<compile_context>
chip_gen: v6e
topology: v6e:2x2x1
jax: 0.10.0
libtpu: 0.0.40
codegen_flags: <defaults>
</compile_context>

<pallas_src>
import functools
import math

import jax
import jax.numpy as jnp
from jax.experimental import pallas as pl
from jax.experimental.pallas import tpu as pltpu


# ----------------------------------------------------------------------------
# helpers
# ----------------------------------------------------------------------------
def _round_up(x, m):
    return (x + m - 1) // m * m


class KeyGen:
    def __init__(self, key):
        self.key = key

    def next(self):
        self.key, sub = jax.random.split(self.key)
        return sub


# ----------------------------------------------------------------------------
# Pallas kernels
# ----------------------------------------------------------------------------
def _mm_kernel(a_ref, b_ref, bias_ref, o_ref, *, pre_act, post_act):
    a = a_ref[...]                                   # f32 (tm, K)
    if pre_act == "lrelu":                           # LeakyReLU(0.2) on conv input
        a = jnp.where(a >= 0, a, 0.2 * a)
    elif pre_act == "relu":
        a = jnp.maximum(a, 0.0)
    out = jnp.dot(a.astype(jnp.bfloat16), b_ref[...],   # bf16 MXU, f32 accumulate
                  preferred_element_type=jnp.float32)
    out = out + bias_ref[...]
    if post_act == "tanh":
        out = jnp.tanh(out)
    o_ref[...] = out


def matmul_bias(a, b, bias, pre_act=None, post_act=None):
    """(M,K)f32 @ (K,N)bf16 + bias(N) with fused pre/post activation."""
    M, K = a.shape
    _, N = b.shape
    Mp8 = _round_up(M, 8)
    tm = min(256, Mp8)                 # 1-2 grid steps at these sizes
    Mp = _round_up(M, tm)
    Np = _round_up(N, 128)
    a_p = jnp.pad(a, ((0, Mp - M), (0, 0)))
    b_p = jnp.pad(b, ((0, 0), (0, Np - N)))
    bias_p = jnp.pad(bias.reshape(1, N).astype(jnp.float32),
                     ((0, 0), (0, Np - N)))
    out = pl.pallas_call(
        functools.partial(_mm_kernel, pre_act=pre_act, post_act=post_act),
        out_shape=jax.ShapeDtypeStruct((Mp, Np), jnp.float32),
        grid=(Mp // tm,),
        in_specs=[
            pl.BlockSpec((tm, K), lambda i: (i, 0)),
            pl.BlockSpec((K, Np), lambda i: (0, 0)),
            pl.BlockSpec((1, Np), lambda i: (0, 0)),
        ],
        out_specs=pl.BlockSpec((tm, Np), lambda i: (i, 0)),
        compiler_params=pltpu.CompilerParams(
            dimension_semantics=("parallel",)),   # v7x: split M across 2 TCs
    )(a_p, b_p, bias_p)
    return out[:M, :N]


def _pool_kernel(xp_ref, o_ref, *, mode, H, W):
    xp = xp_ref[...]                               # (N, H+2, W+2, C)
    acc = None
    for dh in range(3):
        for dw in range(3):
            win = xp[:, dh: dh + H, dw: dw + W, :]
            if acc is None:
                acc = win
            elif mode == "avg":
                acc = acc + win
            else:
                acc = jnp.maximum(acc, win)
    if mode == "avg":
        acc = acc * (1.0 / 9.0)
    o_ref[...] = acc


def pool3x3(x, mode):
    """3x3 pool, stride 1, padding 1 (avg: count_include_pad=True)."""
    N, H, W, C = x.shape
    pad_val = 0.0 if mode == "avg" else -jnp.inf
    xp = jnp.pad(x, ((0, 0), (1, 1), (1, 1), (0, 0)), constant_values=pad_val)
    return pl.pallas_call(
        functools.partial(_pool_kernel, mode=mode, H=H, W=W),
        out_shape=jax.ShapeDtypeStruct((N, H, W, C), x.dtype),
    )(xp)


# ----------------------------------------------------------------------------
# conv lowered to im2col (glue) + Pallas fused matmul
# ----------------------------------------------------------------------------
def conv2d_mm(x, wm, bias, KH, KW, stride=(1, 1), padding=(0, 0),
              pre_act=None, post_act=None):
    """x: NHWC; wm: (KH*KW*Cin, Cout) bf16 (rows ordered kh,kw,ci)."""
    N, H, W, Cin = x.shape
    sh, sw = stride
    ph, pw = padding
    Ho = (H + 2 * ph - KH) // sh + 1
    Wo = (W + 2 * pw - KW) // sw + 1
    xp = jnp.pad(x, ((0, 0), (ph, ph), (pw, pw), (0, 0)))
    cols = []
    for kh in range(KH):
        for kw in range(KW):
            cols.append(xp[:, kh: kh + sh * (Ho - 1) + 1: sh,
                            kw: kw + sw * (Wo - 1) + 1: sw, :])
    patches = cols[0] if len(cols) == 1 else jnp.concatenate(cols, axis=-1)
    a = patches.reshape(N * Ho * Wo, KH * KW * Cin)
    out = matmul_bias(a, wm, bias, pre_act=pre_act, post_act=post_act)
    return out.reshape(N, Ho, Wo, -1)


def run_conv(pp, x, stride=(1, 1), pre_act=None, post_act=None):
    """pp: {'w': (KH,KW,Cin,Cout) bf16, 'b': (Cout,)}.  'same'-style padding."""
    KH, KW, Cin, Cout = pp["w"].shape
    wm = pp["w"].reshape(KH * KW * Cin, Cout)
    padding = ((KH - 1) // 2, (KW - 1) // 2)
    return conv2d_mm(x, wm, pp["b"], KH, KW, stride=stride, padding=padding,
                     pre_act=pre_act, post_act=post_act)


def deconv_block_fwd(pp, x, post_act=None):
    """stride-2 ConvTranspose2d(k=4,p=1) as a single 3x3 conv with 4 parity
    output groups, then interleave.  ReLU on the input is fused in-kernel."""
    N, H, W, Cin = x.shape
    Cout = pp["w"].shape[-1] // 4
    wm = pp["w"].reshape(9 * Cin, 4 * Cout)
    out = conv2d_mm(x, wm, pp["b"], 3, 3, stride=(1, 1), padding=(1, 1),
                    pre_act="relu", post_act=post_act)        # (N,H,W,4*Cout)
    out = out.reshape(N, H, W, 2, 2, Cout)
    out = jnp.transpose(out, (0, 1, 3, 2, 4, 5)).reshape(N, 2 * H, 2 * W, Cout)
    return out


# ----------------------------------------------------------------------------
# raw parameter initialization (deterministic, synthetic, PyTorch-like)
# ----------------------------------------------------------------------------
def conv_params(kg, cin, cout, kh, kw):
    bound = 1.0 / math.sqrt(cin * kh * kw)
    w = jax.random.uniform(kg.next(), (cout, cin, kh, kw), jnp.float32, -bound, bound)
    b = jax.random.uniform(kg.next(), (cout,), jnp.float32, -bound, bound)
    return (w, b)


def deconv_params(kg, cin, cout, kh, kw):
    bound = 1.0 / math.sqrt(cin * kh * kw)
    w = jax.random.uniform(kg.next(), (cin, cout, kh, kw), jnp.float32, -bound, bound)
    b = jax.random.uniform(kg.next(), (cout,), jnp.float32, -bound, bound)
    return (w, b)


def bn_params(C):
    return {
        "gamma": jnp.ones((C,), jnp.float32),
        "beta": jnp.zeros((C,), jnp.float32),
        "mean": jnp.zeros((C,), jnp.float32),
        "var": jnp.ones((C,), jnp.float32),
    }


def convblock_params(kg, cin, cout):
    return {"conv": conv_params(kg, cin, cout, 4, 4), "bn": bn_params(cout)}


def deconvblock_params(kg, cin, cout):
    return {"deconv": deconv_params(kg, cin, cout, 4, 4), "bn": bn_params(cout)}


def inceptionA_params(kg, C):
    return {
        "b1": conv_params(kg, C, C // 4, 1, 1),
        "b2": conv_params(kg, C, C // 4, 1, 1),
        "b3_1": conv_params(kg, C, C // 8, 1, 1),
        "b3_2": conv_params(kg, C // 8, C // 4, 3, 3),
        "b4_1": conv_params(kg, C, C // 16, 1, 1),
        "b4_2": conv_params(kg, C // 16, C // 8, 3, 3),
        "b4_3": conv_params(kg, C // 8, C // 4, 3, 3),
    }


def inceptionB_params(kg, C):
    return {
        "b1": conv_params(kg, C, C // 4, 1, 1),
        "b2": conv_params(kg, C, C // 4, 1, 1),
        "b3_red": conv_params(kg, C, C // 16, 1, 1),
        "b3_1x7": conv_params(kg, C // 16, C // 8, 1, 7),
        "b3_7x1": conv_params(kg, C // 8, C // 4, 7, 1),
        "b4_red": conv_params(kg, C, C // 64, 1, 1),
        "b4_1x7": conv_params(kg, C // 64, C // 32, 1, 7),
        "b4_7x1": conv_params(kg, C // 32, C // 16, 7, 1),
        "b4_1x7_2": conv_params(kg, C // 16, C // 8, 1, 7),
        "b4_7x1_2": conv_params(kg, C // 8, C // 4, 7, 1),
    }


def inceptionC_params(kg, C):
    return {
        "b1": conv_params(kg, C, C // 4, 1, 1),
        "b2": conv_params(kg, C, C // 4, 1, 1),
        "b3_1": conv_params(kg, C, C // 16, 1, 1),
        "b3_2_1x3": conv_params(kg, C // 16, C // 8, 1, 3),
        "b3_3_3x1": conv_params(kg, C // 16, C // 8, 3, 1),
        "b4_1": conv_params(kg, C, C // 64, 1, 1),
        "b4_1x3": conv_params(kg, C // 64, C // 32, 1, 3),
        "b4_3x1": conv_params(kg, C // 32, C // 16, 3, 1),
        "b4_2_1x3": conv_params(kg, C // 16, C // 8, 1, 3),
        "b4_2_3x1": conv_params(kg, C // 16, C // 8, 3, 1),
    }


def reductionA_params(kg, C):
    return {
        "b1_1x1": conv_params(kg, C, C // 8, 1, 1),
        "b1_3x3a": conv_params(kg, C // 8, C // 4, 3, 3),
        "b1_3x3b": conv_params(kg, C // 4, C // 2, 3, 3),
        "b2_3x3": conv_params(kg, C, C // 2, 3, 3),
    }


def reductionB_params(kg, C):
    return {
        "b1_3x3": conv_params(kg, C, C // 2, 3, 3),
        "b2_1x1": conv_params(kg, C, C // 16, 1, 1),
        "b2_1x7": conv_params(kg, C // 16, C // 8, 1, 7),
        "b2_7x1": conv_params(kg, C // 8, C // 4, 7, 1),
        "b2_3x3": conv_params(kg, C // 4, C // 2, 3, 3),
    }


def inceptionV4_params(kg, C):
    return {
        "stem": conv_params(kg, C, C, 1, 1),
        "A": inceptionA_params(kg, C),
        "B": inceptionB_params(kg, C),
        "C": inceptionC_params(kg, C),
        "RA": reductionA_params(kg, C),
        "RB": reductionB_params(kg, C),
    }


def generator_params(kg, in_ch, out_ch, ngf):
    return {
        "inc": inceptionV4_params(kg, ngf * 4),
        "en1": convblock_params(kg, in_ch, ngf),
        "en2": convblock_params(kg, ngf, ngf * 2),
        "en3": convblock_params(kg, ngf * 2, ngf * 4),
        "en4": convblock_params(kg, ngf * 4, ngf * 8),
        "de1": deconvblock_params(kg, ngf * 8, ngf * 4),
        "de2": deconvblock_params(kg, ngf * 8, ngf * 2),
        "de3": deconvblock_params(kg, ngf * 4, ngf),
        "de4": deconvblock_params(kg, ngf * 2, out_ch),
    }


# ----------------------------------------------------------------------------
# parameter preparation: BN fold, deconv parity merge, Inception branch merge
# ----------------------------------------------------------------------------
_BN_EPS = 1e-5


def prep_plain(w, b):
    """PyTorch conv weight (Cout,Cin,KH,KW) -> {'w': (KH,KW,Cin,Cout) bf16, 'b'}."""
    return {"w": jnp.transpose(w, (2, 3, 1, 0)).astype(jnp.bfloat16), "b": b}


def prep_conv(w, b, bn=None):
    """Fold eval-mode BN into a Conv2d's weight/bias, then prep."""
    if bn is not None:
        s = bn["gamma"] / jnp.sqrt(bn["var"] + _BN_EPS)
        t = bn["beta"] - bn["mean"] * s
        w = w * s[:, None, None, None]
        b = b * s + t
    return prep_plain(w, b)


def prep_deconv(w, b, bn=None):
    """ConvTranspose2d(k=4,s=2,p=1) weight (Cin,Cout,4,4) -> merged 3x3 conv
    producing 4 parity output groups; BN folded."""
    Cin, Cout = w.shape[0], w.shape[1]
    if bn is not None:
        s = bn["gamma"] / jnp.sqrt(bn["var"] + _BN_EPS)
        t = bn["beta"] - bn["mean"] * s
        w = w * s[None, :, None, None]
        b = b * s + t
    w_eq = jnp.flip(w, axis=(2, 3))   # conv-equivalent taps: w_eq[..,a,b]=w[..,3-a,3-b]
    # (output parity, 3x3 window offset) -> tap index of w_eq
    tap = {(0, 0): 0, (0, 1): 2, (1, 1): 1, (1, 2): 3}
    W = jnp.zeros((3, 3, Cin, 2, 2, Cout), jnp.float32)
    for (r, dh), a in tap.items():
        for (s_, dw), bb in tap.items():
            W = W.at[dh, dw, :, r, s_, :].set(w_eq[:, :, a, bb])
    return {"w": W.reshape(3, 3, Cin, 4 * Cout).astype(jnp.bfloat16),
            "b": jnp.broadcast_to(b, (2, 2, Cout)).reshape(4 * Cout)}


def _embed_center(w, KH=3, KW=3):
    """Embed a (Cout,Cin,kh,kw) kernel at the center of a KHxKW kernel."""
    Cout, Cin, kh, kw = w.shape
    oh, ow = (KH - kh) // 2, (KW - kw) // 2
    z = jnp.zeros((Cout, Cin, KH, KW), w.dtype)
    return z.at[:, :, oh: oh + kh, ow: ow + kw].set(w)


def _avgpool_1x1_as_3x3(w1x1):
    """avg_pool2d(3,1,1) followed by 1x1 conv == 3x3 conv with weights w/9."""
    Cout, Cin = w1x1.shape[0], w1x1.shape[1]
    return jnp.broadcast_to(w1x1 / 9.0, (Cout, Cin, 3, 3))


def _merge_head(one_by_ones, avg_branch):
    """Merge 1x1 convs + (avgpool->1x1) branch sharing the same input into one
    3x3 conv; column order = listed order then avg branch."""
    ws = [_embed_center(w) for (w, _) in one_by_ones]
    bs = [b for (_, b) in one_by_ones]
    wa, ba = avg_branch
    ws.append(_avgpool_1x1_as_3x3(wa))
    bs.append(ba)
    return prep_plain(jnp.concatenate(ws, axis=0), jnp.concatenate(bs, axis=0))


def _merge_pair_3x3(c1, c2):
    """Merge two small-kernel convs (embeddable in 3x3) on the same input."""
    w = jnp.concatenate([_embed_center(c1[0]), _embed_center(c2[0])], axis=0)
    b = jnp.concatenate([c1[1], c2[1]])
    return prep_plain(w, b)


def prep_inceptionA(p):
    return {
        "head": _merge_head([p["b2"], p["b3_1"], p["b4_1"]], p["b1"]),
        "b3_2": prep_plain(*p["b3_2"]),
        "b4_2": prep_plain(*p["b4_2"]),
        "b4_3": prep_plain(*p["b4_3"]),
    }


def prep_inceptionB(p):
    return {
        "head": _merge_head([p["b1"], p["b3_red"], p["b4_red"]], p["b2"]),
        "b3_1x7": prep_plain(*p["b3_1x7"]),
        "b3_7x1": prep_plain(*p["b3_7x1"]),
        "b4_1x7": prep_plain(*p["b4_1x7"]),
        "b4_7x1": prep_plain(*p["b4_7x1"]),
        "b4_1x7_2": prep_plain(*p["b4_1x7_2"]),
        "b4_7x1_2": prep_plain(*p["b4_7x1_2"]),
    }


def prep_inceptionC(p):
    return {
        "head": _merge_head([p["b2"], p["b3_1"], p["b4_1"]], p["b1"]),
        "b3_tail": _merge_pair_3x3(p["b3_2_1x3"], p["b3_3_3x1"]),
        "b4_1x3": prep_plain(*p["b4_1x3"]),
        "b4_3x1": prep_plain(*p["b4_3x1"]),
        "b4_tail": _merge_pair_3x3(p["b4_2_1x3"], p["b4_2_3x1"]),
    }


def prep_inceptionV4(p):
    return {
        "stem": prep_plain(*p["stem"]),
        "A": prep_inceptionA(p["A"]),
        "B": prep_inceptionB(p["B"]),
        "C": prep_inceptionC(p["C"]),
        "RA": {k: prep_plain(*v) for k, v in p["RA"].items()},
        "RB": {k: prep_plain(*v) for k, v in p["RB"].items()},
    }


def prepare_params(raw):
    return {
        "en1": prep_conv(*raw["en1"]["conv"], bn=None),
        "en2": prep_conv(*raw["en2"]["conv"], bn=raw["en2"]["bn"]),
        "en3": prep_conv(*raw["en3"]["conv"], bn=raw["en3"]["bn"]),
        "en4": prep_conv(*raw["en4"]["conv"], bn=None),
        "de1": prep_deconv(*raw["de1"]["deconv"], bn=raw["de1"]["bn"]),
        "de2": prep_deconv(*raw["de2"]["deconv"], bn=raw["de2"]["bn"]),
        "de3": prep_deconv(*raw["de3"]["deconv"], bn=raw["de3"]["bn"]),
        "de4": prep_deconv(*raw["de4"]["deconv"], bn=None),
        "inc": prep_inceptionV4(raw["inc"]),
    }


# ----------------------------------------------------------------------------
# forward passes (NHWC)
# ----------------------------------------------------------------------------
def inceptionA_fwd(p, x, C):
    c4, c8, c16 = C // 4, C // 8, C // 16
    head = run_conv(p["head"], x)           # [b2 | b3_1 | b4_1 | avgpool->b1]
    b2 = head[..., :c4]
    b3_1 = head[..., c4: c4 + c8]
    b4_1 = head[..., c4 + c8: c4 + c8 + c16]
    b1 = head[..., c4 + c8 + c16:]
    branch3 = run_conv(p["b3_2"], b3_1)
    b4_2 = run_conv(p["b4_2"], b4_1)
    branch4 = run_conv(p["b4_3"], b4_2)
    return jnp.concatenate([b2, branch3, branch4, b1], axis=-1)


def inceptionB_fwd(p, x, C):
    c4, c16, c64 = C // 4, C // 16, C // 64
    head = run_conv(p["head"], x)           # [b1 | b3_red | b4_red | avgpool->b2]
    branch1 = head[..., :c4]
    b3 = head[..., c4: c4 + c16]
    b4 = head[..., c4 + c16: c4 + c16 + c64]
    branch2 = head[..., c4 + c16 + c64:]
    b3 = run_conv(p["b3_1x7"], b3)
    branch3 = run_conv(p["b3_7x1"], b3)
    b4 = run_conv(p["b4_1x7"], b4)
    b4 = run_conv(p["b4_7x1"], b4)
    b4 = run_conv(p["b4_1x7_2"], b4)
    branch4 = run_conv(p["b4_7x1_2"], b4)
    return jnp.concatenate([branch1, branch2, branch3, branch4], axis=-1)


def inceptionC_fwd(p, x, C):
    c4, c16, c64 = C // 4, C // 16, C // 64
    head = run_conv(p["head"], x)           # [b2 | b3_1 | b4_1 | avgpool->b1]
    branch2 = head[..., :c4]
    b3_1 = head[..., c4: c4 + c16]
    b4_1 = head[..., c4 + c16: c4 + c16 + c64]
    branch1 = head[..., c4 + c16 + c64:]
    branch3 = run_conv(p["b3_tail"], b3_1)          # cat(1x3, 3x1) merged
    b4 = run_conv(p["b4_1x3"], b4_1)
    b4 = run_conv(p["b4_3x1"], b4)
    branch4 = run_conv(p["b4_tail"], b4)            # cat(1x3, 3x1) merged
    return jnp.concatenate([branch1, branch2, branch3, branch4], axis=-1)


def reductionA_fwd(p, x):
    b1 = run_conv(p["b1_1x1"], x)
    b1 = run_conv(p["b1_3x3a"], b1)
    branch1 = run_conv(p["b1_3x3b"], b1)
    branch2 = run_conv(p["b2_3x3"], pool3x3(x, "max"))
    return jnp.concatenate([branch2, branch1], axis=-1)


def reductionB_fwd(p, x):
    branch1 = run_conv(p["b1_3x3"], pool3x3(x, "max"))
    b2 = run_conv(p["b2_1x1"], x)
    b2 = run_conv(p["b2_1x7"], b2)
    b2 = run_conv(p["b2_7x1"], b2)
    branch2 = run_conv(p["b2_3x3"], b2)
    return jnp.concatenate([branch1, branch2], axis=-1)


def inceptionV4_fwd(p, x):
    C = x.shape[-1]
    x = run_conv(p["stem"], x)
    x = inceptionA_fwd(p["A"], x, C)
    x = inceptionB_fwd(p["B"], x, C)
    x = inceptionC_fwd(p["C"], x, C)
    x = reductionA_fwd(p["RA"], x)
    x = inceptionB_fwd(p["B"], x, C)    # shared weights as in the reference
    x = inceptionC_fwd(p["C"], x, C)
    x = reductionB_fwd(p["RB"], x)
    x = inceptionC_fwd(p["C"], x, C)
    x = pool3x3(x, "avg")
    # Dropout(0.2): identity in inference mode
    return x


def generator_fwd(pp, x):
    """x: NHWC.  BN folded into weights; activations fused into the matmuls."""
    en1 = run_conv(pp["en1"], x, stride=(2, 2))                     # no act, no BN
    en2 = run_conv(pp["en2"], en1, stride=(2, 2), pre_act="lrelu")  # BN folded
    en3 = run_conv(pp["en3"], en2, stride=(2, 2), pre_act="lrelu")
    en4 = run_conv(pp["en4"], en3, stride=(2, 2), pre_act="lrelu")  # no BN
    de1 = deconv_block_fwd(pp["de1"], en4)                          # relu fused, BN folded
    de1 = inceptionV4_fwd(pp["inc"], de1)
    de2 = deconv_block_fwd(pp["de2"], jnp.concatenate([de1, en3], axis=-1))
    de3 = deconv_block_fwd(pp["de3"], jnp.concatenate([de2, en2], axis=-1))
    de4 = deconv_block_fwd(pp["de4"], jnp.concatenate([de3, en1], axis=-1),
                           post_act="tanh")                          # tanh fused
    return de4


# ----------------------------------------------------------------------------
if __name__ == "__main__":
    kg = KeyGen(jax.random.PRNGKey(0))
    in_ch, out_ch, ngf = 2, 1, 16          # ngf*4 = 64 bottleneck channels
    N, H, W = 2, 32, 32                    # H,W must be divisible by 16

    raw_params = generator_params(kg, in_ch, out_ch, ngf)
    prepared = prepare_params(raw_params)  # one-time BN fold / weight merge
    x_nchw = jax.random.normal(kg.next(), (N, in_ch, H, W), jnp.float32)

    x_nhwc = jnp.transpose(x_nchw, (0, 2, 3, 1))        # NCHW -> NHWC
    fwd = jax.jit(generator_fwd)
    out_nhwc = fwd(prepared, x_nhwc)
    out_nchw = jnp.transpose(out_nhwc, (0, 3, 1, 2))    # back to NCHW
    jax.block_until_ready(out_nchw)

    assert out_nchw.shape == (N, out_ch, H, W), out_nchw.shape
    assert bool(jnp.all(jnp.isfinite(out_nchw)))
    assert bool(jnp.all(jnp.abs(out_nchw) <= 1.0))      # tanh output range
    print("KERNEL_OK")
</pallas_src>

<mosaic_0001>
module attributes {stable_mosaic.version = 11 : i64} {
  func.func @_mm_kernel(%arg0: i32, %arg1: memref<256x32xf32, #tpu.memory_space<vmem>>, %arg2: memref<32x128xbf16, #tpu.memory_space<vmem>>, %arg3: memref<1x128xf32, #tpu.memory_space<vmem>>, %arg4: memref<256x128xf32, #tpu.memory_space<vmem>>) attributes {dimension_semantics = [#tpu.dimension_semantics<parallel>], iteration_bounds = array<i64: 2>, scalar_prefetch = 0 : i64, scratch_operands = 0 : i64, tpu.core_type = #tpu.core_type<tc>, window_params = [{transform_indices = @transform_0, window_bounds = array<i64: 256, 32>}, {pipeline_mode = #tpu.pipeline_mode<synchronous>, transform_indices = @transform_1, window_bounds = array<i64: 32, 128>}, {pipeline_mode = #tpu.pipeline_mode<synchronous>, transform_indices = @transform_2, window_bounds = array<i64: 1, 128>}, {transform_indices = @transform_3, window_bounds = array<i64: 256, 128>}]} {
    %c0 = arith.constant 0 : index
    %c0_0 = arith.constant 0 : index
    %0 = vector.load %arg1[%c0, %c0_0] : memref<256x32xf32, #tpu.memory_space<vmem>>, vector<256x32xf32>
    %1 = arith.truncf %0 : vector<256x32xf32> to vector<256x32xbf16>
    %c0_1 = arith.constant 0 : index
    %c0_2 = arith.constant 0 : index
    %2 = vector.load %arg2[%c0_1, %c0_2] : memref<32x128xbf16, #tpu.memory_space<vmem>>, vector<32x128xbf16>
    %cst = arith.constant dense<0.000000e+00> : vector<256x128xf32>
    %3 = tpu.matmul %1, %2, %cst {dimension_numbers = #tpu.dot_dimension_numbers<[1], [0], [0], [1], [0, 0, 1, 1], [], []>} : vector<256x32xbf16>, vector<32x128xbf16>, vector<256x128xf32> -> vector<256x128xf32>
    %c0_3 = arith.constant 0 : index
    %c0_4 = arith.constant 0 : index
    %4 = vector.load %arg3[%c0_3, %c0_4] : memref<1x128xf32, #tpu.memory_space<vmem>>, vector<1x128xf32>
    %5 = vector.broadcast %4 : vector<1x128xf32> to vector<256x128xf32>
    %6 = arith.addf %3, %5 : vector<256x128xf32>
    %c0_5 = arith.constant 0 : index
    %c0_6 = arith.constant 0 : index
    %7 = vector.load %arg4[%c0_5, %c0_6] : memref<256x128xf32, #tpu.memory_space<vmem>>, vector<256x128xf32>
    tpu.vector_store %arg4[%c0_5, %c0_6], %6 {strides = array<i32>} : memref<256x128xf32, #tpu.memory_space<vmem>>, vector<256x128xf32>,
    return
  }
  func.func @transform_0(%arg0: i32) -> (i32, i32) {
    %c0_i32 = arith.constant 0 : i32
    %c0_i32_0 = arith.constant 0 : i32
    return %arg0, %c0_i32 : i32, i32
  }
  func.func @transform_1(%arg0: i32) -> (i32, i32) {
    %c0_i32 = arith.constant 0 : i32
    %c0_i32_0 = arith.constant 0 : i32
    %c0_i32_1 = arith.constant 0 : i32
    return %c0_i32, %c0_i32_0 : i32, i32
  }
  func.func @transform_2(%arg0: i32) -> (i32, i32) {
    %c0_i32 = arith.constant 0 : i32
    %c0_i32_0 = arith.constant 0 : i32
    %c0_i32_1 = arith.constant 0 : i32
    return %c0_i32, %c0_i32_0 : i32, i32
  }
  func.func @transform_3(%arg0: i32) -> (i32, i32) {
    %c0_i32 = arith.constant 0 : i32
    %c0_i32_0 = arith.constant 0 : i32
    return %arg0, %c0_i32 : i32, i32
  }
}

module attributes {stable_mosaic.version = 11 : i64} {
  func.func @_mm_kernel(%arg0: i32, %arg1: memref<128x256xf32, #tpu.memory_space<vmem>>, %arg2: memref<256x128xbf16, #tpu.memory_space<vmem>>, %arg3: memref<1x128xf32, #tpu.memory_space<vmem>>, %arg4: memref<128x128xf32, #tpu.memory_space<vmem>>) attributes {dimension_semantics = [#tpu.dimension_semantics<parallel>], iteration_bounds = array<i64: 1>, scalar_prefetch = 0 : i64, scratch_operands = 0 : i64, tpu.core_type = #tpu.core_type<tc>, window_params = [{transform_indices = @transform_0, window_bounds = array<i64: 128, 256>}, {pipeline_mode = #tpu.pipeline_mode<synchronous>, transform_indices = @transform_1, window_bounds = array<i64: 256, 128>}, {pipeline_mode = #tpu.pipeline_mode<synchronous>, transform_indices = @transform_2, window_bounds = array<i64: 1, 128>}, {transform_indices = @transform_3, window_bounds = array<i64: 128, 128>}]} {
    %c0 = arith.constant 0 : index
    %c0_0 = arith.constant 0 : index
    %0 = vector.load %arg1[%c0, %c0_0] : memref<128x256xf32, #tpu.memory_space<vmem>>, vector<128x256xf32>
    %cst = arith.constant 0.000000e+00 : f32
    %1 = vector.broadcast %cst : f32 to vector<128x256xf32>
    %2 = arith.cmpf oge, %0, %1 : vector<128x256xf32>
    %cst_1 = arith.constant 2.000000e-01 : f32
    %3 = vector.broadcast %cst_1 : f32 to vector<128x256xf32>
    %4 = arith.mulf %3, %0 : vector<128x256xf32>
    %5 = arith.select %2, %0, %4 : vector<128x256xi1>, vector<128x256xf32>
    %6 = arith.truncf %5 : vector<128x256xf32> to vector<128x256xbf16>
    %c0_2 = arith.constant 0 : index
    %c0_3 = arith.constant 0 : index
    %7 = vector.load %arg2[%c0_2, %c0_3] : memref<256x128xbf16, #tpu.memory_space<vmem>>, vector<256x128xbf16>
    %cst_4 = arith.constant dense<0.000000e+00> : vector<128x128xf32>
    %8 = tpu.matmul %6, %7, %cst_4 {dimension_numbers = #tpu.dot_dimension_numbers<[1], [0], [0], [1], [0, 0, 1, 1], [], []>} : vector<128x256xbf16>, vector<256x128xbf16>, vector<128x128xf32> -> vector<128x128xf32>
    %c0_5 = arith.constant 0 : index
    %c0_6 = arith.constant 0 : index
    %9 = vector.load %arg3[%c0_5, %c0_6] : memref<1x128xf32, #tpu.memory_space<vmem>>, vector<1x128xf32>
    %10 = vector.broadcast %9 : vector<1x128xf32> to vector<128x128xf32>
    %11 = arith.addf %8, %10 : vector<128x128xf32>
    %c0_7 = arith.constant 0 : index
    %c0_8 = arith.constant 0 : index
    %12 = vector.load %arg4[%c0_7, %c0_8] : memref<128x128xf32, #tpu.memory_space<vmem>>, vector<128x128xf32>
    tpu.vector_store %arg4[%c0_7, %c0_8], %11 {strides = array<i32>} : memref<128x128xf32, #tpu.memory_space<vmem>>, vector<128x128xf32>,
    return
  }
  func.func @transform_0(%arg0: i32) -> (i32, i32) {
    %c0_i32 = arith.constant 0 : i32
    %c0_i32_0 = arith.constant 0 : i32
    return %arg0, %c0_i32 : i32, i32
  }
  func.func @transform_1(%arg0: i32) -> (i32, i32) {
    %c0_i32 = arith.constant 0 : i32
    %c0_i32_0 = arith.constant 0 : i32
    %c0_i32_1 = arith.constant 0 : i32
    return %c0_i32, %c0_i32_0 : i32, i32
  }
  func.func @transform_2(%arg0: i32) -> (i32, i32) {
    %c0_i32 = arith.constant 0 : i32
    %c0_i32_0 = arith.constant 0 : i32
    %c0_i32_1 = arith.constant 0 : i32
    return %c0_i32, %c0_i32_0 : i32, i32
  }
  func.func @transform_3(%arg0: i32) -> (i32, i32) {
    %c0_i32 = arith.constant 0 : i32
    %c0_i32_0 = arith.constant 0 : i32
    return %arg0, %c0_i32 : i32, i32
  }
}

module attributes {stable_mosaic.version = 11 : i64} {
  func.func @_mm_kernel(%arg0: i32, %arg1: memref<32x512xf32, #tpu.memory_space<vmem>>, %arg2: memref<512x128xbf16, #tpu.memory_space<vmem>>, %arg3: memref<1x128xf32, #tpu.memory_space<vmem>>, %arg4: memref<32x128xf32, #tpu.memory_space<vmem>>) attributes {dimension_semantics = [#tpu.dimension_semantics<parallel>], iteration_bounds = array<i64: 1>, scalar_prefetch = 0 : i64, scratch_operands = 0 : i64, tpu.core_type = #tpu.core_type<tc>, window_params = [{transform_indices = @transform_0, window_bounds = array<i64: 32, 512>}, {pipeline_mode = #tpu.pipeline_mode<synchronous>, transform_indices = @transform_1, window_bounds = array<i64: 512, 128>}, {pipeline_mode = #tpu.pipeline_mode<synchronous>, transform_indices = @transform_2, window_bounds = array<i64: 1, 128>}, {transform_indices = @transform_3, window_bounds = array<i64: 32, 128>}]} {
    %c0 = arith.constant 0 : index
    %c0_0 = arith.constant 0 : index
    %0 = vector.load %arg1[%c0, %c0_0] : memref<32x512xf32, #tpu.memory_space<vmem>>, vector<32x512xf32>
    %cst = arith.constant 0.000000e+00 : f32
    %1 = vector.broadcast %cst : f32 to vector<32x512xf32>
    %2 = arith.cmpf oge, %0, %1 : vector<32x512xf32>
    %cst_1 = arith.constant 2.000000e-01 : f32
    %3 = vector.broadcast %cst_1 : f32 to vector<32x512xf32>
    %4 = arith.mulf %3, %0 : vector<32x512xf32>
    %5 = arith.select %2, %0, %4 : vector<32x512xi1>, vector<32x512xf32>
    %6 = arith.truncf %5 : vector<32x512xf32> to vector<32x512xbf16>
    %c0_2 = arith.constant 0 : index
    %c0_3 = arith.constant 0 : index
    %7 = vector.load %arg2[%c0_2, %c0_3] : memref<512x128xbf16, #tpu.memory_space<vmem>>, vector<512x128xbf16>
    %cst_4 = arith.constant dense<0.000000e+00> : vector<32x128xf32>
    %8 = tpu.matmul %6, %7, %cst_4 {dimension_numbers = #tpu.dot_dimension_numbers<[1], [0], [0], [1], [0, 0, 1, 1], [], []>} : vector<32x512xbf16>, vector<512x128xbf16>, vector<32x128xf32> -> vector<32x128xf32>
    %c0_5 = arith.constant 0 : index
    %c0_6 = arith.constant 0 : index
    %9 = vector.load %arg3[%c0_5, %c0_6] : memref<1x128xf32, #tpu.memory_space<vmem>>, vector<1x128xf32>
    %10 = vector.broadcast %9 : vector<1x128xf32> to vector<32x128xf32>
    %11 = arith.addf %8, %10 : vector<32x128xf32>
    %c0_7 = arith.constant 0 : index
    %c0_8 = arith.constant 0 : index
    %12 = vector.load %arg4[%c0_7, %c0_8] : memref<32x128xf32, #tpu.memory_space<vmem>>, vector<32x128xf32>
    tpu.vector_store %arg4[%c0_7, %c0_8], %11 {strides = array<i32>} : memref<32x128xf32, #tpu.memory_space<vmem>>, vector<32x128xf32>,
    return
  }
  func.func @transform_0(%arg0: i32) -> (i32, i32) {
    %c0_i32 = arith.constant 0 : i32
    %c0_i32_0 = arith.constant 0 : i32
    return %arg0, %c0_i32 : i32, i32
  }
  func.func @transform_1(%arg0: i32) -> (i32, i32) {
    %c0_i32 = arith.constant 0 : i32
    %c0_i32_0 = arith.constant 0 : i32
    %c0_i32_1 = arith.constant 0 : i32
    return %c0_i32, %c0_i32_0 : i32, i32
  }
  func.func @transform_2(%arg0: i32) -> (i32, i32) {
    %c0_i32 = arith.constant 0 : i32
    %c0_i32_0 = arith.constant 0 : i32
    %c0_i32_1 = arith.constant 0 : i32
    return %c0_i32, %c0_i32_0 : i32, i32
  }
  func.func @transform_3(%arg0: i32) -> (i32, i32) {
    %c0_i32 = arith.constant 0 : i32
    %c0_i32_0 = arith.constant 0 : i32
    return %arg0, %c0_i32 : i32, i32
  }
}

module attributes {stable_mosaic.version = 11 : i64} {
  func.func @_mm_kernel(%arg0: i32, %arg1: memref<8x1024xf32, #tpu.memory_space<vmem>>, %arg2: memref<1024x128xbf16, #tpu.memory_space<vmem>>, %arg3: memref<1x128xf32, #tpu.memory_space<vmem>>, %arg4: memref<8x128xf32, #tpu.memory_space<vmem>>) attributes {dimension_semantics = [#tpu.dimension_semantics<parallel>], iteration_bounds = array<i64: 1>, scalar_prefetch = 0 : i64, scratch_operands = 0 : i64, tpu.core_type = #tpu.core_type<tc>, window_params = [{transform_indices = @transform_0, window_bounds = array<i64: 8, 1024>}, {pipeline_mode = #tpu.pipeline_mode<synchronous>, transform_indices = @transform_1, window_bounds = array<i64: 1024, 128>}, {pipeline_mode = #tpu.pipeline_mode<synchronous>, transform_indices = @transform_2, window_bounds = array<i64: 1, 128>}, {transform_indices = @transform_3, window_bounds = array<i64: 8, 128>}]} {
    %c0 = arith.constant 0 : index
    %c0_0 = arith.constant 0 : index
    %0 = vector.load %arg1[%c0, %c0_0] : memref<8x1024xf32, #tpu.memory_space<vmem>>, vector<8x1024xf32>
    %cst = arith.constant 0.000000e+00 : f32
    %1 = vector.broadcast %cst : f32 to vector<8x1024xf32>
    %2 = arith.cmpf oge, %0, %1 : vector<8x1024xf32>
    %cst_1 = arith.constant 2.000000e-01 : f32
    %3 = vector.broadcast %cst_1 : f32 to vector<8x1024xf32>
    %4 = arith.mulf %3, %0 : vector<8x1024xf32>
    %5 = arith.select %2, %0, %4 : vector<8x1024xi1>, vector<8x1024xf32>
    %6 = arith.truncf %5 : vector<8x1024xf32> to vector<8x1024xbf16>
    %c0_2 = arith.constant 0 : index
    %c0_3 = arith.constant 0 : index
    %7 = vector.load %arg2[%c0_2, %c0_3] : memref<1024x128xbf16, #tpu.memory_space<vmem>>, vector<1024x128xbf16>
    %cst_4 = arith.constant dense<0.000000e+00> : vector<8x128xf32>
    %8 = tpu.matmul %6, %7, %cst_4 {dimension_numbers = #tpu.dot_dimension_numbers<[1], [0], [0], [1], [0, 0, 1, 1], [], []>} : vector<8x1024xbf16>, vector<1024x128xbf16>, vector<8x128xf32> -> vector<8x128xf32>
    %c0_5 = arith.constant 0 : index
    %c0_6 = arith.constant 0 : index
    %9 = vector.load %arg3[%c0_5, %c0_6] : memref<1x128xf32, #tpu.memory_space<vmem>>, vector<1x128xf32>
    %10 = vector.broadcast %9 : vector<1x128xf32> to vector<8x128xf32>
    %11 = arith.addf %8, %10 : vector<8x128xf32>
    %c0_7 = arith.constant 0 : index
    %c0_8 = arith.constant 0 : index
    %12 = vector.load %arg4[%c0_7, %c0_8] : memref<8x128xf32, #tpu.memory_space<vmem>>, vector<8x128xf32>
    tpu.vector_store %arg4[%c0_7, %c0_8], %11 {strides = array<i32>} : memref<8x128xf32, #tpu.memory_space<vmem>>, vector<8x128xf32>,
    return
  }
  func.func @transform_0(%arg0: i32) -> (i32, i32) {
    %c0_i32 = arith.constant 0 : i32
    %c0_i32_0 = arith.constant 0 : i32
    return %arg0, %c0_i32 : i32, i32
  }
  func.func @transform_1(%arg0: i32) -> (i32, i32) {
    %c0_i32 = arith.constant 0 : i32
    %c0_i32_0 = arith.constant 0 : i32
    %c0_i32_1 = arith.constant 0 : i32
    return %c0_i32, %c0_i32_0 : i32, i32
  }
  func.func @transform_2(%arg0: i32) -> (i32, i32) {
    %c0_i32 = arith.constant 0 : i32
    %c0_i32_0 = arith.constant 0 : i32
    %c0_i32_1 = arith.constant 0 : i32
    return %c0_i32, %c0_i32_0 : i32, i32
  }
  func.func @transform_3(%arg0: i32) -> (i32, i32) {
    %c0_i32 = arith.constant 0 : i32
    %c0_i32_0 = arith.constant 0 : i32
    return %arg0, %c0_i32 : i32, i32
  }
}

module attributes {stable_mosaic.version = 11 : i64} {
  func.func @_mm_kernel(%arg0: i32, %arg1: memref<32x64xf32, #tpu.memory_space<vmem>>, %arg2: memref<64x128xbf16, #tpu.memory_space<vmem>>, %arg3: memref<1x128xf32, #tpu.memory_space<vmem>>, %arg4: memref<32x128xf32, #tpu.memory_space<vmem>>) attributes {dimension_semantics = [#tpu.dimension_semantics<parallel>], iteration_bounds = array<i64: 1>, scalar_prefetch = 0 : i64, scratch_operands = 0 : i64, tpu.core_type = #tpu.core_type<tc>, window_params = [{transform_indices = @transform_0, window_bounds = array<i64: 32, 64>}, {pipeline_mode = #tpu.pipeline_mode<synchronous>, transform_indices = @transform_1, window_bounds = array<i64: 64, 128>}, {pipeline_mode = #tpu.pipeline_mode<synchronous>, transform_indices = @transform_2, window_bounds = array<i64: 1, 128>}, {transform_indices = @transform_3, window_bounds = array<i64: 32, 128>}]} {
    %c0 = arith.constant 0 : index
    %c0_0 = arith.constant 0 : index
    %0 = vector.load %arg1[%c0, %c0_0] : memref<32x64xf32, #tpu.memory_space<vmem>>, vector<32x64xf32>
    %1 = arith.truncf %0 : vector<32x64xf32> to vector<32x64xbf16>
    %c0_1 = arith.constant 0 : index
    %c0_2 = arith.constant 0 : index
    %2 = vector.load %arg2[%c0_1, %c0_2] : memref<64x128xbf16, #tpu.memory_space<vmem>>, vector<64x128xbf16>
    %cst = arith.constant dense<0.000000e+00> : vector<32x128xf32>
    %3 = tpu.matmul %1, %2, %cst {dimension_numbers = #tpu.dot_dimension_numbers<[1], [0], [0], [1], [0, 0, 1, 1], [], []>} : vector<32x64xbf16>, vector<64x128xbf16>, vector<32x128xf32> -> vector<32x128xf32>
    %c0_3 = arith.constant 0 : index
    %c0_4 = arith.constant 0 : index
    %4 = vector.load %arg3[%c0_3, %c0_4] : memref<1x128xf32, #tpu.memory_space<vmem>>, vector<1x128xf32>
    %5 = vector.broadcast %4 : vector<1x128xf32> to vector<32x128xf32>
    %6 = arith.addf %3, %5 : vector<32x128xf32>
    %c0_5 = arith.constant 0 : index
    %c0_6 = arith.constant 0 : index
    %7 = vector.load %arg4[%c0_5, %c0_6] : memref<32x128xf32, #tpu.memory_space<vmem>>, vector<32x128xf32>
    tpu.vector_store %arg4[%c0_5, %c0_6], %6 {strides = array<i32>} : memref<32x128xf32, #tpu.memory_space<vmem>>, vector<32x128xf32>,
    return
  }
  func.func @transform_0(%arg0: i32) -> (i32, i32) {
    %c0_i32 = arith.constant 0 : i32
    %c0_i32_0 = arith.constant 0 : i32
    return %arg0, %c0_i32 : i32, i32
  }
  func.func @transform_1(%arg0: i32) -> (i32, i32) {
    %c0_i32 = arith.constant 0 : i32
    %c0_i32_0 = arith.constant 0 : i32
    %c0_i32_1 = arith.constant 0 : i32
    return %c0_i32, %c0_i32_0 : i32, i32
  }
  func.func @transform_2(%arg0: i32) -> (i32, i32) {
    %c0_i32 = arith.constant 0 : i32
    %c0_i32_0 = arith.constant 0 : i32
    %c0_i32_1 = arith.constant 0 : i32
    return %c0_i32, %c0_i32_0 : i32, i32
  }
  func.func @transform_3(%arg0: i32) -> (i32, i32) {
    %c0_i32 = arith.constant 0 : i32
    %c0_i32_0 = arith.constant 0 : i32
    return %arg0, %c0_i32 : i32, i32
  }
}

module attributes {stable_mosaic.version = 11 : i64} {
  func.func @_mm_kernel(%arg0: i32, %arg1: memref<8x1152xf32, #tpu.memory_space<vmem>>, %arg2: memref<1152x256xbf16, #tpu.memory_space<vmem>>, %arg3: memref<1x256xf32, #tpu.memory_space<vmem>>, %arg4: memref<8x256xf32, #tpu.memory_space<vmem>>) attributes {dimension_semantics = [#tpu.dimension_semantics<parallel>], iteration_bounds = array<i64: 1>, scalar_prefetch = 0 : i64, scratch_operands = 0 : i64, tpu.core_type = #tpu.core_type<tc>, window_params = [{transform_indices = @transform_0, window_bounds = array<i64: 8, 1152>}, {pipeline_mode = #tpu.pipeline_mode<synchronous>, transform_indices = @transform_1, window_bounds = array<i64: 1152, 256>}, {pipeline_mode = #tpu.pipeline_mode<synchronous>, transform_indices = @transform_2, window_bounds = array<i64: 1, 256>}, {transform_indices = @transform_3, window_bounds = array<i64: 8, 256>}]} {
    %c0 = arith.constant 0 : index
    %c0_0 = arith.constant 0 : index
    %0 = vector.load %arg1[%c0, %c0_0] : memref<8x1152xf32, #tpu.memory_space<vmem>>, vector<8x1152xf32>
    %cst = arith.constant 0.000000e+00 : f32
    %1 = vector.broadcast %cst : f32 to vector<8x1152xf32>
    %2 = arith.maximumf %0, %1 : vector<8x1152xf32>
    %3 = arith.truncf %2 : vector<8x1152xf32> to vector<8x1152xbf16>
    %c0_1 = arith.constant 0 : index
    %c0_2 = arith.constant 0 : index
    %4 = vector.load %arg2[%c0_1, %c0_2] : memref<1152x256xbf16, #tpu.memory_space<vmem>>, vector<1152x256xbf16>
    %cst_3 = arith.constant dense<0.000000e+00> : vector<8x256xf32>
    %5 = tpu.matmul %3, %4, %cst_3 {dimension_numbers = #tpu.dot_dimension_numbers<[1], [0], [0], [1], [0, 0, 1, 1], [], []>} : vector<8x1152xbf16>, vector<1152x256xbf16>, vector<8x256xf32> -> vector<8x256xf32>
    %c0_4 = arith.constant 0 : index
    %c0_5 = arith.constant 0 : index
    %6 = vector.load %arg3[%c0_4, %c0_5] : memref<1x256xf32, #tpu.memory_space<vmem>>, vector<1x256xf32>
    %7 = vector.broadcast %6 : vector<1x256xf32> to vector<8x256xf32>
    %8 = arith.addf %5, %7 : vector<8x256xf32>
    %c0_6 = arith.constant 0 : index
    %c0_7 = arith.constant 0 : index
    %9 = vector.load %arg4[%c0_6, %c0_7] : memref<8x256xf32, #tpu.memory_space<vmem>>, vector<8x256xf32>
    tpu.vector_store %arg4[%c0_6, %c0_7], %8 {strides = array<i32>} : memref<8x256xf32, #tpu.memory_space<vmem>>, vector<8x256xf32>,
    return
  }
  func.func @transform_0(%arg0: i32) -> (i32, i32) {
    %c0_i32 = arith.constant 0 : i32
    %c0_i32_0 = arith.constant 0 : i32
    return %arg0, %c0_i32 : i32, i32
  }
  func.func @transform_1(%arg0: i32) -> (i32, i32) {
    %c0_i32 = arith.constant 0 : i32
    %c0_i32_0 = arith.constant 0 : i32
    %c0_i32_1 = arith.constant 0 : i32
    return %c0_i32, %c0_i32_0 : i32, i32
  }
  func.func @transform_2(%arg0: i32) -> (i32, i32) {
    %c0_i32 = arith.constant 0 : i32
    %c0_i32_0 = arith.constant 0 : i32
    %c0_i32_1 = arith.constant 0 : i32
    return %c0_i32, %c0_i32_0 : i32, i32
  }
  func.func @transform_3(%arg0: i32) -> (i32, i32) {
    %c0_i32 = arith.constant 0 : i32
    %c0_i32_0 = arith.constant 0 : i32
    return %arg0, %c0_i32 : i32, i32
  }
}

module attributes {stable_mosaic.version = 11 : i64} {
  func.func @_mm_kernel(%arg0: i32, %arg1: memref<32x576xf32, #tpu.memory_space<vmem>>, %arg2: memref<576x128xbf16, #tpu.memory_space<vmem>>, %arg3: memref<1x128xf32, #tpu.memory_space<vmem>>, %arg4: memref<32x128xf32, #tpu.memory_space<vmem>>) attributes {dimension_semantics = [#tpu.dimension_semantics<parallel>], iteration_bounds = array<i64: 1>, scalar_prefetch = 0 : i64, scratch_operands = 0 : i64, tpu.core_type = #tpu.core_type<tc>, window_params = [{transform_indices = @transform_0, window_bounds = array<i64: 32, 576>}, {pipeline_mode = #tpu.pipeline_mode<synchronous>, transform_indices = @transform_1, window_bounds = array<i64: 576, 128>}, {pipeline_mode = #tpu.pipeline_mode<synchronous>, transform_indices = @transform_2, window_bounds = array<i64: 1, 128>}, {transform_indices = @transform_3, window_bounds = array<i64: 32, 128>}]} {
    %c0 = arith.constant 0 : index
    %c0_0 = arith.constant 0 : index
    %0 = vector.load %arg1[%c0, %c0_0] : memref<32x576xf32, #tpu.memory_space<vmem>>, vector<32x576xf32>
    %1 = arith.truncf %0 : vector<32x576xf32> to vector<32x576xbf16>
    %c0_1 = arith.constant 0 : index
    %c0_2 = arith.constant 0 : index
    %2 = vector.load %arg2[%c0_1, %c0_2] : memref<576x128xbf16, #tpu.memory_space<vmem>>, vector<576x128xbf16>
    %cst = arith.constant dense<0.000000e+00> : vector<32x128xf32>
    %3 = tpu.matmul %1, %2, %cst {dimension_numbers = #tpu.dot_dimension_numbers<[1], [0], [0], [1], [0, 0, 1, 1], [], []>} : vector<32x576xbf16>, vector<576x128xbf16>, vector<32x128xf32> -> vector<32x128xf32>
    %c0_3 = arith.constant 0 : index
    %c0_4 = arith.constant 0 : index
    %4 = vector.load %arg3[%c0_3, %c0_4] : memref<1x128xf32, #tpu.memory_space<vmem>>, vector<1x128xf32>
    %5 = vector.broadcast %4 : vector<1x128xf32> to vector<32x128xf32>
    %6 = arith.addf %3, %5 : vector<32x128xf32>
    %c0_5 = arith.constant 0 : index
    %c0_6 = arith.constant 0 : index
    %7 = vector.load %arg4[%c0_5, %c0_6] : memref<32x128xf32, #tpu.memory_space<vmem>>, vector<32x128xf32>
    tpu.vector_store %arg4[%c0_5, %c0_6], %6 {strides = array<i32>} : memref<32x128xf32, #tpu.memory_space<vmem>>, vector<32x128xf32>,
    return
  }
  func.func @transform_0(%arg0: i32) -> (i32, i32) {
    %c0_i32 = arith.constant 0 : i32
    %c0_i32_0 = arith.constant 0 : i32
    return %arg0, %c0_i32 : i32, i32
  }
  func.func @transform_1(%arg0: i32) -> (i32, i32) {
    %c0_i32 = arith.constant 0 : i32
    %c0_i32_0 = arith.constant 0 : i32
    %c0_i32_1 = arith.constant 0 : i32
    return %c0_i32, %c0_i32_0 : i32, i32
  }
  func.func @transform_2(%arg0: i32) -> (i32, i32) {
    %c0_i32 = arith.constant 0 : i32
    %c0_i32_0 = arith.constant 0 : i32
    %c0_i32_1 = arith.constant 0 : i32
    return %c0_i32, %c0_i32_0 : i32, i32
  }
  func.func @transform_3(%arg0: i32) -> (i32, i32) {
    %c0_i32 = arith.constant 0 : i32
    %c0_i32_0 = arith.constant 0 : i32
    return %arg0, %c0_i32 : i32, i32
  }
}

module attributes {stable_mosaic.version = 11 : i64} {
  func.func @_mm_kernel(%arg0: i32, %arg1: memref<32x72xf32, #tpu.memory_space<vmem>>, %arg2: memref<72x128xbf16, #tpu.memory_space<vmem>>, %arg3: memref<1x128xf32, #tpu.memory_space<vmem>>, %arg4: memref<32x128xf32, #tpu.memory_space<vmem>>) attributes {dimension_semantics = [#tpu.dimension_semantics<parallel>], iteration_bounds = array<i64: 1>, scalar_prefetch = 0 : i64, scratch_operands = 0 : i64, tpu.core_type = #tpu.core_type<tc>, window_params = [{transform_indices = @transform_0, window_bounds = array<i64: 32, 72>}, {pipeline_mode = #tpu.pipeline_mode<synchronous>, transform_indices = @transform_1, window_bounds = array<i64: 72, 128>}, {pipeline_mode = #tpu.pipeline_mode<synchronous>, transform_indices = @transform_2, window_bounds = array<i64: 1, 128>}, {transform_indices = @transform_3, window_bounds = array<i64: 32, 128>}]} {
    %c0 = arith.constant 0 : index
    %c0_0 = arith.constant 0 : index
    %0 = vector.load %arg1[%c0, %c0_0] : memref<32x72xf32, #tpu.memory_space<vmem>>, vector<32x72xf32>
    %1 = arith.truncf %0 : vector<32x72xf32> to vector<32x72xbf16>
    %c0_1 = arith.constant 0 : index
    %c0_2 = arith.constant 0 : index
    %2 = vector.load %arg2[%c0_1, %c0_2] : memref<72x128xbf16, #tpu.memory_space<vmem>>, vector<72x128xbf16>
    %cst = arith.constant dense<0.000000e+00> : vector<32x128xf32>
    %3 = tpu.matmul %1, %2, %cst {dimension_numbers = #tpu.dot_dimension_numbers<[1], [0], [0], [1], [0, 0, 1, 1], [], []>} : vector<32x72xbf16>, vector<72x128xbf16>, vector<32x128xf32> -> vector<32x128xf32>
    %c0_3 = arith.constant 0 : index
    %c0_4 = arith.constant 0 : index
    %4 = vector.load %arg3[%c0_3, %c0_4] : memref<1x128xf32, #tpu.memory_space<vmem>>, vector<1x128xf32>
    %5 = vector.broadcast %4 : vector<1x128xf32> to vector<32x128xf32>
    %6 = arith.addf %3, %5 : vector<32x128xf32>
    %c0_5 = arith.constant 0 : index
    %c0_6 = arith.constant 0 : index
    %7 = vector.load %arg4[%c0_5, %c0_6] : memref<32x128xf32, #tpu.memory_space<vmem>>, vector<32x128xf32>
    tpu.vector_store %arg4[%c0_5, %c0_6], %6 {strides = array<i32>} : memref<32x128xf32, #tpu.memory_space<vmem>>, vector<32x128xf32>,
    return
  }
  func.func @transform_0(%arg0: i32) -> (i32, i32) {
    %c0_i32 = arith.constant 0 : i32
    %c0_i32_0 = arith.constant 0 : i32
    return %arg0, %c0_i32 : i32, i32
  }
  func.func @transform_1(%arg0: i32) -> (i32, i32) {
    %c0_i32 = arith.constant 0 : i32
    %c0_i32_0 = arith.constant 0 : i32
    %c0_i32_1 = arith.constant 0 : i32
    return %c0_i32, %c0_i32_0 : i32, i32
  }
  func.func @transform_2(%arg0: i32) -> (i32, i32) {
    %c0_i32 = arith.constant 0 : i32
    %c0_i32_0 = arith.constant 0 : i32
    %c0_i32_1 = arith.constant 0 : i32
    return %c0_i32, %c0_i32_0 : i32, i32
  }
  func.func @transform_3(%arg0: i32) -> (i32, i32) {
    %c0_i32 = arith.constant 0 : i32
    %c0_i32_0 = arith.constant 0 : i32
    return %arg0, %c0_i32 : i32, i32
  }
}

module attributes {stable_mosaic.version = 11 : i64} {
  func.func @_mm_kernel(%arg0: i32, %arg1: memref<32x36xf32, #tpu.memory_space<vmem>>, %arg2: memref<36x128xbf16, #tpu.memory_space<vmem>>, %arg3: memref<1x128xf32, #tpu.memory_space<vmem>>, %arg4: memref<32x128xf32, #tpu.memory_space<vmem>>) attributes {dimension_semantics = [#tpu.dimension_semantics<parallel>], iteration_bounds = array<i64: 1>, scalar_prefetch = 0 : i64, scratch_operands = 0 : i64, tpu.core_type = #tpu.core_type<tc>, window_params = [{transform_indices = @transform_0, window_bounds = array<i64: 32, 36>}, {pipeline_mode = #tpu.pipeline_mode<synchronous>, transform_indices = @transform_1, window_bounds = array<i64: 36, 128>}, {pipeline_mode = #tpu.pipeline_mode<synchronous>, transform_indices = @transform_2, window_bounds = array<i64: 1, 128>}, {transform_indices = @transform_3, window_bounds = array<i64: 32, 128>}]} {
    %c0 = arith.constant 0 : index
    %c0_0 = arith.constant 0 : index
    %0 = vector.load %arg1[%c0, %c0_0] : memref<32x36xf32, #tpu.memory_space<vmem>>, vector<32x36xf32>
    %1 = arith.truncf %0 : vector<32x36xf32> to vector<32x36xbf16>
    %c0_1 = arith.constant 0 : index
    %c0_2 = arith.constant 0 : index
    %2 = vector.load %arg2[%c0_1, %c0_2] : memref<36x128xbf16, #tpu.memory_space<vmem>>, vector<36x128xbf16>
    %cst = arith.constant dense<0.000000e+00> : vector<32x128xf32>
    %3 = tpu.matmul %1, %2, %cst {dimension_numbers = #tpu.dot_dimension_numbers<[1], [0], [0], [1], [0, 0, 1, 1], [], []>} : vector<32x36xbf16>, vector<36x128xbf16>, vector<32x128xf32> -> vector<32x128xf32>
    %c0_3 = arith.constant 0 : index
    %c0_4 = arith.constant 0 : index
    %4 = vector.load %arg3[%c0_3, %c0_4] : memref<1x128xf32, #tpu.memory_space<vmem>>, vector<1x128xf32>
    %5 = vector.broadcast %4 : vector<1x128xf32> to vector<32x128xf32>
    %6 = arith.addf %3, %5 : vector<32x128xf32>
    %c0_5 = arith.constant 0 : index
    %c0_6 = arith.constant 0 : index
    %7 = vector.load %arg4[%c0_5, %c0_6] : memref<32x128xf32, #tpu.memory_space<vmem>>, vector<32x128xf32>
    tpu.vector_store %arg4[%c0_5, %c0_6], %6 {strides = array<i32>} : memref<32x128xf32, #tpu.memory_space<vmem>>, vector<32x128xf32>,
    return
  }
  func.func @transform_0(%arg0: i32) -> (i32, i32) {
    %c0_i32 = arith.constant 0 : i32
    %c0_i32_0 = arith.constant 0 : i32
    return %arg0, %c0_i32 : i32, i32
  }
  func.func @transform_1(%arg0: i32) -> (i32, i32) {
    %c0_i32 = arith.constant 0 : i32
    %c0_i32_0 = arith.constant 0 : i32
    %c0_i32_1 = arith.constant 0 : i32
    return %c0_i32, %c0_i32_0 : i32, i32
  }
  func.func @transform_2(%arg0: i32) -> (i32, i32) {
    %c0_i32 = arith.constant 0 : i32
    %c0_i32_0 = arith.constant 0 : i32
    %c0_i32_1 = arith.constant 0 : i32
    return %c0_i32, %c0_i32_0 : i32, i32
  }
  func.func @transform_3(%arg0: i32) -> (i32, i32) {
    %c0_i32 = arith.constant 0 : i32
    %c0_i32_0 = arith.constant 0 : i32
    return %arg0, %c0_i32 : i32, i32
  }
}

module attributes {stable_mosaic.version = 11 : i64} {
  func.func @_mm_kernel(%arg0: i32, %arg1: memref<32x28xf32, #tpu.memory_space<vmem>>, %arg2: memref<28x128xbf16, #tpu.memory_space<vmem>>, %arg3: memref<1x128xf32, #tpu.memory_space<vmem>>, %arg4: memref<32x128xf32, #tpu.memory_space<vmem>>) attributes {dimension_semantics = [#tpu.dimension_semantics<parallel>], iteration_bounds = array<i64: 1>, scalar_prefetch = 0 : i64, scratch_operands = 0 : i64, tpu.core_type = #tpu.core_type<tc>, window_params = [{transform_indices = @transform_0, window_bounds = array<i64: 32, 28>}, {pipeline_mode = #tpu.pipeline_mode<synchronous>, transform_indices = @transform_1, window_bounds = array<i64: 28, 128>}, {pipeline_mode = #tpu.pipeline_mode<synchronous>, transform_indices = @transform_2, window_bounds = array<i64: 1, 128>}, {transform_indices = @transform_3, window_bounds = array<i64: 32, 128>}]} {
    %c0 = arith.constant 0 : index
    %c0_0 = arith.constant 0 : index
    %0 = vector.load %arg1[%c0, %c0_0] : memref<32x28xf32, #tpu.memory_space<vmem>>, vector<32x28xf32>
    %1 = arith.truncf %0 : vector<32x28xf32> to vector<32x28xbf16>
    %c0_1 = arith.constant 0 : index
    %c0_2 = arith.constant 0 : index
    %2 = vector.load %arg2[%c0_1, %c0_2] : memref<28x128xbf16, #tpu.memory_space<vmem>>, vector<28x128xbf16>
    %cst = arith.constant dense<0.000000e+00> : vector<32x128xf32>
    %3 = tpu.matmul %1, %2, %cst {dimension_numbers = #tpu.dot_dimension_numbers<[1], [0], [0], [1], [0, 0, 1, 1], [], []>} : vector<32x28xbf16>, vector<28x128xbf16>, vector<32x128xf32> -> vector<32x128xf32>
    %c0_3 = arith.constant 0 : index
    %c0_4 = arith.constant 0 : index
    %4 = vector.load %arg3[%c0_3, %c0_4] : memref<1x128xf32, #tpu.memory_space<vmem>>, vector<1x128xf32>
    %5 = vector.broadcast %4 : vector<1x128xf32> to vector<32x128xf32>
    %6 = arith.addf %3, %5 : vector<32x128xf32>
    %c0_5 = arith.constant 0 : index
    %c0_6 = arith.constant 0 : index
    %7 = vector.load %arg4[%c0_5, %c0_6] : memref<32x128xf32, #tpu.memory_space<vmem>>, vector<32x128xf32>
    tpu.vector_store %arg4[%c0_5, %c0_6], %6 {strides = array<i32>} : memref<32x128xf32, #tpu.memory_space<vmem>>, vector<32x128xf32>,
    return
  }
  func.func @transform_0(%arg0: i32) -> (i32, i32) {
    %c0_i32 = arith.constant 0 : i32
    %c0_i32_0 = arith.constant 0 : i32
    return %arg0, %c0_i32 : i32, i32
  }
  func.func @transform_1(%arg0: i32) -> (i32, i32) {
    %c0_i32 = arith.constant 0 : i32
    %c0_i32_0 = arith.constant 0 : i32
    %c0_i32_1 = arith.constant 0 : i32
    return %c0_i32, %c0_i32_0 : i32, i32
  }
  func.func @transform_2(%arg0: i32) -> (i32, i32) {
    %c0_i32 = arith.constant 0 : i32
    %c0_i32_0 = arith.constant 0 : i32
    %c0_i32_1 = arith.constant 0 : i32
    return %c0_i32, %c0_i32_0 : i32, i32
  }
  func.func @transform_3(%arg0: i32) -> (i32, i32) {
    %c0_i32 = arith.constant 0 : i32
    %c0_i32_0 = arith.constant 0 : i32
    return %arg0, %c0_i32 : i32, i32
  }
}

module attributes {stable_mosaic.version = 11 : i64} {
  func.func @_mm_kernel(%arg0: i32, %arg1: memref<32x56xf32, #tpu.memory_space<vmem>>, %arg2: memref<56x128xbf16, #tpu.memory_space<vmem>>, %arg3: memref<1x128xf32, #tpu.memory_space<vmem>>, %arg4: memref<32x128xf32, #tpu.memory_space<vmem>>) attributes {dimension_semantics = [#tpu.dimension_semantics<parallel>], iteration_bounds = array<i64: 1>, scalar_prefetch = 0 : i64, scratch_operands = 0 : i64, tpu.core_type = #tpu.core_type<tc>, window_params = [{transform_indices = @transform_0, window_bounds = array<i64: 32, 56>}, {pipeline_mode = #tpu.pipeline_mode<synchronous>, transform_indices = @transform_1, window_bounds = array<i64: 56, 128>}, {pipeline_mode = #tpu.pipeline_mode<synchronous>, transform_indices = @transform_2, window_bounds = array<i64: 1, 128>}, {transform_indices = @transform_3, window_bounds = array<i64: 32, 128>}]} {
    %c0 = arith.constant 0 : index
    %c0_0 = arith.constant 0 : index
    %0 = vector.load %arg1[%c0, %c0_0] : memref<32x56xf32, #tpu.memory_space<vmem>>, vector<32x56xf32>
    %1 = arith.truncf %0 : vector<32x56xf32> to vector<32x56xbf16>
    %c0_1 = arith.constant 0 : index
    %c0_2 = arith.constant 0 : index
    %2 = vector.load %arg2[%c0_1, %c0_2] : memref<56x128xbf16, #tpu.memory_space<vmem>>, vector<56x128xbf16>
    %cst = arith.constant dense<0.000000e+00> : vector<32x128xf32>
    %3 = tpu.matmul %1, %2, %cst {dimension_numbers = #tpu.dot_dimension_numbers<[1], [0], [0], [1], [0, 0, 1, 1], [], []>} : vector<32x56xbf16>, vector<56x128xbf16>, vector<32x128xf32> -> vector<32x128xf32>
    %c0_3 = arith.constant 0 : index
    %c0_4 = arith.constant 0 : index
    %4 = vector.load %arg3[%c0_3, %c0_4] : memref<1x128xf32, #tpu.memory_space<vmem>>, vector<1x128xf32>
    %5 = vector.broadcast %4 : vector<1x128xf32> to vector<32x128xf32>
    %6 = arith.addf %3, %5 : vector<32x128xf32>
    %c0_5 = arith.constant 0 : index
    %c0_6 = arith.constant 0 : index
    %7 = vector.load %arg4[%c0_5, %c0_6] : memref<32x128xf32, #tpu.memory_space<vmem>>, vector<32x128xf32>
    tpu.vector_store %arg4[%c0_5, %c0_6], %6 {strides = array<i32>} : memref<32x128xf32, #tpu.memory_space<vmem>>, vector<32x128xf32>,
    return
  }
  func.func @transform_0(%arg0: i32) -> (i32, i32) {
    %c0_i32 = arith.constant 0 : i32
    %c0_i32_0 = arith.constant 0 : i32
    return %arg0, %c0_i32 : i32, i32
  }
  func.func @transform_1(%arg0: i32) -> (i32, i32) {
    %c0_i32 = arith.constant 0 : i32
    %c0_i32_0 = arith.constant 0 : i32
    %c0_i32_1 = arith.constant 0 : i32
    return %c0_i32, %c0_i32_0 : i32, i32
  }
  func.func @transform_2(%arg0: i32) -> (i32, i32) {
    %c0_i32 = arith.constant 0 : i32
    %c0_i32_0 = arith.constant 0 : i32
    %c0_i32_1 = arith.constant 0 : i32
    return %c0_i32, %c0_i32_0 : i32, i32
  }
  func.func @transform_3(%arg0: i32) -> (i32, i32) {
    %c0_i32 = arith.constant 0 : i32
    %c0_i32_0 = arith.constant 0 : i32
    return %arg0, %c0_i32 : i32, i32
  }
}

module attributes {stable_mosaic.version = 11 : i64} {
  func.func @_mm_kernel(%arg0: i32, %arg1: memref<32x7xf32, #tpu.memory_space<vmem>>, %arg2: memref<7x128xbf16, #tpu.memory_space<vmem>>, %arg3: memref<1x128xf32, #tpu.memory_space<vmem>>, %arg4: memref<32x128xf32, #tpu.memory_space<vmem>>) attributes {dimension_semantics = [#tpu.dimension_semantics<parallel>], iteration_bounds = array<i64: 1>, scalar_prefetch = 0 : i64, scratch_operands = 0 : i64, tpu.core_type = #tpu.core_type<tc>, window_params = [{transform_indices = @transform_0, window_bounds = array<i64: 32, 7>}, {pipeline_mode = #tpu.pipeline_mode<synchronous>, transform_indices = @transform_1, window_bounds = array<i64: 7, 128>}, {pipeline_mode = #tpu.pipeline_mode<synchronous>, transform_indices = @transform_2, window_bounds = array<i64: 1, 128>}, {transform_indices = @transform_3, window_bounds = array<i64: 32, 128>}]} {
    %c0 = arith.constant 0 : index
    %c0_0 = arith.constant 0 : index
    %0 = vector.load %arg1[%c0, %c0_0] : memref<32x7xf32, #tpu.memory_space<vmem>>, vector<32x7xf32>
    %1 = arith.truncf %0 : vector<32x7xf32> to vector<32x7xbf16>
    %c0_1 = arith.constant 0 : index
    %c0_2 = arith.constant 0 : index
    %2 = vector.load %arg2[%c0_1, %c0_2] : memref<7x128xbf16, #tpu.memory_space<vmem>>, vector<7x128xbf16>
    %cst = arith.constant dense<0.000000e+00> : vector<32x128xf32>
    %3 = tpu.matmul %1, %2, %cst {dimension_numbers = #tpu.dot_dimension_numbers<[1], [0], [0], [1], [0, 0, 1, 1], [], []>} : vector<32x7xbf16>, vector<7x128xbf16>, vector<32x128xf32> -> vector<32x128xf32>
    %c0_3 = arith.constant 0 : index
    %c0_4 = arith.constant 0 : index
    %4 = vector.load %arg3[%c0_3, %c0_4] : memref<1x128xf32, #tpu.memory_space<vmem>>, vector<1x128xf32>
    %5 = vector.broadcast %4 : vector<1x128xf32> to vector<32x128xf32>
    %6 = arith.addf %3, %5 : vector<32x128xf32>
    %c0_5 = arith.constant 0 : index
    %c0_6 = arith.constant 0 : index
    %7 = vector.load %arg4[%c0_5, %c0_6] : memref<32x128xf32, #tpu.memory_space<vmem>>, vector<32x128xf32>
    tpu.vector_store %arg4[%c0_5, %c0_6], %6 {strides = array<i32>} : memref<32x128xf32, #tpu.memory_space<vmem>>, vector<32x128xf32>,
    return
  }
  func.func @transform_0(%arg0: i32) -> (i32, i32) {
    %c0_i32 = arith.constant 0 : i32
    %c0_i32_0 = arith.constant 0 : i32
    return %arg0, %c0_i32 : i32, i32
  }
  func.func @transform_1(%arg0: i32) -> (i32, i32) {
    %c0_i32 = arith.constant 0 : i32
    %c0_i32_0 = arith.constant 0 : i32
    %c0_i32_1 = arith.constant 0 : i32
    return %c0_i32, %c0_i32_0 : i32, i32
  }
  func.func @transform_2(%arg0: i32) -> (i32, i32) {
    %c0_i32 = arith.constant 0 : i32
    %c0_i32_0 = arith.constant 0 : i32
    %c0_i32_1 = arith.constant 0 : i32
    return %c0_i32, %c0_i32_0 : i32, i32
  }
  func.func @transform_3(%arg0: i32) -> (i32, i32) {
    %c0_i32 = arith.constant 0 : i32
    %c0_i32_0 = arith.constant 0 : i32
    return %arg0, %c0_i32 : i32, i32
  }
}

module attributes {stable_mosaic.version = 11 : i64} {
  func.func @_mm_kernel(%arg0: i32, %arg1: memref<32x14xf32, #tpu.memory_space<vmem>>, %arg2: memref<14x128xbf16, #tpu.memory_space<vmem>>, %arg3: memref<1x128xf32, #tpu.memory_space<vmem>>, %arg4: memref<32x128xf32, #tpu.memory_space<vmem>>) attributes {dimension_semantics = [#tpu.dimension_semantics<parallel>], iteration_bounds = array<i64: 1>, scalar_prefetch = 0 : i64, scratch_operands = 0 : i64, tpu.core_type = #tpu.core_type<tc>, window_params = [{transform_indices = @transform_0, window_bounds = array<i64: 32, 14>}, {pipeline_mode = #tpu.pipeline_mode<synchronous>, transform_indices = @transform_1, window_bounds = array<i64: 14, 128>}, {pipeline_mode = #tpu.pipeline_mode<synchronous>, transform_indices = @transform_2, window_bounds = array<i64: 1, 128>}, {transform_indices = @transform_3, window_bounds = array<i64: 32, 128>}]} {
    %c0 = arith.constant 0 : index
    %c0_0 = arith.constant 0 : index
    %0 = vector.load %arg1[%c0, %c0_0] : memref<32x14xf32, #tpu.memory_space<vmem>>, vector<32x14xf32>
    %1 = arith.truncf %0 : vector<32x14xf32> to vector<32x14xbf16>
    %c0_1 = arith.constant 0 : index
    %c0_2 = arith.constant 0 : index
    %2 = vector.load %arg2[%c0_1, %c0_2] : memref<14x128xbf16, #tpu.memory_space<vmem>>, vector<14x128xbf16>
    %cst = arith.constant dense<0.000000e+00> : vector<32x128xf32>
    %3 = tpu.matmul %1, %2, %cst {dimension_numbers = #tpu.dot_dimension_numbers<[1], [0], [0], [1], [0, 0, 1, 1], [], []>} : vector<32x14xbf16>, vector<14x128xbf16>, vector<32x128xf32> -> vector<32x128xf32>
    %c0_3 = arith.constant 0 : index
    %c0_4 = arith.constant 0 : index
    %4 = vector.load %arg3[%c0_3, %c0_4] : memref<1x128xf32, #tpu.memory_space<vmem>>, vector<1x128xf32>
    %5 = vector.broadcast %4 : vector<1x128xf32> to vector<32x128xf32>
    %6 = arith.addf %3, %5 : vector<32x128xf32>
    %c0_5 = arith.constant 0 : index
    %c0_6 = arith.constant 0 : index
    %7 = vector.load %arg4[%c0_5, %c0_6] : memref<32x128xf32, #tpu.memory_space<vmem>>, vector<32x128xf32>
    tpu.vector_store %arg4[%c0_5, %c0_6], %6 {strides = array<i32>} : memref<32x128xf32, #tpu.memory_space<vmem>>, vector<32x128xf32>,
    return
  }
  func.func @transform_0(%arg0: i32) -> (i32, i32) {
    %c0_i32 = arith.constant 0 : i32
    %c0_i32_0 = arith.constant 0 : i32
    return %arg0, %c0_i32 : i32, i32
  }
  func.func @transform_1(%arg0: i32) -> (i32, i32) {
    %c0_i32 = arith.constant 0 : i32
    %c0_i32_0 = arith.constant 0 : i32
    %c0_i32_1 = arith.constant 0 : i32
    return %c0_i32, %c0_i32_0 : i32, i32
  }
  func.func @transform_2(%arg0: i32) -> (i32, i32) {
    %c0_i32 = arith.constant 0 : i32
    %c0_i32_0 = arith.constant 0 : i32
    %c0_i32_1 = arith.constant 0 : i32
    return %c0_i32, %c0_i32_0 : i32, i32
  }
  func.func @transform_3(%arg0: i32) -> (i32, i32) {
    %c0_i32 = arith.constant 0 : i32
    %c0_i32_0 = arith.constant 0 : i32
    return %arg0, %c0_i32 : i32, i32
  }
}

module attributes {stable_mosaic.version = 11 : i64} {
  func.func @_mm_kernel(%arg0: i32, %arg1: memref<32x3xf32, #tpu.memory_space<vmem>>, %arg2: memref<3x128xbf16, #tpu.memory_space<vmem>>, %arg3: memref<1x128xf32, #tpu.memory_space<vmem>>, %arg4: memref<32x128xf32, #tpu.memory_space<vmem>>) attributes {dimension_semantics = [#tpu.dimension_semantics<parallel>], iteration_bounds = array<i64: 1>, scalar_prefetch = 0 : i64, scratch_operands = 0 : i64, tpu.core_type = #tpu.core_type<tc>, window_params = [{transform_indices = @transform_0, window_bounds = array<i64: 32, 3>}, {pipeline_mode = #tpu.pipeline_mode<synchronous>, transform_indices = @transform_1, window_bounds = array<i64: 3, 128>}, {pipeline_mode = #tpu.pipeline_mode<synchronous>, transform_indices = @transform_2, window_bounds = array<i64: 1, 128>}, {transform_indices = @transform_3, window_bounds = array<i64: 32, 128>}]} {
    %c0 = arith.constant 0 : index
    %c0_0 = arith.constant 0 : index
    %0 = vector.load %arg1[%c0, %c0_0] : memref<32x3xf32, #tpu.memory_space<vmem>>, vector<32x3xf32>
    %1 = arith.truncf %0 : vector<32x3xf32> to vector<32x3xbf16>
    %c0_1 = arith.constant 0 : index
    %c0_2 = arith.constant 0 : index
    %2 = vector.load %arg2[%c0_1, %c0_2] : memref<3x128xbf16, #tpu.memory_space<vmem>>, vector<3x128xbf16>
    %cst = arith.constant dense<0.000000e+00> : vector<32x128xf32>
    %3 = tpu.matmul %1, %2, %cst {dimension_numbers = #tpu.dot_dimension_numbers<[1], [0], [0], [1], [0, 0, 1, 1], [], []>} : vector<32x3xbf16>, vector<3x128xbf16>, vector<32x128xf32> -> vector<32x128xf32>
    %c0_3 = arith.constant 0 : index
    %c0_4 = arith.constant 0 : index
    %4 = vector.load %arg3[%c0_3, %c0_4] : memref<1x128xf32, #tpu.memory_space<vmem>>, vector<1x128xf32>
    %5 = vector.broadcast %4 : vector<1x128xf32> to vector<32x128xf32>
    %6 = arith.addf %3, %5 : vector<32x128xf32>
    %c0_5 = arith.constant 0 : index
    %c0_6 = arith.constant 0 : index
    %7 = vector.load %arg4[%c0_5, %c0_6] : memref<32x128xf32, #tpu.memory_space<vmem>>, vector<32x128xf32>
    tpu.vector_store %arg4[%c0_5, %c0_6], %6 {strides = array<i32>} : memref<32x128xf32, #tpu.memory_space<vmem>>, vector<32x128xf32>,
    return
  }
  func.func @transform_0(%arg0: i32) -> (i32, i32) {
    %c0_i32 = arith.constant 0 : i32
    %c0_i32_0 = arith.constant 0 : i32
    return %arg0, %c0_i32 : i32, i32
  }
  func.func @transform_1(%arg0: i32) -> (i32, i32) {
    %c0_i32 = arith.constant 0 : i32
    %c0_i32_0 = arith.constant 0 : i32
    %c0_i32_1 = arith.constant 0 : i32
    return %c0_i32, %c0_i32_0 : i32, i32
  }
  func.func @transform_2(%arg0: i32) -> (i32, i32) {
    %c0_i32 = arith.constant 0 : i32
    %c0_i32_0 = arith.constant 0 : i32
    %c0_i32_1 = arith.constant 0 : i32
    return %c0_i32, %c0_i32_0 : i32, i32
  }
  func.func @transform_3(%arg0: i32) -> (i32, i32) {
    %c0_i32 = arith.constant 0 : i32
    %c0_i32_0 = arith.constant 0 : i32
    return %arg0, %c0_i32 : i32, i32
  }
}

module attributes {stable_mosaic.version = 11 : i64} {
  func.func @_mm_kernel(%arg0: i32, %arg1: memref<32x6xf32, #tpu.memory_space<vmem>>, %arg2: memref<6x128xbf16, #tpu.memory_space<vmem>>, %arg3: memref<1x128xf32, #tpu.memory_space<vmem>>, %arg4: memref<32x128xf32, #tpu.memory_space<vmem>>) attributes {dimension_semantics = [#tpu.dimension_semantics<parallel>], iteration_bounds = array<i64: 1>, scalar_prefetch = 0 : i64, scratch_operands = 0 : i64, tpu.core_type = #tpu.core_type<tc>, window_params = [{transform_indices = @transform_0, window_bounds = array<i64: 32, 6>}, {pipeline_mode = #tpu.pipeline_mode<synchronous>, transform_indices = @transform_1, window_bounds = array<i64: 6, 128>}, {pipeline_mode = #tpu.pipeline_mode<synchronous>, transform_indices = @transform_2, window_bounds = array<i64: 1, 128>}, {transform_indices = @transform_3, window_bounds = array<i64: 32, 128>}]} {
    %c0 = arith.constant 0 : index
    %c0_0 = arith.constant 0 : index
    %0 = vector.load %arg1[%c0, %c0_0] : memref<32x6xf32, #tpu.memory_space<vmem>>, vector<32x6xf32>
    %1 = arith.truncf %0 : vector<32x6xf32> to vector<32x6xbf16>
    %c0_1 = arith.constant 0 : index
    %c0_2 = arith.constant 0 : index
    %2 = vector.load %arg2[%c0_1, %c0_2] : memref<6x128xbf16, #tpu.memory_space<vmem>>, vector<6x128xbf16>
    %cst = arith.constant dense<0.000000e+00> : vector<32x128xf32>
    %3 = tpu.matmul %1, %2, %cst {dimension_numbers = #tpu.dot_dimension_numbers<[1], [0], [0], [1], [0, 0, 1, 1], [], []>} : vector<32x6xbf16>, vector<6x128xbf16>, vector<32x128xf32> -> vector<32x128xf32>
    %c0_3 = arith.constant 0 : index
    %c0_4 = arith.constant 0 : index
    %4 = vector.load %arg3[%c0_3, %c0_4] : memref<1x128xf32, #tpu.memory_space<vmem>>, vector<1x128xf32>
    %5 = vector.broadcast %4 : vector<1x128xf32> to vector<32x128xf32>
    %6 = arith.addf %3, %5 : vector<32x128xf32>
    %c0_5 = arith.constant 0 : index
    %c0_6 = arith.constant 0 : index
    %7 = vector.load %arg4[%c0_5, %c0_6] : memref<32x128xf32, #tpu.memory_space<vmem>>, vector<32x128xf32>
    tpu.vector_store %arg4[%c0_5, %c0_6], %6 {strides = array<i32>} : memref<32x128xf32, #tpu.memory_space<vmem>>, vector<32x128xf32>,
    return
  }
  func.func @transform_0(%arg0: i32) -> (i32, i32) {
    %c0_i32 = arith.constant 0 : i32
    %c0_i32_0 = arith.constant 0 : i32
    return %arg0, %c0_i32 : i32, i32
  }
  func.func @transform_1(%arg0: i32) -> (i32, i32) {
    %c0_i32 = arith.constant 0 : i32
    %c0_i32_0 = arith.constant 0 : i32
    %c0_i32_1 = arith.constant 0 : i32
    return %c0_i32, %c0_i32_0 : i32, i32
  }
  func.func @transform_2(%arg0: i32) -> (i32, i32) {
    %c0_i32 = arith.constant 0 : i32
    %c0_i32_0 = arith.constant 0 : i32
    %c0_i32_1 = arith.constant 0 : i32
    return %c0_i32, %c0_i32_0 : i32, i32
  }
  func.func @transform_3(%arg0: i32) -> (i32, i32) {
    %c0_i32 = arith.constant 0 : i32
    %c0_i32_0 = arith.constant 0 : i32
    return %arg0, %c0_i32 : i32, i32
  }
}

module attributes {stable_mosaic.version = 11 : i64} {
  func.func @_pool_kernel(%arg0: memref<2x6x6x64xf32, #tpu.memory_space<vmem>>, %arg1: memref<2x4x4x64xf32, #tpu.memory_space<vmem>>) attributes {dimension_semantics = [], scalar_prefetch = 0 : i64, scratch_operands = 0 : i64, tpu.core_type = #tpu.core_type<tc>} {
    %c0 = arith.constant 0 : index
    %c0_0 = arith.constant 0 : index
    %c0_1 = arith.constant 0 : index
    %c0_2 = arith.constant 0 : index
    %0 = vector.load %arg0[%c0, %c0_0, %c0_1, %c0_2] : memref<2x6x6x64xf32, #tpu.memory_space<vmem>>, vector<2x6x6x64xf32>
    %1 = vector.extract_strided_slice %0 {offsets = [0, 0, 0, 0], sizes = [2, 4, 4, 64], strides = [1, 1, 1, 1]} : vector<2x6x6x64xf32> to vector<2x4x4x64xf32>
    %2 = vector.extract_strided_slice %0 {offsets = [0, 0, 1, 0], sizes = [2, 4, 4, 64], strides = [1, 1, 1, 1]} : vector<2x6x6x64xf32> to vector<2x4x4x64xf32>
    %3 = arith.maximumf %1, %2 : vector<2x4x4x64xf32>
    %4 = vector.extract_strided_slice %0 {offsets = [0, 0, 2, 0], sizes = [2, 4, 4, 64], strides = [1, 1, 1, 1]} : vector<2x6x6x64xf32> to vector<2x4x4x64xf32>
    %5 = arith.maximumf %3, %4 : vector<2x4x4x64xf32>
    %6 = vector.extract_strided_slice %0 {offsets = [0, 1, 0, 0], sizes = [2, 4, 4, 64], strides = [1, 1, 1, 1]} : vector<2x6x6x64xf32> to vector<2x4x4x64xf32>
    %7 = arith.maximumf %5, %6 : vector<2x4x4x64xf32>
    %8 = vector.extract_strided_slice %0 {offsets = [0, 1, 1, 0], sizes = [2, 4, 4, 64], strides = [1, 1, 1, 1]} : vector<2x6x6x64xf32> to vector<2x4x4x64xf32>
    %9 = arith.maximumf %7, %8 : vector<2x4x4x64xf32>
    %10 = vector.extract_strided_slice %0 {offsets = [0, 1, 2, 0], sizes = [2, 4, 4, 64], strides = [1, 1, 1, 1]} : vector<2x6x6x64xf32> to vector<2x4x4x64xf32>
    %11 = arith.maximumf %9, %10 : vector<2x4x4x64xf32>
    %12 = vector.extract_strided_slice %0 {offsets = [0, 2, 0, 0], sizes = [2, 4, 4, 64], strides = [1, 1, 1, 1]} : vector<2x6x6x64xf32> to vector<2x4x4x64xf32>
    %13 = arith.maximumf %11, %12 : vector<2x4x4x64xf32>
    %14 = vector.extract_strided_slice %0 {offsets = [0, 2, 1, 0], sizes = [2, 4, 4, 64], strides = [1, 1, 1, 1]} : vector<2x6x6x64xf32> to vector<2x4x4x64xf32>
    %15 = arith.maximumf %13, %14 : vector<2x4x4x64xf32>
    %16 = vector.extract_strided_slice %0 {offsets = [0, 2, 2, 0], sizes = [2, 4, 4, 64], strides = [1, 1, 1, 1]} : vector<2x6x6x64xf32> to vector<2x4x4x64xf32>
    %17 = arith.maximumf %15, %16 : vector<2x4x4x64xf32>
    %c0_3 = arith.constant 0 : index
    %c0_4 = arith.constant 0 : index
    %c0_5 = arith.constant 0 : index
    %c0_6 = arith.constant 0 : index
    %18 = vector.load %arg1[%c0_3, %c0_4, %c0_5, %c0_6] : memref<2x4x4x64xf32, #tpu.memory_space<vmem>>, vector<2x4x4x64xf32>
    tpu.vector_store %arg1[%c0_3, %c0_4, %c0_5, %c0_6], %17 {strides = array<i32>} : memref<2x4x4x64xf32, #tpu.memory_space<vmem>>, vector<2x4x4x64xf32>,
    return
  }
}

module attributes {stable_mosaic.version = 11 : i64} {
  func.func @_mm_kernel(%arg0: i32, %arg1: memref<32x144xf32, #tpu.memory_space<vmem>>, %arg2: memref<144x128xbf16, #tpu.memory_space<vmem>>, %arg3: memref<1x128xf32, #tpu.memory_space<vmem>>, %arg4: memref<32x128xf32, #tpu.memory_space<vmem>>) attributes {dimension_semantics = [#tpu.dimension_semantics<parallel>], iteration_bounds = array<i64: 1>, scalar_prefetch = 0 : i64, scratch_operands = 0 : i64, tpu.core_type = #tpu.core_type<tc>, window_params = [{transform_indices = @transform_0, window_bounds = array<i64: 32, 144>}, {pipeline_mode = #tpu.pipeline_mode<synchronous>, transform_indices = @transform_1, window_bounds = array<i64: 144, 128>}, {pipeline_mode = #tpu.pipeline_mode<synchronous>, transform_indices = @transform_2, window_bounds = array<i64: 1, 128>}, {transform_indices = @transform_3, window_bounds = array<i64: 32, 128>}]} {
    %c0 = arith.constant 0 : index
    %c0_0 = arith.constant 0 : index
    %0 = vector.load %arg1[%c0, %c0_0] : memref<32x144xf32, #tpu.memory_space<vmem>>, vector<32x144xf32>
    %1 = arith.truncf %0 : vector<32x144xf32> to vector<32x144xbf16>
    %c0_1 = arith.constant 0 : index
    %c0_2 = arith.constant 0 : index
    %2 = vector.load %arg2[%c0_1, %c0_2] : memref<144x128xbf16, #tpu.memory_space<vmem>>, vector<144x128xbf16>
    %cst = arith.constant dense<0.000000e+00> : vector<32x128xf32>
    %3 = tpu.matmul %1, %2, %cst {dimension_numbers = #tpu.dot_dimension_numbers<[1], [0], [0], [1], [0, 0, 1, 1], [], []>} : vector<32x144xbf16>, vector<144x128xbf16>, vector<32x128xf32> -> vector<32x128xf32>
    %c0_3 = arith.constant 0 : index
    %c0_4 = arith.constant 0 : index
    %4 = vector.load %arg3[%c0_3, %c0_4] : memref<1x128xf32, #tpu.memory_space<vmem>>, vector<1x128xf32>
    %5 = vector.broadcast %4 : vector<1x128xf32> to vector<32x128xf32>
    %6 = arith.addf %3, %5 : vector<32x128xf32>
    %c0_5 = arith.constant 0 : index
    %c0_6 = arith.constant 0 : index
    %7 = vector.load %arg4[%c0_5, %c0_6] : memref<32x128xf32, #tpu.memory_space<vmem>>, vector<32x128xf32>
    tpu.vector_store %arg4[%c0_5, %c0_6], %6 {strides = array<i32>} : memref<32x128xf32, #tpu.memory_space<vmem>>, vector<32x128xf32>,
    return
  }
  func.func @transform_0(%arg0: i32) -> (i32, i32) {
    %c0_i32 = arith.constant 0 : i32
    %c0_i32_0 = arith.constant 0 : i32
    return %arg0, %c0_i32 : i32, i32
  }
  func.func @transform_1(%arg0: i32) -> (i32, i32) {
    %c0_i32 = arith.constant 0 : i32
    %c0_i32_0 = arith.constant 0 : i32
    %c0_i32_1 = arith.constant 0 : i32
    return %c0_i32, %c0_i32_0 : i32, i32
  }
  func.func @transform_2(%arg0: i32) -> (i32, i32) {
    %c0_i32 = arith.constant 0 : i32
    %c0_i32_0 = arith.constant 0 : i32
    %c0_i32_1 = arith.constant 0 : i32
    return %c0_i32, %c0_i32_0 : i32, i32
  }
  func.func @transform_3(%arg0: i32) -> (i32, i32) {
    %c0_i32 = arith.constant 0 : i32
    %c0_i32_0 = arith.constant 0 : i32
    return %arg0, %c0_i32 : i32, i32
  }
}

module attributes {stable_mosaic.version = 11 : i64} {
  func.func @_pool_kernel(%arg0: memref<2x6x6x64xf32, #tpu.memory_space<vmem>>, %arg1: memref<2x4x4x64xf32, #tpu.memory_space<vmem>>) attributes {dimension_semantics = [], scalar_prefetch = 0 : i64, scratch_operands = 0 : i64, tpu.core_type = #tpu.core_type<tc>} {
    %c0 = arith.constant 0 : index
    %c0_0 = arith.constant 0 : index
    %c0_1 = arith.constant 0 : index
    %c0_2 = arith.constant 0 : index
    %0 = vector.load %arg0[%c0, %c0_0, %c0_1, %c0_2] : memref<2x6x6x64xf32, #tpu.memory_space<vmem>>, vector<2x6x6x64xf32>
    %1 = vector.extract_strided_slice %0 {offsets = [0, 0, 0, 0], sizes = [2, 4, 4, 64], strides = [1, 1, 1, 1]} : vector<2x6x6x64xf32> to vector<2x4x4x64xf32>
    %2 = vector.extract_strided_slice %0 {offsets = [0, 0, 1, 0], sizes = [2, 4, 4, 64], strides = [1, 1, 1, 1]} : vector<2x6x6x64xf32> to vector<2x4x4x64xf32>
    %3 = arith.addf %1, %2 : vector<2x4x4x64xf32>
    %4 = vector.extract_strided_slice %0 {offsets = [0, 0, 2, 0], sizes = [2, 4, 4, 64], strides = [1, 1, 1, 1]} : vector<2x6x6x64xf32> to vector<2x4x4x64xf32>
    %5 = arith.addf %3, %4 : vector<2x4x4x64xf32>
    %6 = vector.extract_strided_slice %0 {offsets = [0, 1, 0, 0], sizes = [2, 4, 4, 64], strides = [1, 1, 1, 1]} : vector<2x6x6x64xf32> to vector<2x4x4x64xf32>
    %7 = arith.addf %5, %6 : vector<2x4x4x64xf32>
    %8 = vector.extract_strided_slice %0 {offsets = [0, 1, 1, 0], sizes = [2, 4, 4, 64], strides = [1, 1, 1, 1]} : vector<2x6x6x64xf32> to vector<2x4x4x64xf32>
    %9 = arith.addf %7, %8 : vector<2x4x4x64xf32>
    %10 = vector.extract_strided_slice %0 {offsets = [0, 1, 2, 0], sizes = [2, 4, 4, 64], strides = [1, 1, 1, 1]} : vector<2x6x6x64xf32> to vector<2x4x4x64xf32>
    %11 = arith.addf %9, %10 : vector<2x4x4x64xf32>
    %12 = vector.extract_strided_slice %0 {offsets = [0, 2, 0, 0], sizes = [2, 4, 4, 64], strides = [1, 1, 1, 1]} : vector<2x6x6x64xf32> to vector<2x4x4x64xf32>
    %13 = arith.addf %11, %12 : vector<2x4x4x64xf32>
    %14 = vector.extract_strided_slice %0 {offsets = [0, 2, 1, 0], sizes = [2, 4, 4, 64], strides = [1, 1, 1, 1]} : vector<2x6x6x64xf32> to vector<2x4x4x64xf32>
    %15 = arith.addf %13, %14 : vector<2x4x4x64xf32>
    %16 = vector.extract_strided_slice %0 {offsets = [0, 2, 2, 0], sizes = [2, 4, 4, 64], strides = [1, 1, 1, 1]} : vector<2x6x6x64xf32> to vector<2x4x4x64xf32>
    %17 = arith.addf %15, %16 : vector<2x4x4x64xf32>
    %cst = arith.constant 0.111111112 : f32
    %18 = vector.broadcast %cst : f32 to vector<2x4x4x64xf32>
    %19 = arith.mulf %17, %18 : vector<2x4x4x64xf32>
    %c0_3 = arith.constant 0 : index
    %c0_4 = arith.constant 0 : index
    %c0_5 = arith.constant 0 : index
    %c0_6 = arith.constant 0 : index
    %20 = vector.load %arg1[%c0_3, %c0_4, %c0_5, %c0_6] : memref<2x4x4x64xf32, #tpu.memory_space<vmem>>, vector<2x4x4x64xf32>
    tpu.vector_store %arg1[%c0_3, %c0_4, %c0_5, %c0_6], %19 {strides = array<i32>} : memref<2x4x4x64xf32, #tpu.memory_space<vmem>>, vector<2x4x4x64xf32>,
    return
  }
}

module attributes {stable_mosaic.version = 11 : i64} {
  func.func @_mm_kernel(%arg0: i32, %arg1: memref<32x1152xf32, #tpu.memory_space<vmem>>, %arg2: memref<1152x128xbf16, #tpu.memory_space<vmem>>, %arg3: memref<1x128xf32, #tpu.memory_space<vmem>>, %arg4: memref<32x128xf32, #tpu.memory_space<vmem>>) attributes {dimension_semantics = [#tpu.dimension_semantics<parallel>], iteration_bounds = array<i64: 1>, scalar_prefetch = 0 : i64, scratch_operands = 0 : i64, tpu.core_type = #tpu.core_type<tc>, window_params = [{transform_indices = @transform_0, window_bounds = array<i64: 32, 1152>}, {pipeline_mode = #tpu.pipeline_mode<synchronous>, transform_indices = @transform_1, window_bounds = array<i64: 1152, 128>}, {pipeline_mode = #tpu.pipeline_mode<synchronous>, transform_indices = @transform_2, window_bounds = array<i64: 1, 128>}, {transform_indices = @transform_3, window_bounds = array<i64: 32, 128>}]} {
    %c0 = arith.constant 0 : index
    %c0_0 = arith.constant 0 : index
    %0 = vector.load %arg1[%c0, %c0_0] : memref<32x1152xf32, #tpu.memory_space<vmem>>, vector<32x1152xf32>
    %cst = arith.constant 0.000000e+00 : f32
    %1 = vector.broadcast %cst : f32 to vector<32x1152xf32>
    %2 = arith.maximumf %0, %1 : vector<32x1152xf32>
    %3 = arith.truncf %2 : vector<32x1152xf32> to vector<32x1152xbf16>
    %c0_1 = arith.constant 0 : index
    %c0_2 = arith.constant 0 : index
    %4 = vector.load %arg2[%c0_1, %c0_2] : memref<1152x128xbf16, #tpu.memory_space<vmem>>, vector<1152x128xbf16>
    %cst_3 = arith.constant dense<0.000000e+00> : vector<32x128xf32>
    %5 = tpu.matmul %3, %4, %cst_3 {dimension_numbers = #tpu.dot_dimension_numbers<[1], [0], [0], [1], [0, 0, 1, 1], [], []>} : vector<32x1152xbf16>, vector<1152x128xbf16>, vector<32x128xf32> -> vector<32x128xf32>
    %c0_4 = arith.constant 0 : index
    %c0_5 = arith.constant 0 : index
    %6 = vector.load %arg3[%c0_4, %c0_5] : memref<1x128xf32, #tpu.memory_space<vmem>>, vector<1x128xf32>
    %7 = vector.broadcast %6 : vector<1x128xf32> to vector<32x128xf32>
    %8 = arith.addf %5, %7 : vector<32x128xf32>
    %c0_6 = arith.constant 0 : index
    %c0_7 = arith.constant 0 : index
    %9 = vector.load %arg4[%c0_6, %c0_7] : memref<32x128xf32, #tpu.memory_space<vmem>>, vector<32x128xf32>
    tpu.vector_store %arg4[%c0_6, %c0_7], %8 {strides = array<i32>} : memref<32x128xf32, #tpu.memory_space<vmem>>, vector<32x128xf32>,
    return
  }
  func.func @transform_0(%arg0: i32) -> (i32, i32) {
    %c0_i32 = arith.constant 0 : i32
    %c0_i32_0 = arith.constant 0 : i32
    return %arg0, %c0_i32 : i32, i32
  }
  func.func @transform_1(%arg0: i32) -> (i32, i32) {
    %c0_i32 = arith.constant 0 : i32
    %c0_i32_0 = arith.constant 0 : i32
    %c0_i32_1 = arith.constant 0 : i32
    return %c0_i32, %c0_i32_0 : i32, i32
  }
  func.func @transform_2(%arg0: i32) -> (i32, i32) {
    %c0_i32 = arith.constant 0 : i32
    %c0_i32_0 = arith.constant 0 : i32
    %c0_i32_1 = arith.constant 0 : i32
    return %c0_i32, %c0_i32_0 : i32, i32
  }
  func.func @transform_3(%arg0: i32) -> (i32, i32) {
    %c0_i32 = arith.constant 0 : i32
    %c0_i32_0 = arith.constant 0 : i32
    return %arg0, %c0_i32 : i32, i32
  }
}

module attributes {stable_mosaic.version = 11 : i64} {
  func.func @_mm_kernel(%arg0: i32, %arg1: memref<128x576xf32, #tpu.memory_space<vmem>>, %arg2: memref<576x128xbf16, #tpu.memory_space<vmem>>, %arg3: memref<1x128xf32, #tpu.memory_space<vmem>>, %arg4: memref<128x128xf32, #tpu.memory_space<vmem>>) attributes {dimension_semantics = [#tpu.dimension_semantics<parallel>], iteration_bounds = array<i64: 1>, scalar_prefetch = 0 : i64, scratch_operands = 0 : i64, tpu.core_type = #tpu.core_type<tc>, window_params = [{transform_indices = @transform_0, window_bounds = array<i64: 128, 576>}, {pipeline_mode = #tpu.pipeline_mode<synchronous>, transform_indices = @transform_1, window_bounds = array<i64: 576, 128>}, {pipeline_mode = #tpu.pipeline_mode<synchronous>, transform_indices = @transform_2, window_bounds = array<i64: 1, 128>}, {transform_indices = @transform_3, window_bounds = array<i64: 128, 128>}]} {
    %c0 = arith.constant 0 : index
    %c0_0 = arith.constant 0 : index
    %0 = vector.load %arg1[%c0, %c0_0] : memref<128x576xf32, #tpu.memory_space<vmem>>, vector<128x576xf32>
    %cst = arith.constant 0.000000e+00 : f32
    %1 = vector.broadcast %cst : f32 to vector<128x576xf32>
    %2 = arith.maximumf %0, %1 : vector<128x576xf32>
    %3 = arith.truncf %2 : vector<128x576xf32> to vector<128x576xbf16>
    %c0_1 = arith.constant 0 : index
    %c0_2 = arith.constant 0 : index
    %4 = vector.load %arg2[%c0_1, %c0_2] : memref<576x128xbf16, #tpu.memory_space<vmem>>, vector<576x128xbf16>
    %cst_3 = arith.constant dense<0.000000e+00> : vector<128x128xf32>
    %5 = tpu.matmul %3, %4, %cst_3 {dimension_numbers = #tpu.dot_dimension_numbers<[1], [0], [0], [1], [0, 0, 1, 1], [], []>} : vector<128x576xbf16>, vector<576x128xbf16>, vector<128x128xf32> -> vector<128x128xf32>
    %c0_4 = arith.constant 0 : index
    %c0_5 = arith.constant 0 : index
    %6 = vector.load %arg3[%c0_4, %c0_5] : memref<1x128xf32, #tpu.memory_space<vmem>>, vector<1x128xf32>
    %7 = vector.broadcast %6 : vector<1x128xf32> to vector<128x128xf32>
    %8 = arith.addf %5, %7 : vector<128x128xf32>
    %c0_6 = arith.constant 0 : index
    %c0_7 = arith.constant 0 : index
    %9 = vector.load %arg4[%c0_6, %c0_7] : memref<128x128xf32, #tpu.memory_space<vmem>>, vector<128x128xf32>
    tpu.vector_store %arg4[%c0_6, %c0_7], %8 {strides = array<i32>} : memref<128x128xf32, #tpu.memory_space<vmem>>, vector<128x128xf32>,
    return
  }
  func.func @transform_0(%arg0: i32) -> (i32, i32) {
    %c0_i32 = arith.constant 0 : i32
    %c0_i32_0 = arith.constant 0 : i32
    return %arg0, %c0_i32 : i32, i32
  }
  func.func @transform_1(%arg0: i32) -> (i32, i32) {
    %c0_i32 = arith.constant 0 : i32
    %c0_i32_0 = arith.constant 0 : i32
    %c0_i32_1 = arith.constant 0 : i32
    return %c0_i32, %c0_i32_0 : i32, i32
  }
  func.func @transform_2(%arg0: i32) -> (i32, i32) {
    %c0_i32 = arith.constant 0 : i32
    %c0_i32_0 = arith.constant 0 : i32
    %c0_i32_1 = arith.constant 0 : i32
    return %c0_i32, %c0_i32_0 : i32, i32
  }
  func.func @transform_3(%arg0: i32) -> (i32, i32) {
    %c0_i32 = arith.constant 0 : i32
    %c0_i32_0 = arith.constant 0 : i32
    return %arg0, %c0_i32 : i32, i32
  }
}

module attributes {stable_mosaic.version = 11 : i64} {
  func.func @_mm_kernel(%arg0: i32, %arg1: memref<256x288xf32, #tpu.memory_space<vmem>>, %arg2: memref<288x128xbf16, #tpu.memory_space<vmem>>, %arg3: memref<1x128xf32, #tpu.memory_space<vmem>>, %arg4: memref<256x128xf32, #tpu.memory_space<vmem>>) attributes {dimension_semantics = [#tpu.dimension_semantics<parallel>], iteration_bounds = array<i64: 2>, scalar_prefetch = 0 : i64, scratch_operands = 0 : i64, tpu.core_type = #tpu.core_type<tc>, window_params = [{transform_indices = @transform_0, window_bounds = array<i64: 256, 288>}, {pipeline_mode = #tpu.pipeline_mode<synchronous>, transform_indices = @transform_1, window_bounds = array<i64: 288, 128>}, {pipeline_mode = #tpu.pipeline_mode<synchronous>, transform_indices = @transform_2, window_bounds = array<i64: 1, 128>}, {transform_indices = @transform_3, window_bounds = array<i64: 256, 128>}]} {
    %c0 = arith.constant 0 : index
    %c0_0 = arith.constant 0 : index
    %0 = vector.load %arg1[%c0, %c0_0] : memref<256x288xf32, #tpu.memory_space<vmem>>, vector<256x288xf32>
    %cst = arith.constant 0.000000e+00 : f32
    %1 = vector.broadcast %cst : f32 to vector<256x288xf32>
    %2 = arith.maximumf %0, %1 : vector<256x288xf32>
    %3 = arith.truncf %2 : vector<256x288xf32> to vector<256x288xbf16>
    %c0_1 = arith.constant 0 : index
    %c0_2 = arith.constant 0 : index
    %4 = vector.load %arg2[%c0_1, %c0_2] : memref<288x128xbf16, #tpu.memory_space<vmem>>, vector<288x128xbf16>
    %cst_3 = arith.constant dense<0.000000e+00> : vector<256x128xf32>
    %5 = tpu.matmul %3, %4, %cst_3 {dimension_numbers = #tpu.dot_dimension_numbers<[1], [0], [0], [1], [0, 0, 1, 1], [], []>} : vector<256x288xbf16>, vector<288x128xbf16>, vector<256x128xf32> -> vector<256x128xf32>
    %c0_4 = arith.constant 0 : index
    %c0_5 = arith.constant 0 : index
    %6 = vector.load %arg3[%c0_4, %c0_5] : memref<1x128xf32, #tpu.memory_space<vmem>>, vector<1x128xf32>
    %7 = vector.broadcast %6 : vector<1x128xf32> to vector<256x128xf32>
    %8 = arith.addf %5, %7 : vector<256x128xf32>
    %9 = math.tanh %8 : vector<256x128xf32>
    %c0_6 = arith.constant 0 : index
    %c0_7 = arith.constant 0 : index
    %10 = vector.load %arg4[%c0_6, %c0_7] : memref<256x128xf32, #tpu.memory_space<vmem>>, vector<256x128xf32>
    tpu.vector_store %arg4[%c0_6, %c0_7], %9 {strides = array<i32>} : memref<256x128xf32, #tpu.memory_space<vmem>>, vector<256x128xf32>,
    return
  }
  func.func @transform_0(%arg0: i32) -> (i32, i32) {
    %c0_i32 = arith.constant 0 : i32
    %c0_i32_0 = arith.constant 0 : i32
    return %arg0, %c0_i32 : i32, i32
  }
  func.func @transform_1(%arg0: i32) -> (i32, i32) {
    %c0_i32 = arith.constant 0 : i32
    %c0_i32_0 = arith.constant 0 : i32
    %c0_i32_1 = arith.constant 0 : i32
    return %c0_i32, %c0_i32_0 : i32, i32
  }
  func.func @transform_2(%arg0: i32) -> (i32, i32) {
    %c0_i32 = arith.constant 0 : i32
    %c0_i32_0 = arith.constant 0 : i32
    %c0_i32_1 = arith.constant 0 : i32
    return %c0_i32, %c0_i32_0 : i32, i32
  }
  func.func @transform_3(%arg0: i32) -> (i32, i32) {
    %c0_i32 = arith.constant 0 : i32
    %c0_i32_0 = arith.constant 0 : i32
    return %arg0, %c0_i32 : i32, i32
  }
}

</mosaic_0001>

<bundles_post_ra>
// kernel: generator_fwd.54
= control target key start
LH: loop header
LB: loop body
LE: loop exit
PB: predicated region body
PF: predicated region fallthrough
CT: control target
= control target key end

     0   :  { %s670_s12 = smov 0   ;;  %s821_s0 = inlined_call_operand.vmem [shape: f32[512,32], index: 0, kind: input, shape index: {}]   ;;  %s822_s1 = inlined_call_operand.vmem [shape: bf16[32,128], index: 1, kind: input, shape index: {}]   ;;  %s823_s2 = inlined_call_operand.vmem [shape: f32[1,128], index: 2, kind: input, shape index: {}]   ;;  %s824_s3 = inlined_call_operand.vmem [shape: f32[512,128], index: 3, kind: output, shape index: {}]  }
   0x1 LB: > { %s544_s13 = sadd.s32 4294967295, %s648_s12   ;;  %p548_p0 = scmp.ge.s32.totalorder %s648_s12, 1  ;;  %s648_s12 = sphi %s670_s12, %s13_s12  }
   0x2   : > { %p138_p1 = scmp.lt.s32.totalorder %s648_s12, 3 }
   0x4   : > { %p139_p2 = pnand %p548_p0, %p138_p1 }
   0x5   : > { %s549_s16 = sshll.u32 (!%p139_p2), %s544_s13, 5 }
   0x6   : > { %142 = sbr.rel (%p139_p2) target bundleno = 246 (0xf6), region = 32  ;;  %p163_p3 = scmp.lt.s32.totalorder (!%p139_p2), %s549_s16, 63 }
   0xb   : > { %v640_v0 = vld [vmem:[%s822_s1 + $0x8] sm:$0xff]   ;;  %v641_v1 = vld [vmem:[%s822_s1] sm:$0xff]   ;;  %s826_s16 = smov (!%p163_p3, %s549_s16), 63  ;;  %vm246_vm0 = vcmask 261120  }
   0xc   : > { %592 = vmatprep.subr.bf16.mxu0 %v640_v0  ;;  %628 = vmatprep.subr.bf16.mxu1 %v640_v0  ;;  %s550_s19 = sshll.u32 %s826_s16, 3  ;;  %v745_v50 = vld [vmem:[%s823_s2] ss:$0 sm:$0xff] }
   0xd   : > { %593 = vmatpush3.bf16.msra.mxu0 %v640_v0  ;;  %630 = vmatpush3.bf16.msra.mxu1 %v640_v0  ;;  %s692_s22 = scalar_lea.vmem %s821_s0, %s550_s19  ;;  %s752_s27 = scalar_lea.vmem %s824_s3, %s550_s19 }
   0xe   : > { %594 = vmatprep.subr.bf16.mxu0 %v641_v1  ;;  %629 = vmatprep.subr.bf16.mxu1 %v641_v1  ;;  %v175_v2 = vld [vmem:[%s692_s22] sm:$0xff]  ;;  %v176_v3 = vld [vmem:[%s692_s22 + $0x8] sm:$0xff]  ;;  %v177_v7 = vld [vmem:[%s692_s22 + $0x10] sm:$0xff] }
   0xf   : > { %v191_v4 = vld [vmem:[%s692_s22 + $0x80] sm:$0xff]  ;;  %v207_v5 = vpack.c.bf16 %v176_v3, %v175_v2  ;;  %v192_v6 = vld [vmem:[%s692_s22 + $0x88] sm:$0xff]  ;;  %v178_v8 = vld [vmem:[%s692_s22 + $0x18] sm:$0xff] }
  0x10   : > { %v215_v9 = vpack.c.bf16 %v192_v6, %v191_v4  ;;  %v208_v10 = vpack.c.bf16 %v178_v8, %v177_v7  ;;  %v193_v11 = vld [vmem:[%s692_s22 + $0x90] sm:$0xff]  ;;  %v194_v12 = vld [vmem:[%s692_s22 + $0x98] sm:$0xff]  ;;  %v179_v13 = vld [vmem:[%s692_s22 + $0x20] sm:$0xff] }
  0x11   : > { %595 = vmatpush3.bf16.msra.mxu0 %v641_v1  ;;  %631 = vmatpush3.bf16.msra.mxu1 %v641_v1  ;;  %v216_v14 = vpack.c.bf16 %v194_v12, %v193_v11  ;;  %v180_v15 = vld [vmem:[%s692_s22 + $0x28] sm:$0xff]  ;;  %v195_v16 = vld [vmem:[%s692_s22 + $0xa0] sm:$0xff]  ;;  %v181_v20 = vld [vmem:[%s692_s22 + $0x30] sm:$0xff] }
  0x12   : > { %596 = vmatprep.mubr.msk.bf16.mxu0 %vm246_vm0, %v207_v5  ;;  %v196_v17 = vld [vmem:[%s692_s22 + $0xa8] sm:$0xff]  ;;  %612 = vmatprep.mubr.msk.bf16.mxu1 %vm246_vm0, %v215_v9  ;;  %v209_v18 = vpack.c.bf16 %v180_v15, %v179_v13  ;;  %v182_v21 = vld [vmem:[%s692_s22 + $0x38] sm:$0xff]  ;;  %v197_v22 = vld [vmem:[%s692_s22 + $0xb0] sm:$0xff] }
  0x13   : > { %v217_v19 = vpack.c.bf16 %v196_v17, %v195_v16  ;;  %v198_v23 = vld [vmem:[%s692_s22 + $0xb8] sm:$0xff]  ;;  %v183_v24 = vld [vmem:[%s692_s22 + $0x40] sm:$0xff]  ;;  %v184_v25 = vld [vmem:[%s692_s22 + $0x48] sm:$0xff]  ;;  %v210_v28 = vpack.c.bf16 %v182_v21, %v181_v20 }
  0x14   : > { %597 = vmatmul.mubr.msk.bf16.vlgmr.msra.gmra.mxu0 %vm246_vm0, %v208_v10  ;;  %613 = vmatmul.mubr.msk.bf16.vlgmr.msra.gmra.mxu1 %vm246_vm0, %v216_v14  ;;  %v199_v26 = vld [vmem:[%s692_s22 + $0xc0] sm:$0xff]  ;;  %v200_v27 = vld [vmem:[%s692_s22 + $0xc8] sm:$0xff]  ;;  %v218_v29 = vpack.c.bf16 %v198_v23, %v197_v22  ;;  %v211_v30 = vpack.c.bf16 %v184_v25, %v183_v24  ;;  %v185_v32 = vld [vmem:[%s692_s22 + $0x50] sm:$0xff] }
  0x15   : > { %600 = vmatprep.mubr.msk.bf16.mxu0 %vm246_vm0, %v209_v18  ;;  %616 = vmatprep.mubr.msk.bf16.mxu1 %vm246_vm0, %v217_v19  ;;  %v219_v31 = vpack.c.bf16 %v200_v27, %v199_v26  ;;  %v186_v33 = vld [vmem:[%s692_s22 + $0x58] sm:$0xff]  ;;  %v201_v34 = vld [vmem:[%s692_s22 + $0xd0] sm:$0xff]  ;;  %v187_v36 = vld [vmem:[%s692_s22 + $0x60] sm:$0xff] }
  0x16   : > { %v202_v35 = vld [vmem:[%s692_s22 + $0xd8] sm:$0xff]  ;;  %v188_v37 = vld [vmem:[%s692_s22 + $0x68] sm:$0xff]  ;;  %v203_v38 = vld [vmem:[%s692_s22 + $0xe0] sm:$0xff]  ;;  %v212_v40 = vpack.c.bf16 %v186_v33, %v185_v32 }
  0x17   : > { %v204_v39 = vld [vmem:[%s692_s22 + $0xe8] sm:$0xff]  ;;  %v220_v41 = vpack.c.bf16 %v202_v35, %v201_v34  ;;  %v213_v42 = vpack.c.bf16 %v188_v37, %v187_v36  ;;  %v189_v44 = vld [vmem:[%s692_s22 + $0x70] sm:$0xff]  ;;  %v190_v45 = vld [vmem:[%s692_s22 + $0x78] sm:$0xff] }
  0x18   : > { %v221_v43 = vpack.c.bf16 %v204_v39, %v203_v38  ;;  %v205_v46 = vld [vmem:[%s692_s22 + $0xf0] sm:$0xff]  ;;  %v206_v47 = vld [vmem:[%s692_s22 + $0xf8] sm:$0xff]  ;;  %v214_v48 = vpack.c.bf16 %v190_v45, %v189_v44 }
  0x19   : > { %v222_v49 = vpack.c.bf16 %v206_v47, %v205_v46 }
  0x1c   : > { %601 = vmatmul.mubr.msk.bf16.gmra.mxu0 %vm246_vm0, %v210_v28  ;;  %617 = vmatmul.mubr.msk.bf16.gmra.mxu1 %vm246_vm0, %v218_v29 }
  0x1d   : > { %604 = vmatprep.mubr.msk.bf16.mxu0 %vm246_vm0, %v211_v30  ;;  %620 = vmatprep.mubr.msk.bf16.mxu1 %vm246_vm0, %v219_v31 }
  0x24   : > { %605 = vmatmul.mubr.msk.bf16.gmra.mxu0 %vm246_vm0, %v212_v40  ;;  %621 = vmatmul.mubr.msk.bf16.gmra.mxu1 %vm246_vm0, %v220_v41 }
  0x25   : > { %608 = vmatprep.mubr.msk.bf16.mxu0 %vm246_vm0, %v213_v42  ;;  %624 = vmatprep.mubr.msk.bf16.mxu1 %vm246_vm0, %v221_v43 }
  0x2c   : > { %609 = vmatmul.mubr.msk.bf16.gmra.mxu0 %vm246_vm0, %v214_v48  ;;  %625 = vmatmul.mubr.msk.bf16.gmra.mxu1 %vm246_vm0, %v222_v49 }
  0xd4   : > { %v598_v51 = vpop.f32.mrf.mxu0  ;;  %v614_v53 = vpop.f32.mrf.mxu1 }
  0xd5   : > { %v338_v52 = vadd.f32 %v598_v51, %v745_v50  ;;  %v402_v54 = vadd.f32 %v614_v53, %v745_v50 }
  0xd6   : > { %v329_v55 = vpop.f32.mrf.mxu0  ;;  %v393_v57 = vpop.f32.mrf.mxu1 }
  0xd7   : > { %458 = vst [vmem:[%s752_s27 + $0x10] sm:$0xff] %v338_v52  ;;  %v330_v56 = vadd.f32 %v745_v50, %v329_v55  ;;  %474 = vst [vmem:[%s752_s27 + $0x90] sm:$0xff] %v402_v54  ;;  %v394_v58 = vadd.f32 %v745_v50, %v393_v57 }
  0xd8   : > { %v599_v59 = vpop.f32.mrf.mxu0  ;;  %v615_v61 = vpop.f32.mrf.mxu1 }
  0xd9   : > { %456 = vst [vmem:[%s752_s27] sm:$0xff] %v330_v56  ;;  %v341_v60 = vadd.f32 %v599_v59, %v745_v50  ;;  %472 = vst [vmem:[%s752_s27 + $0x80] sm:$0xff] %v394_v58  ;;  %v405_v62 = vadd.f32 %v615_v61, %v745_v50 }
  0xda   : > { %v332_v63 = vpop.f32.mrf.mxu0  ;;  %v396_v1 = vpop.f32.mrf.mxu1 }
  0xdb   : > { %459 = vst [vmem:[%s752_s27 + $0x18] sm:$0xff] %v341_v60  ;;  %v333_v0 = vadd.f32 %v745_v50, %v332_v63  ;;  %475 = vst [vmem:[%s752_s27 + $0x98] sm:$0xff] %v405_v62  ;;  %v397_v2 = vadd.f32 %v745_v50, %v396_v1 }
  0xdc   : > { %v602_v3 = vpop.f32.mrf.mxu0  ;;  %v618_v5 = vpop.f32.mrf.mxu1 }
  0xdd   : > { %457 = vst [vmem:[%s752_s27 + $0x8] sm:$0xff] %v333_v0  ;;  %v354_v4 = vadd.f32 %v602_v3, %v745_v50  ;;  %473 = vst [vmem:[%s752_s27 + $0x88] sm:$0xff] %v397_v2  ;;  %v418_v6 = vadd.f32 %v618_v5, %v745_v50 }
  0xde   : > { %v345_v7 = vpop.f32.mrf.mxu0  ;;  %v409_v9 = vpop.f32.mrf.mxu1 }
  0xdf   : > { %462 = vst [vmem:[%s752_s27 + $0x30] sm:$0xff] %v354_v4  ;;  %v346_v8 = vadd.f32 %v745_v50, %v345_v7  ;;  %478 = vst [vmem:[%s752_s27 + $0xb0] sm:$0xff] %v418_v6  ;;  %v410_v10 = vadd.f32 %v745_v50, %v409_v9 }
  0xe0   : > { %v603_v11 = vpop.f32.mrf.mxu0  ;;  %v619_v13 = vpop.f32.mrf.mxu1 }
  0xe1   : > { %460 = vst [vmem:[%s752_s27 + $0x20] sm:$0xff] %v346_v8  ;;  %v357_v12 = vadd.f32 %v603_v11, %v745_v50  ;;  %476 = vst [vmem:[%s752_s27 + $0xa0] sm:$0xff] %v410_v10  ;;  %v421_v14 = vadd.f32 %v619_v13, %v745_v50 }
  0xe2   : > { %v348_v15 = vpop.f32.mrf.mxu0  ;;  %v412_v17 = vpop.f32.mrf.mxu1 }
  0xe3   : > { %463 = vst [vmem:[%s752_s27 + $0x38] sm:$0xff] %v357_v12  ;;  %v349_v16 = vadd.f32 %v745_v50, %v348_v15  ;;  %479 = vst [vmem:[%s752_s27 + $0xb8] sm:$0xff] %v421_v14  ;;  %v413_v18 = vadd.f32 %v745_v50, %v412_v17 }
  0xe4   : > { %v606_v19 = vpop.f32.mrf.mxu0  ;;  %v622_v21 = vpop.f32.mrf.mxu1 }
  0xe5   : > { %461 = vst [vmem:[%s752_s27 + $0x28] sm:$0xff] %v349_v16  ;;  %v370_v20 = vadd.f32 %v606_v19, %v745_v50  ;;  %477 = vst [vmem:[%s752_s27 + $0xa8] sm:$0xff] %v413_v18  ;;  %v434_v22 = vadd.f32 %v622_v21, %v745_v50 }
  0xe6   : > { %v361_v23 = vpop.f32.mrf.mxu0  ;;  %v425_v25 = vpop.f32.mrf.mxu1 }
  0xe7   : > { %466 = vst [vmem:[%s752_s27 + $0x50] sm:$0xff] %v370_v20  ;;  %v362_v24 = vadd.f32 %v745_v50, %v361_v23  ;;  %482 = vst [vmem:[%s752_s27 + $0xd0] sm:$0xff] %v434_v22  ;;  %v426_v26 = vadd.f32 %v745_v50, %v425_v25 }
  0xe8   : > { %v607_v27 = vpop.f32.mrf.mxu0  ;;  %v623_v29 = vpop.f32.mrf.mxu1 }
  0xe9   : > { %464 = vst [vmem:[%s752_s27 + $0x40] sm:$0xff] %v362_v24  ;;  %v373_v28 = vadd.f32 %v607_v27, %v745_v50  ;;  %480 = vst [vmem:[%s752_s27 + $0xc0] sm:$0xff] %v426_v26  ;;  %v437_v30 = vadd.f32 %v623_v29, %v745_v50 }
  0xea   : > { %v364_v31 = vpop.f32.mrf.mxu0  ;;  %v428_v33 = vpop.f32.mrf.mxu1 }
  0xeb   : > { %467 = vst [vmem:[%s752_s27 + $0x58] sm:$0xff] %v373_v28  ;;  %v365_v32 = vadd.f32 %v745_v50, %v364_v31  ;;  %483 = vst [vmem:[%s752_s27 + $0xd8] sm:$0xff] %v437_v30  ;;  %v429_v34 = vadd.f32 %v745_v50, %v428_v33 }
  0xec   : > { %v610_v35 = vpop.f32.mrf.mxu0  ;;  %v626_v37 = vpop.f32.mrf.mxu1 }
  0xed   : > { %465 = vst [vmem:[%s752_s27 + $0x48] sm:$0xff] %v365_v32  ;;  %v386_v36 = vadd.f32 %v610_v35, %v745_v50  ;;  %481 = vst [vmem:[%s752_s27 + $0xc8] sm:$0xff] %v429_v34  ;;  %v450_v38 = vadd.f32 %v626_v37, %v745_v50 }
  0xee   : > { %v377_v39 = vpop.f32.mrf.mxu0  ;;  %v441_v41 = vpop.f32.mrf.mxu1 }
  0xef   : > { %470 = vst [vmem:[%s752_s27 + $0x70] sm:$0xff] %v386_v36  ;;  %v378_v40 = vadd.f32 %v745_v50, %v377_v39  ;;  %486 = vst [vmem:[%s752_s27 + $0xf0] sm:$0xff] %v450_v38  ;;  %v442_v42 = vadd.f32 %v745_v50, %v441_v41 }
  0xf0   : > { %v611_v43 = vpop.f32.mrf.mxu0  ;;  %v627_v45 = vpop.f32.mrf.mxu1 }
  0xf1   : > { %468 = vst [vmem:[%s752_s27 + $0x60] sm:$0xff] %v378_v40  ;;  %v389_v44 = vadd.f32 %v611_v43, %v745_v50  ;;  %484 = vst [vmem:[%s752_s27 + $0xe0] sm:$0xff] %v442_v42  ;;  %v453_v46 = vadd.f32 %v627_v45, %v745_v50 }
  0xf2   : > { %v380_v47 = vpop.f32.mrf.mxu0  ;;  %v444_v49 = vpop.f32.mrf.mxu1 }
  0xf3   : > { %471 = vst [vmem:[%s752_s27 + $0x78] sm:$0xff] %v389_v44  ;;  %v381_v48 = vadd.f32 %v745_v50, %v380_v47  ;;  %487 = vst [vmem:[%s752_s27 + $0xf8] sm:$0xff] %v453_v46  ;;  %v445_v51 = vadd.f32 %v745_v50, %v444_v49 }
  0xf5   : > { %469 = vst [vmem:[%s752_s27 + $0x68] sm:$0xff] %v381_v48  ;;  %485 = vst [vmem:[%s752_s27 + $0xe8] sm:$0xff] %v445_v51 }
  0xf6 PF: > { %s13_s12 = sadd.s32 1, %s648_s12  }
  0xf7   : > { %p10_p4 = scmp.ge.s32.totalorder %s13_s12, 4  }
  0xf9   :  { %12 = sbr.rel (!%p10_p4) target bundleno = 1 (0x1), region = 62 }

// kernel: generator_fwd.55
= control target key start
LH: loop header
LB: loop body
LE: loop exit
PB: predicated region body
PF: predicated region fallthrough
CT: control target
= control target key end

     0   :  { %s770_s1 = inlined_call_operand.vmem [shape: bf16[256,128], index: 1, kind: input, shape index: {}]   ;;  %s771_s0 = inlined_call_operand.vmem [shape: f32[128,256], index: 0, kind: input, shape index: {}]   ;;  %s772_s2 = inlined_call_operand.vmem [shape: f32[1,128], index: 2, kind: input, shape index: {}]   ;;  %s773_s3 = inlined_call_operand.vmem [shape: f32[128,128], index: 3, kind: output, shape index: {}]  }
   0x1   :  { %v508_v0 = vld [vmem:[%s770_s1 + $0x78] sm:$0xff]   ;;  %v510_v2 = vld [vmem:[%s770_s1 + $0x70] sm:$0xff]   ;;  %v512_v4 = vld [vmem:[%s770_s1 + $0x68] sm:$0xff]  }
   0x2   :  { %v509_v1 = vld [vmem:[%s770_s1 + $0x38] sm:$0xff]   ;;  %428 = vmatprep.subr.bf16.mxu0 %v508_v0  ;;  %492 = vmatprep.subr.bf16.mxu1 %v508_v0  ;;  %v511_v3 = vld [vmem:[%s770_s1 + $0x30] sm:$0xff]   ;;  %v513_v5 = vld [vmem:[%s770_s1 + $0x28] sm:$0xff]  }
   0x3   :  { %429 = vmatpush3.bf16.msra.mxu0 %v509_v1  ;;  %500 = vmatpush3.bf16.msra.mxu1 %v509_v1  ;;  %v514_v6 = vld [vmem:[%s770_s1 + $0x60] sm:$0xff]   ;;  %v516_v8 = vld [vmem:[%s770_s1 + $0x58] sm:$0xff]   ;;  %v518_v10 = vld [vmem:[%s770_s1 + $0x50] sm:$0xff]  }
   0x4   :  { %430 = vmatprep.subr.bf16.mxu0 %v510_v2  ;;  %493 = vmatprep.subr.bf16.mxu1 %v510_v2  ;;  %v515_v7 = vld [vmem:[%s770_s1 + $0x20] sm:$0xff]   ;;  %v517_v9 = vld [vmem:[%s770_s1 + $0x18] sm:$0xff]   ;;  %v16_v11 = vld [vmem:[%s771_s0 + $0x8] sm:$0xff] }
   0x5   :  { %v18_v12 = vld [vmem:[%s771_s0 + $0x18] sm:$0xff]  ;;  %v32_v13 = vld [vmem:[%s771_s0 + $0x88] sm:$0xff]  ;;  %vm48_vm0 = vcmp.ge.f32.partialorder %v16_v11, 0.0  ;;  %v80_v14 = vmul.f32 0.2, %v16_v11  ;;  %v15_v18 = vld [vmem:[%s771_s0] sm:$0xff] }
   0x6   :  { %vm50_vm1 = vcmp.ge.f32.partialorder %v18_v12, 0.0  ;;  %v82_v15 = vmul.f32 0.2, %v18_v12  ;;  %v34_v16 = vld [vmem:[%s771_s0 + $0x98] sm:$0xff]  ;;  %vm64_vm2 = vcmp.ge.f32.partialorder %v32_v13, 0.0  ;;  %v17_v19 = vld [vmem:[%s771_s0 + $0x10] sm:$0xff] }
   0x7   :  { %431 = vmatpush3.bf16.msra.mxu0 %v511_v3  ;;  %501 = vmatpush3.bf16.msra.mxu1 %v511_v3  ;;  %v96_v17 = vmul.f32 0.2, %v32_v13  ;;  %v519_v20 = vld [vmem:[%s770_s1 + $0x10] sm:$0xff]   ;;  %v112_v21 = vsel %vm48_vm0, %v16_v11, %v80_v14  ;;  %vm66_vm3 = vcmp.ge.f32.partialorder %v34_v16, 0.0  ;;  %v98_v23 = vmul.f32 0.2, %v34_v16 }
   0x8   :  { %432 = vmatprep.subr.bf16.mxu0 %v512_v4  ;;  %494 = vmatprep.subr.bf16.mxu1 %v512_v4  ;;  %v114_v22 = vsel %vm50_vm1, %v18_v12, %v82_v15  ;;  %v31_v24 = vld [vmem:[%s771_s0 + $0x80] sm:$0xff]  ;;  %v33_v25 = vld [vmem:[%s771_s0 + $0x90] sm:$0xff]  ;;  %v520_v26 = vld [vmem:[%s770_s1 + $0x48] sm:$0xff]   ;;  %vm47_vm4 = vcmp.ge.f32.partialorder %v15_v18, 0.0  ;;  %vm49_vm5 = vcmp.ge.f32.partialorder %v17_v19, 0.0 }
   0x9   :  { %v144_v27 = vpack.c.bf16 %v114_v22, %v112_v21  ;;  %v128_v28 = vsel %vm64_vm2, %v32_v13, %v96_v17  ;;  %v20_v29 = vld [vmem:[%s771_s0 + $0x28] sm:$0xff]  ;;  %v22_v30 = vld [vmem:[%s771_s0 + $0x38] sm:$0xff]  ;;  %v130_v31 = vsel %vm66_vm3, %v34_v16, %v98_v23  ;;  %v79_v32 = vmul.f32 0.2, %v15_v18  ;;  %v522_v42 = vld [vmem:[%s770_s1 + $0x40] sm:$0xff]  }
   0xa   :  { %v81_v33 = vmul.f32 0.2, %v17_v19  ;;  %vm63_vm6 = vcmp.ge.f32.partialorder %v31_v24, 0.0  ;;  %v36_v34 = vld [vmem:[%s771_s0 + $0xa8] sm:$0xff]  ;;  %v152_v35 = vpack.c.bf16 %v130_v31, %v128_v28  ;;  %vm65_vm7 = vcmp.ge.f32.partialorder %v33_v25, 0.0  ;;  %v38_v38 = vld [vmem:[%s771_s0 + $0xb8] sm:$0xff] }
   0xb   :  { %433 = vmatpush3.bf16.msra.mxu0 %v513_v5  ;;  %502 = vmatpush3.bf16.msra.mxu1 %v513_v5  ;;  %v95_v36 = vmul.f32 0.2, %v31_v24  ;;  %v97_v37 = vmul.f32 0.2, %v33_v25  ;;  %v521_v39 = vld [vmem:[%s770_s1 + $0x8] sm:$0xff]   ;;  %v111_v40 = vsel %vm47_vm4, %v15_v18, %v79_v32  ;;  %vm52_vm8 = vcmp.ge.f32.partialorder %v20_v29, 0.0 }
   0xc   :  { %434 = vmatprep.subr.bf16.mxu0 %v514_v6  ;;  %495 = vmatprep.subr.bf16.mxu1 %v514_v6  ;;  %v113_v41 = vsel %vm49_vm5, %v17_v19, %v81_v33  ;;  %vm54_vm9 = vcmp.ge.f32.partialorder %v22_v30, 0.0  ;;  %v84_v45 = vmul.f32 0.2, %v20_v29  ;;  %v86_v46 = vmul.f32 0.2, %v22_v30  ;;  %v19_v47 = vld [vmem:[%s771_s0 + $0x20] sm:$0xff] }
   0xd   :  { %326 = vmatprep.mubr.bf16.mxu0 %v144_v27  ;;  %v127_v43 = vsel %vm63_vm6, %v31_v24, %v95_v36  ;;  %v129_v44 = vsel %vm65_vm7, %v33_v25, %v97_v37  ;;  %358 = vmatprep.mubr.bf16.mxu1 %v152_v35  ;;  %vm68_vm10 = vcmp.ge.f32.partialorder %v36_v34, 0.0  ;;  %vm70_vm11 = vcmp.ge.f32.partialorder %v38_v38, 0.0  ;;  %v21_v48 = vld [vmem:[%s771_s0 + $0x30] sm:$0xff]  ;;  %v35_v52 = vld [vmem:[%s771_s0 + $0xa0] sm:$0xff]  ;;  %v24_v62 = vld [vmem:[%s771_s0 + $0x48] sm:$0xff] }
   0xe   :  { %v116_v49 = vsel %vm52_vm8, %v20_v29, %v84_v45  ;;  %v100_v50 = vmul.f32 0.2, %v36_v34  ;;  %v102_v51 = vmul.f32 0.2, %v38_v38  ;;  %v523_v53 = vld [vmem:[%s770_s1] sm:$0xff]   ;;  %v143_v54 = vpack.c.bf16 %v113_v41, %v111_v40  ;;  %v37_v57 = vld [vmem:[%s771_s0 + $0xb0] sm:$0xff] }
   0xf   :  { %435 = vmatpush3.bf16.msra.mxu0 %v515_v7  ;;  %503 = vmatpush3.bf16.msra.mxu1 %v515_v7  ;;  %v151_v55 = vpack.c.bf16 %v129_v44, %v127_v43  ;;  %v118_v56 = vsel %vm54_vm9, %v22_v30, %v86_v46  ;;  %v83_v60 = vmul.f32 0.2, %v19_v47  ;;  %v85_v61 = vmul.f32 0.2, %v21_v48  ;;  %v26_v63 = vld [vmem:[%s771_s0 + $0x58] sm:$0xff]  ;;  %v40_v1 = vld [vmem:[%s771_s0 + $0xc8] sm:$0xff] }
  0x10   :  { %436 = vmatprep.subr.bf16.mxu0 %v516_v8  ;;  %496 = vmatprep.subr.bf16.mxu1 %v516_v8  ;;  %v132_v58 = vsel %vm68_vm10, %v36_v34, %v100_v50  ;;  %v134_v59 = vsel %vm70_vm11, %v38_v38, %v102_v51  ;;  %v146_v0 = vpack.c.bf16 %v118_v56, %v116_v49  ;;  %vm51_vm12 = vcmp.ge.f32.partialorder %v19_v47, 0.0  ;;  %v42_v5 = vld [vmem:[%s771_s0 + $0xd8] sm:$0xff]  ;;  %v23_v16 = vld [vmem:[%s771_s0 + $0x40] sm:$0xff]  ;;  %v25_v17 = vld [vmem:[%s771_s0 + $0x50] sm:$0xff] }
  0x11   :  { %vm53_vm13 = vcmp.ge.f32.partialorder %v21_v48, 0.0  ;;  %vm67_vm14 = vcmp.ge.f32.partialorder %v35_v52, 0.0  ;;  %v154_v2 = vpack.c.bf16 %v134_v59, %v132_v58  ;;  %vm69_vm15 = vcmp.ge.f32.partialorder %v37_v57, 0.0  ;;  %v39_v18 = vld [vmem:[%s771_s0 + $0xc0] sm:$0xff]  ;;  %v41_v19 = vld [vmem:[%s771_s0 + $0xd0] sm:$0xff]  ;;  %v28_v23 = vld [vmem:[%s771_s0 + $0x68] sm:$0xff] }
  0x12   :  { %v99_v3 = vmul.f32 0.2, %v35_v52  ;;  %v101_v4 = vmul.f32 0.2, %v37_v57  ;;  %vm56_vm0 = vcmp.ge.f32.partialorder %v24_v62, 0.0  ;;  %vm58_vm1 = vcmp.ge.f32.partialorder %v26_v63, 0.0 }
  0x13   :  { %437 = vmatpush3.bf16.msra.mxu0 %v517_v9  ;;  %504 = vmatpush3.bf16.msra.mxu1 %v517_v9  ;;  %v88_v6 = vmul.f32 0.2, %v24_v62  ;;  %v90_v7 = vmul.f32 0.2, %v26_v63  ;;  %v115_v8 = vsel %vm51_vm12, %v19_v47, %v83_v60  ;;  %v117_v9 = vsel %vm53_vm13, %v21_v48, %v85_v61  ;;  %v44_v27 = vld [vmem:[%s771_s0 + $0xe8] sm:$0xff]  ;;  %v46_v28 = vld [vmem:[%s771_s0 + $0xf8] sm:$0xff] }
  0x14   :  { %438 = vmatprep.subr.bf16.mxu0 %v518_v10  ;;  %497 = vmatprep.subr.bf16.mxu1 %v518_v10  ;;  %v104_v10 = vmul.f32 0.2, %v40_v1  ;;  %v131_v11 = vsel %vm67_vm14, %v35_v52, %v99_v3  ;;  %vm72_vm2 = vcmp.ge.f32.partialorder %v40_v1, 0.0  ;;  %vm74_vm3 = vcmp.ge.f32.partialorder %v42_v5, 0.0  ;;  %v29_v43 = vld [vmem:[%s771_s0 + $0x70] sm:$0xff]  ;;  %v43_v48 = vld [vmem:[%s771_s0 + $0xe0] sm:$0xff] }
  0x15   :  { %v106_v12 = vmul.f32 0.2, %v42_v5  ;;  %v133_v13 = vsel %vm69_vm15, %v37_v57, %v101_v4  ;;  %v120_v14 = vsel %vm56_vm0, %v24_v62, %v88_v6  ;;  %v122_v15 = vsel %vm58_vm1, %v26_v63, %v90_v7  ;;  %v45_v49 = vld [vmem:[%s771_s0 + $0xf0] sm:$0xff] }
  0x16   :  { %v136_v21 = vsel %vm72_vm2, %v40_v1, %v104_v10  ;;  %v153_v24 = vpack.c.bf16 %v133_v13, %v131_v11  ;;  %v148_v25 = vpack.c.bf16 %v122_v15, %v120_v14  ;;  %vm55_vm4 = vcmp.ge.f32.partialorder %v23_v16, 0.0 }
  0x17   :  { %439 = vmatpush3.bf16.msra.mxu0 %v519_v20  ;;  %505 = vmatpush3.bf16.msra.mxu1 %v519_v20  ;;  %v145_v20 = vpack.c.bf16 %v117_v9, %v115_v8  ;;  %v138_v22 = vsel %vm74_vm3, %v42_v5, %v106_v12  ;;  %vm57_vm5 = vcmp.ge.f32.partialorder %v25_v17, 0.0  ;;  %v87_v29 = vmul.f32 0.2, %v23_v16 }
  0x18   :  { %440 = vmatprep.subr.bf16.mxu0 %v520_v26  ;;  %498 = vmatprep.subr.bf16.mxu1 %v520_v26  ;;  %v30_v26 = vld [vmem:[%s771_s0 + $0x78] sm:$0xff]  ;;  %v89_v30 = vmul.f32 0.2, %v25_v17  ;;  %vm71_vm6 = vcmp.ge.f32.partialorder %v39_v18, 0.0  ;;  %vm73_vm7 = vcmp.ge.f32.partialorder %v41_v19, 0.0  ;;  %v156_v31 = vpack.c.bf16 %v138_v22, %v136_v21 }
  0x19   :  { %v103_v32 = vmul.f32 0.2, %v39_v18  ;;  %v105_v33 = vmul.f32 0.2, %v41_v19  ;;  %v92_v34 = vmul.f32 0.2, %v28_v23  ;;  %v119_v38 = vsel %vm55_vm4, %v23_v16, %v87_v29 }
  0x1a   :  { %v94_v35 = vmul.f32 0.2, %v30_v26  ;;  %v108_v36 = vmul.f32 0.2, %v44_v27  ;;  %v110_v37 = vmul.f32 0.2, %v46_v28 }
  0x1b   :  { %441 = vmatpush3.bf16.msra.mxu0 %v521_v39  ;;  %506 = vmatpush3.bf16.msra.mxu1 %v521_v39  ;;  %vm60_vm8 = vcmp.ge.f32.partialorder %v28_v23, 0.0  ;;  %vm62_vm9 = vcmp.ge.f32.partialorder %v30_v26, 0.0  ;;  %vm76_vm10 = vcmp.ge.f32.partialorder %v44_v27, 0.0  ;;  %vm78_vm11 = vcmp.ge.f32.partialorder %v46_v28, 0.0 }
  0x1c   :  { %442 = vmatprep.subr.bf16.mxu0 %v522_v42  ;;  %499 = vmatprep.subr.bf16.mxu1 %v522_v42  ;;  %v121_v39 = vsel %vm57_vm5, %v25_v17, %v89_v30  ;;  %v135_v40 = vsel %vm71_vm6, %v39_v18, %v103_v32  ;;  %v137_v41 = vsel %vm73_vm7, %v41_v19, %v105_v33  ;;  %v27_v42 = vld [vmem:[%s771_s0 + $0x60] sm:$0xff]  ;;  %v107_v56 = vmul.f32 0.2, %v43_v48 }
  0x1d   :  { %v124_v44 = vsel %vm60_vm8, %v28_v23, %v92_v34  ;;  %v126_v45 = vsel %vm62_vm9, %v30_v26, %v94_v35  ;;  %v140_v46 = vsel %vm76_vm10, %v44_v27, %v108_v36  ;;  %v142_v47 = vsel %vm78_vm11, %v46_v28, %v110_v37 }
  0x1e   :  { %v147_v50 = vpack.c.bf16 %v121_v39, %v119_v38  ;;  %v155_v51 = vpack.c.bf16 %v137_v41, %v135_v40  ;;  %vm59_vm12 = vcmp.ge.f32.partialorder %v27_v42, 0.0  ;;  %v91_v52 = vmul.f32 0.2, %v27_v42 }
  0x1f   :  { %443 = vmatpush3.bf16.msra.mxu0 %v523_v53  ;;  %507 = vmatpush3.bf16.msra.mxu1 %v523_v53  ;;  %v93_v53 = vmul.f32 0.2, %v29_v43  ;;  %v109_v57 = vmul.f32 0.2, %v45_v49  ;;  %vm61_vm13 = vcmp.ge.f32.partialorder %v29_v43, 0.0  ;;  %vm75_vm14 = vcmp.ge.f32.partialorder %v43_v48, 0.0 }
  0x20   :  { %vm77_vm15 = vcmp.ge.f32.partialorder %v45_v49, 0.0  ;;  %v123_v58 = vsel %vm59_vm12, %v27_v42, %v91_v52  ;;  %v139_v60 = vsel %vm75_vm14, %v43_v48, %v107_v56 }
  0x21   :  { %v125_v59 = vsel %vm61_vm13, %v29_v43, %v93_v53  ;;  %v141_v61 = vsel %vm77_vm15, %v45_v49, %v109_v57 }
  0x22   :  { %327 = vmatmul.mubr.bf16.vlgmr.msra.gmra.mxu0 %v143_v54  ;;  %359 = vmatmul.mubr.bf16.vlgmr.msra.gmra.mxu1 %v151_v55  ;;  %v150_v54 = vpack.c.bf16 %v126_v45, %v124_v44  ;;  %v158_v55 = vpack.c.bf16 %v142_v47, %v140_v46  ;;  %v149_v62 = vpack.c.bf16 %v125_v59, %v123_v58 }
  0x23   :  { %334 = vmatprep.mubr.bf16.mxu0 %v146_v0  ;;  %366 = vmatprep.mubr.bf16.mxu1 %v154_v2  ;;  %v157_v63 = vpack.c.bf16 %v141_v61, %v139_v60  ;;  %v704_v2 = vld [vmem:[%s772_s2] ss:$0 sm:$0xff] }
  0x2a   :  { %335 = vmatmul.mubr.bf16.gmra.mxu0 %v145_v20  ;;  %367 = vmatmul.mubr.bf16.gmra.mxu1 %v153_v24 }
  0x2b   :  { %342 = vmatprep.mubr.bf16.mxu0 %v148_v25  ;;  %374 = vmatprep.mubr.bf16.mxu1 %v156_v31 }
  0x32   :  { %343 = vmatmul.mubr.bf16.gmra.mxu0 %v147_v50  ;;  %375 = vmatmul.mubr.bf16.gmra.mxu1 %v155_v51 }
  0x33   :  { %350 = vmatprep.mubr.bf16.mxu0 %v150_v54  ;;  %382 = vmatprep.mubr.bf16.mxu1 %v158_v55 }
  0x3a   :  { %351 = vmatmul.mubr.bf16.gmra.mxu0 %v149_v62  ;;  %383 = vmatmul.mubr.bf16.gmra.mxu1 %v157_v63 }
  0xe2   :  { %v444_v0 = vpop.f32.mrf.mxu0  ;;  %v468_v1 = vpop.f32.mrf.mxu1 }
  0xe4   :  { %v445_v3 = vpop.f32.mrf.mxu0  ;;  %v469_v4 = vpop.f32.mrf.mxu1 }
  0xe5   :  { %v446_v5 = vadd.f32 %v445_v3, %v444_v0  ;;  %v470_v6 = vadd.f32 %v469_v4, %v468_v1 }
  0xe6   :  { %v447_v7 = vpop.f32.mrf.mxu0  ;;  %v471_v8 = vpop.f32.mrf.mxu1 }
  0xe7   :  { %v329_v9 = vadd.f32 %v446_v5, %v704_v2  ;;  %v361_v10 = vadd.f32 %v470_v6, %v704_v2 }
  0xe8   :  { %v448_v11 = vpop.f32.mrf.mxu0  ;;  %v472_v12 = vpop.f32.mrf.mxu1 }
  0xe9   :  { %391 = vst [vmem:[%s773_s3] sm:$0xff] %v329_v9  ;;  %399 = vst [vmem:[%s773_s3 + $0x40] sm:$0xff] %v361_v10  ;;  %v449_v13 = vadd.f32 %v448_v11, %v447_v7  ;;  %v473_v14 = vadd.f32 %v472_v12, %v471_v8 }
  0xea   :  { %v450_v15 = vpop.f32.mrf.mxu0  ;;  %v474_v16 = vpop.f32.mrf.mxu1 }
  0xeb   :  { %v332_v17 = vadd.f32 %v449_v13, %v704_v2  ;;  %v364_v18 = vadd.f32 %v473_v14, %v704_v2 }
  0xec   :  { %v451_v19 = vpop.f32.mrf.mxu0  ;;  %v475_v20 = vpop.f32.mrf.mxu1 }
  0xed   :  { %392 = vst [vmem:[%s773_s3 + $0x8] sm:$0xff] %v332_v17  ;;  %400 = vst [vmem:[%s773_s3 + $0x48] sm:$0xff] %v364_v18  ;;  %v452_v21 = vadd.f32 %v451_v19, %v450_v15  ;;  %v476_v22 = vadd.f32 %v475_v20, %v474_v16 }
  0xee   :  { %v453_v23 = vpop.f32.mrf.mxu0  ;;  %v477_v24 = vpop.f32.mrf.mxu1 }
  0xef   :  { %v337_v25 = vadd.f32 %v452_v21, %v704_v2  ;;  %v369_v26 = vadd.f32 %v476_v22, %v704_v2 }
  0xf0   :  { %v454_v27 = vpop.f32.mrf.mxu0  ;;  %v478_v28 = vpop.f32.mrf.mxu1 }
  0xf1   :  { %393 = vst [vmem:[%s773_s3 + $0x10] sm:$0xff] %v337_v25  ;;  %401 = vst [vmem:[%s773_s3 + $0x50] sm:$0xff] %v369_v26  ;;  %v455_v29 = vadd.f32 %v454_v27, %v453_v23  ;;  %v479_v30 = vadd.f32 %v478_v28, %v477_v24 }
  0xf2   :  { %v456_v31 = vpop.f32.mrf.mxu0  ;;  %v480_v32 = vpop.f32.mrf.mxu1 }
  0xf3   :  { %v340_v33 = vadd.f32 %v455_v29, %v704_v2  ;;  %v372_v34 = vadd.f32 %v479_v30, %v704_v2 }
  0xf4   :  { %v457_v35 = vpop.f32.mrf.mxu0  ;;  %v481_v36 = vpop.f32.mrf.mxu1 }
  0xf5   :  { %394 = vst [vmem:[%s773_s3 + $0x18] sm:$0xff] %v340_v33  ;;  %402 = vst [vmem:[%s773_s3 + $0x58] sm:$0xff] %v372_v34  ;;  %v458_v37 = vadd.f32 %v457_v35, %v456_v31  ;;  %v482_v38 = vadd.f32 %v481_v36, %v480_v32 }
  0xf6   :  { %v459_v39 = vpop.f32.mrf.mxu0  ;;  %v483_v40 = vpop.f32.mrf.mxu1 }
  0xf7   :  { %v345_v41 = vadd.f32 %v458_v37, %v704_v2  ;;  %v377_v42 = vadd.f32 %v482_v38, %v704_v2 }
  0xf8   :  { %v460_v43 = vpop.f32.mrf.mxu0  ;;  %v484_v44 = vpop.f32.mrf.mxu1 }
  0xf9   :  { %395 = vst [vmem:[%s773_s3 + $0x20] sm:$0xff] %v345_v41  ;;  %403 = vst [vmem:[%s773_s3 + $0x60] sm:$0xff] %v377_v42  ;;  %v461_v45 = vadd.f32 %v460_v43, %v459_v39  ;;  %v485_v46 = vadd.f32 %v484_v44, %v483_v40 }
  0xfa   :  { %v462_v47 = vpop.f32.mrf.mxu0  ;;  %v486_v48 = vpop.f32.mrf.mxu1 }
  0xfb   :  { %v348_v49 = vadd.f32 %v461_v45, %v704_v2  ;;  %v380_v50 = vadd.f32 %v485_v46, %v704_v2 }
  0xfc   :  { %v463_v51 = vpop.f32.mrf.mxu0  ;;  %v487_v52 = vpop.f32.mrf.mxu1 }
  0xfd   :  { %396 = vst [vmem:[%s773_s3 + $0x28] sm:$0xff] %v348_v49  ;;  %404 = vst [vmem:[%s773_s3 + $0x68] sm:$0xff] %v380_v50  ;;  %v464_v53 = vadd.f32 %v463_v51, %v462_v47  ;;  %v488_v54 = vadd.f32 %v487_v52, %v486_v48 }
  0xfe   :  { %v465_v55 = vpop.f32.mrf.mxu0  ;;  %v489_v56 = vpop.f32.mrf.mxu1 }
  0xff   :  { %v353_v57 = vadd.f32 %v464_v53, %v704_v2  ;;  %v385_v58 = vadd.f32 %v488_v54, %v704_v2 }
 0x100   :  { %v466_v59 = vpop.f32.mrf.mxu0  ;;  %v490_v60 = vpop.f32.mrf.mxu1 }
 0x101   :  { %397 = vst [vmem:[%s773_s3 + $0x30] sm:$0xff] %v353_v57  ;;  %405 = vst [vmem:[%s773_s3 + $0x70] sm:$0xff] %v385_v58  ;;  %v467_v61 = vadd.f32 %v466_v59, %v465_v55  ;;  %v491_v62 = vadd.f32 %v490_v60, %v489_v56 }
 0x103   :  { %v356_v63 = vadd.f32 %v467_v61, %v704_v2  ;;  %v388_v0 = vadd.f32 %v491_v62, %v704_v2 }
 0x105   :  { %398 = vst [vmem:[%s773_s3 + $0x38] sm:$0xff] %v356_v63  ;;  %406 = vst [vmem:[%s773_s3 + $0x78] sm:$0xff] %v388_v0 }

// kernel: generator_fwd.56
= control target key start
LH: loop header
LB: loop body
LE: loop exit
PB: predicated region body
PF: predicated region fallthrough
CT: control target
= control target key end

     0   :  { %s757_s1 = inlined_call_operand.vmem [shape: bf16[512,128], index: 1, kind: input, shape index: {}]   ;;  %s758_s0 = inlined_call_operand.vmem [shape: f32[32,512], index: 0, kind: input, shape index: {}]   ;;  %s759_s2 = inlined_call_operand.vmem [shape: f32[1,128], index: 2, kind: input, shape index: {}]   ;;  %s760_s3 = inlined_call_operand.vmem [shape: f32[32,128], index: 3, kind: output, shape index: {}]  }
   0x1   :  { %v545_v0 = vld [vmem:[%s757_s1 + $0x78] sm:$0xff]   ;;  %v549_v4 = vld [vmem:[%s757_s1 + $0x70] sm:$0xff]   ;;  %v553_v8 = vld [vmem:[%s757_s1 + $0x68] sm:$0xff]  }
   0x2   :  { %v546_v1 = vld [vmem:[%s757_s1 + $0xf8] sm:$0xff]   ;;  %489 = vmatprep.subr.bf16.mxu0 %v545_v0  ;;  %v550_v5 = vld [vmem:[%s757_s1 + $0xf0] sm:$0xff]   ;;  %v554_v9 = vld [vmem:[%s757_s1 + $0xe8] sm:$0xff]  }
   0x3   :  { %v547_v2 = vld [vmem:[%s757_s1 + $0x38] sm:$0xff]   ;;  %517 = vmatprep.subr.bf16.mxu1 %v546_v1  ;;  %v551_v6 = vld [vmem:[%s757_s1 + $0x30] sm:$0xff]   ;;  %v555_v10 = vld [vmem:[%s757_s1 + $0x28] sm:$0xff]  }
   0x4   :  { %v548_v3 = vld [vmem:[%s757_s1 + $0xb8] sm:$0xff]   ;;  %490 = vmatpush3.bf16.msra.mxu0 %v547_v2  ;;  %v552_v7 = vld [vmem:[%s757_s1 + $0xb0] sm:$0xff]   ;;  %v556_v11 = vld [vmem:[%s757_s1 + $0xa8] sm:$0xff]  }
   0x5   :  { %518 = vmatpush3.bf16.msra.mxu1 %v548_v3  ;;  %491 = vmatprep.subr.bf16.mxu0 %v549_v4  ;;  %v557_v12 = vld [vmem:[%s757_s1 + $0x60] sm:$0xff]   ;;  %v561_v16 = vld [vmem:[%s757_s1 + $0x58] sm:$0xff]   ;;  %v565_v20 = vld [vmem:[%s757_s1 + $0x50] sm:$0xff]  }
   0x6   :  { %519 = vmatprep.subr.bf16.mxu1 %v550_v5  ;;  %v558_v13 = vld [vmem:[%s757_s1 + $0xe0] sm:$0xff]   ;;  %v562_v17 = vld [vmem:[%s757_s1 + $0xd8] sm:$0xff]   ;;  %v566_v21 = vld [vmem:[%s757_s1 + $0xd0] sm:$0xff]  }
   0x7   :  { %v559_v14 = vld [vmem:[%s757_s1 + $0x20] sm:$0xff]   ;;  %v563_v18 = vld [vmem:[%s757_s1 + $0x18] sm:$0xff]   ;;  %v567_v22 = vld [vmem:[%s757_s1 + $0x10] sm:$0xff]  }
   0x8   :  { %492 = vmatpush3.bf16.msra.mxu0 %v551_v6  ;;  %v560_v15 = vld [vmem:[%s757_s1 + $0xa0] sm:$0xff]   ;;  %v564_v19 = vld [vmem:[%s757_s1 + $0x98] sm:$0xff]   ;;  %v568_v23 = vld [vmem:[%s757_s1 + $0x90] sm:$0xff]  }
   0x9   :  { %520 = vmatpush3.bf16.msra.mxu1 %v552_v7  ;;  %493 = vmatprep.subr.bf16.mxu0 %v553_v8  ;;  %v569_v24 = vld [vmem:[%s757_s1 + $0x48] sm:$0xff]   ;;  %v573_v28 = vld [vmem:[%s757_s1 + $0x40] sm:$0xff]   ;;  %v18_v34 = vld [vmem:[%s758_s0 + $0x18] sm:$0xff] }
   0xa   :  { %521 = vmatprep.subr.bf16.mxu1 %v554_v9  ;;  %v570_v25 = vld [vmem:[%s757_s1 + $0xc8] sm:$0xff]   ;;  %v574_v29 = vld [vmem:[%s757_s1 + $0xc0] sm:$0xff]   ;;  %v22_v37 = vld [vmem:[%s758_s0 + $0x38] sm:$0xff]  ;;  %vm34_vm2 = vcmp.ge.f32.partialorder %v18_v34, 0.0  ;;  %v50_v38 = vmul.f32 0.2, %v18_v34 }
   0xb   :  { %v571_v26 = vld [vmem:[%s757_s1 + $0x8] sm:$0xff]   ;;  %v575_v30 = vld [vmem:[%s757_s1] sm:$0xff]   ;;  %vm38_vm3 = vcmp.ge.f32.partialorder %v22_v37, 0.0  ;;  %v54_v43 = vmul.f32 0.2, %v22_v37  ;;  %v17_v44 = vld [vmem:[%s758_s0 + $0x10] sm:$0xff] }
   0xc   :  { %494 = vmatpush3.bf16.msra.mxu0 %v555_v10  ;;  %v572_v27 = vld [vmem:[%s757_s1 + $0x88] sm:$0xff]   ;;  %v576_v31 = vld [vmem:[%s757_s1 + $0x80] sm:$0xff]   ;;  %v21_v45 = vld [vmem:[%s758_s0 + $0x30] sm:$0xff]  ;;  %v66_v47 = vsel %vm34_vm2, %v18_v34, %v50_v38  ;;  %vm33_vm6 = vcmp.ge.f32.partialorder %v17_v44, 0.0  ;;  %v49_v55 = vmul.f32 0.2, %v17_v44 }
   0xd   :  { %522 = vmatpush3.bf16.msra.mxu1 %v556_v11  ;;  %495 = vmatprep.subr.bf16.mxu0 %v557_v12  ;;  %v16_v32 = vld [vmem:[%s758_s0 + $0x8] sm:$0xff]  ;;  %v15_v39 = vld [vmem:[%s758_s0] sm:$0xff]  ;;  %v70_v50 = vsel %vm38_vm3, %v22_v37, %v54_v43  ;;  %v26_v53 = vld [vmem:[%s758_s0 + $0x58] sm:$0xff]  ;;  %vm37_vm7 = vcmp.ge.f32.partialorder %v21_v45, 0.0  ;;  %v53_v56 = vmul.f32 0.2, %v21_v45 }
   0xe   :  { %523 = vmatprep.subr.bf16.mxu1 %v558_v13  ;;  %v20_v33 = vld [vmem:[%s758_s0 + $0x28] sm:$0xff]  ;;  %vm32_vm0 = vcmp.ge.f32.partialorder %v16_v32, 0.0  ;;  %v48_v35 = vmul.f32 0.2, %v16_v32  ;;  %v19_v40 = vld [vmem:[%s758_s0 + $0x20] sm:$0xff]  ;;  %vm31_vm4 = vcmp.ge.f32.partialorder %v15_v39, 0.0  ;;  %v82_v54 = vpack.c.bf16 %v70_v50, %v66_v47 }
   0xf   :  { %vm36_vm1 = vcmp.ge.f32.partialorder %v20_v33, 0.0  ;;  %v52_v36 = vmul.f32 0.2, %v20_v33  ;;  %vm35_vm5 = vcmp.ge.f32.partialorder %v19_v40, 0.0  ;;  %v24_v48 = vld [vmem:[%s758_s0 + $0x48] sm:$0xff]  ;;  %v30_v57 = vld [vmem:[%s758_s0 + $0x78] sm:$0xff]  ;;  %v65_v62 = vsel %vm33_vm6, %v17_v44, %v49_v55 }
  0x10   :  { %496 = vmatpush3.bf16.msra.mxu0 %v559_v14  ;;  %v64_v41 = vsel %vm32_vm0, %v16_v32, %v48_v35  ;;  %v28_v49 = vld [vmem:[%s758_s0 + $0x68] sm:$0xff]  ;;  %v47_v51 = vmul.f32 0.2, %v15_v39  ;;  %v51_v52 = vmul.f32 0.2, %v19_v40  ;;  %vm40_vm8 = vcmp.ge.f32.partialorder %v24_v48, 0.0  ;;  %431 = vmatprep.mubr.bf16.mxu1 %v82_v54 }
  0x11   :  { %524 = vmatpush3.bf16.msra.mxu1 %v560_v15  ;;  %497 = vmatprep.subr.bf16.mxu0 %v561_v16  ;;  %v68_v42 = vsel %vm36_vm1, %v20_v33, %v52_v36  ;;  %vm44_vm9 = vcmp.ge.f32.partialorder %v28_v49, 0.0  ;;  %v23_v60 = vld [vmem:[%s758_s0 + $0x40] sm:$0xff]  ;;  %v69_v63 = vsel %vm37_vm7, %v21_v45, %v53_v56  ;;  %v56_v0 = vmul.f32 0.2, %v24_v48  ;;  %v25_v4 = vld [vmem:[%s758_s0 + $0x50] sm:$0xff] }
  0x12   :  { %525 = vmatprep.subr.bf16.mxu1 %v562_v17  ;;  %v80_v46 = vpack.c.bf16 %v68_v42, %v64_v41  ;;  %v63_v58 = vsel %vm31_vm4, %v15_v39, %v47_v51  ;;  %v67_v59 = vsel %vm35_vm5, %v19_v40, %v51_v52  ;;  %v27_v1 = vld [vmem:[%s758_s0 + $0x60] sm:$0xff]  ;;  %v81_v2 = vpack.c.bf16 %v69_v63, %v65_v62  ;;  %v29_v8 = vld [vmem:[%s758_s0 + $0x70] sm:$0xff] }
  0x13   :  { %v79_v61 = vpack.c.bf16 %v67_v59, %v63_v58  ;;  %v60_v3 = vmul.f32 0.2, %v28_v49  ;;  %vm42_vm10 = vcmp.ge.f32.partialorder %v26_v53, 0.0  ;;  %vm46_vm11 = vcmp.ge.f32.partialorder %v30_v57, 0.0 }
  0x14   :  { %498 = vmatpush3.bf16.msra.mxu0 %v563_v18  ;;  %382 = vmatprep.mubr.bf16.mxu0 %v80_v46  ;;  %v72_v5 = vsel %vm40_vm8, %v24_v48, %v56_v0  ;;  %v58_v6 = vmul.f32 0.2, %v26_v53  ;;  %v62_v7 = vmul.f32 0.2, %v30_v57  ;;  %vm39_vm12 = vcmp.ge.f32.partialorder %v23_v60, 0.0 }
  0x15   :  { %526 = vmatpush3.bf16.msra.mxu1 %v564_v19  ;;  %499 = vmatprep.subr.bf16.mxu0 %v565_v20  ;;  %v76_v9 = vsel %vm44_vm9, %v28_v49, %v60_v3  ;;  %vm43_vm13 = vcmp.ge.f32.partialorder %v27_v1, 0.0  ;;  %v55_v10 = vmul.f32 0.2, %v23_v60  ;;  %v59_v11 = vmul.f32 0.2, %v27_v1 }
  0x16   :  { %527 = vmatprep.subr.bf16.mxu1 %v566_v21  ;;  %v84_v12 = vpack.c.bf16 %v76_v9, %v72_v5  ;;  %v74_v13 = vsel %vm42_vm10, %v26_v53, %v58_v6  ;;  %v78_v14 = vsel %vm46_vm11, %v30_v57, %v62_v7  ;;  %vm41_vm14 = vcmp.ge.f32.partialorder %v25_v4, 0.0 }
  0x17   :  { %v86_v15 = vpack.c.bf16 %v78_v14, %v74_v13  ;;  %v71_v16 = vsel %vm39_vm12, %v23_v60, %v55_v10  ;;  %v75_v17 = vsel %vm43_vm13, %v27_v1, %v59_v11  ;;  %vm45_vm15 = vcmp.ge.f32.partialorder %v29_v8, 0.0 }
  0x18   :  { %500 = vmatpush3.bf16.msra.mxu0 %v567_v22  ;;  %v83_v18 = vpack.c.bf16 %v75_v17, %v71_v16  ;;  %v57_v19 = vmul.f32 0.2, %v25_v4  ;;  %v61_v20 = vmul.f32 0.2, %v29_v8 }
  0x19   :  { %528 = vmatpush3.bf16.msra.mxu1 %v568_v23  ;;  %501 = vmatprep.subr.bf16.mxu0 %v569_v24 }
  0x1a   :  { %529 = vmatprep.subr.bf16.mxu1 %v570_v25  ;;  %v73_v21 = vsel %vm41_vm14, %v25_v4, %v57_v19  ;;  %v77_v22 = vsel %vm45_vm15, %v29_v8, %v61_v20 }
  0x1b   :  { %v85_v23 = vpack.c.bf16 %v77_v22, %v73_v21 }
  0x1c   :  { %502 = vmatpush3.bf16.msra.mxu0 %v571_v26  ;;  %v456_v26 = vld [vmem:[%s759_s2] ss:$0 sm:$0xff] }
  0x1d   :  { %530 = vmatpush3.bf16.msra.mxu1 %v572_v27  ;;  %503 = vmatprep.subr.bf16.mxu0 %v573_v28 }
  0x1e   :  { %531 = vmatprep.subr.bf16.mxu1 %v574_v29 }
  0x20   :  { %504 = vmatpush3.bf16.msra.mxu0 %v575_v30 }
  0x21   :  { %532 = vmatpush3.bf16.msra.mxu1 %v576_v31 }
  0x23   :  { %383 = vmatmul.mubr.bf16.vlgmr.msra.gmra.mxu0 %v79_v61 }
  0x24   :  { %432 = vmatmul.mubr.bf16.vlgmr.msra.gmra.mxu1 %v81_v2  ;;  %390 = vmatprep.mubr.bf16.mxu0 %v84_v12 }
  0x25   :  { %439 = vmatprep.mubr.bf16.mxu1 %v86_v15 }
  0x2b   :  { %391 = vmatmul.mubr.bf16.gmra.mxu0 %v83_v18 }
  0x2c   :  { %440 = vmatmul.mubr.bf16.gmra.mxu1 %v85_v23 }
  0xe3   :  { %v505_v24 = vpop.f32.mrf.mxu0 }
  0xe4   :  { %v533_v25 = vpop.f32.mrf.mxu1 }
  0xe5   :  { %v506_v27 = vpop.f32.mrf.mxu0 }
  0xe6   :  { %v507_v28 = vadd.f32 %v506_v27, %v505_v24  ;;  %v534_v29 = vpop.f32.mrf.mxu1 }
  0xe7   :  { %v508_v30 = vpop.f32.mrf.mxu0  ;;  %v535_v32 = vadd.f32 %v534_v29, %v533_v25 }
  0xe8   :  { %v385_v31 = vadd.f32 %v507_v28, %v456_v26  ;;  %v536_v33 = vpop.f32.mrf.mxu1 }
  0xe9   :  { %v509_v34 = vpop.f32.mrf.mxu0 }
  0xea   :  { %v434_v35 = vadd.f32 %v535_v32, %v385_v31  ;;  %v510_v36 = vadd.f32 %v509_v34, %v508_v30  ;;  %v537_v37 = vpop.f32.mrf.mxu1 }
  0xeb   :  { %v511_v38 = vpop.f32.mrf.mxu0  ;;  %v538_v40 = vadd.f32 %v537_v37, %v536_v33 }
  0xec   :  { %448 = vst [vmem:[%s760_s3] sm:$0xff] %v434_v35  ;;  %v388_v39 = vadd.f32 %v510_v36, %v456_v26  ;;  %v539_v41 = vpop.f32.mrf.mxu1 }
  0xed   :  { %v512_v42 = vpop.f32.mrf.mxu0 }
  0xee   :  { %v437_v43 = vadd.f32 %v538_v40, %v388_v39  ;;  %v513_v44 = vadd.f32 %v512_v42, %v511_v38  ;;  %v540_v45 = vpop.f32.mrf.mxu1 }
  0xef   :  { %v514_v46 = vpop.f32.mrf.mxu0  ;;  %v541_v48 = vadd.f32 %v540_v45, %v539_v41 }
  0xf0   :  { %449 = vst [vmem:[%s760_s3 + $0x8] sm:$0xff] %v437_v43  ;;  %v393_v47 = vadd.f32 %v513_v44, %v456_v26  ;;  %v542_v49 = vpop.f32.mrf.mxu1 }
  0xf1   :  { %v515_v50 = vpop.f32.mrf.mxu0 }
  0xf2   :  { %v442_v51 = vadd.f32 %v541_v48, %v393_v47  ;;  %v516_v52 = vadd.f32 %v515_v50, %v514_v46  ;;  %v543_v53 = vpop.f32.mrf.mxu1 }
  0xf3   :  { %v544_v55 = vadd.f32 %v543_v53, %v542_v49 }
  0xf4   :  { %450 = vst [vmem:[%s760_s3 + $0x10] sm:$0xff] %v442_v51  ;;  %v396_v54 = vadd.f32 %v516_v52, %v456_v26 }
  0xf6   :  { %v445_v56 = vadd.f32 %v544_v55, %v396_v54 }
  0xf8   :  { %451 = vst [vmem:[%s760_s3 + $0x18] sm:$0xff] %v445_v56 }

// kernel: generator_fwd.59
= control target key start
LH: loop header
LB: loop body
LE: loop exit
PB: predicated region body
PF: predicated region fallthrough
CT: control target
= control target key end

     0   :  { %vm60_vm0 = vcmask 523264   ;;  %s212_s1 = inlined_call_operand.vmem [shape: bf16[64,128], index: 1, kind: input, shape index: {}]   ;;  %s213_s0 = inlined_call_operand.vmem [shape: f32[32,64], index: 0, kind: input, shape index: {}]   ;;  %s214_s2 = inlined_call_operand.vmem [shape: f32[1,128], index: 2, kind: input, shape index: {}]   ;;  %s215_s3 = inlined_call_operand.vmem [shape: f32[32,128], index: 3, kind: output, shape index: {}]  }
   0x1   :  { %v149_v0 = vld [vmem:[%s212_s1 + $0x18] sm:$0xff]   ;;  %v150_v1 = vld [vmem:[%s212_s1 + $0x10] sm:$0xff]   ;;  %v151_v2 = vld [vmem:[%s212_s1 + $0x8] sm:$0xff]  }
   0x2   :  { %137 = vmatprep.subr.bf16.mxu0 %v149_v0  ;;  %v15_v3 = vld [vmem:[%s213_s0] sm:$0xff]  ;;  %v16_v4 = vld [vmem:[%s213_s0 + $0x8] sm:$0xff]  ;;  %v17_v7 = vld [vmem:[%s213_s0 + $0x10] sm:$0xff] }
   0x3   :  { %138 = vmatpush3.bf16.msra.mxu0 %v149_v0  ;;  %v19_v5 = vpack.c.bf16 %v16_v4, %v15_v3  ;;  %v152_v6 = vld [vmem:[%s212_s1] sm:$0xff]   ;;  %v18_v8 = vld [vmem:[%s213_s0 + $0x18] sm:$0xff] }
   0x4   :  { %139 = vmatprep.subr.bf16.mxu0 %v150_v1  ;;  %v20_v9 = vpack.c.bf16 %v18_v8, %v17_v7  ;;  %v124_v10 = vld [vmem:[%s214_s2] ss:$0 sm:$0xff] }
   0x5   :  { %145 = vmatprep.mubr.msk.bf16.mxu0 %vm60_vm0, %v19_v5 }
   0x7   :  { %140 = vmatpush3.bf16.msra.mxu0 %v150_v1 }
   0x8   :  { %141 = vmatprep.subr.bf16.mxu0 %v151_v2 }
   0xb   :  { %142 = vmatpush3.bf16.msra.mxu0 %v151_v2 }
   0xc   :  { %143 = vmatprep.subr.bf16.mxu0 %v152_v6 }
   0xf   :  { %144 = vmatpush3.bf16.msra.mxu0 %v152_v6 }
  0x12   :  { %146 = vmatmul.mubr.msk.bf16.vlgmr.msra.gmra.mxu0 %vm60_vm0, %v20_v9 }
  0xd2   :  { %v147_v11 = vpop.f32.mrf.mxu0 }
  0xd3   :  { %v110_v12 = vadd.f32 %v147_v11, %v124_v10 }
  0xd4   :  { %v101_v13 = vpop.f32.mrf.mxu0 }
  0xd5   :  { %118 = vst [vmem:[%s215_s3 + $0x10] sm:$0xff] %v110_v12  ;;  %v102_v14 = vadd.f32 %v124_v10, %v101_v13 }
  0xd6   :  { %v148_v15 = vpop.f32.mrf.mxu0 }
  0xd7   :  { %116 = vst [vmem:[%s215_s3] sm:$0xff] %v102_v14  ;;  %v113_v16 = vadd.f32 %v148_v15, %v124_v10 }
  0xd8   :  { %v104_v17 = vpop.f32.mrf.mxu0 }
  0xd9   :  { %119 = vst [vmem:[%s215_s3 + $0x18] sm:$0xff] %v113_v16  ;;  %v105_v18 = vadd.f32 %v124_v10, %v104_v17 }
  0xdb   :  { %117 = vst [vmem:[%s215_s3 + $0x8] sm:$0xff] %v105_v18 }

// kernel: generator_fwd.57
= control target key start
LH: loop header
LB: loop body
LE: loop exit
PB: predicated region body
PF: predicated region fallthrough
CT: control target
= control target key end

     0   :  { %s1198_s1 = inlined_call_operand.vmem [shape: bf16[1024,128], index: 1, kind: input, shape index: {}]   ;;  %s1199_s0 = inlined_call_operand.vmem [shape: f32[8,1024], index: 0, kind: input, shape index: {}]   ;;  %s1200_s2 = inlined_call_operand.vmem [shape: f32[1,128], index: 2, kind: input, shape index: {}]   ;;  %s1201_s3 = inlined_call_operand.vmem [shape: f32[8,128], index: 3, kind: output, shape index: {}]  }
   0x1   :  { %v892_v0 = vld [vmem:[%s1198_s1 + $0x78] sm:$0xff]   ;;  %v896_v4 = vld [vmem:[%s1198_s1 + $0x70] sm:$0xff]   ;;  %v900_v8 = vld [vmem:[%s1198_s1 + $0x68] sm:$0xff]  }
   0x2   :  { %v893_v1 = vld [vmem:[%s1198_s1 + $0xf8] sm:$0xff]   ;;  %804 = vmatprep.subr.bf16.mxu0 %v892_v0  ;;  %v897_v5 = vld [vmem:[%s1198_s1 + $0xf0] sm:$0xff]   ;;  %v901_v9 = vld [vmem:[%s1198_s1 + $0xe8] sm:$0xff]  }
   0x3   :  { %v894_v2 = vld [vmem:[%s1198_s1 + $0x38] sm:$0xff]   ;;  %826 = vmatprep.subr.bf16.mxu1 %v893_v1  ;;  %v898_v6 = vld [vmem:[%s1198_s1 + $0x30] sm:$0xff]   ;;  %v902_v10 = vld [vmem:[%s1198_s1 + $0x28] sm:$0xff]  }
   0x4   :  { %v895_v3 = vld [vmem:[%s1198_s1 + $0xb8] sm:$0xff]   ;;  %805 = vmatpush3.bf16.msra.mxu0 %v894_v2  ;;  %v899_v7 = vld [vmem:[%s1198_s1 + $0xb0] sm:$0xff]   ;;  %v903_v11 = vld [vmem:[%s1198_s1 + $0xa8] sm:$0xff]  }
   0x5   :  { %827 = vmatpush3.bf16.msra.mxu1 %v895_v3  ;;  %806 = vmatprep.subr.bf16.mxu0 %v896_v4  ;;  %v904_v12 = vld [vmem:[%s1198_s1 + $0x60] sm:$0xff]   ;;  %v908_v16 = vld [vmem:[%s1198_s1 + $0x58] sm:$0xff]   ;;  %v912_v20 = vld [vmem:[%s1198_s1 + $0x50] sm:$0xff]  }
   0x6   :  { %828 = vmatprep.subr.bf16.mxu1 %v897_v5  ;;  %v905_v13 = vld [vmem:[%s1198_s1 + $0xe0] sm:$0xff]   ;;  %v909_v17 = vld [vmem:[%s1198_s1 + $0xd8] sm:$0xff]   ;;  %v913_v21 = vld [vmem:[%s1198_s1 + $0xd0] sm:$0xff]  }
   0x7   :  { %v906_v14 = vld [vmem:[%s1198_s1 + $0x20] sm:$0xff]   ;;  %v910_v18 = vld [vmem:[%s1198_s1 + $0x18] sm:$0xff]   ;;  %v914_v22 = vld [vmem:[%s1198_s1 + $0x10] sm:$0xff]  }
   0x8   :  { %807 = vmatpush3.bf16.msra.mxu0 %v898_v6  ;;  %v907_v15 = vld [vmem:[%s1198_s1 + $0xa0] sm:$0xff]   ;;  %v911_v19 = vld [vmem:[%s1198_s1 + $0x98] sm:$0xff]   ;;  %v915_v23 = vld [vmem:[%s1198_s1 + $0x90] sm:$0xff]  }
   0x9   :  { %829 = vmatpush3.bf16.msra.mxu1 %v899_v7  ;;  %808 = vmatprep.subr.bf16.mxu0 %v900_v8  ;;  %v916_v24 = vld [vmem:[%s1198_s1 + $0x48] sm:$0xff]   ;;  %v920_v28 = vld [vmem:[%s1198_s1 + $0x40] sm:$0xff]   ;;  %v18_v33 = vld [vmem:[%s1199_s0 + $0x18] sm:$0xff] }
   0xa   :  { %830 = vmatprep.subr.bf16.mxu1 %v901_v9  ;;  %v917_v25 = vld [vmem:[%s1198_s1 + $0xc8] sm:$0xff]   ;;  %v921_v29 = vld [vmem:[%s1198_s1 + $0xc0] sm:$0xff]   ;;  %vm26_vm1 = vcmp.ge.f32.partialorder %v18_v33, 0.0  ;;  %v34_v36 = vmul.f32 0.2, %v18_v33  ;;  %v17_v38 = vld [vmem:[%s1199_s0 + $0x10] sm:$0xff] }
   0xb   :  { %v918_v26 = vld [vmem:[%s1198_s1 + $0x8] sm:$0xff]   ;;  %v922_v30 = vld [vmem:[%s1198_s1] sm:$0xff]   ;;  %vm25_vm3 = vcmp.ge.f32.partialorder %v17_v38, 0.0  ;;  %v33_v41 = vmul.f32 0.2, %v17_v38  ;;  %v924_v42 = vld [vmem:[%s1198_s1 + $0x178] sm:$0xff]  }
   0xc   :  { %809 = vmatpush3.bf16.msra.mxu0 %v902_v10  ;;  %v919_v27 = vld [vmem:[%s1198_s1 + $0x88] sm:$0xff]   ;;  %v923_v31 = vld [vmem:[%s1198_s1 + $0x80] sm:$0xff]   ;;  %v42_v40 = vsel %vm26_vm1, %v18_v33, %v34_v36  ;;  %v925_v46 = vld [vmem:[%s1198_s1 + $0x1f8] sm:$0xff]  }
   0xd   :  { %831 = vmatpush3.bf16.msra.mxu1 %v903_v11  ;;  %810 = vmatprep.subr.bf16.mxu0 %v904_v12  ;;  %v16_v32 = vld [vmem:[%s1199_s0 + $0x8] sm:$0xff]  ;;  %v15_v34 = vld [vmem:[%s1199_s0] sm:$0xff]  ;;  %v50_v44 = vpack.c.bf16 %v42_v40, %v42_v40  ;;  %v41_v48 = vsel %vm25_vm3, %v17_v38, %v33_v41  ;;  %v926_v49 = vld [vmem:[%s1198_s1 + $0x138] sm:$0xff]  }
   0xe   :  { %832 = vmatprep.subr.bf16.mxu1 %v905_v13  ;;  %vm24_vm0 = vcmp.ge.f32.partialorder %v16_v32, 0.0  ;;  %v32_v35 = vmul.f32 0.2, %v16_v32  ;;  %vm23_vm2 = vcmp.ge.f32.partialorder %v15_v34, 0.0  ;;  %v31_v37 = vmul.f32 0.2, %v15_v34 }
   0xf   :  { %646 = vmatprep.mubr.bf16.mxu1 %v50_v44  ;;  %v49_v50 = vpack.c.bf16 %v41_v48, %v41_v48  ;;  %v927_v51 = vld [vmem:[%s1198_s1 + $0x1b8] sm:$0xff]   ;;  %v928_v52 = vld [vmem:[%s1198_s1 + $0x170] sm:$0xff]   ;;  %v932_v56 = vld [vmem:[%s1198_s1 + $0x168] sm:$0xff]  }
  0x10   :  { %811 = vmatpush3.bf16.msra.mxu0 %v906_v14  ;;  %v40_v39 = vsel %vm24_vm0, %v16_v32, %v32_v35  ;;  %v39_v45 = vsel %vm23_vm2, %v15_v34, %v31_v37  ;;  %v929_v53 = vld [vmem:[%s1198_s1 + $0x1f0] sm:$0xff]   ;;  %v933_v57 = vld [vmem:[%s1198_s1 + $0x1e8] sm:$0xff]   ;;  %v936_v60 = vld [vmem:[%s1198_s1 + $0x160] sm:$0xff]  }
  0x11   :  { %833 = vmatpush3.bf16.msra.mxu1 %v907_v15  ;;  %812 = vmatprep.subr.bf16.mxu0 %v908_v16  ;;  %v48_v43 = vpack.c.bf16 %v40_v39, %v40_v39  ;;  %v47_v47 = vpack.c.bf16 %v39_v45, %v39_v45  ;;  %v930_v54 = vld [vmem:[%s1198_s1 + $0x130] sm:$0xff]   ;;  %v934_v58 = vld [vmem:[%s1198_s1 + $0x128] sm:$0xff]   ;;  %v937_v61 = vld [vmem:[%s1198_s1 + $0x1e0] sm:$0xff]  }
  0x12   :  { %834 = vmatprep.subr.bf16.mxu1 %v909_v17  ;;  %v931_v55 = vld [vmem:[%s1198_s1 + $0x1b0] sm:$0xff]   ;;  %v935_v59 = vld [vmem:[%s1198_s1 + $0x1a8] sm:$0xff]   ;;  %v938_v62 = vld [vmem:[%s1198_s1 + $0x120] sm:$0xff]  }
  0x13   :  { %606 = vmatprep.mubr.bf16.mxu0 %v48_v43  ;;  %v939_v63 = vld [vmem:[%s1198_s1 + $0x1a0] sm:$0xff]   ;;  %v940_v0 = vld [vmem:[%s1198_s1 + $0x158] sm:$0xff]   ;;  %v944_v4 = vld [vmem:[%s1198_s1 + $0x150] sm:$0xff]  }
  0x14   :  { %813 = vmatpush3.bf16.msra.mxu0 %v910_v18  ;;  %v941_v1 = vld [vmem:[%s1198_s1 + $0x1d8] sm:$0xff]   ;;  %v945_v5 = vld [vmem:[%s1198_s1 + $0x1d0] sm:$0xff]   ;;  %v948_v8 = vld [vmem:[%s1198_s1 + $0x148] sm:$0xff]  }
  0x15   :  { %835 = vmatpush3.bf16.msra.mxu1 %v911_v19  ;;  %814 = vmatprep.subr.bf16.mxu0 %v912_v20  ;;  %v942_v2 = vld [vmem:[%s1198_s1 + $0x118] sm:$0xff]   ;;  %v946_v6 = vld [vmem:[%s1198_s1 + $0x110] sm:$0xff]   ;;  %v949_v9 = vld [vmem:[%s1198_s1 + $0x1c8] sm:$0xff]  }
  0x16   :  { %836 = vmatprep.subr.bf16.mxu1 %v913_v21  ;;  %v943_v3 = vld [vmem:[%s1198_s1 + $0x198] sm:$0xff]   ;;  %v947_v7 = vld [vmem:[%s1198_s1 + $0x190] sm:$0xff]   ;;  %v950_v10 = vld [vmem:[%s1198_s1 + $0x108] sm:$0xff]  }
  0x17   :  { %v951_v11 = vld [vmem:[%s1198_s1 + $0x188] sm:$0xff]   ;;  %v952_v12 = vld [vmem:[%s1198_s1 + $0x140] sm:$0xff]   ;;  %v22_v17 = vld [vmem:[%s1199_s0 + $0x38] sm:$0xff] }
  0x18   :  { %815 = vmatpush3.bf16.msra.mxu0 %v914_v22  ;;  %v953_v13 = vld [vmem:[%s1198_s1 + $0x1c0] sm:$0xff]   ;;  %v20_v16 = vld [vmem:[%s1199_s0 + $0x28] sm:$0xff]  ;;  %vm30_vm5 = vcmp.ge.f32.partialorder %v22_v17, 0.0  ;;  %v38_v20 = vmul.f32 0.2, %v22_v17  ;;  %v21_v22 = vld [vmem:[%s1199_s0 + $0x30] sm:$0xff] }
  0x19   :  { %837 = vmatpush3.bf16.msra.mxu1 %v915_v23  ;;  %816 = vmatprep.subr.bf16.mxu0 %v916_v24  ;;  %v954_v14 = vld [vmem:[%s1198_s1 + $0x100] sm:$0xff]   ;;  %vm28_vm4 = vcmp.ge.f32.partialorder %v20_v16, 0.0  ;;  %v36_v19 = vmul.f32 0.2, %v20_v16  ;;  %vm29_vm7 = vcmp.ge.f32.partialorder %v21_v22, 0.0 }
  0x1a   :  { %838 = vmatprep.subr.bf16.mxu1 %v917_v25  ;;  %v955_v15 = vld [vmem:[%s1198_s1 + $0x180] sm:$0xff]   ;;  %v46_v24 = vsel %vm30_vm5, %v22_v17, %v38_v20  ;;  %v37_v25 = vmul.f32 0.2, %v21_v22 }
  0x1b   :  { %v19_v18 = vld [vmem:[%s1199_s0 + $0x20] sm:$0xff]  ;;  %v44_v23 = vsel %vm28_vm4, %v20_v16, %v36_v19 }
  0x1c   :  { %817 = vmatpush3.bf16.msra.mxu0 %v918_v26  ;;  %vm27_vm6 = vcmp.ge.f32.partialorder %v19_v18, 0.0  ;;  %v35_v21 = vmul.f32 0.2, %v19_v18  ;;  %v52_v26 = vpack.c.bf16 %v44_v23, %v44_v23  ;;  %v739_v41 = vld [vmem:[%s1200_s2] ss:$0 sm:$0xff] }
  0x1d   :  { %839 = vmatpush3.bf16.msra.mxu1 %v919_v27  ;;  %818 = vmatprep.subr.bf16.mxu0 %v920_v28  ;;  %v54_v27 = vpack.c.bf16 %v46_v24, %v46_v24 }
  0x1e   :  { %840 = vmatprep.subr.bf16.mxu1 %v921_v29  ;;  %v43_v28 = vsel %vm27_vm6, %v19_v18, %v35_v21 }
  0x1f   :  { %v51_v29 = vpack.c.bf16 %v43_v28, %v43_v28 }
  0x20   :  { %819 = vmatpush3.bf16.msra.mxu0 %v922_v30  ;;  %v45_v30 = vsel %vm29_vm7, %v21_v22, %v37_v25 }
  0x21   :  { %841 = vmatpush3.bf16.msra.mxu1 %v923_v31  ;;  %848 = vmatprep.subr.bf16.mxu0 %v924_v42  ;;  %v53_v31 = vpack.c.bf16 %v45_v30, %v45_v30 }
  0x22   :  { %870 = vmatprep.subr.bf16.mxu1 %v925_v46 }
  0x23   :  { %607 = vmatmul.mubr.bf16.vlgmr.msra.gmra.mxu0 %v47_v47 }
  0x24   :  { %647 = vmatmul.mubr.bf16.vlgmr.msra.gmra.mxu1 %v49_v50  ;;  %849 = vmatpush3.bf16.msra.mxu0 %v926_v49 }
  0x25   :  { %871 = vmatpush3.bf16.msra.mxu1 %v927_v51  ;;  %850 = vmatprep.subr.bf16.mxu0 %v928_v52 }
  0x26   :  { %872 = vmatprep.subr.bf16.mxu1 %v929_v53  ;;  %686 = vmatprep.mubr.bf16.mxu0 %v52_v26 }
  0x27   :  { %726 = vmatprep.mubr.bf16.mxu1 %v54_v27 }
  0x28   :  { %851 = vmatpush3.bf16.msra.mxu0 %v930_v54 }
  0x29   :  { %873 = vmatpush3.bf16.msra.mxu1 %v931_v55  ;;  %852 = vmatprep.subr.bf16.mxu0 %v932_v56 }
  0x2a   :  { %874 = vmatprep.subr.bf16.mxu1 %v933_v57 }
  0x2c   :  { %853 = vmatpush3.bf16.msra.mxu0 %v934_v58 }
  0x2d   :  { %875 = vmatpush3.bf16.msra.mxu1 %v935_v59  ;;  %854 = vmatprep.subr.bf16.mxu0 %v936_v60 }
  0x2e   :  { %876 = vmatprep.subr.bf16.mxu1 %v937_v61 }
  0x30   :  { %855 = vmatpush3.bf16.msra.mxu0 %v938_v62 }
  0x31   :  { %877 = vmatpush3.bf16.msra.mxu1 %v939_v63  ;;  %856 = vmatprep.subr.bf16.mxu0 %v940_v0 }
  0x32   :  { %878 = vmatprep.subr.bf16.mxu1 %v941_v1 }
  0x34   :  { %857 = vmatpush3.bf16.msra.mxu0 %v942_v2 }
  0x35   :  { %879 = vmatpush3.bf16.msra.mxu1 %v943_v3  ;;  %858 = vmatprep.subr.bf16.mxu0 %v944_v4 }
  0x36   :  { %880 = vmatprep.subr.bf16.mxu1 %v945_v5 }
  0x38   :  { %859 = vmatpush3.bf16.msra.mxu0 %v946_v6 }
  0x39   :  { %881 = vmatpush3.bf16.msra.mxu1 %v947_v7  ;;  %860 = vmatprep.subr.bf16.mxu0 %v948_v8 }
  0x3a   :  { %882 = vmatprep.subr.bf16.mxu1 %v949_v9 }
  0x3c   :  { %861 = vmatpush3.bf16.msra.mxu0 %v950_v10 }
  0x3d   :  { %883 = vmatpush3.bf16.msra.mxu1 %v951_v11  ;;  %862 = vmatprep.subr.bf16.mxu0 %v952_v12 }
  0x3e   :  { %884 = vmatprep.subr.bf16.mxu1 %v953_v13 }
  0x40   :  { %863 = vmatpush3.bf16.msra.mxu0 %v954_v14 }
  0x41   :  { %885 = vmatpush3.bf16.msra.mxu1 %v955_v15 }
  0x43   :  { %687 = vmatmul.mubr.bf16.vlgmr.msra.gmra.mxu0 %v51_v29 }
  0x44   :  { %727 = vmatmul.mubr.bf16.vlgmr.msra.gmra.mxu1 %v53_v31 }
  0xe3   :  { %v820_v32 = vpop.f32.mrf.mxu0 }
  0xe4   :  { %v842_v33 = vpop.f32.mrf.mxu1 }
  0xe5   :  { %v821_v34 = vpop.f32.mrf.mxu0 }
  0xe6   :  { %v843_v35 = vpop.f32.mrf.mxu1  ;;  %v822_v40 = vadd.f32 %v821_v34, %v820_v32 }
  0xe7   :  { %v823_v36 = vpop.f32.mrf.mxu0  ;;  %v844_v43 = vadd.f32 %v843_v35, %v842_v33 }
  0xe8   :  { %v845_v37 = vpop.f32.mrf.mxu1  ;;  %v609_v42 = vadd.f32 %v822_v40, %v739_v41 }
  0xe9   :  { %v824_v38 = vpop.f32.mrf.mxu0 }
  0xea   :  { %v846_v39 = vpop.f32.mrf.mxu1  ;;  %v649_v47 = vadd.f32 %v844_v43, %v609_v42 }
 0x103   :  { %v864_v44 = vpop.f32.mrf.mxu0 }
 0x104   :  { %v886_v45 = vpop.f32.mrf.mxu1 }
 0x105   :  { %v865_v46 = vpop.f32.mrf.mxu0 }
 0x106   :  { %v866_v48 = vadd.f32 %v865_v46, %v864_v44  ;;  %v887_v49 = vpop.f32.mrf.mxu1 }
 0x107   :  { %v867_v50 = vpop.f32.mrf.mxu0  ;;  %v888_v52 = vadd.f32 %v887_v49, %v886_v45 }
 0x108   :  { %v689_v51 = vadd.f32 %v866_v48, %v649_v47  ;;  %v889_v53 = vpop.f32.mrf.mxu1 }
 0x109   :  { %v868_v54 = vpop.f32.mrf.mxu0 }
 0x10a   :  { %v729_v55 = vadd.f32 %v888_v52, %v689_v51  ;;  %v890_v56 = vpop.f32.mrf.mxu1 }
 0x10c   :  { %734 = vst [vmem:[%s1201_s3] sm:$0xff] %v729_v55 }

// kernel: generator_fwd.60
= control target key start
LH: loop header
LB: loop body
LE: loop exit
PB: predicated region body
PF: predicated region fallthrough
CT: control target
= control target key end

     0   :  { %vm340_vm0 = vcmask 523264   ;;  %s854_s1 = inlined_call_operand.vmem [shape: bf16[576,128], index: 1, kind: input, shape index: {}]   ;;  %s855_s0 = inlined_call_operand.vmem [shape: f32[32,576], index: 0, kind: input, shape index: {}]   ;;  %s856_s2 = inlined_call_operand.vmem [shape: f32[1,128], index: 2, kind: input, shape index: {}]   ;;  %s857_s3 = inlined_call_operand.vmem [shape: f32[32,128], index: 3, kind: output, shape index: {}]  }
   0x1   :  { %v615_v0 = vld [vmem:[%s854_s1 + $0x78] sm:$0xff]   ;;  %v619_v4 = vld [vmem:[%s854_s1 + $0x70] sm:$0xff]   ;;  %v623_v8 = vld [vmem:[%s854_s1 + $0x68] sm:$0xff]  }
   0x2   :  { %v616_v1 = vld [vmem:[%s854_s1 + $0xf8] sm:$0xff]   ;;  %541 = vmatprep.subr.bf16.mxu0 %v615_v0  ;;  %v620_v5 = vld [vmem:[%s854_s1 + $0xf0] sm:$0xff]   ;;  %v624_v9 = vld [vmem:[%s854_s1 + $0xe8] sm:$0xff]  }
   0x3   :  { %v617_v2 = vld [vmem:[%s854_s1 + $0x38] sm:$0xff]   ;;  %569 = vmatprep.subr.bf16.mxu1 %v616_v1  ;;  %v621_v6 = vld [vmem:[%s854_s1 + $0x30] sm:$0xff]   ;;  %v625_v10 = vld [vmem:[%s854_s1 + $0x28] sm:$0xff]  }
   0x4   :  { %v618_v3 = vld [vmem:[%s854_s1 + $0xb8] sm:$0xff]   ;;  %542 = vmatpush3.bf16.msra.mxu0 %v617_v2  ;;  %v622_v7 = vld [vmem:[%s854_s1 + $0xb0] sm:$0xff]   ;;  %v626_v11 = vld [vmem:[%s854_s1 + $0xa8] sm:$0xff]  }
   0x5   :  { %570 = vmatpush3.bf16.msra.mxu1 %v618_v3  ;;  %543 = vmatprep.subr.bf16.mxu0 %v619_v4  ;;  %v627_v12 = vld [vmem:[%s854_s1 + $0x60] sm:$0xff]   ;;  %v631_v16 = vld [vmem:[%s854_s1 + $0x58] sm:$0xff]   ;;  %v635_v20 = vld [vmem:[%s854_s1 + $0x50] sm:$0xff]  }
   0x6   :  { %571 = vmatprep.subr.bf16.mxu1 %v620_v5  ;;  %v628_v13 = vld [vmem:[%s854_s1 + $0xe0] sm:$0xff]   ;;  %v632_v17 = vld [vmem:[%s854_s1 + $0xd8] sm:$0xff]   ;;  %v636_v21 = vld [vmem:[%s854_s1 + $0xd0] sm:$0xff]  }
   0x7   :  { %v629_v14 = vld [vmem:[%s854_s1 + $0x20] sm:$0xff]   ;;  %v633_v18 = vld [vmem:[%s854_s1 + $0x18] sm:$0xff]   ;;  %v637_v22 = vld [vmem:[%s854_s1 + $0x10] sm:$0xff]  }
   0x8   :  { %544 = vmatpush3.bf16.msra.mxu0 %v621_v6  ;;  %v630_v15 = vld [vmem:[%s854_s1 + $0xa0] sm:$0xff]   ;;  %v634_v19 = vld [vmem:[%s854_s1 + $0x98] sm:$0xff]   ;;  %v638_v23 = vld [vmem:[%s854_s1 + $0x90] sm:$0xff]  }
   0x9   :  { %572 = vmatpush3.bf16.msra.mxu1 %v622_v7  ;;  %545 = vmatprep.subr.bf16.mxu0 %v623_v8  ;;  %v639_v24 = vld [vmem:[%s854_s1 + $0x48] sm:$0xff]   ;;  %v643_v28 = vld [vmem:[%s854_s1 + $0x40] sm:$0xff]   ;;  %v21_v33 = vld [vmem:[%s855_s0 + $0x30] sm:$0xff] }
   0xa   :  { %573 = vmatprep.subr.bf16.mxu1 %v624_v9  ;;  %v640_v25 = vld [vmem:[%s854_s1 + $0xc8] sm:$0xff]   ;;  %v644_v29 = vld [vmem:[%s854_s1 + $0xc0] sm:$0xff]   ;;  %v18_v34 = vld [vmem:[%s855_s0 + $0x18] sm:$0xff] }
   0xb   :  { %v641_v26 = vld [vmem:[%s854_s1 + $0x8] sm:$0xff]   ;;  %v645_v30 = vld [vmem:[%s854_s1] sm:$0xff]   ;;  %v17_v41 = vld [vmem:[%s855_s0 + $0x10] sm:$0xff] }
   0xc   :  { %546 = vmatpush3.bf16.msra.mxu0 %v625_v10  ;;  %v642_v27 = vld [vmem:[%s854_s1 + $0x88] sm:$0xff]   ;;  %v646_v31 = vld [vmem:[%s854_s1 + $0x80] sm:$0xff]   ;;  %v22_v42 = vld [vmem:[%s855_s0 + $0x38] sm:$0xff] }
   0xd   :  { %574 = vmatpush3.bf16.msra.mxu1 %v626_v11  ;;  %547 = vmatprep.subr.bf16.mxu0 %v627_v12  ;;  %v16_v32 = vld [vmem:[%s855_s0 + $0x8] sm:$0xff]  ;;  %v23_v36 = vld [vmem:[%s855_s0 + $0x40] sm:$0xff]  ;;  %v37_v43 = vpack.c.bf16 %v22_v42, %v17_v41  ;;  %v647_v44 = vld [vmem:[%s854_s1 + $0x118] sm:$0xff]  }
   0xe   :  { %575 = vmatprep.subr.bf16.mxu1 %v628_v13  ;;  %v36_v35 = vpack.c.bf16 %v21_v33, %v16_v32  ;;  %v15_v37 = vld [vmem:[%s855_s0] sm:$0xff]  ;;  %v20_v38 = vld [vmem:[%s855_s0 + $0x28] sm:$0xff]  ;;  %v38_v39 = vpack.c.bf16 %v23_v36, %v18_v34  ;;  %v648_v45 = vld [vmem:[%s854_s1 + $0x110] sm:$0xff]  }
   0xf   :  { %v35_v40 = vpack.c.bf16 %v20_v38, %v15_v37  ;;  %v26_v46 = vld [vmem:[%s855_s0 + $0x58] sm:$0xff]  ;;  %v31_v47 = vld [vmem:[%s855_s0 + $0x80] sm:$0xff]  ;;  %v28_v48 = vld [vmem:[%s855_s0 + $0x68] sm:$0xff] }
  0x10   :  { %548 = vmatpush3.bf16.msra.mxu0 %v629_v14  ;;  %379 = vmatprep.mubr.bf16.mxu0 %v36_v35  ;;  %v33_v49 = vld [vmem:[%s855_s0 + $0x90] sm:$0xff]  ;;  %v41_v50 = vpack.c.bf16 %v31_v47, %v26_v46  ;;  %v30_v53 = vld [vmem:[%s855_s0 + $0x78] sm:$0xff]  ;;  %v27_v54 = vld [vmem:[%s855_s0 + $0x60] sm:$0xff] }
  0x11   :  { %576 = vmatpush3.bf16.msra.mxu1 %v630_v15  ;;  %549 = vmatprep.subr.bf16.mxu0 %v631_v16  ;;  %v43_v51 = vpack.c.bf16 %v33_v49, %v28_v48  ;;  %v25_v52 = vld [vmem:[%s855_s0 + $0x50] sm:$0xff]  ;;  %v32_v55 = vld [vmem:[%s855_s0 + $0x88] sm:$0xff]  ;;  %v19_v59 = vld [vmem:[%s855_s0 + $0x20] sm:$0xff] }
  0x12   :  { %577 = vmatprep.subr.bf16.mxu1 %v632_v17  ;;  %428 = vmatprep.mubr.bf16.mxu1 %v38_v39  ;;  %v40_v56 = vpack.c.bf16 %v30_v53, %v25_v52  ;;  %v649_v57 = vld [vmem:[%s854_s1 + $0x108] sm:$0xff]   ;;  %v42_v58 = vpack.c.bf16 %v32_v55, %v27_v54  ;;  %v650_v62 = vld [vmem:[%s854_s1 + $0x100] sm:$0xff]   ;;  %v29_v63 = vld [vmem:[%s855_s0 + $0x70] sm:$0xff] }
  0x13   :  { %v24_v60 = vld [vmem:[%s855_s0 + $0x48] sm:$0xff]  ;;  %v34_v0 = vld [vmem:[%s855_s0 + $0x98] sm:$0xff]  ;;  %v502_v14 = vld [vmem:[%s856_s2] ss:$0 sm:$0xff] }
  0x14   :  { %550 = vmatpush3.bf16.msra.mxu0 %v633_v18  ;;  %v39_v61 = vpack.c.bf16 %v24_v60, %v19_v59  ;;  %v44_v1 = vpack.c.bf16 %v34_v0, %v29_v63 }
  0x15   :  { %578 = vmatpush3.bf16.msra.mxu1 %v634_v19  ;;  %551 = vmatprep.subr.bf16.mxu0 %v635_v20 }
  0x16   :  { %579 = vmatprep.subr.bf16.mxu1 %v636_v21 }
  0x18   :  { %552 = vmatpush3.bf16.msra.mxu0 %v637_v22 }
  0x19   :  { %580 = vmatpush3.bf16.msra.mxu1 %v638_v23  ;;  %553 = vmatprep.subr.bf16.mxu0 %v639_v24 }
  0x1a   :  { %581 = vmatprep.subr.bf16.mxu1 %v640_v25 }
  0x1c   :  { %554 = vmatpush3.bf16.msra.mxu0 %v641_v26 }
  0x1d   :  { %582 = vmatpush3.bf16.msra.mxu1 %v642_v27  ;;  %555 = vmatprep.subr.bf16.mxu0 %v643_v28 }
  0x1e   :  { %583 = vmatprep.subr.bf16.mxu1 %v644_v29 }
  0x20   :  { %556 = vmatpush3.bf16.msra.mxu0 %v645_v30 }
  0x21   :  { %584 = vmatpush3.bf16.msra.mxu1 %v646_v31  ;;  %603 = vmatprep.subr.bf16.mxu0 %v647_v44 }
  0x23   :  { %380 = vmatmul.mubr.bf16.vlgmr.msra.gmra.mxu0 %v35_v40 }
  0x24   :  { %429 = vmatmul.mubr.bf16.vlgmr.msra.gmra.mxu1 %v37_v43  ;;  %604 = vmatpush3.bf16.msra.mxu0 %v647_v44 }
  0x25   :  { %605 = vmatprep.subr.bf16.mxu0 %v648_v45  ;;  %387 = vmatprep.mubr.bf16.mxu0 %v41_v50 }
  0x26   :  { %436 = vmatprep.mubr.bf16.mxu1 %v43_v51 }
  0x28   :  { %606 = vmatpush3.bf16.msra.mxu0 %v648_v45 }
  0x29   :  { %607 = vmatprep.subr.bf16.mxu0 %v649_v57 }
  0x2b   :  { %388 = vmatmul.mubr.bf16.gmra.mxu0 %v40_v56 }
  0x2c   :  { %437 = vmatmul.mubr.bf16.gmra.mxu1 %v42_v58  ;;  %611 = vmatprep.mubr.msk.bf16.mxu0 %vm340_vm0, %v39_v61 }
  0x2d   :  { %608 = vmatpush3.bf16.msra.mxu0 %v649_v57 }
  0x2e   :  { %609 = vmatprep.subr.bf16.mxu0 %v650_v62 }
  0x31   :  { %610 = vmatpush3.bf16.msra.mxu0 %v650_v62 }
  0x34   :  { %612 = vmatmul.mubr.msk.bf16.vlgmr.msra.gmra.mxu0 %vm340_vm0, %v44_v1 }
  0xe3   :  { %v557_v2 = vpop.f32.mrf.mxu0 }
  0xe4   :  { %v585_v3 = vpop.f32.mrf.mxu1 }
  0xe5   :  { %v558_v4 = vpop.f32.mrf.mxu0 }
  0xe6   :  { %v586_v5 = vpop.f32.mrf.mxu1  ;;  %v559_v12 = vadd.f32 %v558_v4, %v557_v2 }
  0xe7   :  { %v560_v6 = vpop.f32.mrf.mxu0  ;;  %v587_v22 = vadd.f32 %v586_v5, %v585_v3 }
  0xe8   :  { %v588_v7 = vpop.f32.mrf.mxu1  ;;  %v382_v21 = vadd.f32 %v559_v12, %v502_v14 }
  0xe9   :  { %v561_v8 = vpop.f32.mrf.mxu0 }
  0xea   :  { %v589_v9 = vpop.f32.mrf.mxu1  ;;  %v562_v23 = vadd.f32 %v561_v8, %v560_v6  ;;  %v431_v33 = vadd.f32 %v587_v22, %v382_v21 }
  0xeb   :  { %v563_v10 = vpop.f32.mrf.mxu0  ;;  %v590_v36 = vadd.f32 %v589_v9, %v588_v7 }
  0xec   :  { %v591_v11 = vpop.f32.mrf.mxu1  ;;  %v385_v31 = vadd.f32 %v562_v23, %v502_v14 }
  0xed   :  { %v564_v13 = vpop.f32.mrf.mxu0 }
  0xee   :  { %v565_v15 = vadd.f32 %v564_v13, %v563_v10  ;;  %v592_v16 = vpop.f32.mrf.mxu1  ;;  %v434_v40 = vadd.f32 %v590_v36, %v385_v31 }
  0xef   :  { %v593_v17 = vadd.f32 %v592_v16, %v591_v11  ;;  %v566_v18 = vpop.f32.mrf.mxu0 }
  0xf0   :  { %v390_v19 = vadd.f32 %v565_v15, %v502_v14  ;;  %v594_v20 = vpop.f32.mrf.mxu1 }
  0xf1   :  { %v567_v24 = vpop.f32.mrf.mxu0 }
  0xf2   :  { %v568_v25 = vadd.f32 %v567_v24, %v566_v18  ;;  %v595_v26 = vpop.f32.mrf.mxu1  ;;  %v439_v27 = vadd.f32 %v593_v17, %v390_v19 }
  0xf3   :  { %v596_v29 = vadd.f32 %v595_v26, %v594_v20 }
  0xf4   :  { %v393_v28 = vadd.f32 %v568_v25, %v502_v14  ;;  %v613_v30 = vpop.f32.mrf.mxu0 }
  0xf5   :  { %v488_v32 = vadd.f32 %v613_v30, %v439_v27 }
  0xf6   :  { %v479_v34 = vpop.f32.mrf.mxu0  ;;  %v442_v35 = vadd.f32 %v596_v29, %v393_v28 }
  0xf7   :  { %496 = vst [vmem:[%s857_s3 + $0x10] sm:$0xff] %v488_v32  ;;  %v480_v37 = vadd.f32 %v479_v34, %v431_v33 }
  0xf8   :  { %v614_v38 = vpop.f32.mrf.mxu0 }
  0xf9   :  { %494 = vst [vmem:[%s857_s3] sm:$0xff] %v480_v37  ;;  %v491_v39 = vadd.f32 %v614_v38, %v442_v35 }
  0xfa   :  { %v482_v41 = vpop.f32.mrf.mxu0 }
  0xfb   :  { %497 = vst [vmem:[%s857_s3 + $0x18] sm:$0xff] %v491_v39  ;;  %v483_v42 = vadd.f32 %v482_v41, %v434_v40 }
  0xfd   :  { %495 = vst [vmem:[%s857_s3 + $0x8] sm:$0xff] %v483_v42 }

// kernel: generator_fwd.58
= control target key start
LH: loop header
LB: loop body
LE: loop exit
PB: predicated region body
PF: predicated region fallthrough
CT: control target
= control target key end

     0   :  { %s1979_s1 = inlined_call_operand.vmem [shape: bf16[1152,256], index: 1, kind: input, shape index: {}]   ;;  %s1980_s0 = inlined_call_operand.vmem [shape: f32[8,1152], index: 0, kind: input, shape index: {}]   ;;  %s1981_s2 = inlined_call_operand.vmem [shape: f32[1,256], index: 2, kind: input, shape index: {}]   ;;  %s1982_s3 = inlined_call_operand.vmem [shape: f32[8,256], index: 3, kind: output, shape index: {}]  }
   0x1   :  { %v1274_v0 = vld [vmem:[%s1979_s1 + $0x74] ss:$8 sps:$4 sm:$0xff]   ;;  %v1276_v1 = vld [vmem:[%s1979_s1 + $0x70] ss:$8 sps:$4 sm:$0xff]   ;;  %v1280_v4 = vld [vmem:[%s1979_s1 + $0x64] ss:$8 sps:$4 sm:$0xff]  }
   0x2   :  { %918 = vmatprep.subr.bf16.mxu0 %v1274_v0  ;;  %v1277_v2 = vld [vmem:[%s1979_s1 + $0x174] ss:$8 sps:$4 sm:$0xff]   ;;  %v1279_v3 = vld [vmem:[%s1979_s1 + $0x170] ss:$8 sps:$4 sm:$0xff]   ;;  %v1282_v5 = vld [vmem:[%s1979_s1 + $0x60] ss:$8 sps:$4 sm:$0xff]  }
   0x3   :  { %919 = vmatpush1.bf16.msra.mxu0 %v1276_v1  ;;  %959 = vmatprep.subr.bf16.mxu1 %v1277_v2  ;;  %v1283_v6 = vld [vmem:[%s1979_s1 + $0x164] ss:$8 sps:$4 sm:$0xff]   ;;  %v1285_v7 = vld [vmem:[%s1979_s1 + $0x160] ss:$8 sps:$4 sm:$0xff]   ;;  %v1286_v8 = vld [vmem:[%s1979_s1 + $0x54] ss:$8 sps:$4 sm:$0xff]  }
   0x4   :  { %960 = vmatpush1.bf16.msra.mxu1 %v1279_v3  ;;  %920 = vmatprep.subr.bf16.mxu0 %v1280_v4  ;;  %v1288_v9 = vld [vmem:[%s1979_s1 + $0x50] ss:$8 sps:$4 sm:$0xff]   ;;  %v1289_v10 = vld [vmem:[%s1979_s1 + $0x154] ss:$8 sps:$4 sm:$0xff]   ;;  %v1292_v11 = vld [vmem:[%s1979_s1 + $0x44] ss:$8 sps:$4 sm:$0xff]  }
   0x5   :  { %961 = vmatprep.subr.bf16.mxu1 %v1283_v6  ;;  %v1291_v12 = vld [vmem:[%s1979_s1 + $0x150] ss:$8 sps:$4 sm:$0xff]   ;;  %v1295_v13 = vld [vmem:[%s1979_s1 + $0x144] ss:$8 sps:$4 sm:$0xff]   ;;  %v1294_v14 = vld [vmem:[%s1979_s1 + $0x40] ss:$8 sps:$4 sm:$0xff]  }
   0x6   :  { %v1298_v15 = vld [vmem:[%s1979_s1 + $0x34] ss:$8 sps:$4 sm:$0xff]   ;;  %v1297_v16 = vld [vmem:[%s1979_s1 + $0x140] ss:$8 sps:$4 sm:$0xff]   ;;  %v1300_v18 = vld [vmem:[%s1979_s1 + $0x30] ss:$8 sps:$4 sm:$0xff]  }
   0x7   :  { %921 = vmatpush1.bf16.msra.mxu0 %v1282_v5  ;;  %v1301_v17 = vld [vmem:[%s1979_s1 + $0x134] ss:$8 sps:$4 sm:$0xff]   ;;  %v1304_v19 = vld [vmem:[%s1979_s1 + $0x24] ss:$8 sps:$4 sm:$0xff]   ;;  %v1303_v20 = vld [vmem:[%s1979_s1 + $0x130] ss:$8 sps:$4 sm:$0xff]  }
   0x8   :  { %922 = vmatprep.subr.bf16.mxu0 %v1286_v8  ;;  %962 = vmatpush1.bf16.msra.mxu1 %v1285_v7  ;;  %v1307_v21 = vld [vmem:[%s1979_s1 + $0x124] ss:$8 sps:$4 sm:$0xff]   ;;  %v1306_v22 = vld [vmem:[%s1979_s1 + $0x20] ss:$8 sps:$4 sm:$0xff]   ;;  %v1310_v23 = vld [vmem:[%s1979_s1 + $0x14] ss:$8 sps:$4 sm:$0xff]  }
   0x9   :  { %963 = vmatprep.subr.bf16.mxu1 %v1289_v10  ;;  %v1309_v24 = vld [vmem:[%s1979_s1 + $0x120] ss:$8 sps:$4 sm:$0xff]   ;;  %v1313_v25 = vld [vmem:[%s1979_s1 + $0x114] ss:$8 sps:$4 sm:$0xff]   ;;  %v1312_v26 = vld [vmem:[%s1979_s1 + $0x10] ss:$8 sps:$4 sm:$0xff]  }
   0xa   :  { %v1316_v27 = vld [vmem:[%s1979_s1 + $0x4] ss:$8 sps:$4 sm:$0xff]   ;;  %v1315_v28 = vld [vmem:[%s1979_s1 + $0x110] ss:$8 sps:$4 sm:$0xff]   ;;  %v1318_v30 = vld [vmem:[%s1979_s1] ss:$8 sps:$4 sm:$0xff]  }
   0xb   :  { %923 = vmatpush1.bf16.msra.mxu0 %v1288_v9  ;;  %v1319_v29 = vld [vmem:[%s1979_s1 + $0x104] ss:$8 sps:$4 sm:$0xff]   ;;  %v1322_v31 = vld [vmem:[%s1979_s1 + $0xf4] ss:$8 sps:$4 sm:$0xff]   ;;  %v1321_v32 = vld [vmem:[%s1979_s1 + $0x100] ss:$8 sps:$4 sm:$0xff]  }
   0xc   :  { %924 = vmatprep.subr.bf16.mxu0 %v1292_v11  ;;  %964 = vmatpush1.bf16.msra.mxu1 %v1291_v12  ;;  %v1325_v33 = vld [vmem:[%s1979_s1 + $0x1f4] ss:$8 sps:$4 sm:$0xff]   ;;  %v1324_v34 = vld [vmem:[%s1979_s1 + $0xf0] ss:$8 sps:$4 sm:$0xff]   ;;  %v1328_v35 = vld [vmem:[%s1979_s1 + $0xe4] ss:$8 sps:$4 sm:$0xff]  }
   0xd   :  { %965 = vmatprep.subr.bf16.mxu1 %v1295_v13  ;;  %v1327_v36 = vld [vmem:[%s1979_s1 + $0x1f0] ss:$8 sps:$4 sm:$0xff]   ;;  %v1331_v37 = vld [vmem:[%s1979_s1 + $0x1e4] ss:$8 sps:$4 sm:$0xff]   ;;  %v1330_v38 = vld [vmem:[%s1979_s1 + $0xe0] ss:$8 sps:$4 sm:$0xff]  }
   0xe   :  { %v1334_v39 = vld [vmem:[%s1979_s1 + $0xd4] ss:$8 sps:$4 sm:$0xff]   ;;  %v1333_v40 = vld [vmem:[%s1979_s1 + $0x1e0] ss:$8 sps:$4 sm:$0xff]   ;;  %v1336_v42 = vld [vmem:[%s1979_s1 + $0xd0] ss:$8 sps:$4 sm:$0xff]  }
   0xf   :  { %925 = vmatpush1.bf16.msra.mxu0 %v1294_v14  ;;  %v1337_v41 = vld [vmem:[%s1979_s1 + $0x1d4] ss:$8 sps:$4 sm:$0xff]   ;;  %v1340_v43 = vld [vmem:[%s1979_s1 + $0xc4] ss:$8 sps:$4 sm:$0xff]   ;;  %v1339_v44 = vld [vmem:[%s1979_s1 + $0x1d0] ss:$8 sps:$4 sm:$0xff]  }
  0x10   :  { %926 = vmatprep.subr.bf16.mxu0 %v1298_v15  ;;  %966 = vmatpush1.bf16.msra.mxu1 %v1297_v16  ;;  %v1343_v45 = vld [vmem:[%s1979_s1 + $0x1c4] ss:$8 sps:$4 sm:$0xff]   ;;  %v1342_v47 = vld [vmem:[%s1979_s1 + $0xc0] ss:$8 sps:$4 sm:$0xff]   ;;  %v1346_v49 = vld [vmem:[%s1979_s1 + $0xb4] ss:$8 sps:$4 sm:$0xff]  }
  0x11   :  { %967 = vmatprep.subr.bf16.mxu1 %v1301_v17  ;;  %v16_v46 = vld [vmem:[%s1980_s0 + $0x8] sm:$0xff]  ;;  %v18_v50 = vld [vmem:[%s1980_s0 + $0x18] sm:$0xff]  ;;  %v15_v2 = vld [vmem:[%s1980_s0] sm:$0xff] }
  0x12   :  { %v25_v48 = vmax.f32 %v16_v46, 0.0  ;;  %v1345_v51 = vld [vmem:[%s1979_s1 + $0x1c0] ss:$8 sps:$4 sm:$0xff]   ;;  %v27_v53 = vmax.f32 %v18_v50, 0.0  ;;  %v1349_v54 = vld [vmem:[%s1979_s1 + $0x1b4] ss:$8 sps:$4 sm:$0xff]  }
  0x13   :  { %927 = vmatpush1.bf16.msra.mxu0 %v1300_v18  ;;  %v1348_v55 = vld [vmem:[%s1979_s1 + $0xb0] ss:$8 sps:$4 sm:$0xff]   ;;  %v1352_v57 = vld [vmem:[%s1979_s1 + $0xa4] ss:$8 sps:$4 sm:$0xff]   ;;  %v1354_v60 = vld [vmem:[%s1979_s1 + $0xa0] ss:$8 sps:$4 sm:$0xff]  }
  0x14   :  { %928 = vmatprep.subr.bf16.mxu0 %v1304_v19  ;;  %968 = vmatpush1.bf16.msra.mxu1 %v1303_v20  ;;  %v34_v52 = vpack.c.bf16 %v25_v48, %v25_v48  ;;  %v36_v56 = vpack.c.bf16 %v27_v53, %v27_v53  ;;  %v1351_v58 = vld [vmem:[%s1979_s1 + $0x1b0] ss:$8 sps:$4 sm:$0xff]   ;;  %v1355_v59 = vld [vmem:[%s1979_s1 + $0x1a4] ss:$8 sps:$4 sm:$0xff]   ;;  %v1358_v61 = vld [vmem:[%s1979_s1 + $0x94] ss:$8 sps:$4 sm:$0xff]  }
  0x15   :  { %969 = vmatprep.subr.bf16.mxu1 %v1307_v21  ;;  %v1357_v62 = vld [vmem:[%s1979_s1 + $0x1a0] ss:$8 sps:$4 sm:$0xff]   ;;  %v1360_v63 = vld [vmem:[%s1979_s1 + $0x90] ss:$8 sps:$4 sm:$0xff]   ;;  %v1361_v0 = vld [vmem:[%s1979_s1 + $0x194] ss:$8 sps:$4 sm:$0xff]  }
  0x16   :  { %950 = vmatprep.mubr.bf16.mxu0 %v34_v52  ;;  %991 = vmatprep.mubr.bf16.mxu1 %v36_v56  ;;  %v1363_v1 = vld [vmem:[%s1979_s1 + $0x190] ss:$8 sps:$4 sm:$0xff]   ;;  %v1364_v3 = vld [vmem:[%s1979_s1 + $0x84] ss:$8 sps:$4 sm:$0xff]   ;;  %v24_v6 = vmax.f32 %v15_v2, 0.0 }
  0x17   :  { %929 = vmatpush1.bf16.msra.mxu0 %v1306_v22  ;;  %v17_v4 = vld [vmem:[%s1980_s0 + $0x10] sm:$0xff]  ;;  %v1367_v5 = vld [vmem:[%s1979_s1 + $0x184] ss:$8 sps:$4 sm:$0xff]   ;;  %v1366_v7 = vld [vmem:[%s1979_s1 + $0x80] ss:$8 sps:$4 sm:$0xff]  }
  0x18   :  { %930 = vmatprep.subr.bf16.mxu0 %v1310_v23  ;;  %970 = vmatpush1.bf16.msra.mxu1 %v1309_v24  ;;  %v1372_v8 = vld [vmem:[%s1979_s1 + $0x274] ss:$8 sps:$4 sm:$0xff]   ;;  %v26_v9 = vmax.f32 %v17_v4, 0.0  ;;  %v1369_v10 = vld [vmem:[%s1979_s1 + $0x180] ss:$8 sps:$4 sm:$0xff]   ;;  %v33_v11 = vpack.c.bf16 %v24_v6, %v24_v6 }
  0x19   :  { %971 = vmatprep.subr.bf16.mxu1 %v1313_v25  ;;  %v1375_v12 = vld [vmem:[%s1979_s1 + $0x374] ss:$8 sps:$4 sm:$0xff]   ;;  %v1370_v13 = vld [vmem:[%s1979_s1 + $0x270] ss:$8 sps:$4 sm:$0xff]   ;;  %v1378_v15 = vld [vmem:[%s1979_s1 + $0x264] ss:$8 sps:$4 sm:$0xff]  }
  0x1a   :  { %v35_v14 = vpack.c.bf16 %v26_v9, %v26_v9  ;;  %v1373_v16 = vld [vmem:[%s1979_s1 + $0x370] ss:$8 sps:$4 sm:$0xff]   ;;  %v1381_v17 = vld [vmem:[%s1979_s1 + $0x364] ss:$8 sps:$4 sm:$0xff]   ;;  %v1376_v18 = vld [vmem:[%s1979_s1 + $0x260] ss:$8 sps:$4 sm:$0xff]  }
  0x1b   :  { %931 = vmatpush1.bf16.msra.mxu0 %v1312_v26  ;;  %v1384_v19 = vld [vmem:[%s1979_s1 + $0x254] ss:$8 sps:$4 sm:$0xff]   ;;  %v1379_v20 = vld [vmem:[%s1979_s1 + $0x360] ss:$8 sps:$4 sm:$0xff]   ;;  %v1382_v22 = vld [vmem:[%s1979_s1 + $0x250] ss:$8 sps:$4 sm:$0xff]  }
  0x1c   :  { %932 = vmatprep.subr.bf16.mxu0 %v1316_v27  ;;  %972 = vmatpush1.bf16.msra.mxu1 %v1315_v28  ;;  %v1387_v21 = vld [vmem:[%s1979_s1 + $0x354] ss:$8 sps:$4 sm:$0xff]   ;;  %v1390_v23 = vld [vmem:[%s1979_s1 + $0x244] ss:$8 sps:$4 sm:$0xff]   ;;  %v1385_v24 = vld [vmem:[%s1979_s1 + $0x350] ss:$8 sps:$4 sm:$0xff]  }
  0x1d   :  { %973 = vmatprep.subr.bf16.mxu1 %v1319_v29  ;;  %v1393_v25 = vld [vmem:[%s1979_s1 + $0x344] ss:$8 sps:$4 sm:$0xff]   ;;  %v1388_v26 = vld [vmem:[%s1979_s1 + $0x240] ss:$8 sps:$4 sm:$0xff]   ;;  %v1396_v27 = vld [vmem:[%s1979_s1 + $0x234] ss:$8 sps:$4 sm:$0xff]  }
  0x1e   :  { %v1391_v28 = vld [vmem:[%s1979_s1 + $0x340] ss:$8 sps:$4 sm:$0xff]   ;;  %v1399_v29 = vld [vmem:[%s1979_s1 + $0x334] ss:$8 sps:$4 sm:$0xff]   ;;  %v1417_v46 = vld [vmem:[%s1979_s1 + $0x304] ss:$8 sps:$4 sm:$0xff]  }
  0x1f   :  { %933 = vmatpush1.bf16.msra.mxu0 %v1318_v30  ;;  %v1394_v30 = vld [vmem:[%s1979_s1 + $0x230] ss:$8 sps:$4 sm:$0xff]   ;;  %v1415_v50 = vld [vmem:[%s1979_s1 + $0x300] ss:$8 sps:$4 sm:$0xff]   ;;  %v1426_v53 = vld [vmem:[%s1979_s1 + $0x2e4] ss:$8 sps:$4 sm:$0xff]  }
  0x20   :  { %934 = vmatprep.subr.bf16.mxu0 %v1322_v31  ;;  %974 = vmatpush1.bf16.msra.mxu1 %v1321_v32  ;;  %v1402_v31 = vld [vmem:[%s1979_s1 + $0x224] ss:$8 sps:$4 sm:$0xff]   ;;  %v1397_v32 = vld [vmem:[%s1979_s1 + $0x330] ss:$8 sps:$4 sm:$0xff]   ;;  %v1424_v56 = vld [vmem:[%s1979_s1 + $0x2e0] ss:$8 sps:$4 sm:$0xff]  }
  0x21   :  { %975 = vmatprep.subr.bf16.mxu1 %v1325_v33  ;;  %v1405_v33 = vld [vmem:[%s1979_s1 + $0x324] ss:$8 sps:$4 sm:$0xff]   ;;  %v1418_v52 = vld [vmem:[%s1979_s1 + $0x2f0] ss:$8 sps:$4 sm:$0xff]   ;;  %v1439_v2 = vld [vmem:[%s1979_s1 + $0x3c0] ss:$8 sps:$4 sm:$0xff]  }
  0x22   :  { %v1442_v4 = vld [vmem:[%s1979_s1 + $0x2b0] ss:$8 sps:$4 sm:$0xff]   ;;  %v1456_v9 = vld [vmem:[%s1979_s1 + $0x294] ss:$8 sps:$4 sm:$0xff]  }
  0x23   :  { %935 = vmatpush2.bf16.msra.mxu0 %v1324_v34  ;;  %v1400_v34 = vld [vmem:[%s1979_s1 + $0x220] ss:$8 sps:$4 sm:$0xff]   ;;  %v1445_v6 = vld [vmem:[%s1979_s1 + $0x3b0] ss:$8 sps:$4 sm:$0xff]  }
  0x24   :  { %936 = vmatprep.subr.bf16.mxu0 %v1328_v35  ;;  %976 = vmatpush2.bf16.msra.mxu1 %v1327_v36  ;;  %v1408_v35 = vld [vmem:[%s1979_s1 + $0x214] ss:$8 sps:$4 sm:$0xff]   ;;  %v1403_v36 = vld [vmem:[%s1979_s1 + $0x320] ss:$8 sps:$4 sm:$0xff]  }
  0x25   :  { %977 = vmatprep.subr.bf16.mxu1 %v1331_v37  ;;  %v1411_v37 = vld [vmem:[%s1979_s1 + $0x314] ss:$8 sps:$4 sm:$0xff]  }
  0x27   :  { %937 = vmatpush2.bf16.msra.mxu0 %v1330_v38  ;;  %v20_v38 = vld [vmem:[%s1980_s0 + $0x28] sm:$0xff] }
  0x28   :  { %938 = vmatprep.subr.bf16.mxu0 %v1334_v39  ;;  %978 = vmatpush2.bf16.msra.mxu1 %v1333_v40  ;;  %v1406_v39 = vld [vmem:[%s1979_s1 + $0x210] ss:$8 sps:$4 sm:$0xff]   ;;  %v29_v40 = vmax.f32 %v20_v38, 0.0 }
  0x29   :  { %979 = vmatprep.subr.bf16.mxu1 %v1337_v41  ;;  %v1414_v41 = vld [vmem:[%s1979_s1 + $0x204] ss:$8 sps:$4 sm:$0xff]   ;;  %v1484_v38 = vld [vmem:[%s1979_s1 + $0x410] ss:$8 sps:$4 sm:$0xff]  }
  0x2b   :  { %939 = vmatpush2.bf16.msra.mxu0 %v1336_v42  ;;  %v22_v42 = vld [vmem:[%s1980_s0 + $0x38] sm:$0xff] }
  0x2c   :  { %940 = vmatprep.subr.bf16.mxu0 %v1340_v43  ;;  %980 = vmatpush2.bf16.msra.mxu1 %v1339_v44  ;;  %v1409_v43 = vld [vmem:[%s1979_s1 + $0x310] ss:$8 sps:$4 sm:$0xff]   ;;  %v38_v44 = vpack.c.bf16 %v29_v40, %v29_v40  ;;  %v1489_v40 = vld [vmem:[%s1979_s1 + $0x404] ss:$8 sps:$4 sm:$0xff]  }
  0x2d   :  { %981 = vmatprep.subr.bf16.mxu1 %v1343_v45  ;;  %v31_v45 = vmax.f32 %v22_v42, 0.0  ;;  %v1487_v42 = vld [vmem:[%s1979_s1 + $0x400] ss:$8 sps:$4 sm:$0xff]  }
  0x2f   :  { %941 = vmatpush2.bf16.msra.mxu0 %v1342_v47  ;;  %v1412_v47 = vld [vmem:[%s1979_s1 + $0x200] ss:$8 sps:$4 sm:$0xff]   ;;  %v40_v48 = vpack.c.bf16 %v31_v45, %v31_v45 }
  0x30   :  { %942 = vmatprep.subr.bf16.mxu0 %v1346_v49  ;;  %982 = vmatpush2.bf16.msra.mxu1 %v1345_v51  ;;  %v1420_v49 = vld [vmem:[%s1979_s1 + $0x2f4] ss:$8 sps:$4 sm:$0xff]  }
  0x31   :  { %983 = vmatprep.subr.bf16.mxu1 %v1349_v54  ;;  %v1423_v51 = vld [vmem:[%s1979_s1 + $0x3f4] ss:$8 sps:$4 sm:$0xff]   ;;  %v1421_v54 = vld [vmem:[%s1979_s1 + $0x3f0] ss:$8 sps:$4 sm:$0xff]  }
  0x33   :  { %943 = vmatpush2.bf16.msra.mxu0 %v1348_v55  ;;  %v1429_v55 = vld [vmem:[%s1979_s1 + $0x3e4] ss:$8 sps:$4 sm:$0xff]  }
  0x34   :  { %944 = vmatprep.subr.bf16.mxu0 %v1352_v57  ;;  %984 = vmatpush2.bf16.msra.mxu1 %v1351_v58  ;;  %v1432_v57 = vld [vmem:[%s1979_s1 + $0x2d4] ss:$8 sps:$4 sm:$0xff]   ;;  %v1427_v58 = vld [vmem:[%s1979_s1 + $0x3e0] ss:$8 sps:$4 sm:$0xff]  }
  0x35   :  { %985 = vmatprep.subr.bf16.mxu1 %v1355_v59  ;;  %v1435_v59 = vld [vmem:[%s1979_s1 + $0x3d4] ss:$8 sps:$4 sm:$0xff]  }
  0x37   :  { %945 = vmatpush2.bf16.msra.mxu0 %v1354_v60  ;;  %v1430_v60 = vld [vmem:[%s1979_s1 + $0x2d0] ss:$8 sps:$4 sm:$0xff]  }
  0x38   :  { %946 = vmatprep.subr.bf16.mxu0 %v1358_v61  ;;  %986 = vmatpush2.bf16.msra.mxu1 %v1357_v62  ;;  %v1438_v61 = vld [vmem:[%s1979_s1 + $0x2c4] ss:$8 sps:$4 sm:$0xff]   ;;  %v1433_v62 = vld [vmem:[%s1979_s1 + $0x3d0] ss:$8 sps:$4 sm:$0xff]  }
  0x39   :  { %987 = vmatprep.subr.bf16.mxu1 %v1361_v0  ;;  %v1436_v0 = vld [vmem:[%s1979_s1 + $0x2c0] ss:$8 sps:$4 sm:$0xff]  }
  0x3b   :  { %947 = vmatpush2.bf16.msra.mxu0 %v1360_v63  ;;  %v1441_v63 = vld [vmem:[%s1979_s1 + $0x3c4] ss:$8 sps:$4 sm:$0xff]  }
  0x3c   :  { %948 = vmatprep.subr.bf16.mxu0 %v1364_v3  ;;  %988 = vmatpush2.bf16.msra.mxu1 %v1363_v1  ;;  %v1444_v1 = vld [vmem:[%s1979_s1 + $0x2b4] ss:$8 sps:$4 sm:$0xff]  }
  0x3d   :  { %989 = vmatprep.subr.bf16.mxu1 %v1367_v5  ;;  %v1447_v3 = vld [vmem:[%s1979_s1 + $0x3b4] ss:$8 sps:$4 sm:$0xff]   ;;  %v1450_v5 = vld [vmem:[%s1979_s1 + $0x2a4] ss:$8 sps:$4 sm:$0xff]  }
  0x3f   :  { %949 = vmatpush2.bf16.msra.mxu0 %v1366_v7  ;;  %v1453_v7 = vld [vmem:[%s1979_s1 + $0x3a4] ss:$8 sps:$4 sm:$0xff]  }
  0x40   :  { %1000 = vmatprep.subr.bf16.mxu0 %v1372_v8  ;;  %990 = vmatpush2.bf16.msra.mxu1 %v1369_v10  ;;  %v1448_v8 = vld [vmem:[%s1979_s1 + $0x2a0] ss:$8 sps:$4 sm:$0xff]  }
  0x41   :  { %1041 = vmatprep.subr.bf16.mxu1 %v1375_v12  ;;  %v1451_v10 = vld [vmem:[%s1979_s1 + $0x3a0] ss:$8 sps:$4 sm:$0xff]   ;;  %v1454_v12 = vld [vmem:[%s1979_s1 + $0x290] ss:$8 sps:$4 sm:$0xff]  }
  0x42   :  { %951 = vmatmul.mubr.bf16.vlgmr.msra.gmra.mxu0 %v33_v11  ;;  %v1459_v11 = vld [vmem:[%s1979_s1 + $0x394] ss:$8 sps:$4 sm:$0xff]  }
  0x43   :  { %1001 = vmatpush1.bf16.msra.mxu0 %v1370_v13  ;;  %992 = vmatmul.mubr.bf16.vlgmr.msra.gmra.mxu1 %v35_v14  ;;  %v19_v13 = vld [vmem:[%s1980_s0 + $0x20] sm:$0xff] }
  0x44   :  { %1002 = vmatprep.subr.bf16.mxu0 %v1378_v15  ;;  %1042 = vmatpush1.bf16.msra.mxu1 %v1373_v16  ;;  %v1462_v14 = vld [vmem:[%s1979_s1 + $0x284] ss:$8 sps:$4 sm:$0xff]   ;;  %v1457_v15 = vld [vmem:[%s1979_s1 + $0x390] ss:$8 sps:$4 sm:$0xff]  }
  0x45   :  { %1043 = vmatprep.subr.bf16.mxu1 %v1381_v17  ;;  %1032 = vmatprep.mubr.bf16.mxu0 %v38_v44  ;;  %v21_v16 = vld [vmem:[%s1980_s0 + $0x30] sm:$0xff]  ;;  %v1465_v17 = vld [vmem:[%s1979_s1 + $0x384] ss:$8 sps:$4 sm:$0xff]   ;;  %v188_v44 = vlaneseq }
  0x46   :  { %1073 = vmatprep.mubr.bf16.mxu1 %v40_v48 }
  0x47   :  { %1003 = vmatpush1.bf16.msra.mxu0 %v1376_v18  ;;  %v28_v18 = vmax.f32 %v19_v13, 0.0  ;;  %v189_v45 = vshrl.u32 %v188_v44, 7 }
  0x48   :  { %1004 = vmatprep.subr.bf16.mxu0 %v1384_v19  ;;  %1044 = vmatpush1.bf16.msra.mxu1 %v1379_v20  ;;  %v1460_v19 = vld [vmem:[%s1979_s1 + $0x280] ss:$8 sps:$4 sm:$0xff]   ;;  %v1468_v20 = vld [vmem:[%s1979_s1 + $0x474] ss:$8 sps:$4 sm:$0xff]  }
  0x49   :  { %1045 = vmatprep.subr.bf16.mxu1 %v1387_v21  ;;  %v30_v21 = vmax.f32 %v21_v16, 0.0  ;;  %v194_v48 = vsub.s32 1, %v189_v45 }
  0x4b   :  { %1005 = vmatpush1.bf16.msra.mxu0 %v1382_v22  ;;  %v1463_v22 = vld [vmem:[%s1979_s1 + $0x380] ss:$8 sps:$4 sm:$0xff]  }
  0x4c   :  { %1006 = vmatprep.subr.bf16.mxu0 %v1390_v23  ;;  %1046 = vmatpush1.bf16.msra.mxu1 %v1385_v24  ;;  %v37_v23 = vpack.c.bf16 %v28_v18, %v28_v18  ;;  %v1466_v24 = vld [vmem:[%s1979_s1 + $0x470] ss:$8 sps:$4 sm:$0xff]  }
  0x4d   :  { %1047 = vmatprep.subr.bf16.mxu1 %v1393_v25  ;;  %v39_v25 = vpack.c.bf16 %v30_v21, %v30_v21 }
  0x4f   :  { %1007 = vmatpush1.bf16.msra.mxu0 %v1388_v26  ;;  %v1471_v26 = vld [vmem:[%s1979_s1 + $0x464] ss:$8 sps:$4 sm:$0xff]  }
  0x50   :  { %1008 = vmatprep.subr.bf16.mxu0 %v1396_v27  ;;  %1048 = vmatpush1.bf16.msra.mxu1 %v1391_v28  ;;  %v1469_v27 = vld [vmem:[%s1979_s1 + $0x460] ss:$8 sps:$4 sm:$0xff]   ;;  %v1490_v28 = vmov 0  }
  0x51   :  { %1049 = vmatprep.subr.bf16.mxu1 %v1399_v29  ;;  %v1474_v29 = vld [vmem:[%s1979_s1 + $0x454] ss:$8 sps:$4 sm:$0xff]  }
  0x53   :  { %1009 = vmatpush1.bf16.msra.mxu0 %v1394_v30  ;;  %v1472_v30 = vld [vmem:[%s1979_s1 + $0x450] ss:$8 sps:$4 sm:$0xff]  }
  0x54   :  { %1010 = vmatprep.subr.bf16.mxu0 %v1402_v31  ;;  %1050 = vmatpush1.bf16.msra.mxu1 %v1397_v32  ;;  %v1477_v31 = vld [vmem:[%s1979_s1 + $0x444] ss:$8 sps:$4 sm:$0xff]   ;;  %v1475_v32 = vld [vmem:[%s1979_s1 + $0x440] ss:$8 sps:$4 sm:$0xff]  }
  0x55   :  { %1051 = vmatprep.subr.bf16.mxu1 %v1405_v33  ;;  %v1480_v33 = vld [vmem:[%s1979_s1 + $0x434] ss:$8 sps:$4 sm:$0xff]  }
  0x57   :  { %1011 = vmatpush1.bf16.msra.mxu0 %v1400_v34  ;;  %v1478_v34 = vld [vmem:[%s1979_s1 + $0x430] ss:$8 sps:$4 sm:$0xff]  }
  0x58   :  { %1012 = vmatprep.subr.bf16.mxu0 %v1408_v35  ;;  %1052 = vmatpush1.bf16.msra.mxu1 %v1403_v36  ;;  %v1483_v35 = vld [vmem:[%s1979_s1 + $0x424] ss:$8 sps:$4 sm:$0xff]   ;;  %v1481_v36 = vld [vmem:[%s1979_s1 + $0x420] ss:$8 sps:$4 sm:$0xff]  }
  0x59   :  { %1053 = vmatprep.subr.bf16.mxu1 %v1411_v37  ;;  %v1486_v37 = vld [vmem:[%s1979_s1 + $0x414] ss:$8 sps:$4 sm:$0xff]  }
  0x5b   :  { %1013 = vmatpush1.bf16.msra.mxu0 %v1406_v39  ;;  %v23_v39 = vld [vmem:[%s1980_s0 + $0x40] sm:$0xff] }
  0x5c   :  { %1014 = vmatprep.subr.bf16.mxu0 %v1414_v41  ;;  %1054 = vmatpush1.bf16.msra.mxu1 %v1409_v43  ;;  %v32_v41 = vmax.f32 %v23_v39, 0.0 }
  0x5d   :  { %1055 = vmatprep.subr.bf16.mxu1 %v1417_v46  ;;  %v190_v46 = vsub.s32 0, %v189_v45 }
  0x5e   :  { %v41_v43 = vpack.c.bf16 %v32_v41, %v32_v41 }
  0x5f   :  { %1015 = vmatpush1.bf16.msra.mxu0 %v1412_v47  ;;  %v186_v47 = vld [vmem:[%s1981_s2] sm:$0x3] }
  0x60   :  { %1016 = vmatprep.subr.bf16.mxu0 %v1420_v49  ;;  %1056 = vmatpush1.bf16.msra.mxu1 %v1415_v50  ;;  %v191_v49 = vrot.slane %v186_v47, %v190_v46  ;;  %v195_v50 = vrot.slane %v186_v47, %v194_v48 }
  0x61   :  { %1057 = vmatprep.subr.bf16.mxu1 %v1423_v51 }
  0x63   :  { %1017 = vmatpush2.bf16.msra.mxu0 %v1418_v52 }
  0x64   :  { %1018 = vmatprep.subr.bf16.mxu0 %v1426_v53  ;;  %1058 = vmatpush2.bf16.msra.mxu1 %v1421_v54 }
  0x65   :  { %1059 = vmatprep.subr.bf16.mxu1 %v1429_v55 }
  0x67   :  { %1019 = vmatpush2.bf16.msra.mxu0 %v1424_v56 }
  0x68   :  { %1020 = vmatprep.subr.bf16.mxu0 %v1432_v57  ;;  %1060 = vmatpush2.bf16.msra.mxu1 %v1427_v58 }
  0x69   :  { %1061 = vmatprep.subr.bf16.mxu1 %v1435_v59 }
  0x6b   :  { %1021 = vmatpush2.bf16.msra.mxu0 %v1430_v60 }
  0x6c   :  { %1022 = vmatprep.subr.bf16.mxu0 %v1438_v61  ;;  %1062 = vmatpush2.bf16.msra.mxu1 %v1433_v62 }
  0x6d   :  { %1063 = vmatprep.subr.bf16.mxu1 %v1441_v63 }
  0x6f   :  { %1023 = vmatpush2.bf16.msra.mxu0 %v1436_v0 }
  0x70   :  { %1024 = vmatprep.subr.bf16.mxu0 %v1444_v1  ;;  %1064 = vmatpush2.bf16.msra.mxu1 %v1439_v2 }
  0x71   :  { %1065 = vmatprep.subr.bf16.mxu1 %v1447_v3 }
  0x73   :  { %1025 = vmatpush2.bf16.msra.mxu0 %v1442_v4 }
  0x74   :  { %1026 = vmatprep.subr.bf16.mxu0 %v1450_v5  ;;  %1066 = vmatpush2.bf16.msra.mxu1 %v1445_v6 }
  0x75   :  { %1067 = vmatprep.subr.bf16.mxu1 %v1453_v7 }
  0x77   :  { %1027 = vmatpush2.bf16.msra.mxu0 %v1448_v8 }
  0x78   :  { %1028 = vmatprep.subr.bf16.mxu0 %v1456_v9  ;;  %1068 = vmatpush2.bf16.msra.mxu1 %v1451_v10 }
  0x79   :  { %1069 = vmatprep.subr.bf16.mxu1 %v1459_v11 }
  0x7b   :  { %1029 = vmatpush2.bf16.msra.mxu0 %v1454_v12 }
  0x7c   :  { %1030 = vmatprep.subr.bf16.mxu0 %v1462_v14  ;;  %1070 = vmatpush2.bf16.msra.mxu1 %v1457_v15 }
  0x7d   :  { %1071 = vmatprep.subr.bf16.mxu1 %v1465_v17 }
  0x7f   :  { %1031 = vmatpush2.bf16.msra.mxu0 %v1460_v19 }
  0x80   :  { %1082 = vmatprep.subr.bf16.mxu0 %v1468_v20  ;;  %1072 = vmatpush2.bf16.msra.mxu1 %v1463_v22 }
  0x82   :  { %1033 = vmatmul.mubr.bf16.vlgmr.msra.gmra.mxu0 %v37_v23 }
  0x83   :  { %1083 = vmatpush1.bf16.msra.mxu0 %v1466_v24  ;;  %1114 = vmatprep.mubr.bf16.mxu0 %v1490_v28 }
  0x84   :  { %1074 = vmatmul.mubr.bf16.vlgmr.msra.gmra.mxu1 %v39_v25  ;;  %1084 = vmatprep.subr.bf16.mxu0 %v1471_v26 }
  0x87   :  { %1085 = vmatpush1.bf16.msra.mxu0 %v1469_v27 }
  0x88   :  { %1086 = vmatprep.subr.bf16.mxu0 %v1474_v29 }
  0x8b   :  { %1087 = vmatpush1.bf16.msra.mxu0 %v1472_v30 }
  0x8c   :  { %1088 = vmatprep.subr.bf16.mxu0 %v1477_v31 }
  0x8f   :  { %1089 = vmatpush1.bf16.msra.mxu0 %v1475_v32 }
  0x90   :  { %1090 = vmatprep.subr.bf16.mxu0 %v1480_v33 }
  0x93   :  { %1091 = vmatpush1.bf16.msra.mxu0 %v1478_v34 }
  0x94   :  { %1092 = vmatprep.subr.bf16.mxu0 %v1483_v35 }
  0x97   :  { %1093 = vmatpush1.bf16.msra.mxu0 %v1481_v36 }
  0x98   :  { %1094 = vmatprep.subr.bf16.mxu0 %v1486_v37 }
  0x9b   :  { %1095 = vmatpush1.bf16.msra.mxu0 %v1484_v38 }
  0x9c   :  { %1096 = vmatprep.subr.bf16.mxu0 %v1489_v40 }
  0x9f   :  { %1097 = vmatpush1.bf16.msra.mxu0 %v1487_v42 }
  0xa2   :  { %1115 = vmatmul.mubr.bf16.vlgmr.msra.gmra.mxu0 %v41_v43 }
 0x102   :  { %v952_v51 = vpop.f32.mrf.mxu0 }
 0x103   :  { %v953_v52 = vadd.f32 %v952_v51, %v191_v49  ;;  %v993_v54 = vpop.f32.mrf.mxu1 }
 0x104   :  { %v954_v53 = vpop.f32.mrf.mxu0 }
 0x105   :  { %v955_v55 = vadd.f32 %v954_v53, %v195_v50  ;;  %v994_v56 = vadd.f32 %v993_v54, %v953_v52  ;;  %v995_v58 = vpop.f32.mrf.mxu1 }
 0x106   :  { %v956_v57 = vpop.f32.mrf.mxu0 }
 0x107   :  { %v996_v59 = vadd.f32 %v995_v58, %v955_v55  ;;  %v997_v61 = vpop.f32.mrf.mxu1 }
 0x108   :  { %v957_v60 = vpop.f32.mrf.mxu0 }
 0x109   :  { %v998_v62 = vpop.f32.mrf.mxu1 }
 0x142   :  { %v1034_v63 = vpop.f32.mrf.mxu0 }
 0x143   :  { %v1035_v7 = vadd.f32 %v1034_v63, %v994_v56 }
 0x144   :  { %v1036_v0 = vpop.f32.mrf.mxu0  ;;  %v1075_v1 = vpop.f32.mrf.mxu1 }
 0x145   :  { %v1037_v8 = vadd.f32 %v1036_v0, %v996_v59  ;;  %v1076_v9 = vadd.f32 %v1075_v1, %v1035_v7 }
 0x146   :  { %v1038_v2 = vpop.f32.mrf.mxu0  ;;  %v1077_v3 = vpop.f32.mrf.mxu1 }
 0x147   :  { %v1078_v11 = vadd.f32 %v1077_v3, %v1037_v8 }
 0x148   :  { %v1039_v4 = vpop.f32.mrf.mxu0  ;;  %v1079_v5 = vpop.f32.mrf.mxu1 }
 0x14a   :  { %v1080_v6 = vpop.f32.mrf.mxu1 }
 0x162   :  { %v1116_v10 = vpop.f32.mrf.mxu0 }
 0x163   :  { %v1117_v12 = vadd.f32 %v1116_v10, %v1076_v9 }
 0x164   :  { %v1118_v13 = vpop.f32.mrf.mxu0 }
 0x165   :  { %1123 = vst [vmem:[%s1982_s3] sm:$0xff] %v1117_v12  ;;  %v1119_v14 = vadd.f32 %v1118_v13, %v1078_v11 }
 0x166   :  { %v1120_v15 = vpop.f32.mrf.mxu0 }
 0x167   :  { %1124 = vst [vmem:[%s1982_s3 + $0x8] sm:$0xff] %v1119_v14 }
 0x168   :  { %v1121_v16 = vpop.f32.mrf.mxu0 }

// kernel: generator_fwd.61
= control target key start
LH: loop header
LB: loop body
LE: loop exit
PB: predicated region body
PF: predicated region fallthrough
CT: control target
= control target key end

     0   :  { %vm71_vm0 = vcmask 1043456   ;;  %vm64_vm1 = vcmask 588800   ;;  %s229_s1 = inlined_call_operand.vmem [shape: bf16[72,128], index: 1, kind: input, shape index: {}]   ;;  %s230_s0 = inlined_call_operand.vmem [shape: f32[32,72], index: 0, kind: input, shape index: {}]   ;;  %s231_s2 = inlined_call_operand.vmem [shape: f32[1,128], index: 2, kind: input, shape index: {}]   ;;  %s232_s3 = inlined_call_operand.vmem [shape: f32[32,128], index: 3, kind: output, shape index: {}]  }
   0x1   :  { %v162_v0 = vld [vmem:[%s229_s1 + $0x20] ss:$0 sps:$4 sm:$0xff]   ;;  %v163_v1 = vld [vmem:[%s229_s1 + $0x18] sm:$0xff]   ;;  %v164_v3 = vld [vmem:[%s229_s1 + $0x10] sm:$0xff]  }
   0x2   :  { %161 = vmatprep.subr.msk.bf16.mxu0 %vm71_vm0, %v162_v0  ;;  %v73_v2 = vsel %vm71_vm0, %v162_v0, 0  ;;  %v15_v4 = vld [vmem:[%s230_s0] sm:$0xff]  ;;  %v16_v5 = vld [vmem:[%s230_s0 + $0x8] sm:$0xff]  ;;  %v17_v9 = vld [vmem:[%s230_s0 + $0x10] sm:$0xff] }
   0x3   :  { %148 = vmatpush3.bf16.msra.mxu0 %v73_v2  ;;  %v19_v6 = vpack.c.bf16 %v16_v5, %v15_v4  ;;  %v165_v7 = vld [vmem:[%s229_s1 + $0x8] sm:$0xff]   ;;  %v166_v8 = vld [vmem:[%s229_s1] sm:$0xff]   ;;  %v18_v10 = vld [vmem:[%s230_s0 + $0x18] sm:$0xff] }
   0x4   :  { %149 = vmatprep.subr.bf16.mxu0 %v163_v1  ;;  %v20_v11 = vpack.c.bf16 %v18_v10, %v17_v9  ;;  %v132_v12 = vld [vmem:[%s231_s2] ss:$0 sm:$0xff] }
   0x5   :  { %157 = vmatprep.mubr.msk.bf16.mxu0 %vm64_vm1, %v19_v6 }
   0x7   :  { %150 = vmatpush3.bf16.msra.mxu0 %v163_v1 }
   0x8   :  { %151 = vmatprep.subr.bf16.mxu0 %v164_v3 }
   0xb   :  { %152 = vmatpush3.bf16.msra.mxu0 %v164_v3 }
   0xc   :  { %153 = vmatprep.subr.bf16.mxu0 %v165_v7 }
   0xf   :  { %154 = vmatpush3.bf16.msra.mxu0 %v165_v7 }
  0x10   :  { %155 = vmatprep.subr.bf16.mxu0 %v166_v8 }
  0x13   :  { %156 = vmatpush3.bf16.msra.mxu0 %v166_v8 }
  0x16   :  { %158 = vmatmul.mubr.msk.bf16.vlgmr.msra.gmra.mxu0 %vm64_vm1, %v20_v11 }
  0xd6   :  { %v159_v13 = vpop.f32.mrf.mxu0 }
  0xd7   :  { %v118_v14 = vadd.f32 %v159_v13, %v132_v12 }
  0xd8   :  { %v109_v15 = vpop.f32.mrf.mxu0 }
  0xd9   :  { %126 = vst [vmem:[%s232_s3 + $0x10] sm:$0xff] %v118_v14  ;;  %v110_v16 = vadd.f32 %v132_v12, %v109_v15 }
  0xda   :  { %v160_v17 = vpop.f32.mrf.mxu0 }
  0xdb   :  { %124 = vst [vmem:[%s232_s3] sm:$0xff] %v110_v16  ;;  %v121_v18 = vadd.f32 %v160_v17, %v132_v12 }
  0xdc   :  { %v112_v19 = vpop.f32.mrf.mxu0 }
  0xdd   :  { %127 = vst [vmem:[%s232_s3 + $0x18] sm:$0xff] %v121_v18  ;;  %v113_v20 = vadd.f32 %v132_v12, %v112_v19 }
  0xdf   :  { %125 = vst [vmem:[%s232_s3 + $0x8] sm:$0xff] %v113_v20 }

// kernel: generator_fwd.62
= control target key start
LH: loop header
LB: loop body
LE: loop exit
PB: predicated region body
PF: predicated region fallthrough
CT: control target
= control target key end

     0   :  { %vm55_vm0 = vcmask 1041408   ;;  %vm48_vm1 = vcmask 293888   ;;  %s197_s1 = inlined_call_operand.vmem [shape: bf16[36,128], index: 1, kind: input, shape index: {}]   ;;  %s198_s0 = inlined_call_operand.vmem [shape: f32[32,36], index: 0, kind: input, shape index: {}]   ;;  %s199_s2 = inlined_call_operand.vmem [shape: f32[1,128], index: 2, kind: input, shape index: {}]   ;;  %s200_s3 = inlined_call_operand.vmem [shape: f32[32,128], index: 3, kind: output, shape index: {}]  }
   0x1   :  { %v138_v0 = vld [vmem:[%s197_s1 + $0x10] ss:$0 sps:$4 sm:$0x33]   ;;  %v139_v1 = vld [vmem:[%s197_s1 + $0x8] sm:$0xff]   ;;  %v15_v3 = vld [vmem:[%s198_s0] sm:$0xff] }
   0x2   :  { %137 = vmatprep.subr.msk.bf16.mxu0 %vm55_vm0, %v138_v0  ;;  %v57_v2 = vsel %vm55_vm0, %v138_v0, 0  ;;  %v16_v4 = vld [vmem:[%s198_s0 + $0x8] sm:$0xff]  ;;  %v140_v5 = vld [vmem:[%s197_s1] sm:$0xff]   ;;  %v17_v7 = vld [vmem:[%s198_s0 + $0x10] sm:$0xff] }
   0x3   :  { %128 = vmatpush3.bf16.msra.mxu0 %v57_v2  ;;  %v19_v6 = vpack.c.bf16 %v16_v4, %v15_v3  ;;  %v18_v8 = vld [vmem:[%s198_s0 + $0x18] sm:$0xff]  ;;  %v116_v10 = vld [vmem:[%s199_s2] ss:$0 sm:$0xff] }
   0x4   :  { %129 = vmatprep.subr.bf16.mxu0 %v139_v1  ;;  %v20_v9 = vpack.c.bf16 %v18_v8, %v17_v7 }
   0x5   :  { %133 = vmatprep.mubr.msk.bf16.mxu0 %vm48_vm1, %v19_v6 }
   0x7   :  { %130 = vmatpush3.bf16.msra.mxu0 %v139_v1 }
   0x8   :  { %131 = vmatprep.subr.bf16.mxu0 %v140_v5 }
   0xb   :  { %132 = vmatpush3.bf16.msra.mxu0 %v140_v5 }
   0xe   :  { %134 = vmatmul.mubr.msk.bf16.vlgmr.msra.gmra.mxu0 %vm48_vm1, %v20_v9 }
  0xce   :  { %v135_v11 = vpop.f32.mrf.mxu0 }
  0xcf   :  { %v102_v12 = vadd.f32 %v135_v11, %v116_v10 }
  0xd0   :  { %v93_v13 = vpop.f32.mrf.mxu0 }
  0xd1   :  { %110 = vst [vmem:[%s200_s3 + $0x10] sm:$0xff] %v102_v12  ;;  %v94_v14 = vadd.f32 %v116_v10, %v93_v13 }
  0xd2   :  { %v136_v15 = vpop.f32.mrf.mxu0 }
  0xd3   :  { %108 = vst [vmem:[%s200_s3] sm:$0xff] %v94_v14  ;;  %v105_v16 = vadd.f32 %v136_v15, %v116_v10 }
  0xd4   :  { %v96_v17 = vpop.f32.mrf.mxu0 }
  0xd5   :  { %111 = vst [vmem:[%s200_s3 + $0x18] sm:$0xff] %v105_v16  ;;  %v97_v18 = vadd.f32 %v116_v10, %v96_v17 }
  0xd7   :  { %109 = vst [vmem:[%s200_s3 + $0x8] sm:$0xff] %v97_v18 }

// kernel: generator_fwd.65
= control target key start
LH: loop header
LB: loop body
LE: loop exit
PB: predicated region body
PF: predicated region fallthrough
CT: control target
= control target key end

     0   :  { %vm50_vm0 = vcmask 1045504   ;;  %vm43_vm1 = vcmask 228352   ;;  %s184_s1 = inlined_call_operand.vmem [shape: bf16[28,128], index: 1, kind: input, shape index: {}]   ;;  %s185_s0 = inlined_call_operand.vmem [shape: f32[32,28], index: 0, kind: input, shape index: {}]   ;;  %s186_s2 = inlined_call_operand.vmem [shape: f32[1,128], index: 2, kind: input, shape index: {}]   ;;  %s187_s3 = inlined_call_operand.vmem [shape: f32[32,128], index: 3, kind: output, shape index: {}]  }
   0x1   :  { %v129_v0 = vld [vmem:[%s184_s1 + $0x8] sm:$0x3f]   ;;  %v130_v1 = vld [vmem:[%s184_s1] sm:$0xff]   ;;  %v17_v6 = vld [vmem:[%s185_s0 + $0x10] sm:$0xff] }
   0x2   :  { %128 = vmatprep.subr.msk.bf16.mxu0 %vm50_vm0, %v129_v0  ;;  %v52_v2 = vsel %vm50_vm0, %v129_v0, 0  ;;  %v15_v3 = vld [vmem:[%s185_s0] sm:$0xff]  ;;  %v16_v4 = vld [vmem:[%s185_s0 + $0x8] sm:$0xff]  ;;  %v18_v7 = vld [vmem:[%s185_s0 + $0x18] sm:$0xff] }
   0x3   :  { %121 = vmatpush3.bf16.msra.mxu0 %v52_v2  ;;  %v19_v5 = vpack.c.bf16 %v16_v4, %v15_v3  ;;  %v20_v8 = vpack.c.bf16 %v18_v7, %v17_v6  ;;  %v111_v9 = vld [vmem:[%s186_s2] ss:$0 sm:$0xff] }
   0x4   :  { %122 = vmatprep.subr.bf16.mxu0 %v130_v1 }
   0x5   :  { %124 = vmatprep.mubr.msk.bf16.mxu0 %vm43_vm1, %v19_v5 }
   0x7   :  { %123 = vmatpush3.bf16.msra.mxu0 %v130_v1 }
   0xa   :  { %125 = vmatmul.mubr.msk.bf16.vlgmr.msra.gmra.mxu0 %vm43_vm1, %v20_v8 }
  0xca   :  { %v126_v10 = vpop.f32.mrf.mxu0 }
  0xcb   :  { %v97_v11 = vadd.f32 %v126_v10, %v111_v9 }
  0xcc   :  { %v88_v12 = vpop.f32.mrf.mxu0 }
  0xcd   :  { %105 = vst [vmem:[%s187_s3 + $0x10] sm:$0xff] %v97_v11  ;;  %v89_v13 = vadd.f32 %v111_v9, %v88_v12 }
  0xce   :  { %v127_v14 = vpop.f32.mrf.mxu0 }
  0xcf   :  { %103 = vst [vmem:[%s187_s3] sm:$0xff] %v89_v13  ;;  %v100_v15 = vadd.f32 %v127_v14, %v111_v9 }
  0xd0   :  { %v91_v16 = vpop.f32.mrf.mxu0 }
  0xd1   :  { %106 = vst [vmem:[%s187_s3 + $0x18] sm:$0xff] %v100_v15  ;;  %v92_v17 = vadd.f32 %v111_v9, %v91_v16 }
  0xd3   :  { %104 = vst [vmem:[%s187_s3 + $0x8] sm:$0xff] %v92_v17 }

// kernel: generator_fwd.66
= control target key start
LH: loop header
LB: loop body
LE: loop exit
PB: predicated region body
PF: predicated region fallthrough
CT: control target
= control target key end

     0   :  { %vm63_vm0 = vcmask 1043456   ;;  %vm56_vm1 = vcmask 457728   ;;  %s213_s1 = inlined_call_operand.vmem [shape: bf16[56,128], index: 1, kind: input, shape index: {}]   ;;  %s214_s0 = inlined_call_operand.vmem [shape: f32[32,56], index: 0, kind: input, shape index: {}]   ;;  %s215_s2 = inlined_call_operand.vmem [shape: f32[1,128], index: 2, kind: input, shape index: {}]   ;;  %s216_s3 = inlined_call_operand.vmem [shape: f32[32,128], index: 3, kind: output, shape index: {}]  }
   0x1   :  { %v150_v0 = vld [vmem:[%s213_s1 + $0x18] ss:$0 sps:$4 sm:$0xff]   ;;  %v151_v1 = vld [vmem:[%s213_s1 + $0x10] sm:$0xff]   ;;  %v15_v3 = vld [vmem:[%s214_s0] sm:$0xff] }
   0x2   :  { %149 = vmatprep.subr.msk.bf16.mxu0 %vm63_vm0, %v150_v0  ;;  %v65_v2 = vsel %vm63_vm0, %v150_v0, 0  ;;  %v152_v4 = vld [vmem:[%s213_s1 + $0x8] sm:$0xff]   ;;  %v153_v7 = vld [vmem:[%s213_s1] sm:$0xff]   ;;  %v17_v8 = vld [vmem:[%s214_s0 + $0x10] sm:$0xff] }
   0x3   :  { %138 = vmatpush3.bf16.msra.mxu0 %v65_v2  ;;  %v16_v5 = vld [vmem:[%s214_s0 + $0x8] sm:$0xff]  ;;  %v18_v9 = vld [vmem:[%s214_s0 + $0x18] sm:$0xff]  ;;  %v124_v11 = vld [vmem:[%s215_s2] ss:$0 sm:$0xff] }
   0x4   :  { %139 = vmatprep.subr.bf16.mxu0 %v151_v1  ;;  %v19_v6 = vpack.c.bf16 %v16_v5, %v15_v3  ;;  %v20_v10 = vpack.c.bf16 %v18_v9, %v17_v8 }
   0x6   :  { %145 = vmatprep.mubr.msk.bf16.mxu0 %vm56_vm1, %v19_v6 }
   0x7   :  { %140 = vmatpush3.bf16.msra.mxu0 %v151_v1 }
   0x8   :  { %141 = vmatprep.subr.bf16.mxu0 %v152_v4 }
   0xb   :  { %142 = vmatpush3.bf16.msra.mxu0 %v152_v4 }
   0xc   :  { %143 = vmatprep.subr.bf16.mxu0 %v153_v7 }
   0xf   :  { %144 = vmatpush3.bf16.msra.mxu0 %v153_v7 }
  0x12   :  { %146 = vmatmul.mubr.msk.bf16.vlgmr.msra.gmra.mxu0 %vm56_vm1, %v20_v10 }
  0xd2   :  { %v147_v12 = vpop.f32.mrf.mxu0 }
  0xd3   :  { %v110_v13 = vadd.f32 %v147_v12, %v124_v11 }
  0xd4   :  { %v101_v14 = vpop.f32.mrf.mxu0 }
  0xd5   :  { %118 = vst [vmem:[%s216_s3 + $0x10] sm:$0xff] %v110_v13  ;;  %v102_v15 = vadd.f32 %v124_v11, %v101_v14 }
  0xd6   :  { %v148_v16 = vpop.f32.mrf.mxu0 }
  0xd7   :  { %116 = vst [vmem:[%s216_s3] sm:$0xff] %v102_v15  ;;  %v113_v17 = vadd.f32 %v148_v16, %v124_v11 }
  0xd8   :  { %v104_v18 = vpop.f32.mrf.mxu0 }
  0xd9   :  { %119 = vst [vmem:[%s216_s3 + $0x18] sm:$0xff] %v113_v17  ;;  %v105_v19 = vadd.f32 %v124_v11, %v104_v18 }
  0xdb   :  { %117 = vst [vmem:[%s216_s3 + $0x8] sm:$0xff] %v105_v19 }

// kernel: generator_fwd.67
= control target key start
LH: loop header
LB: loop body
LE: loop exit
PB: predicated region body
PF: predicated region fallthrough
CT: control target
= control target key end

     0   :  { %vm36_vm0 = vcmask 1042432   ;;  %vm37_vm1 = vcmask 1043456   ;;  %v113_v1 = vmov 65535   ;;  %vm29_vm2 = vcmask 56320   ;;  %s164_s1 = inlined_call_operand.vmem [shape: bf16[7,128], index: 1, kind: input, shape index: {}]   ;;  %s165_s0 = inlined_call_operand.vmem [shape: f32[32,7], index: 0, kind: input, shape index: {}]   ;;  %s166_s2 = inlined_call_operand.vmem [shape: f32[1,128], index: 2, kind: input, shape index: {}]   ;;  %s167_s3 = inlined_call_operand.vmem [shape: f32[32,128], index: 3, kind: output, shape index: {}]  }
   0x1   :  { %v21_v0 = vld [vmem:[%s164_s1] sm:$0xf]  ;;  %v38_v2 = vsel %vm36_vm0, 4294967295, %v113_v1  ;;  %v16_v4 = vld [vmem:[%s165_s0 + $0x8] sm:$0xff]  ;;  %v17_v7 = vld [vmem:[%s165_s0 + $0x10] sm:$0xff] }
   0x2   :  { %v15_v3 = vld [vmem:[%s165_s0] sm:$0xff]  ;;  %v39_v5 = vsel %vm37_vm1, %v38_v2, 0  ;;  %v18_v8 = vld [vmem:[%s165_s0 + $0x18] sm:$0xff] }
   0x3   :  { %v19_v6 = vpack.c.bf16 %v16_v4, %v15_v3  ;;  %v41_v9 = vand.u32 %v39_v5, %v21_v0  ;;  %v20_v10 = vpack.c.bf16 %v18_v8, %v17_v7  ;;  %v100_v11 = vld [vmem:[%s166_s2] ss:$0 sm:$0xff] }
   0x5   :  { %108 = vmatprep.mubr.msk.bf16.mxu0 %vm29_vm2, %v19_v6  ;;  %106 = vmatprep.subr.bf16.mxu0 %v41_v9 }
   0x6   :  { %107 = vmatpush3.bf16.msra.mxu0 %v41_v9 }
   0x9   :  { %109 = vmatmul.mubr.msk.bf16.vlgmr.msra.gmra.mxu0 %vm29_vm2, %v20_v10 }
  0xc9   :  { %v110_v12 = vpop.f32.mrf.mxu0 }
  0xca   :  { %v86_v13 = vadd.f32 %v110_v12, %v100_v11 }
  0xcb   :  { %v77_v14 = vpop.f32.mrf.mxu0 }
  0xcc   :  { %94 = vst [vmem:[%s167_s3 + $0x10] sm:$0xff] %v86_v13  ;;  %v78_v15 = vadd.f32 %v100_v11, %v77_v14 }
  0xcd   :  { %v111_v16 = vpop.f32.mrf.mxu0 }
  0xce   :  { %92 = vst [vmem:[%s167_s3] sm:$0xff] %v78_v15  ;;  %v89_v17 = vadd.f32 %v111_v16, %v100_v11 }
  0xcf   :  { %v80_v18 = vpop.f32.mrf.mxu0 }
  0xd0   :  { %95 = vst [vmem:[%s167_s3 + $0x18] sm:$0xff] %v89_v17  ;;  %v81_v19 = vadd.f32 %v100_v11, %v80_v18 }
  0xd2   :  { %93 = vst [vmem:[%s167_s3 + $0x8] sm:$0xff] %v81_v19 }

// kernel: generator_fwd.68
= control target key start
LH: loop header
LB: loop body
LE: loop exit
PB: predicated region body
PF: predicated region fallthrough
CT: control target
= control target key end

     0   :  { %vm42_vm0 = vcmask 1046528   ;;  %vm35_vm1 = vcmask 113664   ;;  %s168_s1 = inlined_call_operand.vmem [shape: bf16[14,128], index: 1, kind: input, shape index: {}]   ;;  %s169_s0 = inlined_call_operand.vmem [shape: f32[32,14], index: 0, kind: input, shape index: {}]   ;;  %s170_s2 = inlined_call_operand.vmem [shape: f32[1,128], index: 2, kind: input, shape index: {}]   ;;  %s171_s3 = inlined_call_operand.vmem [shape: f32[32,128], index: 3, kind: output, shape index: {}]  }
   0x1   :  { %v117_v0 = vld [vmem:[%s168_s1] sm:$0x7f]   ;;  %v16_v2 = vld [vmem:[%s169_s0 + $0x8] sm:$0xff]  ;;  %v17_v3 = vld [vmem:[%s169_s0 + $0x10] sm:$0xff] }
   0x2   :  { %v15_v1 = vld [vmem:[%s169_s0] sm:$0xff]  ;;  %116 = vmatprep.subr.msk.bf16.mxu0 %vm42_vm0, %v117_v0  ;;  %v44_v4 = vsel %vm42_vm0, %v117_v0, 0  ;;  %v18_v6 = vld [vmem:[%s169_s0 + $0x18] sm:$0xff] }
   0x3   :  { %v19_v5 = vpack.c.bf16 %v16_v2, %v15_v1  ;;  %111 = vmatpush3.bf16.msra.mxu0 %v44_v4  ;;  %v20_v7 = vpack.c.bf16 %v18_v6, %v17_v3  ;;  %v103_v8 = vld [vmem:[%s170_s2] ss:$0 sm:$0xff] }
   0x5   :  { %112 = vmatprep.mubr.msk.bf16.mxu0 %vm35_vm1, %v19_v5 }
   0x6   :  { %113 = vmatmul.mubr.msk.bf16.vlgmr.msra.gmra.mxu0 %vm35_vm1, %v20_v7 }
  0xc6   :  { %v114_v9 = vpop.f32.mrf.mxu0 }
  0xc7   :  { %v89_v10 = vadd.f32 %v114_v9, %v103_v8 }
  0xc8   :  { %v80_v11 = vpop.f32.mrf.mxu0 }
  0xc9   :  { %97 = vst [vmem:[%s171_s3 + $0x10] sm:$0xff] %v89_v10  ;;  %v81_v12 = vadd.f32 %v103_v8, %v80_v11 }
  0xca   :  { %v115_v13 = vpop.f32.mrf.mxu0 }
  0xcb   :  { %95 = vst [vmem:[%s171_s3] sm:$0xff] %v81_v12  ;;  %v92_v14 = vadd.f32 %v115_v13, %v103_v8 }
  0xcc   :  { %v83_v15 = vpop.f32.mrf.mxu0 }
  0xcd   :  { %98 = vst [vmem:[%s171_s3 + $0x18] sm:$0xff] %v92_v14  ;;  %v84_v16 = vadd.f32 %v103_v8, %v83_v15 }
  0xcf   :  { %96 = vst [vmem:[%s171_s3 + $0x8] sm:$0xff] %v84_v16 }

// kernel: generator_fwd.73
= control target key start
LH: loop header
LB: loop body
LE: loop exit
PB: predicated region body
PF: predicated region fallthrough
CT: control target
= control target key end

     0   :  { %vm36_vm0 = vcmask 1040384   ;;  %vm37_vm1 = vcmask 1041408   ;;  %v113_v1 = vmov 65535   ;;  %vm29_vm2 = vcmask 23552   ;;  %s164_s1 = inlined_call_operand.vmem [shape: bf16[3,128], index: 1, kind: input, shape index: {}]   ;;  %s165_s0 = inlined_call_operand.vmem [shape: f32[32,3], index: 0, kind: input, shape index: {}]   ;;  %s166_s2 = inlined_call_operand.vmem [shape: f32[1,128], index: 2, kind: input, shape index: {}]   ;;  %s167_s3 = inlined_call_operand.vmem [shape: f32[32,128], index: 3, kind: output, shape index: {}]  }
   0x1   :  { %v21_v0 = vld [vmem:[%s164_s1] sm:$0x3]  ;;  %v38_v2 = vsel %vm36_vm0, 4294967295, %v113_v1  ;;  %v16_v4 = vld [vmem:[%s165_s0 + $0x8] sm:$0xff]  ;;  %v17_v7 = vld [vmem:[%s165_s0 + $0x10] sm:$0xff] }
   0x2   :  { %v15_v3 = vld [vmem:[%s165_s0] sm:$0xff]  ;;  %v39_v5 = vsel %vm37_vm1, %v38_v2, 0  ;;  %v18_v8 = vld [vmem:[%s165_s0 + $0x18] sm:$0xff] }
   0x3   :  { %v19_v6 = vpack.c.bf16 %v16_v4, %v15_v3  ;;  %v41_v9 = vand.u32 %v39_v5, %v21_v0  ;;  %v20_v10 = vpack.c.bf16 %v18_v8, %v17_v7  ;;  %v100_v11 = vld [vmem:[%s166_s2] ss:$0 sm:$0xff] }
   0x5   :  { %108 = vmatprep.mubr.msk.bf16.mxu0 %vm29_vm2, %v19_v6  ;;  %106 = vmatprep.subr.bf16.mxu0 %v41_v9 }
   0x6   :  { %107 = vmatpush3.bf16.msra.mxu0 %v41_v9 }
   0x9   :  { %109 = vmatmul.mubr.msk.bf16.vlgmr.msra.gmra.mxu0 %vm29_vm2, %v20_v10 }
  0xc9   :  { %v110_v12 = vpop.f32.mrf.mxu0 }
  0xca   :  { %v86_v13 = vadd.f32 %v110_v12, %v100_v11 }
  0xcb   :  { %v77_v14 = vpop.f32.mrf.mxu0 }
  0xcc   :  { %94 = vst [vmem:[%s167_s3 + $0x10] sm:$0xff] %v86_v13  ;;  %v78_v15 = vadd.f32 %v100_v11, %v77_v14 }
  0xcd   :  { %v111_v16 = vpop.f32.mrf.mxu0 }
  0xce   :  { %92 = vst [vmem:[%s167_s3] sm:$0xff] %v78_v15  ;;  %v89_v17 = vadd.f32 %v111_v16, %v100_v11 }
  0xcf   :  { %v80_v18 = vpop.f32.mrf.mxu0 }
  0xd0   :  { %95 = vst [vmem:[%s167_s3 + $0x18] sm:$0xff] %v89_v17  ;;  %v81_v19 = vadd.f32 %v100_v11, %v80_v18 }
  0xd2   :  { %93 = vst [vmem:[%s167_s3 + $0x8] sm:$0xff] %v81_v19 }

// kernel: generator_fwd.74
= control target key start
LH: loop header
LB: loop body
LE: loop exit
PB: predicated region body
PF: predicated region fallthrough
CT: control target
= control target key end

     0   :  { %vm36_vm0 = vcmask 1042432   ;;  %vm29_vm1 = vcmask 48128   ;;  %s160_s1 = inlined_call_operand.vmem [shape: bf16[6,128], index: 1, kind: input, shape index: {}]   ;;  %s161_s0 = inlined_call_operand.vmem [shape: f32[32,6], index: 0, kind: input, shape index: {}]   ;;  %s162_s2 = inlined_call_operand.vmem [shape: f32[1,128], index: 2, kind: input, shape index: {}]   ;;  %s163_s3 = inlined_call_operand.vmem [shape: f32[32,128], index: 3, kind: output, shape index: {}]  }
   0x1   :  { %v21_v0 = vld [vmem:[%s160_s1] sm:$0x7]  ;;  %v16_v2 = vld [vmem:[%s161_s0 + $0x8] sm:$0xff]  ;;  %v17_v5 = vld [vmem:[%s161_s0 + $0x10] sm:$0xff] }
   0x2   :  { %v15_v1 = vld [vmem:[%s161_s0] sm:$0xff]  ;;  %109 = vmatprep.subr.msk.bf16.mxu0 %vm36_vm0, %v21_v0  ;;  %v38_v3 = vsel %vm36_vm0, %v21_v0, 0  ;;  %v18_v6 = vld [vmem:[%s161_s0 + $0x18] sm:$0xff] }
   0x3   :  { %v19_v4 = vpack.c.bf16 %v16_v2, %v15_v1  ;;  %104 = vmatpush3.bf16.msra.mxu0 %v38_v3  ;;  %v20_v7 = vpack.c.bf16 %v18_v6, %v17_v5  ;;  %v97_v8 = vld [vmem:[%s162_s2] ss:$0 sm:$0xff] }
   0x5   :  { %105 = vmatprep.mubr.msk.bf16.mxu0 %vm29_vm1, %v19_v4 }
   0x6   :  { %106 = vmatmul.mubr.msk.bf16.vlgmr.msra.gmra.mxu0 %vm29_vm1, %v20_v7 }
  0xc6   :  { %v107_v9 = vpop.f32.mrf.mxu0 }
  0xc7   :  { %v83_v10 = vadd.f32 %v107_v9, %v97_v8 }
  0xc8   :  { %v74_v11 = vpop.f32.mrf.mxu0 }
  0xc9   :  { %91 = vst [vmem:[%s163_s3 + $0x10] sm:$0xff] %v83_v10  ;;  %v75_v12 = vadd.f32 %v97_v8, %v74_v11 }
  0xca   :  { %v108_v13 = vpop.f32.mrf.mxu0 }
  0xcb   :  { %89 = vst [vmem:[%s163_s3] sm:$0xff] %v75_v12  ;;  %v86_v14 = vadd.f32 %v108_v13, %v97_v8 }
  0xcc   :  { %v77_v15 = vpop.f32.mrf.mxu0 }
  0xcd   :  { %92 = vst [vmem:[%s163_s3 + $0x18] sm:$0xff] %v86_v14  ;;  %v78_v16 = vadd.f32 %v97_v8, %v77_v15 }
  0xcf   :  { %90 = vst [vmem:[%s163_s3 + $0x8] sm:$0xff] %v78_v16 }

// kernel: generator_fwd.79
= control target key start
LH: loop header
LB: loop body
LE: loop exit
PB: predicated region body
PF: predicated region fallthrough
CT: control target
= control target key end

     0   :  { %vm144_vm0 = vcmask 519168   ;;  %s280_s0 = inlined_call_operand.vmem [shape: f32[2,6,6,64], index: 0, kind: input, shape index: {}]   ;;  %s281_s1 = inlined_call_operand.vmem [shape: f32[2,4,4,64], index: 1, kind: output, shape index: {}]  }
   0x1   :  { %v8_v0 = vld [vmem:[%s280_s0] sm:$0x3f]  ;;  %v9_v1 = vld [vmem:[%s280_s0 + $0x8] sm:$0x3f]  ;;  %v176_v2 = vld [vmem:[%s280_s0 + $0x10] sm:$0x3f] }
   0x2   :  { %v28_v3 = vrot.slane %v8_v0, 1  ;;  %v29_v4 = vrot.slane %v9_v1, 1  ;;  %v179_v5 = vrot.slane %v176_v2, 1  ;;  %v52_v6 = vrot.slane %v8_v0, 2  ;;  %v11_v7 = vld [vmem:[%s280_s0 + $0x18] sm:$0x3f] }
   0x3   :  { %v53_v8 = vrot.slane %v9_v1, 2  ;;  %v185_v9 = vrot.slane %v176_v2, 2  ;;  %v187_v10 = vrot.slane %v11_v7, 1  ;;  %v189_v11 = vrot.slane %v11_v7, 2  ;;  %v194_v12 = vld [vmem:[%s280_s0 + $0x20] sm:$0x3f] }
   0x4   :  { %v44_v13 = vmax.f32 %v8_v0, %v28_v3  ;;  %v45_v14 = vmax.f32 %v9_v1, %v29_v4  ;;  %v46_v15 = vmax.f32 %v176_v2, %v179_v5  ;;  %v86_v16 = vrot.slane %v194_v12, 1  ;;  %v202_v17 = vld [vmem:[%s280_s0 + $0x28] sm:$0x3f]  ;;  %v14_v18 = vld [vmem:[%s280_s0 + $0x30] sm:$0x3f] }
   0x5   :  { %v47_v19 = vmax.f32 %v11_v7, %v187_v10  ;;  %v98_v20 = vrot.slane %v194_v12, 2  ;;  %v120_v21 = vrot.slane %v202_v17, 1  ;;  %v132_v22 = vrot.slane %v202_v17, 2  ;;  %v15_v23 = vld [vmem:[%s280_s0 + $0x38] sm:$0x3f] }
   0x6   :  { %v68_v24 = vmax.f32 %v44_v13, %v52_v6  ;;  %v69_v25 = vmax.f32 %v45_v14, %v53_v8  ;;  %v70_v26 = vmax.f32 %v46_v15, %v185_v9  ;;  %v218_v27 = vld [vmem:[%s280_s0 + $0x40] sm:$0x3f]  ;;  %v32_v28 = vrot.slane %v14_v18, 1  ;;  %v17_v37 = vld [vmem:[%s280_s0 + $0x48] sm:$0x3f] }
   0x7   :  { %v71_v29 = vmax.f32 %v47_v19, %v189_v11  ;;  %v33_v30 = vrot.slane %v15_v23, 1  ;;  %v34_v31 = vrot.slane %v218_v27, 1  ;;  %v56_v32 = vrot.slane %v14_v18, 2  ;;  %v18_v62 = vld [vmem:[%s280_s0 + $0x50] sm:$0x3f] }
   0x8   :  { %v76_v33 = vmax.f32 %v68_v24, %v9_v1  ;;  %v77_v34 = vmax.f32 %v69_v25, %v176_v2  ;;  %v78_v35 = vmax.f32 %v70_v26, %v11_v7  ;;  %v48_v36 = vmax.f32 %v14_v18, %v32_v28 }
   0x9   :  { %v79_v38 = vmax.f32 %v71_v29, %v194_v12  ;;  %v49_v39 = vmax.f32 %v15_v23, %v33_v30  ;;  %v50_v40 = vmax.f32 %v218_v27, %v34_v31  ;;  %v57_v41 = vrot.slane %v15_v23, 2 }
   0xa   :  { %v90_v42 = vmax.f32 %v76_v33, %v29_v4  ;;  %v91_v43 = vmax.f32 %v77_v34, %v179_v5  ;;  %v92_v44 = vmax.f32 %v78_v35, %v187_v10  ;;  %v58_v45 = vrot.slane %v218_v27, 2 }
   0xb   :  { %v93_v46 = vmax.f32 %v79_v38, %v86_v16  ;;  %v72_v47 = vmax.f32 %v48_v36, %v56_v32  ;;  %v73_v48 = vmax.f32 %v49_v39, %v57_v41  ;;  %v35_v49 = vrot.slane %v17_v37, 1 }
   0xc   :  { %v102_v50 = vmax.f32 %v90_v42, %v53_v8  ;;  %v103_v51 = vmax.f32 %v91_v43, %v185_v9  ;;  %v104_v52 = vmax.f32 %v92_v44, %v189_v11  ;;  %v74_v53 = vmax.f32 %v50_v40, %v58_v45 }
   0xd   :  { %v105_v54 = vmax.f32 %v93_v46, %v98_v20  ;;  %v80_v55 = vmax.f32 %v72_v47, %v15_v23  ;;  %v51_v56 = vmax.f32 %v17_v37, %v35_v49  ;;  %v59_v57 = vrot.slane %v17_v37, 2 }
   0xe   :  { %v110_v58 = vmax.f32 %v102_v50, %v176_v2  ;;  %v111_v59 = vmax.f32 %v103_v51, %v11_v7  ;;  %v112_v60 = vmax.f32 %v104_v52, %v194_v12  ;;  %v81_v61 = vmax.f32 %v73_v48, %v218_v27 }
   0xf   :  { %v113_v63 = vmax.f32 %v105_v54, %v202_v17  ;;  %v94_v0 = vmax.f32 %v80_v55, %v33_v30  ;;  %v75_v1 = vmax.f32 %v51_v56, %v59_v57  ;;  %v82_v3 = vmax.f32 %v74_v53, %v17_v37 }
  0x10   :  { %v124_v4 = vmax.f32 %v110_v58, %v179_v5  ;;  %v125_v6 = vmax.f32 %v111_v59, %v187_v10  ;;  %v126_v8 = vmax.f32 %v112_v60, %v86_v16  ;;  %v95_v2 = vmax.f32 %v81_v61, %v34_v31  ;;  %v19_v5 = vld [vmem:[%s280_s0 + $0x58] sm:$0x3f] }
  0x11   :  { %v127_v7 = vmax.f32 %v113_v63, %v120_v21  ;;  %v106_v13 = vmax.f32 %v94_v0, %v57_v41  ;;  %v83_v12 = vmax.f32 %v75_v1, %v18_v62  ;;  %v87_v14 = vrot.slane %v18_v62, 1 }
  0x12   :  { %v136_v15 = vmax.f32 %v124_v4, %v185_v9  ;;  %v137_v18 = vmax.f32 %v125_v6, %v189_v11  ;;  %v138_v19 = vmax.f32 %v126_v8, %v98_v20  ;;  %v107_v23 = vmax.f32 %v95_v2, %v58_v45 }
  0x13   :  { %v139_v17 = vmax.f32 %v127_v7, %v132_v22  ;;  %v114_v24 = vmax.f32 %v106_v13, %v218_v27  ;;  %v96_v25 = vmax.f32 %v82_v3, %v35_v49  ;;  %v97_v26 = vmax.f32 %v83_v12, %v87_v14 }
  0x14   :  { %145 = vst.msk [vmem:[%s281_s1] sm:$0xf] %vm144_vm0, %v136_v15  ;;  %146 = vst.msk [vmem:[%s281_s1 + $0x4] sm:$0xf] %vm144_vm0, %v137_v18  ;;  %v115_v9 = vmax.f32 %v107_v23, %v17_v37  ;;  %v99_v10 = vrot.slane %v18_v62, 2  ;;  %v121_v22 = vrot.slane %v19_v5, 1 }
  0x15   :  { %147 = vst.msk [vmem:[%s281_s1 + $0x8] sm:$0xf] %vm144_vm0, %v138_v19  ;;  %148 = vst.msk [vmem:[%s281_s1 + $0xc] sm:$0xf] %vm144_vm0, %v139_v17  ;;  %v128_v11 = vmax.f32 %v114_v24, %v34_v31  ;;  %v108_v16 = vmax.f32 %v96_v25, %v59_v57  ;;  %v133_v32 = vrot.slane %v19_v5, 2 }
  0x16   :  { %v129_v20 = vmax.f32 %v115_v9, %v35_v49  ;;  %v109_v21 = vmax.f32 %v97_v26, %v99_v10 }
  0x17   :  { %v140_v27 = vmax.f32 %v128_v11, %v58_v45  ;;  %v116_v28 = vmax.f32 %v108_v16, %v18_v62 }
  0x18   :  { %v141_v29 = vmax.f32 %v129_v20, %v59_v57  ;;  %v117_v30 = vmax.f32 %v109_v21, %v19_v5 }
  0x19   :  { %149 = vst.msk [vmem:[%s281_s1 + $0x10] sm:$0xf] %vm144_vm0, %v140_v27  ;;  %v130_v33 = vmax.f32 %v116_v28, %v87_v14 }
  0x1a   :  { %150 = vst.msk [vmem:[%s281_s1 + $0x14] sm:$0xf] %vm144_vm0, %v141_v29  ;;  %v131_v31 = vmax.f32 %v117_v30, %v121_v22 }
  0x1b   :  { %v142_v34 = vmax.f32 %v130_v33, %v99_v10 }
  0x1c   :  { %v143_v35 = vmax.f32 %v131_v31, %v133_v32 }
  0x1d   :  { %151 = vst.msk [vmem:[%s281_s1 + $0x18] sm:$0xf] %vm144_vm0, %v142_v34 }
  0x1e   :  { %152 = vst.msk [vmem:[%s281_s1 + $0x1c] sm:$0xf] %vm144_vm0, %v143_v35 }

// kernel: generator_fwd.78
= control target key start
LH: loop header
LB: loop body
LE: loop exit
PB: predicated region body
PF: predicated region fallthrough
CT: control target
= control target key end

     0   :  { %v210_v0 = vmov 0   ;;  %vm106_vm0 = vcmask 130048   ;;  %s297_s1 = inlined_call_operand.vmem [shape: bf16[144,128], index: 1, kind: input, shape index: {}]   ;;  %s298_s0 = inlined_call_operand.vmem [shape: f32[32,144], index: 0, kind: input, shape index: {}]   ;;  %s299_s2 = inlined_call_operand.vmem [shape: f32[1,128], index: 2, kind: input, shape index: {}]   ;;  %s300_s3 = inlined_call_operand.vmem [shape: f32[32,128], index: 3, kind: output, shape index: {}]  }
   0x1   :  { %113 = vmatprep.subr.bf16.mxu0 %v210_v0  ;;  %182 = vmatprep.subr.bf16.mxu1 %v210_v0  ;;  %v201_v1 = vld [vmem:[%s297_s1 + $0x38] sm:$0xff]   ;;  %v202_v2 = vld [vmem:[%s297_s1 + $0x30] sm:$0xff]   ;;  %v203_v3 = vld [vmem:[%s297_s1 + $0x28] sm:$0xff]  }
   0x2   :  { %114 = vmatpush1.bf16.msra.mxu0 %v201_v1  ;;  %191 = vmatpush1.bf16.msra.mxu1 %v201_v1  ;;  %v16_v4 = vld [vmem:[%s298_s0 + $0x8] sm:$0xff]  ;;  %v18_v5 = vld [vmem:[%s298_s0 + $0x18] sm:$0xff]  ;;  %v204_v7 = vld [vmem:[%s297_s1 + $0x20] sm:$0xff]  }
   0x3   :  { %115 = vmatprep.subr.bf16.mxu0 %v210_v0  ;;  %183 = vmatprep.subr.bf16.mxu1 %v210_v0  ;;  %v20_v6 = vld [vmem:[%s298_s0 + $0x28] sm:$0xff]  ;;  %v24_v8 = vpack.c.bf16 %v18_v5, %v16_v4  ;;  %v22_v9 = vld [vmem:[%s298_s0 + $0x38] sm:$0xff]  ;;  %v206_v12 = vld [vmem:[%s297_s1 + $0x10] sm:$0xff]  }
   0x4   :  { %v26_v10 = vpack.c.bf16 %v22_v9, %v20_v6  ;;  %v205_v11 = vld [vmem:[%s297_s1 + $0x18] sm:$0xff]   ;;  %v207_v13 = vld [vmem:[%s297_s1 + $0x8] sm:$0xff]   ;;  %v208_v14 = vld [vmem:[%s297_s1] sm:$0xff]  }
   0x5   :  { %180 = vmatprep.mubr.msk.bf16.mxu0 %vm106_vm0, %v24_v8  ;;  %v209_v15 = vld [vmem:[%s297_s1 + $0x40] sm:$0xff]   ;;  %v17_v17 = vld [vmem:[%s298_s0 + $0x10] sm:$0xff] }
   0x6   :  { %116 = vmatpush1.bf16.msra.mxu0 %v202_v2  ;;  %192 = vmatpush1.bf16.msra.mxu1 %v202_v2  ;;  %v15_v16 = vld [vmem:[%s298_s0] sm:$0xff]  ;;  %v21_v19 = vld [vmem:[%s298_s0 + $0x30] sm:$0xff] }
   0x7   :  { %117 = vmatprep.subr.bf16.mxu0 %v210_v0  ;;  %184 = vmatprep.subr.bf16.mxu1 %v210_v0  ;;  %v19_v18 = vld [vmem:[%s298_s0 + $0x20] sm:$0xff]  ;;  %v23_v20 = vpack.c.bf16 %v17_v17, %v15_v16 }
   0x8   :  { %181 = vmatprep.mubr.msk.bf16.mxu1 %vm106_vm0, %v26_v10  ;;  %v25_v21 = vpack.c.bf16 %v21_v19, %v19_v18  ;;  %v170_v22 = vld [vmem:[%s299_s2] ss:$0 sm:$0xff] }
   0xa   :  { %118 = vmatpush1.bf16.msra.mxu0 %v203_v3  ;;  %193 = vmatpush1.bf16.msra.mxu1 %v203_v3 }
   0xb   :  { %119 = vmatprep.subr.bf16.mxu0 %v210_v0  ;;  %185 = vmatprep.subr.bf16.mxu1 %v210_v0 }
   0xe   :  { %120 = vmatpush1.bf16.msra.mxu0 %v204_v7  ;;  %194 = vmatpush1.bf16.msra.mxu1 %v204_v7 }
   0xf   :  { %121 = vmatprep.subr.bf16.mxu0 %v210_v0  ;;  %186 = vmatprep.subr.bf16.mxu1 %v210_v0 }
  0x12   :  { %122 = vmatpush1.bf16.msra.mxu0 %v205_v11  ;;  %195 = vmatpush1.bf16.msra.mxu1 %v205_v11 }
  0x13   :  { %123 = vmatprep.subr.bf16.mxu0 %v210_v0  ;;  %187 = vmatprep.subr.bf16.mxu1 %v210_v0 }
  0x16   :  { %124 = vmatpush1.bf16.msra.mxu0 %v206_v12  ;;  %196 = vmatpush1.bf16.msra.mxu1 %v206_v12 }
  0x17   :  { %125 = vmatprep.subr.bf16.mxu0 %v210_v0  ;;  %188 = vmatprep.subr.bf16.mxu1 %v210_v0 }
  0x1a   :  { %126 = vmatpush1.bf16.msra.mxu0 %v207_v13  ;;  %197 = vmatpush1.bf16.msra.mxu1 %v207_v13 }
  0x1b   :  { %127 = vmatprep.subr.bf16.mxu0 %v210_v0  ;;  %189 = vmatprep.subr.bf16.mxu1 %v210_v0 }
  0x1e   :  { %128 = vmatpush1.bf16.msra.mxu0 %v208_v14  ;;  %198 = vmatpush1.bf16.msra.mxu1 %v208_v14 }
  0x1f   :  { %143 = vmatprep.subr.bf16.mxu0 %v210_v0  ;;  %190 = vmatprep.subr.bf16.mxu1 %v210_v0 }
  0x22   :  { %144 = vmatpush2.bf16.msra.mxu0 %v209_v15  ;;  %199 = vmatpush2.bf16.msra.mxu1 %v209_v15 }
  0x25   :  { %146 = vmatmul.mubr.bf16.vlgmr.msra.gmra.mxu0 %v23_v20  ;;  %154 = vmatmul.mubr.bf16.vlgmr.msra.gmra.mxu1 %v25_v21 }
  0xe5   :  { %v147_v23 = vpop.f32.mrf.mxu0  ;;  %v155_v24 = vpop.f32.mrf.mxu1 }
  0xe6   :  { %v148_v25 = vadd.f32 %v170_v22, %v147_v23  ;;  %v156_v26 = vadd.f32 %v170_v22, %v155_v24 }
  0xe7   :  { %v149_v27 = vpop.f32.mrf.mxu0  ;;  %v157_v28 = vpop.f32.mrf.mxu1 }
  0xe8   :  { %162 = vst [vmem:[%s300_s3] sm:$0xff] %v148_v25  ;;  %164 = vst [vmem:[%s300_s3 + $0x10] sm:$0xff] %v156_v26 }
  0xe9   :  { %v150_v29 = vpop.f32.mrf.mxu0  ;;  %v158_v30 = vpop.f32.mrf.mxu1 }
  0xea   :  { %v151_v31 = vadd.f32 %v170_v22, %v150_v29  ;;  %v159_v32 = vadd.f32 %v170_v22, %v158_v30 }
  0xeb   :  { %v152_v33 = vpop.f32.mrf.mxu0  ;;  %v160_v34 = vpop.f32.mrf.mxu1 }
  0xec   :  { %163 = vst [vmem:[%s300_s3 + $0x8] sm:$0xff] %v151_v31  ;;  %165 = vst [vmem:[%s300_s3 + $0x18] sm:$0xff] %v159_v32 }

// kernel: generator_fwd.104
= control target key start
LH: loop header
LB: loop body
LE: loop exit
PB: predicated region body
PF: predicated region fallthrough
CT: control target
= control target key end

     0   :  { %vm152_vm0 = vcmask 519168   ;;  %s269_s0 = inlined_call_operand.vmem [shape: f32[2,6,6,64], index: 0, kind: input, shape index: {}]   ;;  %s270_s1 = inlined_call_operand.vmem [shape: f32[2,4,4,64], index: 1, kind: output, shape index: {}]  }
   0x1   :  { %v8_v0 = vld [vmem:[%s269_s0] sm:$0x3f]  ;;  %v9_v1 = vld [vmem:[%s269_s0 + $0x8] sm:$0x3f]  ;;  %v10_v2 = vld [vmem:[%s269_s0 + $0x10] sm:$0x3f] }
   0x2   :  { %v28_v3 = vrot.slane %v8_v0, 1  ;;  %v29_v4 = vrot.slane %v9_v1, 1  ;;  %v184_v5 = vrot.slane %v10_v2, 1  ;;  %v52_v6 = vrot.slane %v8_v0, 2  ;;  %v11_v7 = vld [vmem:[%s269_s0 + $0x18] sm:$0x3f] }
   0x3   :  { %v53_v8 = vrot.slane %v9_v1, 2  ;;  %v189_v9 = vrot.slane %v10_v2, 2  ;;  %v31_v10 = vrot.slane %v11_v7, 1  ;;  %v191_v11 = vrot.slane %v11_v7, 2  ;;  %v196_v12 = vld [vmem:[%s269_s0 + $0x20] sm:$0x3f] }
   0x4   :  { %v44_v13 = vadd.f32 %v28_v3, %v8_v0  ;;  %v45_v14 = vadd.f32 %v29_v4, %v9_v1  ;;  %v46_v15 = vadd.f32 %v184_v5, %v10_v2  ;;  %v86_v16 = vrot.slane %v196_v12, 1  ;;  %v203_v17 = vld [vmem:[%s269_s0 + $0x28] sm:$0x3f]  ;;  %v14_v18 = vld [vmem:[%s269_s0 + $0x30] sm:$0x3f] }
   0x5   :  { %v47_v19 = vadd.f32 %v31_v10, %v11_v7  ;;  %v98_v20 = vrot.slane %v196_v12, 2  ;;  %v120_v21 = vrot.slane %v203_v17, 1  ;;  %v132_v22 = vrot.slane %v203_v17, 2  ;;  %v15_v23 = vld [vmem:[%s269_s0 + $0x38] sm:$0x3f] }
   0x6   :  { %v68_v24 = vadd.f32 %v52_v6, %v44_v13  ;;  %v69_v25 = vadd.f32 %v53_v8, %v45_v14  ;;  %v70_v26 = vadd.f32 %v189_v9, %v46_v15  ;;  %v16_v27 = vld [vmem:[%s269_s0 + $0x40] sm:$0x3f]  ;;  %v32_v28 = vrot.slane %v14_v18, 1  ;;  %v17_v37 = vld [vmem:[%s269_s0 + $0x48] sm:$0x3f] }
   0x7   :  { %v71_v29 = vadd.f32 %v191_v11, %v47_v19  ;;  %v33_v30 = vrot.slane %v15_v23, 1  ;;  %v34_v31 = vrot.slane %v16_v27, 1  ;;  %v56_v32 = vrot.slane %v14_v18, 2  ;;  %v18_v62 = vld [vmem:[%s269_s0 + $0x50] sm:$0x3f] }
   0x8   :  { %v76_v33 = vadd.f32 %v68_v24, %v9_v1  ;;  %v77_v34 = vadd.f32 %v69_v25, %v10_v2  ;;  %v78_v35 = vadd.f32 %v70_v26, %v11_v7  ;;  %v48_v36 = vadd.f32 %v32_v28, %v14_v18 }
   0x9   :  { %v79_v38 = vadd.f32 %v71_v29, %v196_v12  ;;  %v49_v39 = vadd.f32 %v33_v30, %v15_v23  ;;  %v50_v40 = vadd.f32 %v34_v31, %v16_v27  ;;  %v57_v41 = vrot.slane %v15_v23, 2 }
   0xa   :  { %v90_v42 = vadd.f32 %v76_v33, %v29_v4  ;;  %v91_v43 = vadd.f32 %v77_v34, %v184_v5  ;;  %v92_v44 = vadd.f32 %v78_v35, %v31_v10  ;;  %v58_v45 = vrot.slane %v16_v27, 2 }
   0xb   :  { %v93_v46 = vadd.f32 %v86_v16, %v79_v38  ;;  %v72_v47 = vadd.f32 %v56_v32, %v48_v36  ;;  %v73_v48 = vadd.f32 %v57_v41, %v49_v39  ;;  %v35_v49 = vrot.slane %v17_v37, 1 }
   0xc   :  { %v102_v50 = vadd.f32 %v90_v42, %v53_v8  ;;  %v103_v51 = vadd.f32 %v91_v43, %v189_v9  ;;  %v104_v52 = vadd.f32 %v92_v44, %v191_v11  ;;  %v74_v53 = vadd.f32 %v58_v45, %v50_v40 }
   0xd   :  { %v105_v54 = vadd.f32 %v98_v20, %v93_v46  ;;  %v80_v55 = vadd.f32 %v72_v47, %v15_v23  ;;  %v51_v56 = vadd.f32 %v35_v49, %v17_v37  ;;  %v59_v57 = vrot.slane %v17_v37, 2 }
   0xe   :  { %v110_v58 = vadd.f32 %v102_v50, %v10_v2  ;;  %v111_v59 = vadd.f32 %v103_v51, %v11_v7  ;;  %v112_v60 = vadd.f32 %v104_v52, %v196_v12  ;;  %v81_v61 = vadd.f32 %v73_v48, %v16_v27 }
   0xf   :  { %v113_v63 = vadd.f32 %v105_v54, %v203_v17  ;;  %v94_v0 = vadd.f32 %v80_v55, %v33_v30  ;;  %v75_v1 = vadd.f32 %v59_v57, %v51_v56  ;;  %v82_v3 = vadd.f32 %v74_v53, %v17_v37 }
  0x10   :  { %v124_v4 = vadd.f32 %v110_v58, %v184_v5  ;;  %v125_v6 = vadd.f32 %v111_v59, %v31_v10  ;;  %v126_v8 = vadd.f32 %v112_v60, %v86_v16  ;;  %v95_v13 = vadd.f32 %v81_v61, %v34_v31  ;;  %v19_v5 = vld [vmem:[%s269_s0 + $0x58] sm:$0x3f] }
  0x11   :  { %v127_v14 = vadd.f32 %v120_v21, %v113_v63  ;;  %v106_v2 = vadd.f32 %v94_v0, %v57_v41  ;;  %v83_v7 = vadd.f32 %v75_v1, %v18_v62  ;;  %v87_v15 = vrot.slane %v18_v62, 1 }
  0x12   :  { %v136_v12 = vadd.f32 %v124_v4, %v189_v9  ;;  %v137_v18 = vadd.f32 %v125_v6, %v191_v11  ;;  %v138_v19 = vadd.f32 %v126_v8, %v98_v20  ;;  %v107_v23 = vadd.f32 %v95_v13, %v58_v45 }
  0x13   :  { %v139_v24 = vadd.f32 %v132_v22, %v127_v14  ;;  %v114_v17 = vadd.f32 %v106_v2, %v16_v27  ;;  %v96_v25 = vadd.f32 %v82_v3, %v35_v49  ;;  %v97_v26 = vadd.f32 %v87_v15, %v83_v7 }
  0x14   :  { %v144_v10 = vmul.f32 0.11111111, %v136_v12  ;;  %v145_v16 = vmul.f32 0.11111111, %v137_v18  ;;  %v146_v21 = vmul.f32 0.11111111, %v138_v19  ;;  %v115_v28 = vadd.f32 %v107_v23, %v17_v37 }
  0x15   :  { %v147_v29 = vmul.f32 0.11111111, %v139_v24  ;;  %v128_v30 = vadd.f32 %v114_v17, %v34_v31  ;;  %v99_v32 = vrot.slane %v18_v62, 2  ;;  %v108_v9 = vadd.f32 %v96_v25, %v59_v57 }
  0x16   :  { %153 = vst.msk [vmem:[%s270_s1] sm:$0xf] %vm152_vm0, %v144_v10  ;;  %154 = vst.msk [vmem:[%s270_s1 + $0x4] sm:$0xf] %vm152_vm0, %v145_v16  ;;  %v129_v11 = vadd.f32 %v115_v28, %v35_v49  ;;  %v121_v31 = vrot.slane %v19_v5, 1  ;;  %v133_v37 = vrot.slane %v19_v5, 2 }
  0x17   :  { %155 = vst.msk [vmem:[%s270_s1 + $0x8] sm:$0xf] %vm152_vm0, %v146_v21  ;;  %156 = vst.msk [vmem:[%s270_s1 + $0xc] sm:$0xf] %vm152_vm0, %v147_v29  ;;  %v140_v20 = vadd.f32 %v128_v30, %v58_v45  ;;  %v109_v22 = vadd.f32 %v99_v32, %v97_v26  ;;  %v116_v27 = vadd.f32 %v108_v9, %v18_v62 }
  0x18   :  { %v141_v33 = vadd.f32 %v129_v11, %v59_v57 }
  0x19   :  { %v148_v34 = vmul.f32 0.11111111, %v140_v20  ;;  %v130_v35 = vadd.f32 %v116_v27, %v87_v15  ;;  %v117_v36 = vadd.f32 %v109_v22, %v19_v5 }
  0x1a   :  { %v149_v38 = vmul.f32 0.11111111, %v141_v33 }
  0x1b   :  { %157 = vst.msk [vmem:[%s270_s1 + $0x10] sm:$0xf] %vm152_vm0, %v148_v34  ;;  %v142_v39 = vadd.f32 %v130_v35, %v99_v32  ;;  %v131_v40 = vadd.f32 %v121_v31, %v117_v36 }
  0x1c   :  { %158 = vst.msk [vmem:[%s270_s1 + $0x14] sm:$0xf] %vm152_vm0, %v149_v38 }
  0x1d   :  { %v150_v41 = vmul.f32 0.11111111, %v142_v39  ;;  %v143_v42 = vadd.f32 %v133_v37, %v131_v40 }
  0x1f   :  { %159 = vst.msk [vmem:[%s270_s1 + $0x18] sm:$0xf] %vm152_vm0, %v150_v41  ;;  %v151_v43 = vmul.f32 0.11111111, %v143_v42 }
  0x21   :  { %160 = vst.msk [vmem:[%s270_s1 + $0x1c] sm:$0xf] %vm152_vm0, %v151_v43 }

// kernel: generator_fwd.105
= control target key start
LH: loop header
LB: loop body
LE: loop exit
PB: predicated region body
PF: predicated region fallthrough
CT: control target
= control target key end

     0   :  { %s1587_s1 = inlined_call_operand.vmem [shape: bf16[1152,128], index: 1, kind: input, shape index: {}]   ;;  %s1588_s0 = inlined_call_operand.vmem [shape: f32[32,1152], index: 0, kind: input, shape index: {}]   ;;  %s1589_s2 = inlined_call_operand.vmem [shape: f32[1,128], index: 2, kind: input, shape index: {}]   ;;  %s1590_s3 = inlined_call_operand.vmem [shape: f32[32,128], index: 3, kind: output, shape index: {}]  }
   0x1   :  { %v1156_v0 = vld [vmem:[%s1587_s1 + $0x78] sm:$0xff]   ;;  %v1160_v4 = vld [vmem:[%s1587_s1 + $0x70] sm:$0xff]   ;;  %v1164_v8 = vld [vmem:[%s1587_s1 + $0x68] sm:$0xff]  }
   0x2   :  { %v1157_v1 = vld [vmem:[%s1587_s1 + $0x38] sm:$0xff]   ;;  %1014 = vmatprep.subr.bf16.mxu0 %v1156_v0  ;;  %v1161_v5 = vld [vmem:[%s1587_s1 + $0x30] sm:$0xff]   ;;  %v1165_v9 = vld [vmem:[%s1587_s1 + $0x28] sm:$0xff]  }
   0x3   :  { %v1158_v2 = vld [vmem:[%s1587_s1 + $0xf8] sm:$0xff]   ;;  %1015 = vmatpush3.bf16.msra.mxu0 %v1157_v1  ;;  %v1162_v6 = vld [vmem:[%s1587_s1 + $0xf0] sm:$0xff]   ;;  %v1166_v10 = vld [vmem:[%s1587_s1 + $0xe8] sm:$0xff]  }
   0x4   :  { %v1159_v3 = vld [vmem:[%s1587_s1 + $0xb8] sm:$0xff]   ;;  %1042 = vmatprep.subr.bf16.mxu1 %v1158_v2  ;;  %1016 = vmatprep.subr.bf16.mxu0 %v1160_v4  ;;  %v1163_v7 = vld [vmem:[%s1587_s1 + $0xb0] sm:$0xff]   ;;  %v1167_v11 = vld [vmem:[%s1587_s1 + $0xa8] sm:$0xff]  }
   0x5   :  { %1043 = vmatpush3.bf16.msra.mxu1 %v1159_v3  ;;  %v1168_v12 = vld [vmem:[%s1587_s1 + $0x60] sm:$0xff]   ;;  %v1172_v16 = vld [vmem:[%s1587_s1 + $0x58] sm:$0xff]   ;;  %v1176_v20 = vld [vmem:[%s1587_s1 + $0x50] sm:$0xff]  }
   0x6   :  { %1044 = vmatprep.subr.bf16.mxu1 %v1162_v6  ;;  %v1169_v13 = vld [vmem:[%s1587_s1 + $0x20] sm:$0xff]   ;;  %v1173_v17 = vld [vmem:[%s1587_s1 + $0x18] sm:$0xff]   ;;  %v1177_v21 = vld [vmem:[%s1587_s1 + $0x10] sm:$0xff]  }
   0x7   :  { %1017 = vmatpush3.bf16.msra.mxu0 %v1161_v5  ;;  %v1170_v14 = vld [vmem:[%s1587_s1 + $0xe0] sm:$0xff]   ;;  %v1174_v18 = vld [vmem:[%s1587_s1 + $0xd8] sm:$0xff]   ;;  %v1178_v22 = vld [vmem:[%s1587_s1 + $0xd0] sm:$0xff]  }
   0x8   :  { %1018 = vmatprep.subr.bf16.mxu0 %v1164_v8  ;;  %v1171_v15 = vld [vmem:[%s1587_s1 + $0xa0] sm:$0xff]   ;;  %v1175_v19 = vld [vmem:[%s1587_s1 + $0x98] sm:$0xff]   ;;  %v1179_v23 = vld [vmem:[%s1587_s1 + $0x90] sm:$0xff]  }
   0x9   :  { %1045 = vmatpush3.bf16.msra.mxu1 %v1163_v7  ;;  %v1180_v24 = vld [vmem:[%s1587_s1 + $0x48] sm:$0xff]   ;;  %v1184_v28 = vld [vmem:[%s1587_s1 + $0x40] sm:$0xff]   ;;  %v25_v32 = vld [vmem:[%s1588_s0 + $0x50] sm:$0xff] }
   0xa   :  { %1046 = vmatprep.subr.bf16.mxu1 %v1166_v10  ;;  %v1181_v25 = vld [vmem:[%s1587_s1 + $0x8] sm:$0xff]   ;;  %v1185_v29 = vld [vmem:[%s1587_s1] sm:$0xff]   ;;  %v61_v34 = vmax.f32 %v25_v32, 0.0  ;;  %v1188_v41 = vld [vmem:[%s1587_s1 + $0x178] sm:$0xff]  }
   0xb   :  { %1019 = vmatpush3.bf16.msra.mxu0 %v1165_v9  ;;  %v1182_v26 = vld [vmem:[%s1587_s1 + $0xc8] sm:$0xff]   ;;  %v1186_v30 = vld [vmem:[%s1587_s1 + $0xc0] sm:$0xff]   ;;  %v18_v42 = vld [vmem:[%s1588_s0 + $0x18] sm:$0xff] }
   0xc   :  { %1020 = vmatprep.subr.bf16.mxu0 %v1168_v12  ;;  %v1183_v27 = vld [vmem:[%s1587_s1 + $0x88] sm:$0xff]   ;;  %v1187_v35 = vld [vmem:[%s1587_s1 + $0x80] sm:$0xff]   ;;  %v54_v44 = vmax.f32 %v18_v42, 0.0  ;;  %v1189_v47 = vld [vmem:[%s1587_s1 + $0x138] sm:$0xff]  }
   0xd   :  { %1047 = vmatpush3.bf16.msra.mxu1 %v1167_v11  ;;  %v16_v31 = vld [vmem:[%s1588_s0 + $0x8] sm:$0xff]  ;;  %v15_v36 = vld [vmem:[%s1588_s0] sm:$0xff]  ;;  %v17_v48 = vld [vmem:[%s1588_s0 + $0x10] sm:$0xff] }
   0xe   :  { %1048 = vmatprep.subr.bf16.mxu1 %v1170_v14  ;;  %v52_v33 = vmax.f32 %v16_v31, 0.0  ;;  %v24_v37 = vld [vmem:[%s1588_s0 + $0x48] sm:$0xff]  ;;  %v51_v38 = vmax.f32 %v15_v36, 0.0  ;;  %v27_v43 = vld [vmem:[%s1588_s0 + $0x60] sm:$0xff]  ;;  %v26_v49 = vld [vmem:[%s1588_s0 + $0x58] sm:$0xff]  ;;  %v53_v51 = vmax.f32 %v17_v48, 0.0 }
   0xf   :  { %1021 = vmatpush3.bf16.msra.mxu0 %v1169_v13  ;;  %v60_v40 = vmax.f32 %v24_v37, 0.0  ;;  %v63_v45 = vmax.f32 %v27_v43, 0.0  ;;  %v62_v52 = vmax.f32 %v26_v49, 0.0  ;;  %v1190_v53 = vld [vmem:[%s1587_s1 + $0x1f8] sm:$0xff]   ;;  %v1192_v56 = vld [vmem:[%s1587_s1 + $0x170] sm:$0xff]   ;;  %v1196_v60 = vld [vmem:[%s1587_s1 + $0x168] sm:$0xff]  }
  0x10   :  { %1022 = vmatprep.subr.bf16.mxu0 %v1172_v16  ;;  %v88_v39 = vpack.c.bf16 %v61_v34, %v52_v33  ;;  %v1191_v55 = vld [vmem:[%s1587_s1 + $0x1b8] sm:$0xff]   ;;  %v1193_v57 = vld [vmem:[%s1587_s1 + $0x130] sm:$0xff]   ;;  %v1197_v61 = vld [vmem:[%s1587_s1 + $0x128] sm:$0xff]  }
  0x11   :  { %1049 = vmatpush3.bf16.msra.mxu1 %v1171_v15  ;;  %v87_v46 = vpack.c.bf16 %v60_v40, %v51_v38  ;;  %v90_v50 = vpack.c.bf16 %v63_v45, %v54_v44  ;;  %v89_v54 = vpack.c.bf16 %v62_v52, %v53_v51  ;;  %v1194_v58 = vld [vmem:[%s1587_s1 + $0x1f0] sm:$0xff]   ;;  %v1198_v62 = vld [vmem:[%s1587_s1 + $0x1e8] sm:$0xff]   ;;  %v1200_v0 = vld [vmem:[%s1587_s1 + $0x160] sm:$0xff]  }
  0x12   :  { %1050 = vmatprep.subr.bf16.mxu1 %v1174_v18  ;;  %720 = vmatprep.mubr.bf16.mxu0 %v88_v39  ;;  %v1195_v59 = vld [vmem:[%s1587_s1 + $0x1b0] sm:$0xff]   ;;  %v1199_v63 = vld [vmem:[%s1587_s1 + $0x1a8] sm:$0xff]   ;;  %v1201_v1 = vld [vmem:[%s1587_s1 + $0x120] sm:$0xff]  }
  0x13   :  { %1023 = vmatpush3.bf16.msra.mxu0 %v1173_v17  ;;  %769 = vmatprep.mubr.bf16.mxu1 %v90_v50  ;;  %v1202_v2 = vld [vmem:[%s1587_s1 + $0x1e0] sm:$0xff]   ;;  %v1204_v4 = vld [vmem:[%s1587_s1 + $0x158] sm:$0xff]   ;;  %v33_v11 = vld [vmem:[%s1588_s0 + $0x90] sm:$0xff] }
  0x14   :  { %1024 = vmatprep.subr.bf16.mxu0 %v1176_v20  ;;  %v1203_v3 = vld [vmem:[%s1587_s1 + $0x1a0] sm:$0xff]   ;;  %v1205_v5 = vld [vmem:[%s1587_s1 + $0x118] sm:$0xff]   ;;  %v69_v14 = vmax.f32 %v33_v11, 0.0  ;;  %v36_v17 = vld [vmem:[%s1588_s0 + $0xa8] sm:$0xff] }
  0x15   :  { %1051 = vmatpush3.bf16.msra.mxu1 %v1175_v19  ;;  %v34_v6 = vld [vmem:[%s1588_s0 + $0x98] sm:$0xff]  ;;  %v43_v7 = vld [vmem:[%s1588_s0 + $0xe0] sm:$0xff]  ;;  %v45_v18 = vld [vmem:[%s1588_s0 + $0xf0] sm:$0xff]  ;;  %v72_v20 = vmax.f32 %v36_v17, 0.0 }
  0x16   :  { %1052 = vmatprep.subr.bf16.mxu1 %v1178_v22  ;;  %v70_v8 = vmax.f32 %v34_v6, 0.0  ;;  %v79_v9 = vmax.f32 %v43_v7, 0.0  ;;  %v1206_v10 = vld [vmem:[%s1587_s1 + $0x1d8] sm:$0xff]   ;;  %v1208_v22 = vld [vmem:[%s1587_s1 + $0x150] sm:$0xff]   ;;  %v1212_v32 = vld [vmem:[%s1587_s1 + $0x148] sm:$0xff]  }
  0x17   :  { %1025 = vmatpush3.bf16.msra.mxu0 %v1177_v21  ;;  %v42_v12 = vld [vmem:[%s1588_s0 + $0xd8] sm:$0xff]  ;;  %v81_v21 = vmax.f32 %v45_v18, 0.0  ;;  %v1211_v31 = vld [vmem:[%s1587_s1 + $0x190] sm:$0xff]   ;;  %v1213_v33 = vld [vmem:[%s1587_s1 + $0x108] sm:$0xff]  }
  0x18   :  { %1026 = vmatprep.subr.bf16.mxu0 %v1180_v24  ;;  %v97_v13 = vpack.c.bf16 %v79_v9, %v70_v8  ;;  %v78_v15 = vmax.f32 %v42_v12, 0.0  ;;  %v1207_v16 = vld [vmem:[%s1587_s1 + $0x198] sm:$0xff]   ;;  %v44_v24 = vld [vmem:[%s1588_s0 + $0xe8] sm:$0xff]  ;;  %v1216_v36 = vld [vmem:[%s1587_s1 + $0x140] sm:$0xff]  }
  0x19   :  { %1053 = vmatpush3.bf16.msra.mxu1 %v1179_v23  ;;  %v35_v23 = vld [vmem:[%s1588_s0 + $0xa0] sm:$0xff]  ;;  %v1214_v34 = vld [vmem:[%s1587_s1 + $0x1c8] sm:$0xff]   ;;  %v29_v40 = vld [vmem:[%s1588_s0 + $0x70] sm:$0xff] }
  0x1a   :  { %1054 = vmatprep.subr.bf16.mxu1 %v1182_v26  ;;  %v96_v19 = vpack.c.bf16 %v78_v15, %v69_v14  ;;  %v71_v26 = vmax.f32 %v35_v23, 0.0  ;;  %v1217_v37 = vld [vmem:[%s1587_s1 + $0x100] sm:$0xff]   ;;  %v20_v39 = vld [vmem:[%s1588_s0 + $0x28] sm:$0xff]  ;;  %v65_v42 = vmax.f32 %v29_v40, 0.0  ;;  %v1220_v49 = vld [vmem:[%s1587_s1 + $0x238] sm:$0xff]  }
  0x1b   :  { %1027 = vmatpush3.bf16.msra.mxu0 %v1181_v25  ;;  %v99_v25 = vpack.c.bf16 %v81_v21, %v72_v20  ;;  %v1218_v38 = vld [vmem:[%s1587_s1 + $0x1c0] sm:$0xff]   ;;  %v28_v45 = vld [vmem:[%s1588_s0 + $0x68] sm:$0xff]  ;;  %v22_v50 = vld [vmem:[%s1588_s0 + $0x38] sm:$0xff] }
  0x1c   :  { %1028 = vmatprep.subr.bf16.mxu0 %v1184_v28  ;;  %v1209_v28 = vld [vmem:[%s1587_s1 + $0x110] sm:$0xff]   ;;  %v1219_v43 = vld [vmem:[%s1587_s1 + $0x180] sm:$0xff]   ;;  %v64_v48 = vmax.f32 %v28_v45, 0.0  ;;  %v1222_v6 = vld [vmem:[%s1587_s1 + $0x228] sm:$0xff]  }
  0x1d   :  { %1055 = vmatpush3.bf16.msra.mxu1 %v1183_v27  ;;  %v80_v27 = vmax.f32 %v44_v24, 0.0  ;;  %v19_v44 = vld [vmem:[%s1588_s0 + $0x20] sm:$0xff]  ;;  %v40_v7 = vld [vmem:[%s1588_s0 + $0xc8] sm:$0xff]  ;;  %v49_v8 = vld [vmem:[%s1588_s0 + $0x110] sm:$0xff] }
  0x1e   :  { %1056 = vmatprep.subr.bf16.mxu1 %v1186_v30  ;;  %v1210_v30 = vld [vmem:[%s1587_s1 + $0x1d0] sm:$0xff]   ;;  %v31_v51 = vld [vmem:[%s1588_s0 + $0x80] sm:$0xff]  ;;  %v85_v11 = vmax.f32 %v49_v8, 0.0  ;;  %v32_v21 = vld [vmem:[%s1588_s0 + $0x88] sm:$0xff] }
  0x1f   :  { %1029 = vmatpush3.bf16.msra.mxu0 %v1185_v29  ;;  %v98_v29 = vpack.c.bf16 %v80_v27, %v71_v26  ;;  %v39_v12 = vld [vmem:[%s1588_s0 + $0xc0] sm:$0xff]  ;;  %v1224_v23 = vld [vmem:[%s1587_s1 + $0x218] sm:$0xff]   ;;  %v68_v24 = vmax.f32 %v32_v21, 0.0  ;;  %v1225_v26 = vld [vmem:[%s1587_s1 + $0x210] sm:$0xff]  }
  0x20   :  { %1070 = vmatprep.subr.bf16.mxu0 %v1188_v41  ;;  %v56_v41 = vmax.f32 %v20_v39, 0.0  ;;  %v75_v15 = vmax.f32 %v39_v12, 0.0  ;;  %v1223_v18 = vld [vmem:[%s1587_s1 + $0x220] sm:$0xff]   ;;  %v1226_v27 = vld [vmem:[%s1587_s1 + $0x208] sm:$0xff]  }
  0x21   :  { %1057 = vmatpush3.bf16.msra.mxu1 %v1187_v35  ;;  %v1215_v35 = vld [vmem:[%s1587_s1 + $0x188] sm:$0xff]   ;;  %v23_v20 = vld [vmem:[%s1588_s0 + $0x40] sm:$0xff] }
  0x22   :  { %721 = vmatmul.mubr.bf16.vlgmr.msra.gmra.mxu0 %v87_v46  ;;  %1098 = vmatprep.subr.bf16.mxu1 %v1190_v53  ;;  %v92_v46 = vpack.c.bf16 %v65_v42, %v56_v41  ;;  %v58_v53 = vmax.f32 %v22_v50, 0.0 }
  0x23   :  { %1071 = vmatpush3.bf16.msra.mxu0 %v1189_v47  ;;  %728 = vmatprep.mubr.bf16.mxu0 %v97_v13  ;;  %v55_v47 = vmax.f32 %v19_v44, 0.0  ;;  %v48_v13 = vld [vmem:[%s1588_s0 + $0x108] sm:$0xff] }
  0x24   :  { %770 = vmatmul.mubr.bf16.vlgmr.msra.gmra.mxu1 %v89_v54  ;;  %1072 = vmatprep.subr.bf16.mxu0 %v1192_v56  ;;  %v67_v54 = vmax.f32 %v31_v51, 0.0  ;;  %v30_v56 = vld [vmem:[%s1588_s0 + $0x78] sm:$0xff] }
  0x25   :  { %1099 = vmatpush3.bf16.msra.mxu1 %v1191_v55  ;;  %777 = vmatprep.mubr.bf16.mxu1 %v99_v25  ;;  %v91_v52 = vpack.c.bf16 %v64_v48, %v55_v47  ;;  %v21_v55 = vld [vmem:[%s1588_s0 + $0x30] sm:$0xff] }
  0x26   :  { %1100 = vmatprep.subr.bf16.mxu1 %v1194_v58  ;;  %v66_v58 = vmax.f32 %v30_v56, 0.0 }
  0x27   :  { %1073 = vmatpush3.bf16.msra.mxu0 %v1193_v57  ;;  %v57_v57 = vmax.f32 %v21_v55, 0.0 }
  0x28   :  { %1074 = vmatprep.subr.bf16.mxu0 %v1196_v60  ;;  %v38_v60 = vld [vmem:[%s1588_s0 + $0xb8] sm:$0xff] }
  0x29   :  { %1101 = vmatpush3.bf16.msra.mxu1 %v1195_v59  ;;  %v1221_v59 = vld [vmem:[%s1587_s1 + $0x230] sm:$0xff]  }
  0x2a   :  { %1102 = vmatprep.subr.bf16.mxu1 %v1198_v62  ;;  %729 = vmatmul.mubr.bf16.gmra.mxu0 %v96_v19  ;;  %v47_v62 = vld [vmem:[%s1588_s0 + $0x100] sm:$0xff] }
  0x2b   :  { %1075 = vmatpush3.bf16.msra.mxu0 %v1197_v61  ;;  %818 = vmatprep.mubr.bf16.mxu0 %v92_v46  ;;  %v94_v61 = vpack.c.bf16 %v67_v54, %v58_v53 }
  0x2c   :  { %1076 = vmatprep.subr.bf16.mxu0 %v1200_v0  ;;  %778 = vmatmul.mubr.bf16.gmra.mxu1 %v98_v29  ;;  %v37_v0 = vld [vmem:[%s1588_s0 + $0xb0] sm:$0xff]  ;;  %v50_v29 = vld [vmem:[%s1588_s0 + $0x118] sm:$0xff] }
  0x2d   :  { %1103 = vmatpush3.bf16.msra.mxu1 %v1199_v63  ;;  %v74_v63 = vmax.f32 %v38_v60, 0.0  ;;  %867 = vmatprep.mubr.bf16.mxu1 %v94_v61 }
  0x2e   :  { %1104 = vmatprep.subr.bf16.mxu1 %v1202_v2  ;;  %v93_v2 = vpack.c.bf16 %v66_v58, %v57_v57 }
  0x2f   :  { %1077 = vmatpush3.bf16.msra.mxu0 %v1201_v1  ;;  %v46_v1 = vld [vmem:[%s1588_s0 + $0xf8] sm:$0xff] }
  0x30   :  { %1078 = vmatprep.subr.bf16.mxu0 %v1204_v4  ;;  %v73_v4 = vmax.f32 %v37_v0, 0.0 }
  0x31   :  { %1105 = vmatpush3.bf16.msra.mxu1 %v1203_v3  ;;  %v83_v3 = vmax.f32 %v47_v62, 0.0 }
  0x32   :  { %1106 = vmatprep.subr.bf16.mxu1 %v1206_v10  ;;  %v76_v10 = vmax.f32 %v40_v7, 0.0 }
  0x33   :  { %1079 = vmatpush3.bf16.msra.mxu0 %v1205_v5  ;;  %v82_v5 = vmax.f32 %v46_v1, 0.0  ;;  %v101_v9 = vpack.c.bf16 %v83_v3, %v74_v63  ;;  %v941_v63 = vld [vmem:[%s1589_s2] ss:$0 sm:$0xff] }
  0x34   :  { %1080 = vmatprep.subr.bf16.mxu0 %v1208_v22  ;;  %v103_v17 = vpack.c.bf16 %v85_v11, %v76_v10  ;;  %v59_v22 = vmax.f32 %v23_v20, 0.0 }
  0x35   :  { %1107 = vmatpush3.bf16.msra.mxu1 %v1207_v16  ;;  %v100_v14 = vpack.c.bf16 %v82_v5, %v73_v4  ;;  %v84_v16 = vmax.f32 %v48_v13, 0.0 }
  0x36   :  { %1108 = vmatprep.subr.bf16.mxu1 %v1210_v30  ;;  %v95_v25 = vpack.c.bf16 %v68_v24, %v59_v22  ;;  %v1227_v30 = vld [vmem:[%s1587_s1 + $0x200] sm:$0xff]  }
  0x37   :  { %1081 = vmatpush3.bf16.msra.mxu0 %v1209_v28  ;;  %v102_v19 = vpack.c.bf16 %v84_v16, %v75_v15  ;;  %v41_v28 = vld [vmem:[%s1588_s0 + $0xd0] sm:$0xff] }
  0x38   :  { %1082 = vmatprep.subr.bf16.mxu0 %v1212_v32  ;;  %v86_v32 = vmax.f32 %v50_v29, 0.0 }
  0x39   :  { %1109 = vmatpush3.bf16.msra.mxu1 %v1211_v31  ;;  %v77_v31 = vmax.f32 %v41_v28, 0.0 }
  0x3a   :  { %1110 = vmatprep.subr.bf16.mxu1 %v1214_v34 }
  0x3b   :  { %1083 = vmatpush3.bf16.msra.mxu0 %v1213_v33  ;;  %v104_v33 = vpack.c.bf16 %v86_v32, %v77_v31 }
  0x3c   :  { %1084 = vmatprep.subr.bf16.mxu0 %v1216_v36 }
  0x3d   :  { %1111 = vmatpush3.bf16.msra.mxu1 %v1215_v35 }
  0x3e   :  { %1112 = vmatprep.subr.bf16.mxu1 %v1218_v38 }
  0x3f   :  { %1085 = vmatpush3.bf16.msra.mxu0 %v1217_v37 }
  0x40   :  { %1136 = vmatprep.subr.bf16.mxu0 %v1220_v49 }
  0x41   :  { %1113 = vmatpush3.bf16.msra.mxu1 %v1219_v43 }
  0x42   :  { %819 = vmatmul.mubr.bf16.vlgmr.msra.gmra.mxu0 %v91_v52 }
  0x43   :  { %1137 = vmatpush3.bf16.msra.mxu0 %v1220_v49  ;;  %826 = vmatprep.mubr.bf16.mxu0 %v101_v9 }
  0x44   :  { %1138 = vmatprep.subr.bf16.mxu0 %v1221_v59  ;;  %868 = vmatmul.mubr.bf16.vlgmr.msra.gmra.mxu1 %v93_v2 }
  0x45   :  { %875 = vmatprep.mubr.bf16.mxu1 %v103_v17 }
  0x47   :  { %1139 = vmatpush3.bf16.msra.mxu0 %v1221_v59 }
  0x48   :  { %1140 = vmatprep.subr.bf16.mxu0 %v1222_v6 }
  0x4a   :  { %827 = vmatmul.mubr.bf16.gmra.mxu0 %v100_v14 }
  0x4b   :  { %1141 = vmatpush3.bf16.msra.mxu0 %v1222_v6  ;;  %1152 = vmatprep.mubr.bf16.mxu0 %v95_v25 }
  0x4c   :  { %1142 = vmatprep.subr.bf16.mxu0 %v1223_v18  ;;  %876 = vmatmul.mubr.bf16.gmra.mxu1 %v102_v19 }
  0x4f   :  { %1143 = vmatpush3.bf16.msra.mxu0 %v1223_v18 }
  0x50   :  { %1144 = vmatprep.subr.bf16.mxu0 %v1224_v23 }
  0x53   :  { %1145 = vmatpush3.bf16.msra.mxu0 %v1224_v23 }
  0x54   :  { %1146 = vmatprep.subr.bf16.mxu0 %v1225_v26 }
  0x57   :  { %1147 = vmatpush3.bf16.msra.mxu0 %v1225_v26 }
  0x58   :  { %1148 = vmatprep.subr.bf16.mxu0 %v1226_v27 }
  0x5b   :  { %1149 = vmatpush3.bf16.msra.mxu0 %v1226_v27 }
  0x5c   :  { %1150 = vmatprep.subr.bf16.mxu0 %v1227_v30 }
  0x5f   :  { %1151 = vmatpush3.bf16.msra.mxu0 %v1227_v30 }
  0x62   :  { %1153 = vmatmul.mubr.bf16.vlgmr.msra.gmra.mxu0 %v104_v33 }
  0xe2   :  { %v1030_v34 = vpop.f32.mrf.mxu0 }
  0xe4   :  { %v1058_v35 = vpop.f32.mrf.mxu1  ;;  %v1031_v36 = vpop.f32.mrf.mxu0 }
  0xe5   :  { %v1032_v62 = vadd.f32 %v1031_v36, %v1030_v34 }
  0xe6   :  { %v1059_v37 = vpop.f32.mrf.mxu1  ;;  %v1033_v38 = vpop.f32.mrf.mxu0 }
  0xe7   :  { %v723_v5 = vadd.f32 %v1032_v62, %v941_v63  ;;  %v1060_v6 = vadd.f32 %v1059_v37, %v1058_v35 }
  0xe8   :  { %v1061_v39 = vpop.f32.mrf.mxu1  ;;  %v1034_v40 = vpop.f32.mrf.mxu0 }
  0xe9   :  { %v1035_v7 = vadd.f32 %v1034_v40, %v1033_v38  ;;  %v772_v15 = vadd.f32 %v1060_v6, %v723_v5 }
  0xea   :  { %v1036_v41 = vpop.f32.mrf.mxu0  ;;  %v1062_v42 = vpop.f32.mrf.mxu1 }
  0xeb   :  { %v726_v16 = vadd.f32 %v1035_v7, %v941_v63  ;;  %v1063_v17 = vadd.f32 %v1062_v42, %v1061_v39 }
  0xec   :  { %v1064_v43 = vpop.f32.mrf.mxu1  ;;  %v1037_v44 = vpop.f32.mrf.mxu0 }
  0xed   :  { %v1038_v61 = vadd.f32 %v1037_v44, %v1036_v41  ;;  %v775_v26 = vadd.f32 %v1063_v17, %v726_v16 }
  0xee   :  { %v1065_v45 = vpop.f32.mrf.mxu1  ;;  %v1039_v46 = vpop.f32.mrf.mxu0 }
  0xef   :  { %v731_v2 = vadd.f32 %v1038_v61, %v941_v63  ;;  %v1066_v3 = vadd.f32 %v1065_v45, %v1064_v43 }
  0xf0   :  { %v1067_v47 = vpop.f32.mrf.mxu1  ;;  %v1040_v48 = vpop.f32.mrf.mxu0 }
  0xf1   :  { %v1041_v4 = vadd.f32 %v1040_v48, %v1039_v46  ;;  %v780_v11 = vadd.f32 %v1066_v3, %v731_v2 }
  0xf2   :  { %v1068_v50 = vpop.f32.mrf.mxu1 }
  0xf3   :  { %v734_v12 = vadd.f32 %v1041_v4, %v941_v63  ;;  %v1069_v13 = vadd.f32 %v1068_v50, %v1067_v47 }
  0xf5   :  { %v783_v22 = vadd.f32 %v1069_v13, %v734_v12 }
 0x102   :  { %v1086_v49 = vpop.f32.mrf.mxu0 }
 0x104   :  { %v1087_v51 = vpop.f32.mrf.mxu0  ;;  %v1114_v52 = vpop.f32.mrf.mxu1 }
 0x105   :  { %v1088_v14 = vadd.f32 %v1087_v51, %v1086_v49 }
 0x106   :  { %v1089_v53 = vpop.f32.mrf.mxu0  ;;  %v1115_v54 = vpop.f32.mrf.mxu1 }
 0x107   :  { %v821_v23 = vadd.f32 %v1088_v14, %v772_v15  ;;  %v1116_v24 = vadd.f32 %v1115_v54, %v1114_v52 }
 0x108   :  { %v1090_v55 = vpop.f32.mrf.mxu0  ;;  %v1117_v56 = vpop.f32.mrf.mxu1 }
 0x109   :  { %v1091_v25 = vadd.f32 %v1090_v55, %v1089_v53  ;;  %v870_v34 = vadd.f32 %v1116_v24, %v821_v23 }
 0x10a   :  { %v1092_v57 = vpop.f32.mrf.mxu0  ;;  %v1118_v58 = vpop.f32.mrf.mxu1 }
 0x10b   :  { %v824_v31 = vadd.f32 %v1091_v25, %v775_v26  ;;  %v1119_v32 = vadd.f32 %v1118_v58, %v1117_v56 }
 0x10c   :  { %v1093_v59 = vpop.f32.mrf.mxu0  ;;  %v1120_v60 = vpop.f32.mrf.mxu1 }
 0x10d   :  { %v1094_v8 = vadd.f32 %v1093_v59, %v1092_v57  ;;  %v873_v40 = vadd.f32 %v1119_v32, %v824_v31 }
 0x10e   :  { %v1095_v0 = vpop.f32.mrf.mxu0  ;;  %v1121_v1 = vpop.f32.mrf.mxu1 }
 0x10f   :  { %v829_v18 = vadd.f32 %v1094_v8, %v780_v11  ;;  %v1122_v19 = vadd.f32 %v1121_v1, %v1120_v60 }
 0x110   :  { %v1096_v9 = vpop.f32.mrf.mxu0  ;;  %v1123_v10 = vpop.f32.mrf.mxu1 }
 0x111   :  { %v1097_v20 = vadd.f32 %v1096_v9, %v1095_v0  ;;  %v878_v29 = vadd.f32 %v1122_v19, %v829_v18 }
 0x112   :  { %v1124_v21 = vpop.f32.mrf.mxu1 }
 0x113   :  { %v832_v27 = vadd.f32 %v1097_v20, %v783_v22  ;;  %v1125_v28 = vadd.f32 %v1124_v21, %v1123_v10 }
 0x115   :  { %v881_v37 = vadd.f32 %v1125_v28, %v832_v27 }
 0x122   :  { %v1154_v30 = vpop.f32.mrf.mxu0 }
 0x123   :  { %v927_v33 = vadd.f32 %v1154_v30, %v878_v29 }
 0x124   :  { %v918_v35 = vpop.f32.mrf.mxu0 }
 0x125   :  { %935 = vst [vmem:[%s1590_s3 + $0x10] sm:$0xff] %v927_v33  ;;  %v919_v36 = vadd.f32 %v918_v35, %v870_v34 }
 0x126   :  { %v1155_v38 = vpop.f32.mrf.mxu0 }
 0x127   :  { %933 = vst [vmem:[%s1590_s3] sm:$0xff] %v919_v36  ;;  %v930_v39 = vadd.f32 %v1155_v38, %v881_v37 }
 0x128   :  { %v921_v41 = vpop.f32.mrf.mxu0 }
 0x129   :  { %936 = vst [vmem:[%s1590_s3 + $0x18] sm:$0xff] %v930_v39  ;;  %v922_v42 = vadd.f32 %v921_v41, %v873_v40 }
 0x12b   :  { %934 = vst [vmem:[%s1590_s3 + $0x8] sm:$0xff] %v922_v42 }

// kernel: generator_fwd.106
= control target key start
LH: loop header
LB: loop body
LE: loop exit
PB: predicated region body
PF: predicated region fallthrough
CT: control target
= control target key end

     0   :  { %vm510_vm0 = vcmask 523264   ;;  %s1631_s1 = inlined_call_operand.vmem [shape: bf16[576,128], index: 1, kind: input, shape index: {}]   ;;  %s1632_s0 = inlined_call_operand.vmem [shape: f32[128,576], index: 0, kind: input, shape index: {}]   ;;  %s1633_s2 = inlined_call_operand.vmem [shape: f32[1,128], index: 2, kind: input, shape index: {}]   ;;  %s1634_s3 = inlined_call_operand.vmem [shape: f32[128,128], index: 3, kind: output, shape index: {}]  }
   0x1   :  { %v1063_v0 = vld [vmem:[%s1631_s1 + $0x78] sm:$0xff]   ;;  %v1067_v4 = vld [vmem:[%s1631_s1 + $0x70] sm:$0xff]   ;;  %v1071_v8 = vld [vmem:[%s1631_s1 + $0x68] sm:$0xff]  }
   0x2   :  { %v1064_v1 = vld [vmem:[%s1631_s1 + $0xf8] sm:$0xff]   ;;  %891 = vmatprep.subr.bf16.mxu0 %v1063_v0  ;;  %v1068_v5 = vld [vmem:[%s1631_s1 + $0xf0] sm:$0xff]   ;;  %v1072_v9 = vld [vmem:[%s1631_s1 + $0xe8] sm:$0xff]  }
   0x3   :  { %v1065_v2 = vld [vmem:[%s1631_s1 + $0x38] sm:$0xff]   ;;  %955 = vmatprep.subr.bf16.mxu1 %v1064_v1  ;;  %v1069_v6 = vld [vmem:[%s1631_s1 + $0x30] sm:$0xff]   ;;  %v1073_v10 = vld [vmem:[%s1631_s1 + $0x28] sm:$0xff]  }
   0x4   :  { %v1066_v3 = vld [vmem:[%s1631_s1 + $0xb8] sm:$0xff]   ;;  %892 = vmatpush3.bf16.msra.mxu0 %v1065_v2  ;;  %v1070_v7 = vld [vmem:[%s1631_s1 + $0xb0] sm:$0xff]   ;;  %v1074_v11 = vld [vmem:[%s1631_s1 + $0xa8] sm:$0xff]  }
   0x5   :  { %956 = vmatpush3.bf16.msra.mxu1 %v1066_v3  ;;  %893 = vmatprep.subr.bf16.mxu0 %v1067_v4  ;;  %v1075_v12 = vld [vmem:[%s1631_s1 + $0x60] sm:$0xff]   ;;  %v1079_v16 = vld [vmem:[%s1631_s1 + $0x58] sm:$0xff]   ;;  %v1083_v20 = vld [vmem:[%s1631_s1 + $0x50] sm:$0xff]  }
   0x6   :  { %957 = vmatprep.subr.bf16.mxu1 %v1068_v5  ;;  %v1076_v13 = vld [vmem:[%s1631_s1 + $0xe0] sm:$0xff]   ;;  %v1080_v17 = vld [vmem:[%s1631_s1 + $0xd8] sm:$0xff]   ;;  %v1084_v21 = vld [vmem:[%s1631_s1 + $0xd0] sm:$0xff]  }
   0x7   :  { %v1077_v14 = vld [vmem:[%s1631_s1 + $0x20] sm:$0xff]   ;;  %v1081_v18 = vld [vmem:[%s1631_s1 + $0x18] sm:$0xff]   ;;  %v1085_v22 = vld [vmem:[%s1631_s1 + $0x10] sm:$0xff]  }
   0x8   :  { %894 = vmatpush3.bf16.msra.mxu0 %v1069_v6  ;;  %v1078_v15 = vld [vmem:[%s1631_s1 + $0xa0] sm:$0xff]   ;;  %v1082_v19 = vld [vmem:[%s1631_s1 + $0x98] sm:$0xff]   ;;  %v1086_v23 = vld [vmem:[%s1631_s1 + $0x90] sm:$0xff]  }
   0x9   :  { %958 = vmatpush3.bf16.msra.mxu1 %v1070_v7  ;;  %895 = vmatprep.subr.bf16.mxu0 %v1071_v8  ;;  %v1087_v24 = vld [vmem:[%s1631_s1 + $0x48] sm:$0xff]   ;;  %v1091_v28 = vld [vmem:[%s1631_s1 + $0x40] sm:$0xff]   ;;  %v21_v33 = vld [vmem:[%s1632_s0 + $0x30] sm:$0xff] }
   0xa   :  { %959 = vmatprep.subr.bf16.mxu1 %v1072_v9  ;;  %v1088_v25 = vld [vmem:[%s1631_s1 + $0xc8] sm:$0xff]   ;;  %v1092_v29 = vld [vmem:[%s1631_s1 + $0xc0] sm:$0xff]   ;;  %v18_v34 = vld [vmem:[%s1632_s0 + $0x18] sm:$0xff]  ;;  %v101_v36 = vmax.f32 %v21_v33, 0.0 }
   0xb   :  { %v1089_v26 = vld [vmem:[%s1631_s1 + $0x8] sm:$0xff]   ;;  %v1093_v30 = vld [vmem:[%s1631_s1] sm:$0xff]   ;;  %v98_v38 = vmax.f32 %v18_v34, 0.0  ;;  %v17_v44 = vld [vmem:[%s1632_s0 + $0x10] sm:$0xff] }
   0xc   :  { %896 = vmatpush3.bf16.msra.mxu0 %v1073_v10  ;;  %v1090_v27 = vld [vmem:[%s1631_s1 + $0x88] sm:$0xff]   ;;  %v1094_v31 = vld [vmem:[%s1631_s1 + $0x80] sm:$0xff]   ;;  %v22_v45 = vld [vmem:[%s1632_s0 + $0x38] sm:$0xff]  ;;  %v97_v48 = vmax.f32 %v17_v44, 0.0 }
   0xd   :  { %960 = vmatpush3.bf16.msra.mxu1 %v1074_v11  ;;  %897 = vmatprep.subr.bf16.mxu0 %v1075_v12  ;;  %v16_v32 = vld [vmem:[%s1632_s0 + $0x8] sm:$0xff]  ;;  %v23_v37 = vld [vmem:[%s1632_s0 + $0x40] sm:$0xff]  ;;  %v1095_v46 = vld [vmem:[%s1631_s1 + $0x118] sm:$0xff]   ;;  %v102_v49 = vmax.f32 %v22_v45, 0.0 }
   0xe   :  { %961 = vmatprep.subr.bf16.mxu1 %v1076_v13  ;;  %v96_v35 = vmax.f32 %v16_v32, 0.0  ;;  %v15_v39 = vld [vmem:[%s1632_s0] sm:$0xff]  ;;  %v20_v40 = vld [vmem:[%s1632_s0 + $0x28] sm:$0xff]  ;;  %v103_v41 = vmax.f32 %v23_v37, 0.0  ;;  %v26_v52 = vld [vmem:[%s1632_s0 + $0x58] sm:$0xff] }
   0xf   :  { %v95_v42 = vmax.f32 %v15_v39, 0.0  ;;  %v100_v43 = vmax.f32 %v20_v40, 0.0  ;;  %v31_v53 = vld [vmem:[%s1632_s0 + $0x80] sm:$0xff]  ;;  %v28_v54 = vld [vmem:[%s1632_s0 + $0x68] sm:$0xff]  ;;  %v177_v55 = vpack.c.bf16 %v102_v49, %v97_v48  ;;  %v106_v56 = vmax.f32 %v26_v52, 0.0  ;;  %v33_v58 = vld [vmem:[%s1632_s0 + $0x90] sm:$0xff] }
  0x10   :  { %898 = vmatpush3.bf16.msra.mxu0 %v1077_v14  ;;  %v176_v47 = vpack.c.bf16 %v101_v36, %v96_v35  ;;  %v178_v50 = vpack.c.bf16 %v103_v41, %v98_v38  ;;  %v111_v57 = vmax.f32 %v31_v53, 0.0  ;;  %v108_v59 = vmax.f32 %v28_v54, 0.0  ;;  %v25_v60 = vld [vmem:[%s1632_s0 + $0x50] sm:$0xff]  ;;  %v30_v61 = vld [vmem:[%s1632_s0 + $0x78] sm:$0xff]  ;;  %v27_v1 = vld [vmem:[%s1632_s0 + $0x60] sm:$0xff] }
  0x11   :  { %962 = vmatpush3.bf16.msra.mxu1 %v1078_v15  ;;  %899 = vmatprep.subr.bf16.mxu0 %v1079_v16  ;;  %v175_v51 = vpack.c.bf16 %v100_v43, %v95_v42  ;;  %v113_v62 = vmax.f32 %v33_v58, 0.0  ;;  %v105_v63 = vmax.f32 %v25_v60, 0.0  ;;  %v110_v0 = vmax.f32 %v30_v61, 0.0  ;;  %v32_v2 = vld [vmem:[%s1632_s0 + $0x88] sm:$0xff]  ;;  %v41_v7 = vld [vmem:[%s1632_s0 + $0xd0] sm:$0xff]  ;;  %v38_v9 = vld [vmem:[%s1632_s0 + $0xb8] sm:$0xff] }
  0x12   :  { %963 = vmatprep.subr.bf16.mxu1 %v1080_v17  ;;  %567 = vmatprep.mubr.bf16.mxu0 %v176_v47  ;;  %v36_v3 = vld [vmem:[%s1632_s0 + $0xa8] sm:$0xff]  ;;  %v181_v4 = vpack.c.bf16 %v111_v57, %v106_v56  ;;  %v107_v5 = vmax.f32 %v27_v1, 0.0  ;;  %v112_v6 = vmax.f32 %v32_v2, 0.0  ;;  %v43_v10 = vld [vmem:[%s1632_s0 + $0xe0] sm:$0xff]  ;;  %v121_v12 = vmax.f32 %v41_v7, 0.0  ;;  %v1096_v16 = vld [vmem:[%s1631_s1 + $0x110] sm:$0xff]  }
  0x13   :  { %664 = vmatprep.mubr.bf16.mxu1 %v178_v50  ;;  %v116_v8 = vmax.f32 %v36_v3, 0.0  ;;  %v183_v11 = vpack.c.bf16 %v113_v62, %v108_v59  ;;  %v118_v13 = vmax.f32 %v38_v9, 0.0  ;;  %v123_v14 = vmax.f32 %v43_v10, 0.0  ;;  %v1097_v36 = vld [vmem:[%s1631_s1 + $0x108] sm:$0xff]   ;;  %v45_v40 = vld [vmem:[%s1632_s0 + $0xf0] sm:$0xff]  ;;  %v50_v41 = vld [vmem:[%s1632_s0 + $0x118] sm:$0xff] }
  0x14   :  { %900 = vmatpush3.bf16.msra.mxu0 %v1081_v18  ;;  %v180_v15 = vpack.c.bf16 %v110_v0, %v105_v63  ;;  %v182_v17 = vpack.c.bf16 %v112_v6, %v107_v5  ;;  %v47_v42 = vld [vmem:[%s1632_s0 + $0x100] sm:$0xff]  ;;  %v52_v44 = vld [vmem:[%s1632_s0 + $0x128] sm:$0xff]  ;;  %v58_v47 = vld [vmem:[%s1632_s0 + $0x158] sm:$0xff]  ;;  %v125_v49 = vmax.f32 %v45_v40, 0.0  ;;  %v130_v50 = vmax.f32 %v50_v41, 0.0 }
  0x15   :  { %964 = vmatpush3.bf16.msra.mxu1 %v1082_v19  ;;  %901 = vmatprep.subr.bf16.mxu0 %v1083_v20  ;;  %v186_v18 = vpack.c.bf16 %v121_v12, %v116_v8  ;;  %v35_v19 = vld [vmem:[%s1632_s0 + $0xa0] sm:$0xff]  ;;  %v40_v20 = vld [vmem:[%s1632_s0 + $0xc8] sm:$0xff]  ;;  %v132_v52 = vmax.f32 %v52_v44, 0.0  ;;  %v138_v56 = vmax.f32 %v58_v47, 0.0  ;;  %v57_v63 = vld [vmem:[%s1632_s0 + $0x150] sm:$0xff] }
  0x16   :  { %965 = vmatprep.subr.bf16.mxu1 %v1084_v21  ;;  %v37_v21 = vld [vmem:[%s1632_s0 + $0xb0] sm:$0xff]  ;;  %v56_v45 = vld [vmem:[%s1632_s0 + $0x148] sm:$0xff]  ;;  %v63_v48 = vld [vmem:[%s1632_s0 + $0x180] sm:$0xff]  ;;  %v190_v58 = vpack.c.bf16 %v130_v50, %v125_v49  ;;  %v137_v8 = vmax.f32 %v57_v63, 0.0 }
  0x17   :  { %v136_v53 = vmax.f32 %v56_v45, 0.0  ;;  %v143_v57 = vmax.f32 %v63_v48, 0.0  ;;  %v55_v61 = vld [vmem:[%s1632_s0 + $0x140] sm:$0xff]  ;;  %v60_v62 = vld [vmem:[%s1632_s0 + $0x168] sm:$0xff]  ;;  %v62_v1 = vld [vmem:[%s1632_s0 + $0x178] sm:$0xff] }
  0x18   :  { %902 = vmatpush3.bf16.msra.mxu0 %v1085_v22  ;;  %v188_v22 = vpack.c.bf16 %v123_v14, %v118_v13  ;;  %v66_v2 = vld [vmem:[%s1632_s0 + $0x198] sm:$0xff]  ;;  %v71_v3 = vld [vmem:[%s1632_s0 + $0x1c0] sm:$0xff]  ;;  %v73_v5 = vld [vmem:[%s1632_s0 + $0x1d0] sm:$0xff]  ;;  %v135_v6 = vmax.f32 %v55_v61, 0.0  ;;  %v140_v7 = vmax.f32 %v60_v62, 0.0  ;;  %v142_v9 = vmax.f32 %v62_v1, 0.0 }
  0x19   :  { %966 = vmatpush3.bf16.msra.mxu1 %v1086_v23  ;;  %903 = vmatprep.subr.bf16.mxu0 %v1087_v24  ;;  %v42_v23 = vld [vmem:[%s1632_s0 + $0xd8] sm:$0xff]  ;;  %v198_v0 = vpack.c.bf16 %v143_v57, %v138_v56  ;;  %v146_v10 = vmax.f32 %v66_v2, 0.0  ;;  %v153_v13 = vmax.f32 %v73_v5, 0.0  ;;  %v88_v44 = vld [vmem:[%s1632_s0 + $0x248] sm:$0xff]  ;;  %v93_v45 = vld [vmem:[%s1632_s0 + $0x270] sm:$0xff] }
  0x1a   :  { %967 = vmatprep.subr.bf16.mxu1 %v1088_v25  ;;  %v46_v24 = vld [vmem:[%s1632_s0 + $0xf8] sm:$0xff]  ;;  %v51_v25 = vld [vmem:[%s1632_s0 + $0x120] sm:$0xff]  ;;  %v195_v14 = vpack.c.bf16 %v140_v7, %v135_v6  ;;  %v85_v57 = vld [vmem:[%s1632_s0 + $0x230] sm:$0xff] }
  0x1b   :  { %v126_v32 = vmax.f32 %v46_v24, 0.0  ;;  %v131_v33 = vmax.f32 %v51_v25, 0.0  ;;  %v78_v24 = vld [vmem:[%s1632_s0 + $0x1f8] sm:$0xff]  ;;  %v83_v25 = vld [vmem:[%s1632_s0 + $0x220] sm:$0xff]  ;;  %v92_v61 = vld [vmem:[%s1632_s0 + $0x268] sm:$0xff]  ;;  %v165_v2 = vmax.f32 %v85_v57, 0.0 }
  0x1c   :  { %904 = vmatpush3.bf16.msra.mxu0 %v1089_v26  ;;  %v48_v26 = vld [vmem:[%s1632_s0 + $0x108] sm:$0xff]  ;;  %v82_v41 = vld [vmem:[%s1632_s0 + $0x218] sm:$0xff]  ;;  %v19_v62 = vld [vmem:[%s1632_s0 + $0x20] sm:$0xff]  ;;  %v172_v5 = vmax.f32 %v92_v61, 0.0 }
  0x1d   :  { %968 = vmatpush3.bf16.msra.mxu1 %v1090_v27  ;;  %905 = vmatprep.subr.bf16.mxu0 %v1091_v28  ;;  %v53_v27 = vld [vmem:[%s1632_s0 + $0x130] sm:$0xff]  ;;  %v115_v28 = vmax.f32 %v35_v19, 0.0  ;;  %v128_v34 = vmax.f32 %v48_v26, 0.0  ;;  %v191_v39 = vpack.c.bf16 %v131_v33, %v126_v32  ;;  %v67_v19 = vld [vmem:[%s1632_s0 + $0x1a0] sm:$0xff]  ;;  %v158_v32 = vmax.f32 %v78_v24, 0.0  ;;  %v24_v63 = vld [vmem:[%s1632_s0 + $0x48] sm:$0xff] }
  0x1e   :  { %969 = vmatprep.subr.bf16.mxu1 %v1092_v29  ;;  %v120_v29 = vmax.f32 %v40_v20, 0.0  ;;  %v133_v35 = vmax.f32 %v53_v27, 0.0  ;;  %v163_v33 = vmax.f32 %v83_v25, 0.0  ;;  %v162_v49 = vmax.f32 %v82_v41, 0.0  ;;  %v64_v1 = vld [vmem:[%s1632_s0 + $0x188] sm:$0xff] }
  0x1f   :  { %v99_v6 = vmax.f32 %v19_v62, 0.0  ;;  %v104_v7 = vmax.f32 %v24_v63, 0.0 }
  0x20   :  { %906 = vmatpush3.bf16.msra.mxu0 %v1093_v30  ;;  %v117_v30 = vmax.f32 %v37_v21, 0.0  ;;  %v185_v37 = vpack.c.bf16 %v120_v29, %v115_v28  ;;  %v193_v43 = vpack.c.bf16 %v133_v35, %v128_v34  ;;  %v72_v21 = vld [vmem:[%s1632_s0 + $0x1c8] sm:$0xff]  ;;  %v147_v28 = vmax.f32 %v67_v19, 0.0 }
  0x21   :  { %970 = vmatpush3.bf16.msra.mxu1 %v1094_v31  ;;  %1031 = vmatprep.subr.bf16.mxu0 %v1095_v46  ;;  %v122_v31 = vmax.f32 %v42_v23, 0.0  ;;  %v81_v23 = vld [vmem:[%s1632_s0 + $0x210] sm:$0xff]  ;;  %v152_v29 = vmax.f32 %v72_v21, 0.0  ;;  %v208_v40 = vpack.c.bf16 %v163_v33, %v158_v32  ;;  %v44_v19 = vld [vmem:[%s1632_s0 + $0xe8] sm:$0xff] }
  0x22   :  { %1055 = vmatprep.subr.bf16.mxu1 %v1095_v46  ;;  %v84_v21 = vld [vmem:[%s1632_s0 + $0x228] sm:$0xff]  ;;  %v49_v33 = vld [vmem:[%s1632_s0 + $0x110] sm:$0xff] }
  0x23   :  { %568 = vmatmul.mubr.bf16.vlgmr.msra.gmra.mxu0 %v175_v51  ;;  %v187_v38 = vpack.c.bf16 %v122_v31, %v117_v30  ;;  %v127_v51 = vmax.f32 %v47_v42, 0.0  ;;  %v161_v31 = vmax.f32 %v81_v23, 0.0  ;;  %v202_v35 = vpack.c.bf16 %v152_v29, %v147_v28  ;;  %v86_v42 = vld [vmem:[%s1632_s0 + $0x238] sm:$0xff] }
  0x24   :  { %665 = vmatmul.mubr.bf16.vlgmr.msra.gmra.mxu1 %v177_v55  ;;  %1032 = vmatpush3.bf16.msra.mxu0 %v1095_v46  ;;  %v1098_v55 = vld [vmem:[%s1631_s1 + $0x100] sm:$0xff]   ;;  %v166_v50 = vmax.f32 %v86_v42, 0.0  ;;  %v164_v29 = vmax.f32 %v84_v21, 0.0 }
  0x25   :  { %1059 = vmatpush3.bf16.msra.mxu1 %v1095_v46  ;;  %575 = vmatprep.mubr.bf16.mxu0 %v181_v4  ;;  %v61_v46 = vld [vmem:[%s1632_s0 + $0x170] sm:$0xff]  ;;  %v192_v59 = vpack.c.bf16 %v132_v52, %v127_v51  ;;  %v68_v4 = vld [vmem:[%s1632_s0 + $0x1a8] sm:$0xff]  ;;  %v168_v52 = vmax.f32 %v88_v44, 0.0 }
  0x26   :  { %672 = vmatprep.mubr.bf16.mxu1 %v183_v11  ;;  %1033 = vmatprep.subr.bf16.mxu0 %v1096_v16  ;;  %v141_v54 = vmax.f32 %v61_v46, 0.0  ;;  %v151_v11 = vmax.f32 %v71_v3, 0.0  ;;  %v148_v12 = vmax.f32 %v68_v4, 0.0 }
  0x27   :  { %1056 = vmatprep.subr.bf16.mxu1 %v1096_v16 }
  0x28   :  { %1034 = vmatpush3.bf16.msra.mxu0 %v1096_v16  ;;  %v196_v60 = vpack.c.bf16 %v141_v54, %v136_v53  ;;  %v203_v20 = vpack.c.bf16 %v153_v13, %v148_v12  ;;  %v173_v53 = vmax.f32 %v93_v45, 0.0  ;;  %v179_v12 = vpack.c.bf16 %v104_v7, %v99_v6  ;;  %v29_v13 = vld [vmem:[%s1632_s0 + $0x70] sm:$0xff] }
  0x29   :  { %1060 = vmatpush3.bf16.msra.mxu1 %v1096_v16  ;;  %1035 = vmatprep.subr.bf16.mxu0 %v1097_v36  ;;  %v201_v16 = vpack.c.bf16 %v151_v11, %v146_v10 }
  0x2a   :  { %1057 = vmatprep.subr.bf16.mxu1 %v1097_v36 }
  0x2b   :  { %576 = vmatmul.mubr.bf16.gmra.mxu0 %v180_v15  ;;  %v197_v15 = vpack.c.bf16 %v142_v9, %v137_v8  ;;  %v144_v9 = vmax.f32 %v64_v1, 0.0 }
  0x2c   :  { %673 = vmatmul.mubr.bf16.gmra.mxu1 %v182_v17  ;;  %583 = vmatprep.mubr.bf16.mxu0 %v186_v18  ;;  %v65_v17 = vld [vmem:[%s1632_s0 + $0x190] sm:$0xff]  ;;  %v70_v18 = vld [vmem:[%s1632_s0 + $0x1b8] sm:$0xff] }
  0x2d   :  { %680 = vmatprep.mubr.bf16.mxu1 %v188_v22  ;;  %1036 = vmatpush3.bf16.msra.mxu0 %v1097_v36  ;;  %v76_v22 = vld [vmem:[%s1632_s0 + $0x1e8] sm:$0xff]  ;;  %v145_v26 = vmax.f32 %v65_v17, 0.0  ;;  %v150_v27 = vmax.f32 %v70_v18, 0.0  ;;  %v74_v17 = vld [vmem:[%s1632_s0 + $0x1d8] sm:$0xff]  ;;  %v39_v18 = vld [vmem:[%s1632_s0 + $0xc0] sm:$0xff] }
  0x2e   :  { %1061 = vmatpush3.bf16.msra.mxu1 %v1097_v36  ;;  %1037 = vmatprep.subr.bf16.mxu0 %v1098_v55  ;;  %v156_v30 = vmax.f32 %v76_v22, 0.0  ;;  %v109_v22 = vmax.f32 %v29_v13, 0.0  ;;  %v154_v25 = vmax.f32 %v74_v17, 0.0 }
  0x2f   :  { %1058 = vmatprep.subr.bf16.mxu1 %v1098_v55  ;;  %v200_v34 = vpack.c.bf16 %v150_v27, %v145_v26  ;;  %v119_v26 = vmax.f32 %v39_v18, 0.0  ;;  %v124_v27 = vmax.f32 %v44_v19, 0.0 }
  0x30   :  { %v206_v36 = vpack.c.bf16 %v161_v31, %v156_v30 }
  0x31   :  { %1038 = vmatpush3.bf16.msra.mxu0 %v1098_v55  ;;  %v189_v32 = vpack.c.bf16 %v124_v27, %v119_v26 }
  0x32   :  { %1062 = vmatpush3.bf16.msra.mxu1 %v1098_v55 }
  0x33   :  { %584 = vmatmul.mubr.bf16.gmra.mxu0 %v185_v37  ;;  %v75_v37 = vld [vmem:[%s1632_s0 + $0x1e0] sm:$0xff] }
  0x34   :  { %681 = vmatmul.mubr.bf16.gmra.mxu1 %v187_v38  ;;  %591 = vmatprep.mubr.bf16.mxu0 %v191_v39  ;;  %v80_v38 = vld [vmem:[%s1632_s0 + $0x208] sm:$0xff]  ;;  %v77_v39 = vld [vmem:[%s1632_s0 + $0x1f0] sm:$0xff]  ;;  %v155_v46 = vmax.f32 %v75_v37, 0.0  ;;  %v94_v37 = vld [vmem:[%s1632_s0 + $0x278] sm:$0xff] }
  0x35   :  { %688 = vmatprep.mubr.bf16.mxu1 %v193_v43  ;;  %v91_v43 = vld [vmem:[%s1632_s0 + $0x260] sm:$0xff]  ;;  %v160_v47 = vmax.f32 %v80_v38, 0.0  ;;  %v157_v48 = vmax.f32 %v77_v39, 0.0  ;;  %v129_v38 = vmax.f32 %v49_v33, 0.0  ;;  %v174_v41 = vmax.f32 %v94_v37, 0.0 }
  0x36   :  { %v171_v51 = vmax.f32 %v91_v43, 0.0 }
  0x37   :  { %v205_v54 = vpack.c.bf16 %v160_v47, %v155_v46  ;;  %v207_v55 = vpack.c.bf16 %v162_v49, %v157_v48 }
  0x38   :  { %v211_v56 = vpack.c.bf16 %v171_v51, %v166_v50 }
  0x3b   :  { %592 = vmatmul.mubr.bf16.gmra.mxu0 %v190_v58  ;;  %v90_v58 = vld [vmem:[%s1632_s0 + $0x258] sm:$0xff] }
  0x3c   :  { %689 = vmatmul.mubr.bf16.gmra.mxu1 %v192_v59  ;;  %599 = vmatprep.mubr.bf16.mxu0 %v196_v60  ;;  %v87_v59 = vld [vmem:[%s1632_s0 + $0x240] sm:$0xff]  ;;  %v213_v60 = vpack.c.bf16 %v173_v53, %v168_v52  ;;  %v170_v3 = vmax.f32 %v90_v58, 0.0 }
  0x3d   :  { %696 = vmatprep.mubr.bf16.mxu1 %v198_v0  ;;  %v59_v0 = vld [vmem:[%s1632_s0 + $0x160] sm:$0xff]  ;;  %v167_v4 = vmax.f32 %v87_v59, 0.0 }
  0x3e   :  { %v139_v8 = vmax.f32 %v59_v0, 0.0  ;;  %v210_v10 = vpack.c.bf16 %v170_v3, %v165_v2 }
  0x3f   :  { %v212_v11 = vpack.c.bf16 %v172_v5, %v167_v4 }
  0x43   :  { %600 = vmatmul.mubr.bf16.gmra.mxu0 %v195_v14  ;;  %v34_v14 = vld [vmem:[%s1632_s0 + $0x98] sm:$0xff] }
  0x44   :  { %697 = vmatmul.mubr.bf16.gmra.mxu1 %v197_v15  ;;  %607 = vmatprep.mubr.bf16.mxu0 %v201_v16  ;;  %v69_v15 = vld [vmem:[%s1632_s0 + $0x1b0] sm:$0xff]  ;;  %v199_v16 = vpack.c.bf16 %v144_v9, %v139_v8  ;;  %v114_v23 = vmax.f32 %v34_v14, 0.0 }
  0x45   :  { %704 = vmatprep.mubr.bf16.mxu1 %v203_v20  ;;  %v79_v20 = vld [vmem:[%s1632_s0 + $0x200] sm:$0xff]  ;;  %v149_v24 = vmax.f32 %v69_v15, 0.0 }
  0x46   :  { %v159_v28 = vmax.f32 %v79_v20, 0.0  ;;  %v184_v30 = vpack.c.bf16 %v114_v23, %v109_v22 }
  0x47   :  { %v204_v31 = vpack.c.bf16 %v154_v25, %v149_v24 }
  0x4b   :  { %608 = vmatmul.mubr.bf16.gmra.mxu0 %v200_v34  ;;  %v54_v34 = vld [vmem:[%s1632_s0 + $0x138] sm:$0xff] }
  0x4c   :  { %705 = vmatmul.mubr.bf16.gmra.mxu1 %v202_v35  ;;  %615 = vmatprep.mubr.bf16.mxu0 %v206_v36  ;;  %v209_v35 = vpack.c.bf16 %v164_v29, %v159_v28  ;;  %v89_v36 = vld [vmem:[%s1632_s0 + $0x250] sm:$0xff]  ;;  %v134_v39 = vmax.f32 %v54_v34, 0.0 }
  0x4d   :  { %712 = vmatprep.mubr.bf16.mxu1 %v208_v40  ;;  %v169_v40 = vmax.f32 %v89_v36, 0.0  ;;  %v1532_v36 = vld [vmem:[%s1633_s2] ss:$0 sm:$0xff] }
  0x4e   :  { %v194_v42 = vpack.c.bf16 %v134_v39, %v129_v38 }
  0x4f   :  { %v214_v43 = vpack.c.bf16 %v174_v41, %v169_v40 }
  0x53   :  { %616 = vmatmul.mubr.bf16.gmra.mxu0 %v205_v54 }
  0x54   :  { %713 = vmatmul.mubr.bf16.gmra.mxu1 %v207_v55  ;;  %623 = vmatprep.mubr.bf16.mxu0 %v211_v56 }
  0x55   :  { %720 = vmatprep.mubr.bf16.mxu1 %v213_v60 }
  0x5b   :  { %624 = vmatmul.mubr.bf16.gmra.mxu0 %v210_v10 }
  0x5c   :  { %721 = vmatmul.mubr.bf16.gmra.mxu1 %v212_v11  ;;  %1039 = vmatprep.mubr.msk.bf16.mxu0 %vm510_vm0, %v179_v12 }
  0x5d   :  { %1047 = vmatprep.mubr.msk.bf16.mxu1 %vm510_vm0, %v199_v16 }
  0x63   :  { %1040 = vmatmul.mubr.msk.bf16.vlgmr.msra.gmra.mxu0 %vm510_vm0, %v184_v30 }
  0x64   :  { %1048 = vmatmul.mubr.msk.bf16.vlgmr.msra.gmra.mxu1 %vm510_vm0, %v204_v31  ;;  %1043 = vmatprep.mubr.msk.bf16.mxu0 %vm510_vm0, %v189_v32 }
  0x65   :  { %1051 = vmatprep.mubr.msk.bf16.mxu1 %vm510_vm0, %v209_v35 }
  0x6b   :  { %1044 = vmatmul.mubr.msk.bf16.gmra.mxu0 %vm510_vm0, %v194_v42 }
  0x6c   :  { %1052 = vmatmul.mubr.msk.bf16.gmra.mxu1 %vm510_vm0, %v214_v43 }
  0xe3   :  { %v907_v44 = vpop.f32.mrf.mxu0 }
  0xe4   :  { %v1475_v45 = vpop.f32.mrf.mxu1 }
  0xe5   :  { %v908_v46 = vpop.f32.mrf.mxu0 }
  0xe6   :  { %v1477_v47 = vpop.f32.mrf.mxu1  ;;  %v909_v34 = vadd.f32 %v908_v46, %v907_v44 }
  0xe7   :  { %v910_v48 = vpop.f32.mrf.mxu0 }
  0xe8   :  { %v1479_v49 = vpop.f32.mrf.mxu1 }
  0xe9   :  { %v911_v50 = vpop.f32.mrf.mxu0 }
  0xea   :  { %v1481_v51 = vpop.f32.mrf.mxu1  ;;  %v912_v37 = vadd.f32 %v911_v50, %v910_v48 }
  0xeb   :  { %v913_v52 = vpop.f32.mrf.mxu0  ;;  %v976_v48 = vadd.f32 %v1481_v51, %v1479_v49 }
  0xec   :  { %v1483_v53 = vpop.f32.mrf.mxu1  ;;  %v573_v44 = vadd.f32 %v912_v37, %v1532_v36 }
  0xed   :  { %v914_v54 = vpop.f32.mrf.mxu0 }
  0xee   :  { %v1485_v55 = vpop.f32.mrf.mxu1  ;;  %v915_v38 = vadd.f32 %v914_v54, %v913_v52  ;;  %v670_v37 = vadd.f32 %v976_v48, %v573_v44 }
  0xef   :  { %v916_v56 = vpop.f32.mrf.mxu0 }
  0xf0   :  { %v1487_v57 = vpop.f32.mrf.mxu1  ;;  %v578_v46 = vadd.f32 %v915_v38, %v1532_v36 }
  0xf1   :  { %v917_v58 = vpop.f32.mrf.mxu0 }
  0xf2   :  { %v1489_v59 = vpop.f32.mrf.mxu1  ;;  %v918_v42 = vadd.f32 %v917_v58, %v916_v56  ;;  %v979_v56 = vadd.f32 %v1485_v55, %v1483_v53 }
  0xf3   :  { %v919_v60 = vpop.f32.mrf.mxu0  ;;  %v982_v49 = vadd.f32 %v1489_v59, %v1487_v57 }
  0xf4   :  { %v1491_v61 = vpop.f32.mrf.mxu1  ;;  %v581_v58 = vadd.f32 %v918_v42, %v1532_v36 }
  0xf5   :  { %v920_v62 = vpop.f32.mrf.mxu0 }
  0xf6   :  { %v1493_v63 = vpop.f32.mrf.mxu1 }
  0xf7   :  { %v1495_v0 = vpop.f32.mrf.mxu0 }
  0xf8   :  { %v1497_v1 = vpop.f32.mrf.mxu1 }
  0xf9   :  { %1635 = vst [vmem:[#allocation2_spill] sm:$0xff] %v1497_v1  ;;  %v1499_v2 = vpop.f32.mrf.mxu0 }
  0xfa   :  { %v1501_v3 = vpop.f32.mrf.mxu1 }
  0xfb   :  { %1636 = vst [vmem:[#allocation3_spill] sm:$0xff] %v1501_v3  ;;  %v925_v4 = vpop.f32.mrf.mxu0  ;;  %v570_v3 = vadd.f32 %v909_v34, %v1532_v36 }
  0xfc   :  { %v1503_v5 = vpop.f32.mrf.mxu1 }
  0xfd   :  { %v926_v6 = vpop.f32.mrf.mxu0 }
  0xfe   :  { %v1505_v7 = vpop.f32.mrf.mxu1  ;;  %v927_v51 = vadd.f32 %v926_v6, %v925_v4 }
  0xff   :  { %v1507_v8 = vpop.f32.mrf.mxu0 }
 0x100   :  { %v1509_v9 = vpop.f32.mrf.mxu1  ;;  %v594_v6 = vadd.f32 %v927_v51, %v1532_v36  ;;  %v1642_v51 = vld [vmem:[#allocation2_spill] sm:$0xff] }
 0x101   :  { %1637 = vst [vmem:[#allocation4_spill] sm:$0xff] %v1509_v9  ;;  %v1511_v10 = vpop.f32.mrf.mxu0  ;;  %v973_v9 = vadd.f32 %v1477_v47, %v1475_v45 }
 0x102   :  { %v1513_v11 = vpop.f32.mrf.mxu1 }
 0x103   :  { %1638 = vst [vmem:[#allocation5_spill] sm:$0xff] %v1513_v11  ;;  %v931_v12 = vpop.f32.mrf.mxu0  ;;  %v667_v47 = vadd.f32 %v973_v9, %v570_v3  ;;  %v678_v3 = vadd.f32 %v982_v49, %v581_v58 }
 0x104   :  { %v995_v13 = vpop.f32.mrf.mxu1 }
 0x105   :  { %v932_v14 = vpop.f32.mrf.mxu0 }
 0x106   :  { %v996_v15 = vpop.f32.mrf.mxu1  ;;  %v933_v1 = vadd.f32 %v932_v14, %v931_v12  ;;  %v921_v12 = vadd.f32 %v920_v62, %v919_v60 }
 0x107   :  { %v934_v16 = vpop.f32.mrf.mxu0  ;;  %v997_v38 = vadd.f32 %v996_v15, %v995_v13  ;;  %v930_v13 = vadd.f32 %v1511_v10, %v1507_v8  ;;  %v924_v8 = vadd.f32 %v1499_v2, %v1495_v0  ;;  %v991_v10 = vadd.f32 %v1505_v7, %v1503_v5 }
 0x108   :  { %v1515_v17 = vpop.f32.mrf.mxu1  ;;  %v985_v5 = vadd.f32 %v1493_v63, %v1491_v61 }
 0x109   :  { %v935_v18 = vpop.f32.mrf.mxu0  ;;  %v597_v7 = vadd.f32 %v930_v13, %v1532_v36 }
 0x10a   :  { %v1517_v19 = vpop.f32.mrf.mxu1  ;;  %v936_v14 = vadd.f32 %v935_v18, %v934_v16  ;;  %v586_v16 = vadd.f32 %v921_v12, %v1532_v36  ;;  %v1641_v58 = vld [vmem:[#allocation5_spill] sm:$0xff] }
 0x10b   :  { %v937_v20 = vpop.f32.mrf.mxu0  ;;  %v1000_v15 = vadd.f32 %v1517_v19, %v1515_v17 }
 0x10c   :  { %v1001_v21 = vpop.f32.mrf.mxu1 }
 0x10d   :  { %v938_v22 = vpop.f32.mrf.mxu0 }
 0x10e   :  { %v1002_v23 = vpop.f32.mrf.mxu1  ;;  %v939_v40 = vadd.f32 %v938_v22, %v937_v20  ;;  %v602_v22 = vadd.f32 %v933_v1, %v1532_v36  ;;  %v605_v1 = vadd.f32 %v936_v14, %v1532_v36 }
 0x10f   :  { %v940_v24 = vpop.f32.mrf.mxu0  ;;  %v1003_v34 = vadd.f32 %v1002_v23, %v1001_v21 }
 0x110   :  { %v1004_v25 = vpop.f32.mrf.mxu1  ;;  %v610_v50 = vadd.f32 %v939_v40, %v1532_v36  ;;  %v699_v4 = vadd.f32 %v997_v38, %v602_v22  ;;  %v702_v42 = vadd.f32 %v1000_v15, %v605_v1 }
 0x111   :  { %v941_v26 = vpop.f32.mrf.mxu0 }
 0x112   :  { %v1005_v27 = vpop.f32.mrf.mxu1  ;;  %v942_v52 = vadd.f32 %v941_v26, %v940_v24  ;;  %v675_v26 = vadd.f32 %v979_v56, %v578_v46  ;;  %v707_v62 = vadd.f32 %v1003_v34, %v610_v50  ;;  %v1640_v56 = vld [vmem:[#allocation4_spill] sm:$0xff] }
 0x113   :  { %v943_v28 = vpop.f32.mrf.mxu0  ;;  %v1006_v9 = vadd.f32 %v1005_v27, %v1004_v25  ;;  %v994_v12 = vadd.f32 %v1641_v58, %v1640_v56 }
 0x114   :  { %v1519_v29 = vpop.f32.mrf.mxu1  ;;  %v613_v53 = vadd.f32 %v942_v52, %v1532_v36 }
 0x115   :  { %v944_v30 = vpop.f32.mrf.mxu0 }
 0x116   :  { %v1521_v31 = vpop.f32.mrf.mxu1  ;;  %v945_v23 = vadd.f32 %v944_v30, %v943_v28 }
 0x117   :  { %v1523_v32 = vpop.f32.mrf.mxu0 }
 0x118   :  { %v1525_v33 = vpop.f32.mrf.mxu1  ;;  %v618_v44 = vadd.f32 %v945_v23, %v1532_v36 }
 0x119   :  { %1639 = vst [vmem:[#allocation6_spill] sm:$0xff] %v1525_v33  ;;  %v1527_v35 = vpop.f32.mrf.mxu0 }
 0x11a   :  { %v1534_v39 = vpop.f32.mrf.mxu1  ;;  %v948_v46 = vadd.f32 %v1527_v35, %v1523_v32 }
 0x11b   :  { %v949_v41 = vpop.f32.mrf.mxu0 }
 0x11c   :  { %v1013_v43 = vpop.f32.mrf.mxu1  ;;  %v621_v22 = vadd.f32 %v948_v46, %v1532_v36 }
 0x11d   :  { %v950_v33 = vpop.f32.mrf.mxu0 }
 0x11e   :  { %v1014_v11 = vpop.f32.mrf.mxu1  ;;  %v951_v55 = vadd.f32 %v950_v33, %v949_v41  ;;  %v710_v41 = vadd.f32 %v1006_v9, %v613_v53 }
 0x11f   :  { %v952_v54 = vpop.f32.mrf.mxu0  ;;  %v1015_v48 = vadd.f32 %v1014_v11, %v1013_v43  ;;  %v1009_v11 = vadd.f32 %v1521_v31, %v1519_v29  ;;  %v589_v43 = vadd.f32 %v924_v8, %v1532_v36  ;;  %v683_v31 = vadd.f32 %v985_v5, %v586_v16 }
 0x120   :  { %v1547_v20 = vpop.f32.mrf.mxu1  ;;  %v626_v25 = vadd.f32 %v951_v55, %v1532_v36  ;;  %v694_v55 = vadd.f32 %v994_v12, %v597_v7 }
 0x121   :  { %v953_v45 = vpop.f32.mrf.mxu0  ;;  %v715_v49 = vadd.f32 %v1009_v11, %v618_v44 }
 0x122   :  { %v1017_v24 = vpop.f32.mrf.mxu1  ;;  %v954_v27 = vadd.f32 %v953_v45, %v952_v54  ;;  %v691_v54 = vadd.f32 %v991_v10, %v594_v6  ;;  %v723_v63 = vadd.f32 %v1015_v48, %v626_v25 }
 0x123   :  { %v1041_v60 = vpop.f32.mrf.mxu0  ;;  %v1018_v34 = vadd.f32 %v1017_v24, %v1547_v20 }
 0x124   :  { %v772_v18 = vadd.f32 %v1041_v60, %v675_v26  ;;  %v1049_v21 = vpop.f32.mrf.mxu1  ;;  %v629_v32 = vadd.f32 %v954_v27, %v1532_v36  ;;  %v1643_v26 = vld [vmem:[#allocation3_spill] sm:$0xff]  ;;  %v1644_v36 = vld [vmem:[#allocation6_spill] sm:$0xff] }
 0x125   :  { %v804_v57 = vadd.f32 %v1049_v21, %v707_v62  ;;  %v763_v59 = vpop.f32.mrf.mxu0  ;;  %v1012_v20 = vadd.f32 %v1534_v39, %v1644_v36 }
 0x126   :  { %828 = vst [vmem:[%s1634_s3 + $0x10] sm:$0xff] %v772_v18  ;;  %v764_v33 = vadd.f32 %v763_v59, %v667_v47  ;;  %v795_v40 = vpop.f32.mrf.mxu1  ;;  %v726_v62 = vadd.f32 %v1018_v34, %v629_v32 }
 0x127   :  { %836 = vst [vmem:[%s1634_s3 + $0x50] sm:$0xff] %v804_v57  ;;  %v796_v28 = vadd.f32 %v795_v40, %v699_v4  ;;  %v1042_v30 = vpop.f32.mrf.mxu0 }
 0x128   :  { %826 = vst [vmem:[%s1634_s3] sm:$0xff] %v764_v33  ;;  %v775_v17 = vadd.f32 %v1042_v30, %v678_v3  ;;  %v1050_v19 = vpop.f32.mrf.mxu1  ;;  %v718_v3 = vadd.f32 %v1012_v20, %v621_v22 }
 0x129   :  { %834 = vst [vmem:[%s1634_s3 + $0x40] sm:$0xff] %v796_v28  ;;  %v807_v0 = vadd.f32 %v1050_v19, %v710_v41  ;;  %v766_v2 = vpop.f32.mrf.mxu0 }
 0x12a   :  { %829 = vst [vmem:[%s1634_s3 + $0x18] sm:$0xff] %v775_v17  ;;  %v767_v50 = vadd.f32 %v766_v2, %v670_v37  ;;  %v798_v52 = vpop.f32.mrf.mxu1  ;;  %v988_v37 = vadd.f32 %v1643_v26, %v1642_v51 }
 0x12b   :  { %837 = vst [vmem:[%s1634_s3 + $0x58] sm:$0xff] %v807_v0  ;;  %v799_v35 = vadd.f32 %v798_v52, %v702_v42  ;;  %v1045_v61 = vpop.f32.mrf.mxu0 }
 0x12c   :  { %827 = vst [vmem:[%s1634_s3 + $0x8] sm:$0xff] %v767_v50  ;;  %v788_v14 = vadd.f32 %v1045_v61, %v691_v54  ;;  %v1053_v29 = vpop.f32.mrf.mxu1  ;;  %v686_v18 = vadd.f32 %v988_v37, %v589_v43 }
 0x12d   :  { %835 = vst [vmem:[%s1634_s3 + $0x48] sm:$0xff] %v799_v35  ;;  %v820_v45 = vadd.f32 %v1053_v29, %v723_v63  ;;  %v779_v47 = vpop.f32.mrf.mxu0 }
 0x12e   :  { %832 = vst [vmem:[%s1634_s3 + $0x30] sm:$0xff] %v788_v14  ;;  %v780_v38 = vadd.f32 %v779_v47, %v683_v31  ;;  %v811_v53 = vpop.f32.mrf.mxu1 }
 0x12f   :  { %840 = vst [vmem:[%s1634_s3 + $0x70] sm:$0xff] %v820_v45  ;;  %v812_v24 = vadd.f32 %v811_v53, %v715_v49  ;;  %v1046_v60 = vpop.f32.mrf.mxu0 }
 0x130   :  { %830 = vst [vmem:[%s1634_s3 + $0x20] sm:$0xff] %v780_v38  ;;  %v791_v16 = vadd.f32 %v1046_v60, %v694_v55  ;;  %v1054_v1 = vpop.f32.mrf.mxu1 }
 0x131   :  { %838 = vst [vmem:[%s1634_s3 + $0x60] sm:$0xff] %v812_v24  ;;  %v823_v21 = vadd.f32 %v1054_v1, %v726_v62  ;;  %v782_v39 = vpop.f32.mrf.mxu0 }
 0x132   :  { %833 = vst [vmem:[%s1634_s3 + $0x38] sm:$0xff] %v791_v16  ;;  %v783_v9 = vadd.f32 %v782_v39, %v686_v18  ;;  %v814_v23 = vpop.f32.mrf.mxu1 }
 0x133   :  { %841 = vst [vmem:[%s1634_s3 + $0x78] sm:$0xff] %v823_v21  ;;  %v815_v57 = vadd.f32 %v814_v23, %v718_v3 }
 0x134   :  { %831 = vst [vmem:[%s1634_s3 + $0x28] sm:$0xff] %v783_v9 }
 0x135   :  { %839 = vst [vmem:[%s1634_s3 + $0x68] sm:$0xff] %v815_v57 }

// kernel: generator_fwd.107
= control target key start
LH: loop header
LB: loop body
LE: loop exit
PB: predicated region body
PF: predicated region fallthrough
CT: control target
= control target key end

     0   :  { %s1407_s12 = smov 0   ;;  %s1703_s0 = inlined_call_operand.vmem [shape: f32[512,288], index: 0, kind: input, shape index: {}]   ;;  %s1704_s1 = inlined_call_operand.vmem [shape: bf16[288,128], index: 1, kind: input, shape index: {}]   ;;  %s1705_s2 = inlined_call_operand.vmem [shape: f32[1,128], index: 2, kind: input, shape index: {}]   ;;  %s1706_s3 = inlined_call_operand.vmem [shape: f32[512,128], index: 3, kind: output, shape index: {}]  }
   0x1 LB: > { %s1060_s13 = sadd.s32 4294967295, %s1385_s12   ;;  %p1064_p0 = scmp.ge.s32.totalorder %s1385_s12, 1  ;;  %s1385_s12 = sphi %s1407_s12, %s13_s12  }
   0x2   : > { %p139_p1 = scmp.lt.s32.totalorder %s1385_s12, 3 }
   0x4   : > { %p140_p2 = pnand %p1064_p0, %p139_p1 }
   0x5   : > { %s1065_s16 = sshll.u32 (!%p140_p2), %s1060_s13, 5 }
   0x6   : > { %143 = sbr.rel (%p140_p2) target bundleno = 352 (0x160), region = 32  ;;  %p165_p3 = scmp.lt.s32.totalorder (!%p140_p2), %s1065_s16, 63 }
   0xb   : > { %v1297_v0 = vld [vmem:[%s1704_s1 + $0x78] sm:$0xff]   ;;  %v1299_v2 = vld [vmem:[%s1704_s1 + $0x70] sm:$0xff]   ;;  %v1301_v4 = vld [vmem:[%s1704_s1 + $0x68] sm:$0xff]   ;;  %s1708_s16 = smov (!%p165_p3, %s1065_s16), 63  ;;  %vm569_vm0 = vcmask 261120  }
   0xc   : > { %v1298_v1 = vld [vmem:[%s1704_s1 + $0x38] sm:$0xff]   ;;  %1106 = vmatprep.subr.bf16.mxu0 %v1297_v0  ;;  %1272 = vmatprep.subr.bf16.mxu1 %v1297_v0  ;;  %v1300_v3 = vld [vmem:[%s1704_s1 + $0x30] sm:$0xff]   ;;  %v1302_v5 = vld [vmem:[%s1704_s1 + $0x28] sm:$0xff]   ;;  %s1288_s29 = smul.u32 24, %s1708_s16  ;;  %s1068_s5 = sshll.u32 %s1708_s16, 3 }
   0xd   : > { %1107 = vmatpush3.bf16.msra.mxu0 %v1298_v1  ;;  %1280 = vmatpush3.bf16.msra.mxu1 %v1298_v1  ;;  %v1303_v6 = vld [vmem:[%s1704_s1 + $0x60] sm:$0xff]   ;;  %v1305_v8 = vld [vmem:[%s1704_s1 + $0x58] sm:$0xff]   ;;  %v1307_v10 = vld [vmem:[%s1704_s1 + $0x50] sm:$0xff]   ;;  %s1626_s8 = scalar_lea.vmem %s1706_s3, %s1068_s5 }
   0xe   : > { %1108 = vmatprep.subr.bf16.mxu0 %v1299_v2  ;;  %1273 = vmatprep.subr.bf16.mxu1 %v1299_v2  ;;  %v1304_v7 = vld [vmem:[%s1704_s1 + $0x20] sm:$0xff]   ;;  %s1448_s9 = scalar_lea.vmem %s1703_s0, %s1288_s29  ;;  %v1306_v9 = vld [vmem:[%s1704_s1 + $0x18] sm:$0xff]   ;;  %v1308_v19 = vld [vmem:[%s1704_s1 + $0x10] sm:$0xff]  }
   0xf   : > { %v179_v11 = vld [vmem:[%s1448_s9 + $0x8] sm:$0xff]  ;;  %v182_v12 = vld [vmem:[%s1448_s9 + $0x20] sm:$0xff]  ;;  %v181_v25 = vld [vmem:[%s1448_s9 + $0x18] sm:$0xff] }
  0x10   : > { %v251_v13 = vld [vmem:[%s1448_s9 + $0x248] sm:$0xff]  ;;  %v275_v14 = vmax.f32 %v179_v11, 0.0  ;;  %v278_v15 = vmax.f32 %v182_v12, 0.0  ;;  %v254_v16 = vld [vmem:[%s1448_s9 + $0x260] sm:$0xff]  ;;  %v253_v27 = vld [vmem:[%s1448_s9 + $0x258] sm:$0xff]  ;;  %v277_v34 = vmax.f32 %v181_v25, 0.0 }
  0x11   : > { %1109 = vmatpush3.bf16.msra.mxu0 %v1300_v3  ;;  %1281 = vmatpush3.bf16.msra.mxu1 %v1300_v3  ;;  %v347_v17 = vmax.f32 %v251_v13, 0.0  ;;  %v350_v18 = vmax.f32 %v254_v16, 0.0  ;;  %v1309_v21 = vld [vmem:[%s1704_s1 + $0x48] sm:$0xff]   ;;  %v178_v24 = vld [vmem:[%s1448_s9] sm:$0xff]  ;;  %v185_v29 = vld [vmem:[%s1448_s9 + $0x38] sm:$0xff]  ;;  %v349_v36 = vmax.f32 %v253_v27, 0.0 }
  0x12   : > { %1110 = vmatprep.subr.bf16.mxu0 %v1301_v4  ;;  %1274 = vmatprep.subr.bf16.mxu1 %v1301_v4  ;;  %v371_v20 = vpack.c.bf16 %v278_v15, %v275_v14  ;;  %v1310_v23 = vld [vmem:[%s1704_s1 + $0x8] sm:$0xff]   ;;  %v250_v26 = vld [vmem:[%s1448_s9 + $0x240] sm:$0xff]  ;;  %v188_v30 = vld [vmem:[%s1448_s9 + $0x50] sm:$0xff]  ;;  %v274_v33 = vmax.f32 %v178_v24, 0.0  ;;  %v281_v38 = vmax.f32 %v185_v29, 0.0 }
  0x13   : > { %v407_v22 = vpack.c.bf16 %v350_v18, %v347_v17  ;;  %v1311_v28 = vld [vmem:[%s1704_s1 + $0x40] sm:$0xff]   ;;  %v257_v31 = vld [vmem:[%s1448_s9 + $0x278] sm:$0xff]  ;;  %v260_v32 = vld [vmem:[%s1448_s9 + $0x290] sm:$0xff]  ;;  %v346_v35 = vmax.f32 %v250_v26, 0.0  ;;  %v284_v39 = vmax.f32 %v188_v30, 0.0 }
  0x14   : > { %650 = vmatprep.mubr.bf16.mxu0 %v371_v20  ;;  %v1312_v37 = vld [vmem:[%s1704_s1] sm:$0xff]   ;;  %v1313_v40 = vld [vmem:[%s1704_s1 + $0x88] sm:$0xff]   ;;  %v353_v41 = vmax.f32 %v257_v31, 0.0  ;;  %v356_v42 = vmax.f32 %v260_v32, 0.0  ;;  %v370_v43 = vpack.c.bf16 %v277_v34, %v274_v33  ;;  %v184_v45 = vld [vmem:[%s1448_s9 + $0x30] sm:$0xff] }
  0x15   : > { %1111 = vmatpush3.bf16.msra.mxu0 %v1302_v5  ;;  %1282 = vmatpush3.bf16.msra.mxu1 %v1302_v5  ;;  %v406_v44 = vpack.c.bf16 %v349_v36, %v346_v35  ;;  %v187_v46 = vld [vmem:[%s1448_s9 + $0x48] sm:$0xff]  ;;  %v256_v47 = vld [vmem:[%s1448_s9 + $0x270] sm:$0xff]  ;;  %v374_v48 = vpack.c.bf16 %v284_v39, %v281_v38  ;;  %v194_v51 = vld [vmem:[%s1448_s9 + $0x80] sm:$0xff]  ;;  %v280_v56 = vmax.f32 %v184_v45, 0.0 }
  0x16   : > { %1112 = vmatprep.subr.bf16.mxu0 %v1303_v6  ;;  %1275 = vmatprep.subr.bf16.mxu1 %v1303_v6  ;;  %v259_v49 = vld [vmem:[%s1448_s9 + $0x288] sm:$0xff]  ;;  %v410_v52 = vpack.c.bf16 %v356_v42, %v353_v41  ;;  %v266_v54 = vld [vmem:[%s1448_s9 + $0x2c0] sm:$0xff]  ;;  %v283_v57 = vmax.f32 %v187_v46, 0.0  ;;  %v352_v58 = vmax.f32 %v256_v47, 0.0  ;;  %v290_v61 = vmax.f32 %v194_v51, 0.0  ;;  %v193_v3 = vld [vmem:[%s1448_s9 + $0x78] sm:$0xff] }
  0x17   : > { %746 = vmatprep.mubr.bf16.mxu1 %v407_v22  ;;  %v191_v50 = vld [vmem:[%s1448_s9 + $0x68] sm:$0xff]  ;;  %v1314_v55 = vld [vmem:[%s1704_s1 + $0x80] sm:$0xff]   ;;  %v355_v59 = vmax.f32 %v259_v49, 0.0  ;;  %v362_v63 = vmax.f32 %v266_v54, 0.0  ;;  %v272_v11 = vld [vmem:[%s1448_s9 + $0x2f0] sm:$0xff]  ;;  %v289_v13 = vmax.f32 %v193_v3, 0.0 }
  0x18   : > { %v263_v53 = vld [vmem:[%s1448_s9 + $0x2a8] sm:$0xff]  ;;  %v287_v60 = vmax.f32 %v191_v50, 0.0  ;;  %v373_v0 = vpack.c.bf16 %v283_v57, %v280_v56  ;;  %v190_v2 = vld [vmem:[%s1448_s9 + $0x60] sm:$0xff]  ;;  %v196_v22 = vld [vmem:[%s1448_s9 + $0x90] sm:$0xff] }
  0x19   : > { %1113 = vmatpush3.bf16.msra.mxu0 %v1304_v7  ;;  %1283 = vmatpush3.bf16.msra.mxu1 %v1304_v7  ;;  %v359_v62 = vmax.f32 %v263_v53, 0.0  ;;  %v409_v1 = vpack.c.bf16 %v355_v59, %v352_v58  ;;  %v262_v6 = vld [vmem:[%s1448_s9 + $0x2a0] sm:$0xff]  ;;  %v265_v7 = vld [vmem:[%s1448_s9 + $0x2b8] sm:$0xff]  ;;  %v286_v12 = vmax.f32 %v190_v2, 0.0  ;;  %v268_v26 = vld [vmem:[%s1448_s9 + $0x2d0] sm:$0xff]  ;;  %v292_v32 = vmax.f32 %v196_v22, 0.0 }
  0x1a   : > { %1114 = vmatprep.subr.bf16.mxu0 %v1305_v8  ;;  %1276 = vmatprep.subr.bf16.mxu1 %v1305_v8  ;;  %v377_v4 = vpack.c.bf16 %v290_v61, %v287_v60  ;;  %v197_v8 = vld [vmem:[%s1448_s9 + $0x98] sm:$0xff]  ;;  %v358_v14 = vmax.f32 %v262_v6, 0.0  ;;  %v361_v15 = vmax.f32 %v265_v7, 0.0  ;;  %v271_v27 = vld [vmem:[%s1448_s9 + $0x2e8] sm:$0xff]  ;;  %v206_v29 = vld [vmem:[%s1448_s9 + $0xe0] sm:$0xff]  ;;  %v364_v34 = vmax.f32 %v268_v26, 0.0 }
  0x1b   : > { %v413_v5 = vpack.c.bf16 %v362_v63, %v359_v62  ;;  %v293_v16 = vmax.f32 %v197_v8, 0.0  ;;  %v376_v20 = vpack.c.bf16 %v289_v13, %v286_v12  ;;  %v180_v30 = vld [vmem:[%s1448_s9 + $0x10] sm:$0xff]  ;;  %v183_v31 = vld [vmem:[%s1448_s9 + $0x28] sm:$0xff]  ;;  %v367_v35 = vmax.f32 %v271_v27, 0.0  ;;  %v202_v42 = vld [vmem:[%s1448_s9 + $0xc0] sm:$0xff] }
  0x1c   : > { %v276_v38 = vmax.f32 %v180_v30, 0.0  ;;  %v279_v39 = vmax.f32 %v183_v31, 0.0  ;;  %v186_v46 = vld [vmem:[%s1448_s9 + $0x40] sm:$0xff]  ;;  %v189_v47 = vld [vmem:[%s1448_s9 + $0x58] sm:$0xff]  ;;  %v212_v49 = vld [vmem:[%s1448_s9 + $0x110] sm:$0xff] }
  0x1d   : > { %1115 = vmatpush3.bf16.msra.mxu0 %v1306_v9  ;;  %1284 = vmatpush3.bf16.msra.mxu1 %v1306_v9  ;;  %v200_v9 = vld [vmem:[%s1448_s9 + $0xb0] sm:$0xff]  ;;  %v415_v41 = vpack.c.bf16 %v367_v35, %v364_v34  ;;  %v195_v51 = vld [vmem:[%s1448_s9 + $0x88] sm:$0xff]  ;;  %v282_v54 = vmax.f32 %v186_v46, 0.0  ;;  %v308_v57 = vmax.f32 %v212_v49, 0.0  ;;  %v198_v2 = vld [vmem:[%s1448_s9 + $0xa0] sm:$0xff] }
  0x1e   : > { %1116 = vmatprep.subr.bf16.mxu0 %v1307_v10  ;;  %1277 = vmatprep.subr.bf16.mxu1 %v1307_v10  ;;  %v269_v10 = vld [vmem:[%s1448_s9 + $0x2d8] sm:$0xff]  ;;  %v296_v17 = vmax.f32 %v200_v9, 0.0  ;;  %v372_v45 = vpack.c.bf16 %v279_v39, %v276_v38  ;;  %v192_v50 = vld [vmem:[%s1448_s9 + $0x70] sm:$0xff]  ;;  %v291_v59 = vmax.f32 %v195_v51, 0.0  ;;  %v211_v63 = vld [vmem:[%s1448_s9 + $0x108] sm:$0xff] }
  0x1f   : > { %v365_v18 = vmax.f32 %v269_v10, 0.0  ;;  %v288_v58 = vmax.f32 %v192_v50, 0.0  ;;  %v208_v62 = vld [vmem:[%s1448_s9 + $0xf0] sm:$0xff]  ;;  %v201_v3 = vld [vmem:[%s1448_s9 + $0xb8] sm:$0xff]  ;;  %v207_v7 = vld [vmem:[%s1448_s9 + $0xe8] sm:$0xff]  ;;  %v307_v9 = vmax.f32 %v211_v63, 0.0 }
  0x20   : > { %v380_v24 = vpack.c.bf16 %v296_v17, %v293_v16  ;;  %v204_v6 = vld [vmem:[%s1448_s9 + $0xd0] sm:$0xff]  ;;  %v304_v8 = vmax.f32 %v208_v62, 0.0  ;;  %v294_v10 = vmax.f32 %v198_v2, 0.0  ;;  %v210_v22 = vld [vmem:[%s1448_s9 + $0x100] sm:$0xff]  ;;  %v219_v27 = vld [vmem:[%s1448_s9 + $0x148] sm:$0xff] }
  0x21   : > { %1117 = vmatpush3.bf16.msra.mxu0 %v1308_v19  ;;  %1285 = vmatpush3.bf16.msra.mxu1 %v1308_v19  ;;  %v368_v19 = vmax.f32 %v272_v11, 0.0  ;;  %v297_v11 = vmax.f32 %v201_v3, 0.0  ;;  %v216_v26 = vld [vmem:[%s1448_s9 + $0x130] sm:$0xff]  ;;  %v306_v30 = vmax.f32 %v210_v22, 0.0  ;;  %v315_v35 = vmax.f32 %v219_v27, 0.0  ;;  %v223_v39 = vld [vmem:[%s1448_s9 + $0x168] sm:$0xff] }
  0x22   : > { %1118 = vmatprep.subr.bf16.mxu0 %v1309_v21  ;;  %1278 = vmatprep.subr.bf16.mxu1 %v1309_v21  ;;  %v412_v21 = vpack.c.bf16 %v361_v15, %v358_v14  ;;  %v300_v14 = vmax.f32 %v204_v6, 0.0  ;;  %v303_v15 = vmax.f32 %v207_v7, 0.0  ;;  %v385_v16 = vpack.c.bf16 %v307_v9, %v304_v8  ;;  %v220_v38 = vld [vmem:[%s1448_s9 + $0x150] sm:$0xff]  ;;  %v234_v62 = vld [vmem:[%s1448_s9 + $0x1c0] sm:$0xff]  ;;  %v237_v63 = vld [vmem:[%s1448_s9 + $0x1d8] sm:$0xff] }
  0x23   : > { %v416_v25 = vpack.c.bf16 %v368_v19, %v365_v18  ;;  %v381_v17 = vpack.c.bf16 %v297_v11, %v294_v10  ;;  %v214_v18 = vld [vmem:[%s1448_s9 + $0x120] sm:$0xff]  ;;  %v217_v19 = vld [vmem:[%s1448_s9 + $0x138] sm:$0xff]  ;;  %v312_v34 = vmax.f32 %v216_v26, 0.0  ;;  %v228_v46 = vld [vmem:[%s1448_s9 + $0x190] sm:$0xff]  ;;  %v319_v49 = vmax.f32 %v223_v39, 0.0 }
  0x24   : > { %v240_v2 = vld [vmem:[%s1448_s9 + $0x1f0] sm:$0xff]  ;;  %v243_v3 = vld [vmem:[%s1448_s9 + $0x208] sm:$0xff]  ;;  %v330_v6 = vmax.f32 %v234_v62, 0.0  ;;  %v333_v7 = vmax.f32 %v237_v63, 0.0  ;;  %v261_v39 = vld [vmem:[%s1448_s9 + $0x298] sm:$0xff] }
  0x25   : > { %1119 = vmatpush3.bf16.msra.mxu0 %v1310_v23  ;;  %1286 = vmatpush3.bf16.msra.mxu1 %v1310_v23  ;;  %v199_v23 = vld [vmem:[%s1448_s9 + $0xa8] sm:$0xff]  ;;  %v336_v10 = vmax.f32 %v240_v2, 0.0  ;;  %v339_v11 = vmax.f32 %v243_v3, 0.0  ;;  %v252_v22 = vld [vmem:[%s1448_s9 + $0x250] sm:$0xff] }
  0x26   : > { %1120 = vmatprep.subr.bf16.mxu0 %v1311_v28  ;;  %1279 = vmatprep.subr.bf16.mxu1 %v1311_v28  ;;  %v203_v28 = vld [vmem:[%s1448_s9 + $0xc8] sm:$0xff]  ;;  %v295_v33 = vmax.f32 %v199_v23, 0.0  ;;  %v213_v23 = vld [vmem:[%s1448_s9 + $0x118] sm:$0xff] }
  0x27   : > { %v299_v36 = vmax.f32 %v203_v28, 0.0  ;;  %v310_v28 = vmax.f32 %v214_v18, 0.0  ;;  %v309_v31 = vmax.f32 %v213_v23, 0.0  ;;  %v246_v18 = vld [vmem:[%s1448_s9 + $0x220] sm:$0xff]  ;;  %v255_v23 = vld [vmem:[%s1448_s9 + $0x268] sm:$0xff] }
  0x28   : > { %v342_v26 = vmax.f32 %v246_v18, 0.0 }
  0x29   : > { %1121 = vmatpush3.bf16.msra.mxu0 %v1312_v37  ;;  %1287 = vmatpush3.bf16.msra.mxu1 %v1312_v37  ;;  %v302_v37 = vmax.f32 %v206_v29, 0.0  ;;  %v313_v29 = vmax.f32 %v217_v19, 0.0  ;;  %v249_v19 = vld [vmem:[%s1448_s9 + $0x238] sm:$0xff] }
  0x2a   : > { %1236 = vmatprep.subr.bf16.mxu1 %v1313_v40  ;;  %v345_v27 = vmax.f32 %v249_v19, 0.0 }
  0x2c   : > { %651 = vmatmul.mubr.bf16.vlgmr.msra.gmra.mxu0 %v370_v43  ;;  %747 = vmatmul.mubr.bf16.vlgmr.msra.gmra.mxu1 %v406_v44  ;;  %v205_v43 = vld [vmem:[%s1448_s9 + $0xd8] sm:$0xff]  ;;  %v383_v44 = vpack.c.bf16 %v302_v37, %v299_v36  ;;  %v388_v36 = vpack.c.bf16 %v313_v29, %v310_v28  ;;  %v387_v37 = vpack.c.bf16 %v309_v31, %v306_v30  ;;  %v348_v30 = vmax.f32 %v252_v22, 0.0 }
  0x2d   : > { %1237 = vmatpush3.bf16.msra.mxu1 %v1313_v40  ;;  %658 = vmatprep.mubr.bf16.mxu0 %v374_v48  ;;  %v379_v40 = vpack.c.bf16 %v295_v33, %v292_v32  ;;  %v209_v48 = vld [vmem:[%s1448_s9 + $0xf8] sm:$0xff]  ;;  %v301_v53 = vmax.f32 %v205_v43, 0.0  ;;  %v351_v31 = vmax.f32 %v255_v23, 0.0 }
  0x2e   : > { %754 = vmatprep.mubr.bf16.mxu1 %v410_v52  ;;  %1238 = vmatprep.subr.bf16.mxu1 %v1314_v55  ;;  %v298_v52 = vmax.f32 %v202_v42, 0.0  ;;  %v305_v56 = vmax.f32 %v209_v48, 0.0  ;;  %v222_v42 = vld [vmem:[%s1448_s9 + $0x160] sm:$0xff]  ;;  %v225_v43 = vld [vmem:[%s1448_s9 + $0x178] sm:$0xff]  ;;  %v316_v48 = vmax.f32 %v220_v38, 0.0 }
  0x2f   : > { %v318_v50 = vmax.f32 %v222_v42, 0.0  ;;  %v321_v51 = vmax.f32 %v225_v43, 0.0  ;;  %v258_v38 = vld [vmem:[%s1448_s9 + $0x280] sm:$0xff]  ;;  %v264_v42 = vld [vmem:[%s1448_s9 + $0x2b0] sm:$0xff]  ;;  %v267_v43 = vld [vmem:[%s1448_s9 + $0x2c8] sm:$0xff] }
  0x30   : > { %v382_v60 = vpack.c.bf16 %v301_v53, %v298_v52 }
  0x31   : > { %1239 = vmatpush3.bf16.msra.mxu1 %v1314_v55  ;;  %v285_v55 = vmax.f32 %v189_v47, 0.0  ;;  %v231_v47 = vld [vmem:[%s1448_s9 + $0x1a8] sm:$0xff] }
  0x33   : > { %v375_v61 = vpack.c.bf16 %v285_v55, %v282_v54  ;;  %v324_v54 = vmax.f32 %v228_v46, 0.0  ;;  %v327_v55 = vmax.f32 %v231_v47, 0.0  ;;  %v354_v46 = vmax.f32 %v258_v38, 0.0 }
  0x34   : > { %659 = vmatmul.mubr.bf16.gmra.mxu0 %v373_v0  ;;  %755 = vmatmul.mubr.bf16.gmra.mxu1 %v409_v1  ;;  %v386_v0 = vpack.c.bf16 %v308_v57, %v305_v56  ;;  %v378_v1 = vpack.c.bf16 %v291_v59, %v288_v58  ;;  %v391_v56 = vpack.c.bf16 %v319_v49, %v316_v48  ;;  %v226_v58 = vld [vmem:[%s1448_s9 + $0x180] sm:$0xff]  ;;  %v229_v59 = vld [vmem:[%s1448_s9 + $0x198] sm:$0xff]  ;;  %v357_v47 = vmax.f32 %v261_v39, 0.0 }
  0x35   : > { %666 = vmatprep.mubr.bf16.mxu0 %v377_v4  ;;  %762 = vmatprep.mubr.bf16.mxu1 %v413_v5  ;;  %v215_v4 = vld [vmem:[%s1448_s9 + $0x128] sm:$0xff]  ;;  %v218_v5 = vld [vmem:[%s1448_s9 + $0x140] sm:$0xff]  ;;  %v393_v57 = vpack.c.bf16 %v321_v51, %v318_v50  ;;  %v360_v50 = vmax.f32 %v264_v42, 0.0  ;;  %v363_v51 = vmax.f32 %v267_v43, 0.0 }
  0x36   : > { %v311_v12 = vmax.f32 %v215_v4, 0.0  ;;  %v314_v13 = vmax.f32 %v218_v5, 0.0  ;;  %v322_v4 = vmax.f32 %v226_v58, 0.0  ;;  %v325_v5 = vmax.f32 %v229_v59, 0.0  ;;  %v270_v58 = vld [vmem:[%s1448_s9 + $0x2e0] sm:$0xff]  ;;  %v273_v59 = vld [vmem:[%s1448_s9 + $0x2f8] sm:$0xff] }
  0x37   : > { %v366_v62 = vmax.f32 %v270_v58, 0.0  ;;  %v369_v63 = vmax.f32 %v273_v59, 0.0  ;;  %v1612_v42 = vld [vmem:[%s1705_s2] ss:$0 sm:$0xff] }
  0x3c   : > { %667 = vmatmul.mubr.bf16.gmra.mxu0 %v376_v20  ;;  %763 = vmatmul.mubr.bf16.gmra.mxu1 %v412_v21  ;;  %v389_v20 = vpack.c.bf16 %v314_v13, %v311_v12  ;;  %v384_v21 = vpack.c.bf16 %v303_v15, %v300_v14  ;;  %v394_v12 = vpack.c.bf16 %v325_v5, %v322_v4  ;;  %v232_v14 = vld [vmem:[%s1448_s9 + $0x1b0] sm:$0xff]  ;;  %v235_v15 = vld [vmem:[%s1448_s9 + $0x1c8] sm:$0xff] }
  0x3d   : > { %674 = vmatprep.mubr.bf16.mxu0 %v380_v24  ;;  %770 = vmatprep.mubr.bf16.mxu1 %v416_v25  ;;  %v221_v24 = vld [vmem:[%s1448_s9 + $0x158] sm:$0xff]  ;;  %v224_v25 = vld [vmem:[%s1448_s9 + $0x170] sm:$0xff]  ;;  %v399_v13 = vpack.c.bf16 %v333_v7, %v330_v6 }
  0x3e   : > { %v317_v32 = vmax.f32 %v221_v24, 0.0  ;;  %v320_v33 = vmax.f32 %v224_v25, 0.0  ;;  %v328_v24 = vmax.f32 %v232_v14, 0.0  ;;  %v331_v25 = vmax.f32 %v235_v15, 0.0 }
  0x44   : > { %675 = vmatmul.mubr.bf16.gmra.mxu0 %v379_v40  ;;  %771 = vmatmul.mubr.bf16.gmra.mxu1 %v415_v41  ;;  %v392_v40 = vpack.c.bf16 %v320_v33, %v317_v32  ;;  %v390_v41 = vpack.c.bf16 %v315_v35, %v312_v34  ;;  %v397_v32 = vpack.c.bf16 %v331_v25, %v328_v24  ;;  %v238_v34 = vld [vmem:[%s1448_s9 + $0x1e0] sm:$0xff]  ;;  %v241_v35 = vld [vmem:[%s1448_s9 + $0x1f8] sm:$0xff] }
  0x45   : > { %682 = vmatprep.mubr.bf16.mxu0 %v383_v44  ;;  %1240 = vmatprep.mubr.msk.bf16.mxu1 %vm569_vm0, %v372_v45  ;;  %v227_v44 = vld [vmem:[%s1448_s9 + $0x188] sm:$0xff]  ;;  %v230_v45 = vld [vmem:[%s1448_s9 + $0x1a0] sm:$0xff]  ;;  %v405_v33 = vpack.c.bf16 %v345_v27, %v342_v26 }
  0x46   : > { %v323_v52 = vmax.f32 %v227_v44, 0.0  ;;  %v326_v53 = vmax.f32 %v230_v45, 0.0  ;;  %v334_v44 = vmax.f32 %v238_v34, 0.0  ;;  %v337_v45 = vmax.f32 %v241_v35, 0.0 }
  0x4c   : > { %683 = vmatmul.mubr.bf16.gmra.mxu0 %v382_v60  ;;  %1241 = vmatmul.mubr.msk.bf16.vlgmr.msra.gmra.mxu1 %vm569_vm0, %v375_v61  ;;  %v395_v60 = vpack.c.bf16 %v326_v53, %v323_v52  ;;  %v396_v61 = vpack.c.bf16 %v327_v55, %v324_v54  ;;  %v400_v52 = vpack.c.bf16 %v337_v45, %v334_v44  ;;  %v244_v54 = vld [vmem:[%s1448_s9 + $0x210] sm:$0xff] }
  0x4d   : > { %690 = vmatprep.mubr.bf16.mxu0 %v386_v0  ;;  %1244 = vmatprep.mubr.msk.bf16.mxu1 %vm569_vm0, %v378_v1  ;;  %v233_v0 = vld [vmem:[%s1448_s9 + $0x1b8] sm:$0xff]  ;;  %v236_v1 = vld [vmem:[%s1448_s9 + $0x1d0] sm:$0xff]  ;;  %v411_v53 = vpack.c.bf16 %v357_v47, %v354_v46 }
  0x4e   : > { %v329_v8 = vmax.f32 %v233_v0, 0.0  ;;  %v332_v9 = vmax.f32 %v236_v1, 0.0  ;;  %v417_v1 = vpack.c.bf16 %v369_v63, %v366_v62 }
  0x54   : > { %691 = vmatmul.mubr.bf16.gmra.mxu0 %v385_v16  ;;  %1245 = vmatmul.mubr.msk.bf16.gmra.mxu1 %vm569_vm0, %v381_v17  ;;  %v398_v16 = vpack.c.bf16 %v332_v9, %v329_v8  ;;  %v402_v17 = vpack.c.bf16 %v339_v11, %v336_v10 }
  0x55   : > { %698 = vmatprep.mubr.bf16.mxu0 %v389_v20  ;;  %1248 = vmatprep.mubr.msk.bf16.mxu1 %vm569_vm0, %v384_v21  ;;  %v239_v20 = vld [vmem:[%s1448_s9 + $0x1e8] sm:$0xff]  ;;  %v242_v21 = vld [vmem:[%s1448_s9 + $0x200] sm:$0xff] }
  0x56   : > { %v335_v28 = vmax.f32 %v239_v20, 0.0  ;;  %v338_v29 = vmax.f32 %v242_v21, 0.0 }
  0x5c   : > { %699 = vmatmul.mubr.bf16.gmra.mxu0 %v388_v36  ;;  %1249 = vmatmul.mubr.msk.bf16.gmra.mxu1 %vm569_vm0, %v387_v37  ;;  %v401_v36 = vpack.c.bf16 %v338_v29, %v335_v28  ;;  %v408_v37 = vpack.c.bf16 %v351_v31, %v348_v30 }
  0x5d   : > { %706 = vmatprep.mubr.bf16.mxu0 %v392_v40  ;;  %1252 = vmatprep.mubr.msk.bf16.mxu1 %vm569_vm0, %v390_v41  ;;  %v245_v40 = vld [vmem:[%s1448_s9 + $0x218] sm:$0xff]  ;;  %v248_v41 = vld [vmem:[%s1448_s9 + $0x230] sm:$0xff] }
  0x5e   : > { %v341_v48 = vmax.f32 %v245_v40, 0.0  ;;  %v344_v49 = vmax.f32 %v248_v41, 0.0 }
  0x60   : > { %v404_v55 = vpack.c.bf16 %v344_v49, %v341_v48 }
  0x64   : > { %707 = vmatmul.mubr.bf16.gmra.mxu0 %v391_v56  ;;  %1253 = vmatmul.mubr.msk.bf16.gmra.mxu1 %vm569_vm0, %v393_v57  ;;  %v414_v56 = vpack.c.bf16 %v363_v51, %v360_v50  ;;  %v247_v57 = vld [vmem:[%s1448_s9 + $0x228] sm:$0xff] }
  0x65   : > { %714 = vmatprep.mubr.bf16.mxu0 %v395_v60  ;;  %1256 = vmatprep.mubr.msk.bf16.mxu1 %vm569_vm0, %v396_v61  ;;  %v340_v60 = vmax.f32 %v244_v54, 0.0  ;;  %v343_v61 = vmax.f32 %v247_v57, 0.0 }
  0x67   : > { %v403_v0 = vpack.c.bf16 %v343_v61, %v340_v60 }
  0x6c   : > { %715 = vmatmul.mubr.bf16.gmra.mxu0 %v394_v12  ;;  %1257 = vmatmul.mubr.msk.bf16.gmra.mxu1 %vm569_vm0, %v399_v13 }
  0x6d   : > { %722 = vmatprep.mubr.bf16.mxu0 %v398_v16  ;;  %1260 = vmatprep.mubr.msk.bf16.mxu1 %vm569_vm0, %v402_v17 }
  0x74   : > { %723 = vmatmul.mubr.bf16.gmra.mxu0 %v397_v32  ;;  %1261 = vmatmul.mubr.msk.bf16.gmra.mxu1 %vm569_vm0, %v405_v33 }
  0x75   : > { %730 = vmatprep.mubr.bf16.mxu0 %v401_v36  ;;  %1264 = vmatprep.mubr.msk.bf16.mxu1 %vm569_vm0, %v408_v37 }
  0x7c   : > { %731 = vmatmul.mubr.bf16.gmra.mxu0 %v400_v52  ;;  %1265 = vmatmul.mubr.msk.bf16.gmra.mxu1 %vm569_vm0, %v411_v53 }
  0x7d   : > { %738 = vmatprep.mubr.bf16.mxu0 %v404_v55  ;;  %1268 = vmatprep.mubr.msk.bf16.mxu1 %vm569_vm0, %v414_v56 }
  0x84   : > { %739 = vmatmul.mubr.bf16.gmra.mxu0 %v403_v0  ;;  %1269 = vmatmul.mubr.msk.bf16.gmra.mxu1 %vm569_vm0, %v417_v1 }
  0xec   : > { %v1122_v2 = vpop.f32.mrf.mxu0  ;;  %v1194_v3 = vpop.f32.mrf.mxu1 }
  0xee   : > { %v1123_v4 = vpop.f32.mrf.mxu0  ;;  %v1195_v5 = vpop.f32.mrf.mxu1 }
  0xef   : > { %v1589_v6 = vadd.f32 %v1195_v5, %v1194_v3  ;;  %v1124_v39 = vadd.f32 %v1123_v4, %v1122_v2 }
  0xf0   : > { %v1125_v7 = vpop.f32.mrf.mxu0  ;;  %v1197_v8 = vpop.f32.mrf.mxu1 }
  0xf1   : > { %v653_v49 = vadd.f32 %v1124_v39, %v1612_v42 }
  0xf2   : > { %v1126_v9 = vpop.f32.mrf.mxu0  ;;  %v1198_v10 = vpop.f32.mrf.mxu1 }
  0xf3   : > { %v1591_v11 = vadd.f32 %v1198_v10, %v1197_v8  ;;  %v1127_v47 = vadd.f32 %v1126_v9, %v1125_v7 }
  0xf4   : > { %v1128_v12 = vpop.f32.mrf.mxu0  ;;  %v1200_v13 = vpop.f32.mrf.mxu1 }
  0xf5   : > { %v656_v59 = vadd.f32 %v1127_v47, %v1612_v42 }
  0xf6   : > { %v1129_v14 = vpop.f32.mrf.mxu0  ;;  %v1201_v15 = vpop.f32.mrf.mxu1 }
  0xf7   : > { %v1593_v16 = vadd.f32 %v1201_v15, %v1200_v13  ;;  %v1130_v36 = vadd.f32 %v1129_v14, %v1128_v12 }
  0xf8   : > { %v1131_v17 = vpop.f32.mrf.mxu0  ;;  %v1203_v18 = vpop.f32.mrf.mxu1 }
  0xf9   : > { %v661_v44 = vadd.f32 %v1130_v36, %v1612_v42 }
  0xfa   : > { %v1132_v19 = vpop.f32.mrf.mxu0  ;;  %v1204_v20 = vpop.f32.mrf.mxu1 }
  0xfb   : > { %v1595_v21 = vadd.f32 %v1204_v20, %v1203_v18  ;;  %v1133_v43 = vadd.f32 %v1132_v19, %v1131_v17 }
  0xfc   : > { %v1134_v22 = vpop.f32.mrf.mxu0  ;;  %v1206_v23 = vpop.f32.mrf.mxu1 }
  0xfd   : > { %v664_v54 = vadd.f32 %v1133_v43, %v1612_v42 }
  0xfe   : > { %v1135_v24 = vpop.f32.mrf.mxu0  ;;  %v1207_v25 = vpop.f32.mrf.mxu1 }
  0xff   : > { %v1597_v26 = vadd.f32 %v1207_v25, %v1206_v23  ;;  %v1136_v57 = vadd.f32 %v1135_v24, %v1134_v22 }
 0x100   : > { %v1137_v27 = vpop.f32.mrf.mxu0  ;;  %v1209_v28 = vpop.f32.mrf.mxu1 }
 0x101   : > { %v669_v5 = vadd.f32 %v1136_v57, %v1612_v42 }
 0x102   : > { %v1138_v29 = vpop.f32.mrf.mxu0  ;;  %v1210_v30 = vpop.f32.mrf.mxu1 }
 0x103   : > { %v1599_v31 = vadd.f32 %v1210_v30, %v1209_v28  ;;  %v1139_v3 = vadd.f32 %v1138_v29, %v1137_v27 }
 0x104   : > { %v1140_v32 = vpop.f32.mrf.mxu0  ;;  %v1601_v33 = vpop.f32.mrf.mxu1 }
 0x105   : > { %v672_v18 = vadd.f32 %v1139_v3, %v1612_v42 }
 0x106   : > { %v1141_v34 = vpop.f32.mrf.mxu0  ;;  %v1603_v35 = vpop.f32.mrf.mxu1 }
 0x107   : > { %v1142_v52 = vadd.f32 %v1141_v34, %v1140_v32 }
 0x108   : > { %v1143_v37 = vpop.f32.mrf.mxu0  ;;  %v1605_v38 = vpop.f32.mrf.mxu1 }
 0x109   : > { %v677_v0 = vadd.f32 %v1142_v52, %v1612_v42 }
 0x10a   : > { %v1144_v40 = vpop.f32.mrf.mxu0  ;;  %v1607_v41 = vpop.f32.mrf.mxu1 }
 0x10b   : > { %v1145_v62 = vadd.f32 %v1144_v40, %v1143_v37 }
 0x10c   : > { %v1146_v45 = vpop.f32.mrf.mxu0  ;;  %v1242_v46 = vpop.f32.mrf.mxu1 }
 0x10d   : > { %v822_v48 = vadd.f32 %v1242_v46, %v661_v44  ;;  %v680_v12 = vadd.f32 %v1145_v62, %v1612_v42 }
 0x10e   : > { %v1147_v50 = vpop.f32.mrf.mxu0  ;;  %v813_v51 = vpop.f32.mrf.mxu1 }
 0x10f   : > { %1315 = vtanh.f32 %v822_v48  ;;  %v814_v53 = vadd.f32 %v813_v51, %v653_v49  ;;  %v1148_v15 = vadd.f32 %v1147_v50, %v1146_v45 }
 0x110   : > { %v1149_v55 = vpop.f32.mrf.mxu0  ;;  %v1243_v56 = vpop.f32.mrf.mxu1 }
 0x111   : > { %1317 = vtanh.f32 %v814_v53  ;;  %v825_v58 = vadd.f32 %v1243_v56, %v664_v54  ;;  %v685_v32 = vadd.f32 %v1148_v15, %v1612_v42 }
 0x112   : > { %v1150_v60 = vpop.f32.mrf.mxu0  ;;  %v816_v61 = vpop.f32.mrf.mxu1 }
 0x113   : > { %1319 = vtanh.f32 %v825_v58  ;;  %v817_v63 = vadd.f32 %v816_v61, %v656_v59  ;;  %v1151_v29 = vadd.f32 %v1150_v60, %v1149_v55 }
 0x114   : > { %v1152_v1 = vpop.f32.mrf.mxu0  ;;  %v1246_v2 = vpop.f32.mrf.mxu1 }
 0x115   : > { %1321 = vtanh.f32 %v817_v63  ;;  %v838_v4 = vadd.f32 %v1246_v2, %v677_v0  ;;  %v688_v48 = vadd.f32 %v1151_v29, %v1612_v42 }
 0x116   : > { %v1153_v7 = vpop.f32.mrf.mxu0  ;;  %v829_v8 = vpop.f32.mrf.mxu1 }
 0x117   : > { %1323 = vtanh.f32 %v838_v4  ;;  %v1154_v9 = vadd.f32 %v1153_v7, %v1152_v1  ;;  %v830_v10 = vadd.f32 %v829_v8, %v669_v5 }
 0x118   : > { %v1155_v13 = vpop.f32.mrf.mxu0  ;;  %v1247_v14 = vpop.f32.mrf.mxu1 }
 0x119   : > { %1325 = vtanh.f32 %v830_v10  ;;  %v841_v17 = vadd.f32 %v1247_v14, %v680_v12  ;;  %v693_v24 = vadd.f32 %v1154_v9, %v1612_v42 }
 0x11a   : > { %v1156_v19 = vpop.f32.mrf.mxu0  ;;  %v832_v20 = vpop.f32.mrf.mxu1 }
 0x11b   : > { %1327 = vtanh.f32 %v841_v17  ;;  %v1157_v22 = vadd.f32 %v1156_v19, %v1155_v13  ;;  %v833_v23 = vadd.f32 %v832_v20, %v672_v18 }
 0x11c   : > { %v1316_v25 = vpop.eup %1315  ;;  %v1158_v27 = vpop.f32.mrf.mxu0 }
 0x11d   : > { %v1250_v28 = vpop.f32.mrf.mxu1  ;;  %974 = vst [vmem:[%s1626_s8 + $0x10] sm:$0xff] %v1316_v25  ;;  %1329 = vtanh.f32 %v833_v23  ;;  %v696_v40 = vadd.f32 %v1157_v22, %v1612_v42 }
 0x11e   : > { %v854_v30 = vadd.f32 %v1250_v28, %v693_v24  ;;  %v1318_v34 = vpop.eup %1317  ;;  %v1159_v36 = vpop.f32.mrf.mxu0 }
 0x11f   : > { %v845_v37 = vpop.f32.mrf.mxu1  ;;  %972 = vst [vmem:[%s1626_s8] sm:$0xff] %v1318_v34  ;;  %v1160_v46 = vadd.f32 %v1159_v36, %v1158_v27 }
 0x120   : > { %1331 = vtanh.f32 %v854_v30  ;;  %v846_v39 = vadd.f32 %v845_v37, %v685_v32  ;;  %v1320_v43 = vpop.eup %1319  ;;  %v1161_v44 = vpop.f32.mrf.mxu0 }
 0x121   : > { %v1251_v45 = vpop.f32.mrf.mxu1  ;;  %975 = vst [vmem:[%s1626_s8 + $0x18] sm:$0xff] %v1320_v43  ;;  %v701_v57 = vadd.f32 %v1160_v46, %v1612_v42 }
 0x122   : > { %1333 = vtanh.f32 %v846_v39  ;;  %v857_v47 = vadd.f32 %v1251_v45, %v696_v40  ;;  %v1322_v49 = vpop.eup %1321  ;;  %v1162_v50 = vpop.f32.mrf.mxu0 }
 0x123   : > { %v848_v51 = vpop.f32.mrf.mxu1  ;;  %973 = vst [vmem:[%s1626_s8 + $0x8] sm:$0xff] %v1322_v49  ;;  %v1163_v56 = vadd.f32 %v1162_v50, %v1161_v44 }
 0x124   : > { %1335 = vtanh.f32 %v857_v47  ;;  %v849_v52 = vadd.f32 %v848_v51, %v688_v48  ;;  %v1324_v53 = vpop.eup %1323  ;;  %v1164_v54 = vpop.f32.mrf.mxu0 }
 0x125   : > { %v1254_v55 = vpop.f32.mrf.mxu1  ;;  %978 = vst [vmem:[%s1626_s8 + $0x30] sm:$0xff] %v1324_v53  ;;  %v704_v3 = vadd.f32 %v1163_v56, %v1612_v42  ;;  %v757_v56 = vadd.f32 %v1593_v16, %v1612_v42 }
 0x126   : > { %1337 = vtanh.f32 %v849_v52  ;;  %v1326_v58 = vpop.eup %1325  ;;  %v1165_v59 = vpop.f32.mrf.mxu0 }
 0x127   : > { %v861_v60 = vpop.f32.mrf.mxu1  ;;  %976 = vst [vmem:[%s1626_s8 + $0x20] sm:$0xff] %v1326_v58  ;;  %v1166_v61 = vadd.f32 %v1165_v59, %v1164_v54 }
 0x128   : > { %v862_v62 = vadd.f32 %v861_v60, %v701_v57  ;;  %v1328_v63 = vpop.eup %1327  ;;  %v1167_v0 = vpop.f32.mrf.mxu0 }
 0x129   : > { %v1255_v1 = vpop.f32.mrf.mxu1  ;;  %979 = vst [vmem:[%s1626_s8 + $0x38] sm:$0xff] %v1328_v63  ;;  %v709_v2 = vadd.f32 %v1166_v61, %v1612_v42  ;;  %v749_v61 = vadd.f32 %v1589_v6, %v1612_v42  ;;  %v1214_v63 = vadd.f32 %v1603_v35, %v1601_v33  ;;  %v752_v33 = vadd.f32 %v1591_v11, %v1612_v42 }
 0x12a   : > { %1339 = vtanh.f32 %v862_v62  ;;  %v1330_v4 = vpop.eup %1329  ;;  %v1168_v5 = vpop.f32.mrf.mxu0 }
 0x12b   : > { %v864_v7 = vpop.f32.mrf.mxu1  ;;  %977 = vst [vmem:[%s1626_s8 + $0x28] sm:$0xff] %v1330_v4  ;;  %v870_v8 = vadd.f32 %v1254_v55, %v709_v2  ;;  %v1169_v9 = vadd.f32 %v1168_v5, %v1167_v0  ;;  %v760_v2 = vadd.f32 %v1595_v21, %v1612_v42 }
 0x12c   : > { %v865_v10 = vadd.f32 %v864_v7, %v704_v3  ;;  %v1170_v13 = vpop.f32.mrf.mxu0 }
 0x12d   : > { %v1332_v12 = vpop.eup %1331  ;;  %v1258_v14 = vpop.f32.mrf.mxu1  ;;  %1341 = vtanh.f32 %v870_v8  ;;  %v712_v15 = vadd.f32 %v1169_v9, %v1612_v42  ;;  %v1217_v9 = vadd.f32 %v1607_v41, %v1605_v38  ;;  %v765_v38 = vadd.f32 %v1597_v26, %v1612_v42 }
 0x12e   : > { %982 = vst [vmem:[%s1626_s8 + $0x50] sm:$0xff] %v1332_v12  ;;  %1343 = vtanh.f32 %v865_v10  ;;  %v1171_v18 = vpop.f32.mrf.mxu0  ;;  %v773_v12 = vadd.f32 %v1214_v63, %v1612_v42  ;;  %v768_v26 = vadd.f32 %v1599_v31, %v1612_v42 }
 0x12f   : > { %v1334_v17 = vpop.eup %1333  ;;  %v877_v19 = vpop.f32.mrf.mxu1  ;;  %v873_v20 = vadd.f32 %v1255_v1, %v712_v15  ;;  %v1172_v22 = vadd.f32 %v1171_v18, %v1170_v13 }
 0x130   : > { %980 = vst [vmem:[%s1626_s8 + $0x40] sm:$0xff] %v1334_v17  ;;  %v1173_v24 = vpop.f32.mrf.mxu0 }
 0x131   : > { %v1336_v23 = vpop.eup %1335  ;;  %v1259_v25 = vpop.f32.mrf.mxu1  ;;  %1345 = vtanh.f32 %v873_v20  ;;  %v717_v27 = vadd.f32 %v1172_v22, %v1612_v42 }
 0x132   : > { %983 = vst [vmem:[%s1626_s8 + $0x58] sm:$0xff] %v1336_v23  ;;  %v1174_v29 = vpop.f32.mrf.mxu0  ;;  %v776_v23 = vadd.f32 %v1217_v9, %v1612_v42 }
 0x133   : > { %v1338_v28 = vpop.eup %1337  ;;  %v880_v30 = vpop.f32.mrf.mxu1  ;;  %v878_v32 = vadd.f32 %v877_v19, %v717_v27  ;;  %v1175_v34 = vadd.f32 %v1174_v29, %v1173_v24 }
 0x134   : > { %981 = vst [vmem:[%s1626_s8 + $0x48] sm:$0xff] %v1338_v28  ;;  %v1176_v36 = vpop.f32.mrf.mxu0 }
 0x135   : > { %v1649_v37 = vpop.f32.mrf.mxu1  ;;  %1347 = vtanh.f32 %v878_v32  ;;  %v720_v39 = vadd.f32 %v1175_v34, %v1612_v42 }
 0x136   : > { %v1177_v43 = vpop.f32.mrf.mxu0 }
 0x137   : > { %v1340_v40 = vpop.eup %1339  ;;  %v893_v44 = vpop.f32.mrf.mxu1  ;;  %v881_v45 = vadd.f32 %v880_v30, %v720_v39  ;;  %v1178_v46 = vadd.f32 %v1177_v43, %v1176_v36 }
 0x138   : > { %984 = vst [vmem:[%s1626_s8 + $0x60] sm:$0xff] %v1340_v40  ;;  %v1179_v47 = vpop.f32.mrf.mxu0 }
 0x139   : > { %v1653_v48 = vpop.f32.mrf.mxu1  ;;  %1349 = vtanh.f32 %v881_v45  ;;  %v725_v49 = vadd.f32 %v1178_v46, %v1612_v42 }
 0x13a   : > { %v1342_v50 = vpop.eup %1341  ;;  %v1180_v51 = vpop.f32.mrf.mxu0 }
 0x13b   : > { %v896_v52 = vpop.f32.mrf.mxu1  ;;  %v1344_v53 = vpop.eup %1343  ;;  %986 = vst [vmem:[%s1626_s8 + $0x70] sm:$0xff] %v1342_v50  ;;  %v886_v54 = vadd.f32 %v1258_v14, %v725_v49  ;;  %v1181_v55 = vadd.f32 %v1180_v51, %v1179_v47 }
 0x13c   : > { %985 = vst [vmem:[%s1626_s8 + $0x68] sm:$0xff] %v1344_v53  ;;  %v1182_v57 = vpop.f32.mrf.mxu0 }
 0x13d   : > { %v1266_v58 = vpop.f32.mrf.mxu1  ;;  %1351 = vtanh.f32 %v886_v54  ;;  %v728_v59 = vadd.f32 %v1181_v55, %v1612_v42 }
 0x13e   : > { %v918_v60 = vadd.f32 %v1266_v58, %v757_v56  ;;  %v1346_v62 = vpop.eup %1345  ;;  %v1183_v0 = vpop.f32.mrf.mxu0 }
 0x13f   : > { %v909_v1 = vpop.f32.mrf.mxu1  ;;  %987 = vst [vmem:[%s1626_s8 + $0x78] sm:$0xff] %v1346_v62  ;;  %v889_v16 = vadd.f32 %v1259_v25, %v728_v59  ;;  %v1184_v3 = vadd.f32 %v1183_v0, %v1182_v57 }
 0x140   : > { %1353 = vtanh.f32 %v918_v60  ;;  %v910_v4 = vadd.f32 %v909_v1, %v749_v61  ;;  %v1185_v5 = vpop.f32.mrf.mxu0 }
 0x141   : > { %v1267_v7 = vpop.f32.mrf.mxu1  ;;  %1355 = vtanh.f32 %v889_v16  ;;  %v733_v6 = vadd.f32 %v1184_v3, %v1612_v42 }
 0x142   : > { %v921_v8 = vadd.f32 %v1267_v7, %v760_v2  ;;  %v1348_v35 = vpop.eup %1347  ;;  %1357 = vtanh.f32 %v910_v4  ;;  %v1186_v21 = vpop.f32.mrf.mxu0 }
 0x143   : > { %v912_v10 = vpop.f32.mrf.mxu1  ;;  %988 = vst [vmem:[%s1626_s8 + $0x80] sm:$0xff] %v1348_v35  ;;  %v894_v13 = vadd.f32 %v893_v44, %v733_v6  ;;  %v1187_v14 = vadd.f32 %v1186_v21, %v1185_v5 }
 0x144   : > { %1359 = vtanh.f32 %v921_v8  ;;  %v913_v15 = vadd.f32 %v912_v10, %v752_v33  ;;  %v1188_v17 = vpop.f32.mrf.mxu0 }
 0x145   : > { %v1270_v18 = vpop.f32.mrf.mxu1  ;;  %1361 = vtanh.f32 %v894_v13  ;;  %v736_v11 = vadd.f32 %v1187_v14, %v1612_v42 }
 0x146   : > { %v934_v19 = vadd.f32 %v1270_v18, %v773_v12  ;;  %v1350_v41 = vpop.eup %1349  ;;  %1363 = vtanh.f32 %v913_v15  ;;  %v1189_v20 = vpop.f32.mrf.mxu0 }
 0x147   : > { %v925_v22 = vpop.f32.mrf.mxu1  ;;  %989 = vst [vmem:[%s1626_s8 + $0x88] sm:$0xff] %v1350_v41  ;;  %v897_v24 = vadd.f32 %v896_v52, %v736_v11  ;;  %v1190_v25 = vadd.f32 %v1189_v20, %v1188_v17 }
 0x148   : > { %1365 = vtanh.f32 %v934_v19  ;;  %v926_v27 = vadd.f32 %v925_v22, %v765_v38  ;;  %v1191_v28 = vpop.f32.mrf.mxu0 }
 0x149   : > { %v1271_v29 = vpop.f32.mrf.mxu1  ;;  %1367 = vtanh.f32 %v897_v24  ;;  %v741_v30 = vadd.f32 %v1190_v25, %v1612_v42 }
 0x14a   : > { %v937_v32 = vadd.f32 %v1271_v29, %v776_v23  ;;  %v1352_v34 = vpop.eup %1351  ;;  %1369 = vtanh.f32 %v926_v27  ;;  %v1192_v36 = vpop.f32.mrf.mxu0 }
 0x14b   : > { %v928_v39 = vpop.f32.mrf.mxu1  ;;  %990 = vst [vmem:[%s1626_s8 + $0x90] sm:$0xff] %v1352_v34  ;;  %v902_v40 = vadd.f32 %v1649_v37, %v741_v30  ;;  %v1193_v43 = vadd.f32 %v1192_v36, %v1191_v28 }
 0x14c   : > { %1371 = vtanh.f32 %v937_v32  ;;  %v929_v44 = vadd.f32 %v928_v39, %v768_v26 }
 0x14d   : > { %v1354_v45 = vpop.eup %1353  ;;  %1373 = vtanh.f32 %v902_v40  ;;  %v744_v31 = vadd.f32 %v1193_v43, %v1612_v42 }
 0x14e   : > { %998 = vst [vmem:[%s1626_s8 + $0xd0] sm:$0xff] %v1354_v45  ;;  %v1356_v46 = vpop.eup %1355  ;;  %1375 = vtanh.f32 %v929_v44 }
 0x14f   : > { %v1358_v47 = vpop.eup %1357  ;;  %991 = vst [vmem:[%s1626_s8 + $0x98] sm:$0xff] %v1356_v46  ;;  %v905_v49 = vadd.f32 %v1653_v48, %v744_v31 }
 0x150   : > { %996 = vst [vmem:[%s1626_s8 + $0xc0] sm:$0xff] %v1358_v47 }
 0x151   : > { %v1360_v37 = vpop.eup %1359  ;;  %1377 = vtanh.f32 %v905_v49 }
 0x152   : > { %999 = vst [vmem:[%s1626_s8 + $0xd8] sm:$0xff] %v1360_v37  ;;  %v1362_v50 = vpop.eup %1361 }
 0x153   : > { %v1364_v51 = vpop.eup %1363  ;;  %992 = vst [vmem:[%s1626_s8 + $0xa0] sm:$0xff] %v1362_v50 }
 0x154   : > { %997 = vst [vmem:[%s1626_s8 + $0xc8] sm:$0xff] %v1364_v51 }
 0x155   : > { %v1366_v42 = vpop.eup %1365 }
 0x156   : > { %1002 = vst [vmem:[%s1626_s8 + $0xf0] sm:$0xff] %v1366_v42  ;;  %v1368_v52 = vpop.eup %1367 }
 0x157   : > { %v1370_v53 = vpop.eup %1369  ;;  %993 = vst [vmem:[%s1626_s8 + $0xa8] sm:$0xff] %v1368_v52 }
 0x158   : > { %1000 = vst [vmem:[%s1626_s8 + $0xe0] sm:$0xff] %v1370_v53 }
 0x159   : > { %v1372_v54 = vpop.eup %1371 }
 0x15a   : > { %1003 = vst [vmem:[%s1626_s8 + $0xf8] sm:$0xff] %v1372_v54  ;;  %v1374_v48 = vpop.eup %1373 }
 0x15b   : > { %v1376_v55 = vpop.eup %1375  ;;  %994 = vst [vmem:[%s1626_s8 + $0xb0] sm:$0xff] %v1374_v48 }
 0x15c   : > { %1001 = vst [vmem:[%s1626_s8 + $0xe8] sm:$0xff] %v1376_v55 }
 0x15e   : > { %v1378_v56 = vpop.eup %1377 }
 0x15f   : > { %995 = vst [vmem:[%s1626_s8 + $0xb8] sm:$0xff] %v1378_v56 }
 0x160 PF: > { %s13_s12 = sadd.s32 1, %s1385_s12  }
 0x161   : > { %p10_p4 = scmp.ge.s32.totalorder %s13_s12, 4  }
 0x163   :  { %12 = sbr.rel (!%p10_p4) target bundleno = 1 (0x1), region = 62 }

</bundles_post_ra>
